<compile_context>
chip_gen: v7x
topology: tpu7x:2x2x1
jax: 0.10.0
libtpu: 0.0.40
codegen_flags: <defaults>
</compile_context>

<pallas_src>
import jax
import jax.numpy as jnp
from jax import lax
from jax.experimental import pallas as pl
from jax.experimental.pallas import tpu as pltpu


def _lstm_cell(gates, c, H):
    """Gate order [i, f, o, g] (wrapper permutes from PyTorch's [i, f, g, o])
    so the cell needs one sigmoid over 3H lanes + one tanh over H lanes."""
    sig = jax.nn.sigmoid(gates[:, : 3 * H])
    g = jnp.tanh(gates[:, 3 * H:])
    i = sig[:, 0 * H:1 * H]
    f = sig[:, 1 * H:2 * H]
    o = sig[:, 2 * H:3 * H]
    c_new = f * c + i * g
    h_new = o * jnp.tanh(c_new)
    return h_new, c_new


def seq2seq_kernel(tf_ref,          # SMEM (trg_len,) int32 teacher-force mask
                   gates_src_ref,   # (src_len, B, 4H) f32 precomputed enc input gates (+bias)
                   gates_tgt_ref,   # (trg_len, B, 4H) f32 precomputed dec input gates (+bias)
                   enc_whh_ref,     # (H, 4H)       bf16
                   w_cat_ref,       # (H, 4H + Vp)  bf16  [dec_whh | fc_w], vocab-padded
                   dec_wf_ref,      # (Vp, 4H)      bf16  fused dec_emb @ dec_wih, vocab-padded
                   dec_b_ref,       # (1, 4H)  f32
                   fc_b_ref,        # (1, Vp)  f32  pad lanes = -1e30 (argmax guard)
                   out_ref):        # (trg_len, B, Vp) f32
    src_len, B, fourH = gates_src_ref.shape
    H = fourH // 4
    trg_len, _, Vp = out_ref.shape

    # outputs[0] stays zero (torch.zeros init; decoder fills rows 1..T-1).
    out_ref[0] = jnp.zeros((B, Vp), out_ref.dtype)

    # ---------------- encoder: recurrence only (inputs pre-projected) -------
    enc_whh = enc_whh_ref[...]

    def enc_body(t, carry):
        h, c = carry
        gates = gates_src_ref[t] + jnp.dot(
            h.astype(enc_whh.dtype), enc_whh, preferred_element_type=jnp.float32)
        return _lstm_cell(gates, c, H)

    h0 = jnp.zeros((B, H), jnp.float32)
    c0 = jnp.zeros((B, H), jnp.float32)
    h, c = lax.fori_loop(0, src_len, enc_body, (h0, c0), unroll=True)

    # ---------------- decoder: single fused 256-wide matmul per step --------
    w_cat = w_cat_ref[...]                                 # (H, 4H+Vp)
    dec_wf = dec_wf_ref[...]                               # (Vp, 4H)
    fc_bias = jnp.broadcast_to(fc_b_ref[...], (B, Vp))     # hoisted (no per-step broadcast)
    dec_bias = jnp.broadcast_to(dec_b_ref[...], (B, fourH))

    # hproj carry = h @ dec_whh; prime it from the encoder's final hidden.
    hproj = jnp.dot(h.astype(w_cat.dtype), w_cat,
                    preferred_element_type=jnp.float32)[:, :fourH]
    gx = gates_tgt_ref[0]                                  # x = target[0]

    def dec_body(t, carry):
        hproj, c, gx = carry
        gates = gx + hproj
        h, c = _lstm_cell(gates, c, H)

        # one MXU push gives both next-step hidden projection and the logits
        combined = jnp.dot(h.astype(w_cat.dtype), w_cat,
                           preferred_element_type=jnp.float32)   # (B, 4H+Vp)
        hproj_next = combined[:, :fourH]
        logits = combined[:, fourH:] + fc_bias                   # (B, Vp)
        out_ref[t] = logits                                      # lane-dense store

        # greedy feedback: argmax one-hot (first-max tie break) -> input gates.
        # Pad lanes hold -1e30 in fc_bias, so a pad token can never be selected.
        mx = jnp.max(logits, axis=-1, keepdims=True)
        idx = lax.broadcasted_iota(jnp.int32, logits.shape, 1)
        cand = jnp.where(logits == mx, idx, jnp.int32(2 ** 31 - 1))
        amax = jnp.min(cand, axis=-1, keepdims=True)             # (B, 1) first max index
        greedy_oh = (idx == amax).astype(dec_wf.dtype)           # (B, Vp)
        greedy_gx = jnp.dot(greedy_oh, dec_wf,
                            preferred_element_type=jnp.float32) + dec_bias

        # teacher forcing: select precomputed target[t] gates vs greedy gates.
        gx_next = jnp.where(tf_ref[t] == 1, gates_tgt_ref[t], greedy_gx)
        return hproj_next, c, gx_next

    lax.fori_loop(1, trg_len, dec_body, (hproj, c, gx), unroll=True)


def _reorder_ifgo_to_ifog(w, axis=-1):
    """Permute PyTorch LSTM gate blocks [i, f, g, o] -> [i, f, o, g]."""
    i, f, g, o = jnp.split(w, 4, axis=axis)
    return jnp.concatenate([i, f, o, g], axis=axis)


def seq2seq_forward(source, target, params, tf_mask):
    """source: (src_len, B) int32, target: (trg_len, B) int32,
    tf_mask: (trg_len,) int32. Returns (trg_len, B, trg_vocab) f32."""
    src_len, B = source.shape
    trg_len, _ = target.shape
    Vt = params["dec_emb"].shape[0]
    H = params["enc_whh"].shape[0]
    Vp = ((Vt + 127) // 128) * 128          # pad logits / fc lane dim to 128 multiple

    f32, bf16 = jnp.float32, jnp.bfloat16
    hp = jax.lax.Precision.HIGHEST

    # Fuse embedding with W_ih, hoist ALL input projections (+ bias) out of the
    # kernel, and permute gate columns to [i, f, o, g].
    enc_W = _reorder_ifgo_to_ifog(
        jnp.dot(params["enc_emb"], params["enc_wih"], precision=hp))   # (Vs, 4H)
    dec_W = _reorder_ifgo_to_ifog(
        jnp.dot(params["dec_emb"], params["dec_wih"], precision=hp))   # (Vt, 4H)
    enc_b = _reorder_ifgo_to_ifog(params["enc_b"])
    dec_b = _reorder_ifgo_to_ifog(params["dec_b"]).astype(f32)
    enc_whh = _reorder_ifgo_to_ifog(params["enc_whh"]).astype(bf16)
    dec_whh = _reorder_ifgo_to_ifog(params["dec_whh"])

    gates_src = (enc_W[source] + enc_b).astype(f32)       # (src_len, B, 4H)
    gates_tgt = (dec_W[target] + dec_b).astype(f32)       # (trg_len, B, 4H)

    # Vocab-padded MXU weights. Pad fc bias lanes with -1e30 so greedy argmax
    # never selects a pad lane (do NOT change to 0); pad rows of dec_W are zero.
    dec_W_pad = jnp.zeros((Vp, 4 * H), f32).at[:Vt].set(dec_W).astype(bf16)
    fc_w_pad = jnp.zeros((H, Vp), f32).at[:, :Vt].set(params["fc_w"])
    fc_b_pad = jnp.full((1, Vp), -1e30, f32).at[:, :Vt].set(params["fc_b"])
    # Fused decoder RHS: one 256-wide matmul per step gives gates-proj | logits.
    w_cat = jnp.concatenate([dec_whh, fc_w_pad], axis=1).astype(bf16)  # (H, 4H+Vp)

    # Whole-array VMEM residency is <1 MiB at these shapes; guard it explicitly
    # so scaling seq_len*B doesn't silently blow VMEM (v7x has 64 MiB physical).
    est_vmem = 4 * (gates_src.size + gates_tgt.size + trg_len * B * Vp
                    + dec_b.size + fc_b_pad.size) \
             + 2 * (enc_whh.size + w_cat.size + dec_W_pad.size)
    assert est_vmem < 32 * 1024 * 1024, (
        "seq2seq kernel: arrays no longer fit VMEM; add a time-axis grid / "
        "streaming DMA before scaling")

    vmem = pl.BlockSpec(memory_space=pltpu.MemorySpace.VMEM)
    smem = pl.BlockSpec(memory_space=pltpu.MemorySpace.SMEM)

    out = pl.pallas_call(
        seq2seq_kernel,
        out_shape=jax.ShapeDtypeStruct((trg_len, B, Vp), f32),
        in_specs=[smem] + [vmem] * 7,
        out_specs=vmem,
        compiler_params=pltpu.CompilerParams(
            vmem_limit_bytes=int(min(max(4 * est_vmem, 8 << 20), 64 << 20))),
    )(tf_mask, gates_src, gates_tgt, enc_whh, w_cat, dec_W_pad, dec_b, fc_b_pad)

    return out[..., :Vt]   # crop padded vocab lanes back to the real size


def init_params(key, src_vocab, trg_vocab, emb_dim, hidden):
    ks = jax.random.split(key, 11)
    s = 0.1
    return {
        "enc_emb": s * jax.random.normal(ks[0], (src_vocab, emb_dim), jnp.float32),
        "enc_wih": s * jax.random.normal(ks[1], (emb_dim, 4 * hidden), jnp.float32),
        "enc_whh": s * jax.random.normal(ks[2], (hidden, 4 * hidden), jnp.float32),
        "enc_b":   s * jax.random.normal(ks[3], (1, 4 * hidden), jnp.float32),
        "dec_emb": s * jax.random.normal(ks[4], (trg_vocab, emb_dim), jnp.float32),
        "dec_wih": s * jax.random.normal(ks[5], (emb_dim, 4 * hidden), jnp.float32),
        "dec_whh": s * jax.random.normal(ks[6], (hidden, 4 * hidden), jnp.float32),
        "dec_b":   s * jax.random.normal(ks[7], (1, 4 * hidden), jnp.float32),
        "fc_w":    s * jax.random.normal(ks[8], (hidden, trg_vocab), jnp.float32),
        "fc_b":    s * jax.random.normal(ks[9], (1, trg_vocab), jnp.float32),
    }


if __name__ == "__main__":
    # small shapes consistent with the module's forward (batch_size = 64)
    src_len, trg_len = 7, 8
    batch = 64                      # amortize the serial recurrence over MXU rows
    src_vocab, trg_vocab = 40, 48
    emb_dim, hidden = 32, 32

    key = jax.random.PRNGKey(0)
    kp, ksrc, ktgt, ktf = jax.random.split(key, 4)

    params = init_params(kp, src_vocab, trg_vocab, emb_dim, hidden)
    source = jax.random.randint(ksrc, (src_len, batch), 0, src_vocab, jnp.int32)
    target = jax.random.randint(ktgt, (trg_len, batch), 0, trg_vocab, jnp.int32)
    # TODO(synk): python `random.random()` teacher-forcing replaced by a deterministic
    # jax.random bernoulli mask (ratio = 0.5, one draw per step) passed in via SMEM.
    tf_mask = jax.random.bernoulli(ktf, 0.5, (trg_len,)).astype(jnp.int32)

    fwd = jax.jit(seq2seq_forward)
    outputs = fwd(source, target, params, tf_mask)
    outputs = jax.block_until_ready(outputs)

    assert outputs.shape == (trg_len, batch, trg_vocab)
    assert bool(jnp.all(jnp.isfinite(outputs)))
    assert bool(jnp.all(outputs[0] == 0.0))  # outputs[0] stays zero, like the reference
    print("KERNEL_OK")
</pallas_src>

<mosaic_0001>
module attributes {stable_mosaic.version = 11 : i64} {
  func.func @seq2seq_kernel(%arg0: memref<8xi32, #tpu.memory_space<smem>>, %arg1: memref<7x64x128xf32, #tpu.memory_space<vmem>>, %arg2: memref<8x64x128xf32, #tpu.memory_space<vmem>>, %arg3: memref<32x128xbf16, #tpu.memory_space<vmem>>, %arg4: memref<32x256xbf16, #tpu.memory_space<vmem>>, %arg5: memref<128x128xbf16, #tpu.memory_space<vmem>>, %arg6: memref<1x128xf32, #tpu.memory_space<vmem>>, %arg7: memref<1x128xf32, #tpu.memory_space<vmem>>, %arg8: memref<8x64x128xf32, #tpu.memory_space<vmem>>) attributes {dimension_semantics = [], scalar_prefetch = 0 : i64, scratch_operands = 0 : i64, tpu.core_type = #tpu.core_type<tc>} {
    %cst = arith.constant 0.000000e+00 : f32
    %0 = vector.broadcast %cst : f32 to vector<64x128xf32>
    %c0 = arith.constant 0 : index
    %c0_0 = arith.constant 0 : index
    %c0_1 = arith.constant 0 : index
    %1 = vector.load %arg8[%c0, %c0_0, %c0_1] : memref<8x64x128xf32, #tpu.memory_space<vmem>>, vector<1x64x128xf32>
    %2 = vector.shape_cast %1 : vector<1x64x128xf32> to vector<64x128xf32>
    %3 = vector.shape_cast %0 : vector<64x128xf32> to vector<1x64x128xf32>
    tpu.vector_store %arg8[%c0, %c0_0, %c0_1], %3 {strides = array<i32>} : memref<8x64x128xf32, #tpu.memory_space<vmem>>, vector<1x64x128xf32>,
    %c0_2 = arith.constant 0 : index
    %c0_3 = arith.constant 0 : index
    %4 = vector.load %arg3[%c0_2, %c0_3] : memref<32x128xbf16, #tpu.memory_space<vmem>>, vector<32x128xbf16>
    %cst_4 = arith.constant 0.000000e+00 : f32
    %5 = vector.broadcast %cst_4 : f32 to vector<64x32xf32>
    %cst_5 = arith.constant 0.000000e+00 : f32
    %6 = vector.broadcast %cst_5 : f32 to vector<64x32xf32>
    %c0_i32 = arith.constant 0 : i32
    %7 = arith.index_cast %c0_i32 : i32 to index
    %c0_6 = arith.constant 0 : index
    %c0_7 = arith.constant 0 : index
    %8 = vector.load %arg1[%7, %c0_6, %c0_7] : memref<7x64x128xf32, #tpu.memory_space<vmem>>, vector<1x64x128xf32>
    %9 = vector.shape_cast %8 : vector<1x64x128xf32> to vector<64x128xf32>
    %10 = arith.truncf %5 : vector<64x32xf32> to vector<64x32xbf16>
    %cst_8 = arith.constant dense<0.000000e+00> : vector<64x128xf32>
    %11 = tpu.matmul %10, %4, %cst_8 {dimension_numbers = #tpu.dot_dimension_numbers<[1], [0], [0], [1], [0, 0, 1, 1], [], []>} : vector<64x32xbf16>, vector<32x128xbf16>, vector<64x128xf32> -> vector<64x128xf32>
    %12 = arith.addf %9, %11 : vector<64x128xf32>
    %13 = vector.extract_strided_slice %12 {offsets = [0, 0], sizes = [64, 96], strides = [1, 1]} : vector<64x128xf32> to vector<64x96xf32>
    %14 = arith.negf %13 : vector<64x96xf32>
    %15 = math.exp %14 : vector<64x96xf32>
    %cst_9 = arith.constant 1.000000e+00 : f32
    %16 = vector.broadcast %cst_9 : f32 to vector<64x96xf32>
    %17 = arith.addf %16, %15 : vector<64x96xf32>
    %18 = arith.divf %16, %17 : vector<64x96xf32>
    %19 = vector.extract_strided_slice %12 {offsets = [0, 96], sizes = [64, 32], strides = [1, 1]} : vector<64x128xf32> to vector<64x32xf32>
    %20 = math.tanh %19 : vector<64x32xf32>
    %21 = vector.extract_strided_slice %18 {offsets = [0, 0], sizes = [64, 32], strides = [1, 1]} : vector<64x96xf32> to vector<64x32xf32>
    %22 = vector.extract_strided_slice %18 {offsets = [0, 32], sizes = [64, 32], strides = [1, 1]} : vector<64x96xf32> to vector<64x32xf32>
    %23 = vector.extract_strided_slice %18 {offsets = [0, 64], sizes = [64, 32], strides = [1, 1]} : vector<64x96xf32> to vector<64x32xf32>
    %24 = arith.mulf %22, %6 : vector<64x32xf32>
    %25 = arith.mulf %21, %20 : vector<64x32xf32>
    %26 = arith.addf %24, %25 : vector<64x32xf32>
    %27 = math.tanh %26 : vector<64x32xf32>
    %28 = arith.mulf %23, %27 : vector<64x32xf32>
    %c1_i32 = arith.constant 1 : i32
    %29 = arith.index_cast %c1_i32 : i32 to index
    %c0_10 = arith.constant 0 : index
    %c0_11 = arith.constant 0 : index
    %30 = vector.load %arg1[%29, %c0_10, %c0_11] : memref<7x64x128xf32, #tpu.memory_space<vmem>>, vector<1x64x128xf32>
    %31 = vector.shape_cast %30 : vector<1x64x128xf32> to vector<64x128xf32>
    %32 = arith.truncf %28 : vector<64x32xf32> to vector<64x32xbf16>
    %cst_12 = arith.constant dense<0.000000e+00> : vector<64x128xf32>
    %33 = tpu.matmul %32, %4, %cst_12 {dimension_numbers = #tpu.dot_dimension_numbers<[1], [0], [0], [1], [0, 0, 1, 1], [], []>} : vector<64x32xbf16>, vector<32x128xbf16>, vector<64x128xf32> -> vector<64x128xf32>
    %34 = arith.addf %31, %33 : vector<64x128xf32>
    %35 = vector.extract_strided_slice %34 {offsets = [0, 0], sizes = [64, 96], strides = [1, 1]} : vector<64x128xf32> to vector<64x96xf32>
    %36 = arith.negf %35 : vector<64x96xf32>
    %37 = math.exp %36 : vector<64x96xf32>
    %cst_13 = arith.constant 1.000000e+00 : f32
    %38 = vector.broadcast %cst_13 : f32 to vector<64x96xf32>
    %39 = arith.addf %38, %37 : vector<64x96xf32>
    %40 = arith.divf %38, %39 : vector<64x96xf32>
    %41 = vector.extract_strided_slice %34 {offsets = [0, 96], sizes = [64, 32], strides = [1, 1]} : vector<64x128xf32> to vector<64x32xf32>
    %42 = math.tanh %41 : vector<64x32xf32>
    %43 = vector.extract_strided_slice %40 {offsets = [0, 0], sizes = [64, 32], strides = [1, 1]} : vector<64x96xf32> to vector<64x32xf32>
    %44 = vector.extract_strided_slice %40 {offsets = [0, 32], sizes = [64, 32], strides = [1, 1]} : vector<64x96xf32> to vector<64x32xf32>
    %45 = vector.extract_strided_slice %40 {offsets = [0, 64], sizes = [64, 32], strides = [1, 1]} : vector<64x96xf32> to vector<64x32xf32>
    %46 = arith.mulf %44, %26 : vector<64x32xf32>
    %47 = arith.mulf %43, %42 : vector<64x32xf32>
    %48 = arith.addf %46, %47 : vector<64x32xf32>
    %49 = math.tanh %48 : vector<64x32xf32>
    %50 = arith.mulf %45, %49 : vector<64x32xf32>
    %c2_i32 = arith.constant 2 : i32
    %51 = arith.index_cast %c2_i32 : i32 to index
    %c0_14 = arith.constant 0 : index
    %c0_15 = arith.constant 0 : index
    %52 = vector.load %arg1[%51, %c0_14, %c0_15] : memref<7x64x128xf32, #tpu.memory_space<vmem>>, vector<1x64x128xf32>
    %53 = vector.shape_cast %52 : vector<1x64x128xf32> to vector<64x128xf32>
    %54 = arith.truncf %50 : vector<64x32xf32> to vector<64x32xbf16>
    %cst_16 = arith.constant dense<0.000000e+00> : vector<64x128xf32>
    %55 = tpu.matmul %54, %4, %cst_16 {dimension_numbers = #tpu.dot_dimension_numbers<[1], [0], [0], [1], [0, 0, 1, 1], [], []>} : vector<64x32xbf16>, vector<32x128xbf16>, vector<64x128xf32> -> vector<64x128xf32>
    %56 = arith.addf %53, %55 : vector<64x128xf32>
    %57 = vector.extract_strided_slice %56 {offsets = [0, 0], sizes = [64, 96], strides = [1, 1]} : vector<64x128xf32> to vector<64x96xf32>
    %58 = arith.negf %57 : vector<64x96xf32>
    %59 = math.exp %58 : vector<64x96xf32>
    %cst_17 = arith.constant 1.000000e+00 : f32
    %60 = vector.broadcast %cst_17 : f32 to vector<64x96xf32>
    %61 = arith.addf %60, %59 : vector<64x96xf32>
    %62 = arith.divf %60, %61 : vector<64x96xf32>
    %63 = vector.extract_strided_slice %56 {offsets = [0, 96], sizes = [64, 32], strides = [1, 1]} : vector<64x128xf32> to vector<64x32xf32>
    %64 = math.tanh %63 : vector<64x32xf32>
    %65 = vector.extract_strided_slice %62 {offsets = [0, 0], sizes = [64, 32], strides = [1, 1]} : vector<64x96xf32> to vector<64x32xf32>
    %66 = vector.extract_strided_slice %62 {offsets = [0, 32], sizes = [64, 32], strides = [1, 1]} : vector<64x96xf32> to vector<64x32xf32>
    %67 = vector.extract_strided_slice %62 {offsets = [0, 64], sizes = [64, 32], strides = [1, 1]} : vector<64x96xf32> to vector<64x32xf32>
    %68 = arith.mulf %66, %48 : vector<64x32xf32>
    %69 = arith.mulf %65, %64 : vector<64x32xf32>
    %70 = arith.addf %68, %69 : vector<64x32xf32>
    %71 = math.tanh %70 : vector<64x32xf32>
    %72 = arith.mulf %67, %71 : vector<64x32xf32>
    %c3_i32 = arith.constant 3 : i32
    %73 = arith.index_cast %c3_i32 : i32 to index
    %c0_18 = arith.constant 0 : index
    %c0_19 = arith.constant 0 : index
    %74 = vector.load %arg1[%73, %c0_18, %c0_19] : memref<7x64x128xf32, #tpu.memory_space<vmem>>, vector<1x64x128xf32>
    %75 = vector.shape_cast %74 : vector<1x64x128xf32> to vector<64x128xf32>
    %76 = arith.truncf %72 : vector<64x32xf32> to vector<64x32xbf16>
    %cst_20 = arith.constant dense<0.000000e+00> : vector<64x128xf32>
    %77 = tpu.matmul %76, %4, %cst_20 {dimension_numbers = #tpu.dot_dimension_numbers<[1], [0], [0], [1], [0, 0, 1, 1], [], []>} : vector<64x32xbf16>, vector<32x128xbf16>, vector<64x128xf32> -> vector<64x128xf32>
    %78 = arith.addf %75, %77 : vector<64x128xf32>
    %79 = vector.extract_strided_slice %78 {offsets = [0, 0], sizes = [64, 96], strides = [1, 1]} : vector<64x128xf32> to vector<64x96xf32>
    %80 = arith.negf %79 : vector<64x96xf32>
    %81 = math.exp %80 : vector<64x96xf32>
    %cst_21 = arith.constant 1.000000e+00 : f32
    %82 = vector.broadcast %cst_21 : f32 to vector<64x96xf32>
    %83 = arith.addf %82, %81 : vector<64x96xf32>
    %84 = arith.divf %82, %83 : vector<64x96xf32>
    %85 = vector.extract_strided_slice %78 {offsets = [0, 96], sizes = [64, 32], strides = [1, 1]} : vector<64x128xf32> to vector<64x32xf32>
    %86 = math.tanh %85 : vector<64x32xf32>
    %87 = vector.extract_strided_slice %84 {offsets = [0, 0], sizes = [64, 32], strides = [1, 1]} : vector<64x96xf32> to vector<64x32xf32>
    %88 = vector.extract_strided_slice %84 {offsets = [0, 32], sizes = [64, 32], strides = [1, 1]} : vector<64x96xf32> to vector<64x32xf32>
    %89 = vector.extract_strided_slice %84 {offsets = [0, 64], sizes = [64, 32], strides = [1, 1]} : vector<64x96xf32> to vector<64x32xf32>
    %90 = arith.mulf %88, %70 : vector<64x32xf32>
    %91 = arith.mulf %87, %86 : vector<64x32xf32>
    %92 = arith.addf %90, %91 : vector<64x32xf32>
    %93 = math.tanh %92 : vector<64x32xf32>
    %94 = arith.mulf %89, %93 : vector<64x32xf32>
    %c4_i32 = arith.constant 4 : i32
    %95 = arith.index_cast %c4_i32 : i32 to index
    %c0_22 = arith.constant 0 : index
    %c0_23 = arith.constant 0 : index
    %96 = vector.load %arg1[%95, %c0_22, %c0_23] : memref<7x64x128xf32, #tpu.memory_space<vmem>>, vector<1x64x128xf32>
    %97 = vector.shape_cast %96 : vector<1x64x128xf32> to vector<64x128xf32>
    %98 = arith.truncf %94 : vector<64x32xf32> to vector<64x32xbf16>
    %cst_24 = arith.constant dense<0.000000e+00> : vector<64x128xf32>
    %99 = tpu.matmul %98, %4, %cst_24 {dimension_numbers = #tpu.dot_dimension_numbers<[1], [0], [0], [1], [0, 0, 1, 1], [], []>} : vector<64x32xbf16>, vector<32x128xbf16>, vector<64x128xf32> -> vector<64x128xf32>
    %100 = arith.addf %97, %99 : vector<64x128xf32>
    %101 = vector.extract_strided_slice %100 {offsets = [0, 0], sizes = [64, 96], strides = [1, 1]} : vector<64x128xf32> to vector<64x96xf32>
    %102 = arith.negf %101 : vector<64x96xf32>
    %103 = math.exp %102 : vector<64x96xf32>
    %cst_25 = arith.constant 1.000000e+00 : f32
    %104 = vector.broadcast %cst_25 : f32 to vector<64x96xf32>
    %105 = arith.addf %104, %103 : vector<64x96xf32>
    %106 = arith.divf %104, %105 : vector<64x96xf32>
    %107 = vector.extract_strided_slice %100 {offsets = [0, 96], sizes = [64, 32], strides = [1, 1]} : vector<64x128xf32> to vector<64x32xf32>
    %108 = math.tanh %107 : vector<64x32xf32>
    %109 = vector.extract_strided_slice %106 {offsets = [0, 0], sizes = [64, 32], strides = [1, 1]} : vector<64x96xf32> to vector<64x32xf32>
    %110 = vector.extract_strided_slice %106 {offsets = [0, 32], sizes = [64, 32], strides = [1, 1]} : vector<64x96xf32> to vector<64x32xf32>
    %111 = vector.extract_strided_slice %106 {offsets = [0, 64], sizes = [64, 32], strides = [1, 1]} : vector<64x96xf32> to vector<64x32xf32>
    %112 = arith.mulf %110, %92 : vector<64x32xf32>
    %113 = arith.mulf %109, %108 : vector<64x32xf32>
    %114 = arith.addf %112, %113 : vector<64x32xf32>
    %115 = math.tanh %114 : vector<64x32xf32>
    %116 = arith.mulf %111, %115 : vector<64x32xf32>
    %c5_i32 = arith.constant 5 : i32
    %117 = arith.index_cast %c5_i32 : i32 to index
    %c0_26 = arith.constant 0 : index
    %c0_27 = arith.constant 0 : index
    %118 = vector.load %arg1[%117, %c0_26, %c0_27] : memref<7x64x128xf32, #tpu.memory_space<vmem>>, vector<1x64x128xf32>
    %119 = vector.shape_cast %118 : vector<1x64x128xf32> to vector<64x128xf32>
    %120 = arith.truncf %116 : vector<64x32xf32> to vector<64x32xbf16>
    %cst_28 = arith.constant dense<0.000000e+00> : vector<64x128xf32>
    %121 = tpu.matmul %120, %4, %cst_28 {dimension_numbers = #tpu.dot_dimension_numbers<[1], [0], [0], [1], [0, 0, 1, 1], [], []>} : vector<64x32xbf16>, vector<32x128xbf16>, vector<64x128xf32> -> vector<64x128xf32>
    %122 = arith.addf %119, %121 : vector<64x128xf32>
    %123 = vector.extract_strided_slice %122 {offsets = [0, 0], sizes = [64, 96], strides = [1, 1]} : vector<64x128xf32> to vector<64x96xf32>
    %124 = arith.negf %123 : vector<64x96xf32>
    %125 = math.exp %124 : vector<64x96xf32>
    %cst_29 = arith.constant 1.000000e+00 : f32
    %126 = vector.broadcast %cst_29 : f32 to vector<64x96xf32>
    %127 = arith.addf %126, %125 : vector<64x96xf32>
    %128 = arith.divf %126, %127 : vector<64x96xf32>
    %129 = vector.extract_strided_slice %122 {offsets = [0, 96], sizes = [64, 32], strides = [1, 1]} : vector<64x128xf32> to vector<64x32xf32>
    %130 = math.tanh %129 : vector<64x32xf32>
    %131 = vector.extract_strided_slice %128 {offsets = [0, 0], sizes = [64, 32], strides = [1, 1]} : vector<64x96xf32> to vector<64x32xf32>
    %132 = vector.extract_strided_slice %128 {offsets = [0, 32], sizes = [64, 32], strides = [1, 1]} : vector<64x96xf32> to vector<64x32xf32>
    %133 = vector.extract_strided_slice %128 {offsets = [0, 64], sizes = [64, 32], strides = [1, 1]} : vector<64x96xf32> to vector<64x32xf32>
    %134 = arith.mulf %132, %114 : vector<64x32xf32>
    %135 = arith.mulf %131, %130 : vector<64x32xf32>
    %136 = arith.addf %134, %135 : vector<64x32xf32>
    %137 = math.tanh %136 : vector<64x32xf32>
    %138 = arith.mulf %133, %137 : vector<64x32xf32>
    %c6_i32 = arith.constant 6 : i32
    %139 = arith.index_cast %c6_i32 : i32 to index
    %c0_30 = arith.constant 0 : index
    %c0_31 = arith.constant 0 : index
    %140 = vector.load %arg1[%139, %c0_30, %c0_31] : memref<7x64x128xf32, #tpu.memory_space<vmem>>, vector<1x64x128xf32>
    %141 = vector.shape_cast %140 : vector<1x64x128xf32> to vector<64x128xf32>
    %142 = arith.truncf %138 : vector<64x32xf32> to vector<64x32xbf16>
    %cst_32 = arith.constant dense<0.000000e+00> : vector<64x128xf32>
    %143 = tpu.matmul %142, %4, %cst_32 {dimension_numbers = #tpu.dot_dimension_numbers<[1], [0], [0], [1], [0, 0, 1, 1], [], []>} : vector<64x32xbf16>, vector<32x128xbf16>, vector<64x128xf32> -> vector<64x128xf32>
    %144 = arith.addf %141, %143 : vector<64x128xf32>
    %145 = vector.extract_strided_slice %144 {offsets = [0, 0], sizes = [64, 96], strides = [1, 1]} : vector<64x128xf32> to vector<64x96xf32>
    %146 = arith.negf %145 : vector<64x96xf32>
    %147 = math.exp %146 : vector<64x96xf32>
    %cst_33 = arith.constant 1.000000e+00 : f32
    %148 = vector.broadcast %cst_33 : f32 to vector<64x96xf32>
    %149 = arith.addf %148, %147 : vector<64x96xf32>
    %150 = arith.divf %148, %149 : vector<64x96xf32>
    %151 = vector.extract_strided_slice %144 {offsets = [0, 96], sizes = [64, 32], strides = [1, 1]} : vector<64x128xf32> to vector<64x32xf32>
    %152 = math.tanh %151 : vector<64x32xf32>
    %153 = vector.extract_strided_slice %150 {offsets = [0, 0], sizes = [64, 32], strides = [1, 1]} : vector<64x96xf32> to vector<64x32xf32>
    %154 = vector.extract_strided_slice %150 {offsets = [0, 32], sizes = [64, 32], strides = [1, 1]} : vector<64x96xf32> to vector<64x32xf32>
    %155 = vector.extract_strided_slice %150 {offsets = [0, 64], sizes = [64, 32], strides = [1, 1]} : vector<64x96xf32> to vector<64x32xf32>
    %156 = arith.mulf %154, %136 : vector<64x32xf32>
    %157 = arith.mulf %153, %152 : vector<64x32xf32>
    %158 = arith.addf %156, %157 : vector<64x32xf32>
    %159 = math.tanh %158 : vector<64x32xf32>
    %160 = arith.mulf %155, %159 : vector<64x32xf32>
    %c7_i32 = arith.constant 7 : i32
    %c0_34 = arith.constant 0 : index
    %c0_35 = arith.constant 0 : index
    %161 = vector.load %arg4[%c0_34, %c0_35] : memref<32x256xbf16, #tpu.memory_space<vmem>>, vector<32x256xbf16>
    %c0_36 = arith.constant 0 : index
    %c0_37 = arith.constant 0 : index
    %162 = vector.load %arg5[%c0_36, %c0_37] : memref<128x128xbf16, #tpu.memory_space<vmem>>, vector<128x128xbf16>
    %c0_38 = arith.constant 0 : index
    %c0_39 = arith.constant 0 : index
    %163 = vector.load %arg7[%c0_38, %c0_39] : memref<1x128xf32, #tpu.memory_space<vmem>>, vector<1x128xf32>
    %164 = vector.shape_cast %163 : vector<1x128xf32> to vector<1x128xf32>
    %165 = vector.broadcast %164 : vector<1x128xf32> to vector<64x128xf32>
    %c0_40 = arith.constant 0 : index
    %c0_41 = arith.constant 0 : index
    %166 = vector.load %arg6[%c0_40, %c0_41] : memref<1x128xf32, #tpu.memory_space<vmem>>, vector<1x128xf32>
    %167 = vector.shape_cast %166 : vector<1x128xf32> to vector<1x128xf32>
    %168 = vector.broadcast %167 : vector<1x128xf32> to vector<64x128xf32>
    %169 = arith.truncf %160 : vector<64x32xf32> to vector<64x32xbf16>
    %cst_42 = arith.constant dense<0.000000e+00> : vector<64x256xf32>
    %170 = tpu.matmul %169, %161, %cst_42 {dimension_numbers = #tpu.dot_dimension_numbers<[1], [0], [0], [1], [0, 0, 1, 1], [], []>} : vector<64x32xbf16>, vector<32x256xbf16>, vector<64x256xf32> -> vector<64x256xf32>
    %171 = vector.extract_strided_slice %170 {offsets = [0, 0], sizes = [64, 128], strides = [1, 1]} : vector<64x256xf32> to vector<64x128xf32>
    %c0_43 = arith.constant 0 : index
    %c0_44 = arith.constant 0 : index
    %c0_45 = arith.constant 0 : index
    %172 = vector.load %arg2[%c0_43, %c0_44, %c0_45] : memref<8x64x128xf32, #tpu.memory_space<vmem>>, vector<1x64x128xf32>
    %173 = vector.shape_cast %172 : vector<1x64x128xf32> to vector<64x128xf32>
    %c1_i32_46 = arith.constant 1 : i32
    %174 = arith.addf %173, %171 : vector<64x128xf32>
    %175 = vector.extract_strided_slice %174 {offsets = [0, 0], sizes = [64, 96], strides = [1, 1]} : vector<64x128xf32> to vector<64x96xf32>
    %176 = arith.negf %175 : vector<64x96xf32>
    %177 = math.exp %176 : vector<64x96xf32>
    %cst_47 = arith.constant 1.000000e+00 : f32
    %178 = vector.broadcast %cst_47 : f32 to vector<64x96xf32>
    %179 = arith.addf %178, %177 : vector<64x96xf32>
    %180 = arith.divf %178, %179 : vector<64x96xf32>
    %181 = vector.extract_strided_slice %174 {offsets = [0, 96], sizes = [64, 32], strides = [1, 1]} : vector<64x128xf32> to vector<64x32xf32>
    %182 = math.tanh %181 : vector<64x32xf32>
    %183 = vector.extract_strided_slice %180 {offsets = [0, 0], sizes = [64, 32], strides = [1, 1]} : vector<64x96xf32> to vector<64x32xf32>
    %184 = vector.extract_strided_slice %180 {offsets = [0, 32], sizes = [64, 32], strides = [1, 1]} : vector<64x96xf32> to vector<64x32xf32>
    %185 = vector.extract_strided_slice %180 {offsets = [0, 64], sizes = [64, 32], strides = [1, 1]} : vector<64x96xf32> to vector<64x32xf32>
    %186 = arith.mulf %184, %158 : vector<64x32xf32>
    %187 = arith.mulf %183, %182 : vector<64x32xf32>
    %188 = arith.addf %186, %187 : vector<64x32xf32>
    %189 = math.tanh %188 : vector<64x32xf32>
    %190 = arith.mulf %185, %189 : vector<64x32xf32>
    %191 = arith.truncf %190 : vector<64x32xf32> to vector<64x32xbf16>
    %cst_48 = arith.constant dense<0.000000e+00> : vector<64x256xf32>
    %192 = tpu.matmul %191, %161, %cst_48 {dimension_numbers = #tpu.dot_dimension_numbers<[1], [0], [0], [1], [0, 0, 1, 1], [], []>} : vector<64x32xbf16>, vector<32x256xbf16>, vector<64x256xf32> -> vector<64x256xf32>
    %193 = vector.extract_strided_slice %192 {offsets = [0, 0], sizes = [64, 128], strides = [1, 1]} : vector<64x256xf32> to vector<64x128xf32>
    %194 = vector.extract_strided_slice %192 {offsets = [0, 128], sizes = [64, 128], strides = [1, 1]} : vector<64x256xf32> to vector<64x128xf32>
    %195 = arith.addf %194, %165 : vector<64x128xf32>
    %196 = arith.index_cast %c1_i32_46 : i32 to index
    %c0_49 = arith.constant 0 : index
    %c0_50 = arith.constant 0 : index
    %197 = vector.load %arg8[%196, %c0_49, %c0_50] : memref<8x64x128xf32, #tpu.memory_space<vmem>>, vector<1x64x128xf32>
    %198 = vector.shape_cast %197 : vector<1x64x128xf32> to vector<64x128xf32>
    %199 = vector.shape_cast %195 : vector<64x128xf32> to vector<1x64x128xf32>
    tpu.vector_store %arg8[%196, %c0_49, %c0_50], %199 {strides = array<i32>} : memref<8x64x128xf32, #tpu.memory_space<vmem>>, vector<1x64x128xf32>,
    %cst_51 = arith.constant dense<0xFF800000> : vector<64xf32>
    %200 = vector.multi_reduction <maximumf>, %195, %cst_51 [1] : vector<64x128xf32> to vector<64xf32>
    %201 = vector.shape_cast %200 : vector<64xf32> to vector<64x1xf32>
    %202 = tpu.iota {dimensions = array<i32: 1>} : vector<64x128xi32>
    %203 = vector.broadcast %201 : vector<64x1xf32> to vector<64x128xf32>
    %204 = arith.cmpf oeq, %195, %203 : vector<64x128xf32>
    %c2147483647_i32 = arith.constant 2147483647 : i32
    %205 = vector.broadcast %c2147483647_i32 : i32 to vector<64x128xi32>
    %206 = arith.select %204, %202, %205 : vector<64x128xi1>, vector<64x128xi32>
    %cst_52 = arith.constant dense<2147483647> : vector<64xi32>
    %207 = vector.multi_reduction <minsi>, %206, %cst_52 [1] : vector<64x128xi32> to vector<64xi32>
    %208 = vector.shape_cast %207 : vector<64xi32> to vector<64x1xi32>
    %209 = vector.broadcast %208 : vector<64x1xi32> to vector<64x128xi32>
    %210 = arith.cmpi eq, %202, %209 : vector<64x128xi32>
    %211 = arith.extui %210 : vector<64x128xi1> to vector<64x128xi32>
    %212 = arith.sitofp %211 : vector<64x128xi32> to vector<64x128xf32>
    %213 = arith.truncf %212 : vector<64x128xf32> to vector<64x128xbf16>
    %cst_53 = arith.constant dense<0.000000e+00> : vector<64x128xf32>
    %214 = tpu.matmul %213, %162, %cst_53 {dimension_numbers = #tpu.dot_dimension_numbers<[1], [0], [0], [1], [0, 0, 1, 1], [], []>} : vector<64x128xbf16>, vector<128x128xbf16>, vector<64x128xf32> -> vector<64x128xf32>
    %215 = arith.addf %214, %168 : vector<64x128xf32>
    %216 = arith.index_cast %c1_i32_46 : i32 to index
    %217 = memref.load %arg0[%216] : memref<8xi32, #tpu.memory_space<smem>>
    %c1_i32_54 = arith.constant 1 : i32
    %218 = arith.cmpi eq, %217, %c1_i32_54 : i32
    %219 = arith.index_cast %c1_i32_46 : i32 to index
    %c0_55 = arith.constant 0 : index
    %c0_56 = arith.constant 0 : index
    %220 = vector.load %arg2[%219, %c0_55, %c0_56] : memref<8x64x128xf32, #tpu.memory_space<vmem>>, vector<1x64x128xf32>
    %221 = vector.shape_cast %220 : vector<1x64x128xf32> to vector<64x128xf32>
    %222 = arith.select %218, %221, %215 : vector<64x128xf32>
    %c2_i32_57 = arith.constant 2 : i32
    %223 = arith.addf %222, %193 : vector<64x128xf32>
    %224 = vector.extract_strided_slice %223 {offsets = [0, 0], sizes = [64, 96], strides = [1, 1]} : vector<64x128xf32> to vector<64x96xf32>
    %225 = arith.negf %224 : vector<64x96xf32>
    %226 = math.exp %225 : vector<64x96xf32>
    %cst_58 = arith.constant 1.000000e+00 : f32
    %227 = vector.broadcast %cst_58 : f32 to vector<64x96xf32>
    %228 = arith.addf %227, %226 : vector<64x96xf32>
    %229 = arith.divf %227, %228 : vector<64x96xf32>
    %230 = vector.extract_strided_slice %223 {offsets = [0, 96], sizes = [64, 32], strides = [1, 1]} : vector<64x128xf32> to vector<64x32xf32>
    %231 = math.tanh %230 : vector<64x32xf32>
    %232 = vector.extract_strided_slice %229 {offsets = [0, 0], sizes = [64, 32], strides = [1, 1]} : vector<64x96xf32> to vector<64x32xf32>
    %233 = vector.extract_strided_slice %229 {offsets = [0, 32], sizes = [64, 32], strides = [1, 1]} : vector<64x96xf32> to vector<64x32xf32>
    %234 = vector.extract_strided_slice %229 {offsets = [0, 64], sizes = [64, 32], strides = [1, 1]} : vector<64x96xf32> to vector<64x32xf32>
    %235 = arith.mulf %233, %188 : vector<64x32xf32>
    %236 = arith.mulf %232, %231 : vector<64x32xf32>
    %237 = arith.addf %235, %236 : vector<64x32xf32>
    %238 = math.tanh %237 : vector<64x32xf32>
    %239 = arith.mulf %234, %238 : vector<64x32xf32>
    %240 = arith.truncf %239 : vector<64x32xf32> to vector<64x32xbf16>
    %cst_59 = arith.constant dense<0.000000e+00> : vector<64x256xf32>
    %241 = tpu.matmul %240, %161, %cst_59 {dimension_numbers = #tpu.dot_dimension_numbers<[1], [0], [0], [1], [0, 0, 1, 1], [], []>} : vector<64x32xbf16>, vector<32x256xbf16>, vector<64x256xf32> -> vector<64x256xf32>
    %242 = vector.extract_strided_slice %241 {offsets = [0, 0], sizes = [64, 128], strides = [1, 1]} : vector<64x256xf32> to vector<64x128xf32>
    %243 = vector.extract_strided_slice %241 {offsets = [0, 128], sizes = [64, 128], strides = [1, 1]} : vector<64x256xf32> to vector<64x128xf32>
    %244 = arith.addf %243, %165 : vector<64x128xf32>
    %245 = arith.index_cast %c2_i32_57 : i32 to index
    %c0_60 = arith.constant 0 : index
    %c0_61 = arith.constant 0 : index
    %246 = vector.load %arg8[%245, %c0_60, %c0_61] : memref<8x64x128xf32, #tpu.memory_space<vmem>>, vector<1x64x128xf32>
    %247 = vector.shape_cast %246 : vector<1x64x128xf32> to vector<64x128xf32>
    %248 = vector.shape_cast %244 : vector<64x128xf32> to vector<1x64x128xf32>
    tpu.vector_store %arg8[%245, %c0_60, %c0_61], %248 {strides = array<i32>} : memref<8x64x128xf32, #tpu.memory_space<vmem>>, vector<1x64x128xf32>,
    %cst_62 = arith.constant dense<0xFF800000> : vector<64xf32>
    %249 = vector.multi_reduction <maximumf>, %244, %cst_62 [1] : vector<64x128xf32> to vector<64xf32>
    %250 = vector.shape_cast %249 : vector<64xf32> to vector<64x1xf32>
    %251 = tpu.iota {dimensions = array<i32: 1>} : vector<64x128xi32>
    %252 = vector.broadcast %250 : vector<64x1xf32> to vector<64x128xf32>
    %253 = arith.cmpf oeq, %244, %252 : vector<64x128xf32>
    %c2147483647_i32_63 = arith.constant 2147483647 : i32
    %254 = vector.broadcast %c2147483647_i32_63 : i32 to vector<64x128xi32>
    %255 = arith.select %253, %251, %254 : vector<64x128xi1>, vector<64x128xi32>
    %cst_64 = arith.constant dense<2147483647> : vector<64xi32>
    %256 = vector.multi_reduction <minsi>, %255, %cst_64 [1] : vector<64x128xi32> to vector<64xi32>
    %257 = vector.shape_cast %256 : vector<64xi32> to vector<64x1xi32>
    %258 = vector.broadcast %257 : vector<64x1xi32> to vector<64x128xi32>
    %259 = arith.cmpi eq, %251, %258 : vector<64x128xi32>
    %260 = arith.extui %259 : vector<64x128xi1> to vector<64x128xi32>
    %261 = arith.sitofp %260 : vector<64x128xi32> to vector<64x128xf32>
    %262 = arith.truncf %261 : vector<64x128xf32> to vector<64x128xbf16>
    %cst_65 = arith.constant dense<0.000000e+00> : vector<64x128xf32>
    %263 = tpu.matmul %262, %162, %cst_65 {dimension_numbers = #tpu.dot_dimension_numbers<[1], [0], [0], [1], [0, 0, 1, 1], [], []>} : vector<64x128xbf16>, vector<128x128xbf16>, vector<64x128xf32> -> vector<64x128xf32>
    %264 = arith.addf %263, %168 : vector<64x128xf32>
    %265 = arith.index_cast %c2_i32_57 : i32 to index
    %266 = memref.load %arg0[%265] : memref<8xi32, #tpu.memory_space<smem>>
    %c1_i32_66 = arith.constant 1 : i32
    %267 = arith.cmpi eq, %266, %c1_i32_66 : i32
    %268 = arith.index_cast %c2_i32_57 : i32 to index
    %c0_67 = arith.constant 0 : index
    %c0_68 = arith.constant 0 : index
    %269 = vector.load %arg2[%268, %c0_67, %c0_68] : memref<8x64x128xf32, #tpu.memory_space<vmem>>, vector<1x64x128xf32>
    %270 = vector.shape_cast %269 : vector<1x64x128xf32> to vector<64x128xf32>
    %271 = arith.select %267, %270, %264 : vector<64x128xf32>
    %c3_i32_69 = arith.constant 3 : i32
    %272 = arith.addf %271, %242 : vector<64x128xf32>
    %273 = vector.extract_strided_slice %272 {offsets = [0, 0], sizes = [64, 96], strides = [1, 1]} : vector<64x128xf32> to vector<64x96xf32>
    %274 = arith.negf %273 : vector<64x96xf32>
    %275 = math.exp %274 : vector<64x96xf32>
    %cst_70 = arith.constant 1.000000e+00 : f32
    %276 = vector.broadcast %cst_70 : f32 to vector<64x96xf32>
    %277 = arith.addf %276, %275 : vector<64x96xf32>
    %278 = arith.divf %276, %277 : vector<64x96xf32>
    %279 = vector.extract_strided_slice %272 {offsets = [0, 96], sizes = [64, 32], strides = [1, 1]} : vector<64x128xf32> to vector<64x32xf32>
    %280 = math.tanh %279 : vector<64x32xf32>
    %281 = vector.extract_strided_slice %278 {offsets = [0, 0], sizes = [64, 32], strides = [1, 1]} : vector<64x96xf32> to vector<64x32xf32>
    %282 = vector.extract_strided_slice %278 {offsets = [0, 32], sizes = [64, 32], strides = [1, 1]} : vector<64x96xf32> to vector<64x32xf32>
    %283 = vector.extract_strided_slice %278 {offsets = [0, 64], sizes = [64, 32], strides = [1, 1]} : vector<64x96xf32> to vector<64x32xf32>
    %284 = arith.mulf %282, %237 : vector<64x32xf32>
    %285 = arith.mulf %281, %280 : vector<64x32xf32>
    %286 = arith.addf %284, %285 : vector<64x32xf32>
    %287 = math.tanh %286 : vector<64x32xf32>
    %288 = arith.mulf %283, %287 : vector<64x32xf32>
    %289 = arith.truncf %288 : vector<64x32xf32> to vector<64x32xbf16>
    %cst_71 = arith.constant dense<0.000000e+00> : vector<64x256xf32>
    %290 = tpu.matmul %289, %161, %cst_71 {dimension_numbers = #tpu.dot_dimension_numbers<[1], [0], [0], [1], [0, 0, 1, 1], [], []>} : vector<64x32xbf16>, vector<32x256xbf16>, vector<64x256xf32> -> vector<64x256xf32>
    %291 = vector.extract_strided_slice %290 {offsets = [0, 0], sizes = [64, 128], strides = [1, 1]} : vector<64x256xf32> to vector<64x128xf32>
    %292 = vector.extract_strided_slice %290 {offsets = [0, 128], sizes = [64, 128], strides = [1, 1]} : vector<64x256xf32> to vector<64x128xf32>
    %293 = arith.addf %292, %165 : vector<64x128xf32>
    %294 = arith.index_cast %c3_i32_69 : i32 to index
    %c0_72 = arith.constant 0 : index
    %c0_73 = arith.constant 0 : index
    %295 = vector.load %arg8[%294, %c0_72, %c0_73] : memref<8x64x128xf32, #tpu.memory_space<vmem>>, vector<1x64x128xf32>
    %296 = vector.shape_cast %295 : vector<1x64x128xf32> to vector<64x128xf32>
    %297 = vector.shape_cast %293 : vector<64x128xf32> to vector<1x64x128xf32>
    tpu.vector_store %arg8[%294, %c0_72, %c0_73], %297 {strides = array<i32>} : memref<8x64x128xf32, #tpu.memory_space<vmem>>, vector<1x64x128xf32>,
    %cst_74 = arith.constant dense<0xFF800000> : vector<64xf32>
    %298 = vector.multi_reduction <maximumf>, %293, %cst_74 [1] : vector<64x128xf32> to vector<64xf32>
    %299 = vector.shape_cast %298 : vector<64xf32> to vector<64x1xf32>
    %300 = tpu.iota {dimensions = array<i32: 1>} : vector<64x128xi32>
    %301 = vector.broadcast %299 : vector<64x1xf32> to vector<64x128xf32>
    %302 = arith.cmpf oeq, %293, %301 : vector<64x128xf32>
    %c2147483647_i32_75 = arith.constant 2147483647 : i32
    %303 = vector.broadcast %c2147483647_i32_75 : i32 to vector<64x128xi32>
    %304 = arith.select %302, %300, %303 : vector<64x128xi1>, vector<64x128xi32>
    %cst_76 = arith.constant dense<2147483647> : vector<64xi32>
    %305 = vector.multi_reduction <minsi>, %304, %cst_76 [1] : vector<64x128xi32> to vector<64xi32>
    %306 = vector.shape_cast %305 : vector<64xi32> to vector<64x1xi32>
    %307 = vector.broadcast %306 : vector<64x1xi32> to vector<64x128xi32>
    %308 = arith.cmpi eq, %300, %307 : vector<64x128xi32>
    %309 = arith.extui %308 : vector<64x128xi1> to vector<64x128xi32>
    %310 = arith.sitofp %309 : vector<64x128xi32> to vector<64x128xf32>
    %311 = arith.truncf %310 : vector<64x128xf32> to vector<64x128xbf16>
    %cst_77 = arith.constant dense<0.000000e+00> : vector<64x128xf32>
    %312 = tpu.matmul %311, %162, %cst_77 {dimension_numbers = #tpu.dot_dimension_numbers<[1], [0], [0], [1], [0, 0, 1, 1], [], []>} : vector<64x128xbf16>, vector<128x128xbf16>, vector<64x128xf32> -> vector<64x128xf32>
    %313 = arith.addf %312, %168 : vector<64x128xf32>
    %314 = arith.index_cast %c3_i32_69 : i32 to index
    %315 = memref.load %arg0[%314] : memref<8xi32, #tpu.memory_space<smem>>
    %c1_i32_78 = arith.constant 1 : i32
    %316 = arith.cmpi eq, %315, %c1_i32_78 : i32
    %317 = arith.index_cast %c3_i32_69 : i32 to index
    %c0_79 = arith.constant 0 : index
    %c0_80 = arith.constant 0 : index
    %318 = vector.load %arg2[%317, %c0_79, %c0_80] : memref<8x64x128xf32, #tpu.memory_space<vmem>>, vector<1x64x128xf32>
    %319 = vector.shape_cast %318 : vector<1x64x128xf32> to vector<64x128xf32>
    %320 = arith.select %316, %319, %313 : vector<64x128xf32>
    %c4_i32_81 = arith.constant 4 : i32
    %321 = arith.addf %320, %291 : vector<64x128xf32>
    %322 = vector.extract_strided_slice %321 {offsets = [0, 0], sizes = [64, 96], strides = [1, 1]} : vector<64x128xf32> to vector<64x96xf32>
    %323 = arith.negf %322 : vector<64x96xf32>
    %324 = math.exp %323 : vector<64x96xf32>
    %cst_82 = arith.constant 1.000000e+00 : f32
    %325 = vector.broadcast %cst_82 : f32 to vector<64x96xf32>
    %326 = arith.addf %325, %324 : vector<64x96xf32>
    %327 = arith.divf %325, %326 : vector<64x96xf32>
    %328 = vector.extract_strided_slice %321 {offsets = [0, 96], sizes = [64, 32], strides = [1, 1]} : vector<64x128xf32> to vector<64x32xf32>
    %329 = math.tanh %328 : vector<64x32xf32>
    %330 = vector.extract_strided_slice %327 {offsets = [0, 0], sizes = [64, 32], strides = [1, 1]} : vector<64x96xf32> to vector<64x32xf32>
    %331 = vector.extract_strided_slice %327 {offsets = [0, 32], sizes = [64, 32], strides = [1, 1]} : vector<64x96xf32> to vector<64x32xf32>
    %332 = vector.extract_strided_slice %327 {offsets = [0, 64], sizes = [64, 32], strides = [1, 1]} : vector<64x96xf32> to vector<64x32xf32>
    %333 = arith.mulf %331, %286 : vector<64x32xf32>
    %334 = arith.mulf %330, %329 : vector<64x32xf32>
    %335 = arith.addf %333, %334 : vector<64x32xf32>
    %336 = math.tanh %335 : vector<64x32xf32>
    %337 = arith.mulf %332, %336 : vector<64x32xf32>
    %338 = arith.truncf %337 : vector<64x32xf32> to vector<64x32xbf16>
    %cst_83 = arith.constant dense<0.000000e+00> : vector<64x256xf32>
    %339 = tpu.matmul %338, %161, %cst_83 {dimension_numbers = #tpu.dot_dimension_numbers<[1], [0], [0], [1], [0, 0, 1, 1], [], []>} : vector<64x32xbf16>, vector<32x256xbf16>, vector<64x256xf32> -> vector<64x256xf32>
    %340 = vector.extract_strided_slice %339 {offsets = [0, 0], sizes = [64, 128], strides = [1, 1]} : vector<64x256xf32> to vector<64x128xf32>
    %341 = vector.extract_strided_slice %339 {offsets = [0, 128], sizes = [64, 128], strides = [1, 1]} : vector<64x256xf32> to vector<64x128xf32>
    %342 = arith.addf %341, %165 : vector<64x128xf32>
    %343 = arith.index_cast %c4_i32_81 : i32 to index
    %c0_84 = arith.constant 0 : index
    %c0_85 = arith.constant 0 : index
    %344 = vector.load %arg8[%343, %c0_84, %c0_85] : memref<8x64x128xf32, #tpu.memory_space<vmem>>, vector<1x64x128xf32>
    %345 = vector.shape_cast %344 : vector<1x64x128xf32> to vector<64x128xf32>
    %346 = vector.shape_cast %342 : vector<64x128xf32> to vector<1x64x128xf32>
    tpu.vector_store %arg8[%343, %c0_84, %c0_85], %346 {strides = array<i32>} : memref<8x64x128xf32, #tpu.memory_space<vmem>>, vector<1x64x128xf32>,
    %cst_86 = arith.constant dense<0xFF800000> : vector<64xf32>
    %347 = vector.multi_reduction <maximumf>, %342, %cst_86 [1] : vector<64x128xf32> to vector<64xf32>
    %348 = vector.shape_cast %347 : vector<64xf32> to vector<64x1xf32>
    %349 = tpu.iota {dimensions = array<i32: 1>} : vector<64x128xi32>
    %350 = vector.broadcast %348 : vector<64x1xf32> to vector<64x128xf32>
    %351 = arith.cmpf oeq, %342, %350 : vector<64x128xf32>
    %c2147483647_i32_87 = arith.constant 2147483647 : i32
    %352 = vector.broadcast %c2147483647_i32_87 : i32 to vector<64x128xi32>
    %353 = arith.select %351, %349, %352 : vector<64x128xi1>, vector<64x128xi32>
    %cst_88 = arith.constant dense<2147483647> : vector<64xi32>
    %354 = vector.multi_reduction <minsi>, %353, %cst_88 [1] : vector<64x128xi32> to vector<64xi32>
    %355 = vector.shape_cast %354 : vector<64xi32> to vector<64x1xi32>
    %356 = vector.broadcast %355 : vector<64x1xi32> to vector<64x128xi32>
    %357 = arith.cmpi eq, %349, %356 : vector<64x128xi32>
    %358 = arith.extui %357 : vector<64x128xi1> to vector<64x128xi32>
    %359 = arith.sitofp %358 : vector<64x128xi32> to vector<64x128xf32>
    %360 = arith.truncf %359 : vector<64x128xf32> to vector<64x128xbf16>
    %cst_89 = arith.constant dense<0.000000e+00> : vector<64x128xf32>
    %361 = tpu.matmul %360, %162, %cst_89 {dimension_numbers = #tpu.dot_dimension_numbers<[1], [0], [0], [1], [0, 0, 1, 1], [], []>} : vector<64x128xbf16>, vector<128x128xbf16>, vector<64x128xf32> -> vector<64x128xf32>
    %362 = arith.addf %361, %168 : vector<64x128xf32>
    %363 = arith.index_cast %c4_i32_81 : i32 to index
    %364 = memref.load %arg0[%363] : memref<8xi32, #tpu.memory_space<smem>>
    %c1_i32_90 = arith.constant 1 : i32
    %365 = arith.cmpi eq, %364, %c1_i32_90 : i32
    %366 = arith.index_cast %c4_i32_81 : i32 to index
    %c0_91 = arith.constant 0 : index
    %c0_92 = arith.constant 0 : index
    %367 = vector.load %arg2[%366, %c0_91, %c0_92] : memref<8x64x128xf32, #tpu.memory_space<vmem>>, vector<1x64x128xf32>
    %368 = vector.shape_cast %367 : vector<1x64x128xf32> to vector<64x128xf32>
    %369 = arith.select %365, %368, %362 : vector<64x128xf32>
    %c5_i32_93 = arith.constant 5 : i32
    %370 = arith.addf %369, %340 : vector<64x128xf32>
    %371 = vector.extract_strided_slice %370 {offsets = [0, 0], sizes = [64, 96], strides = [1, 1]} : vector<64x128xf32> to vector<64x96xf32>
    %372 = arith.negf %371 : vector<64x96xf32>
    %373 = math.exp %372 : vector<64x96xf32>
    %cst_94 = arith.constant 1.000000e+00 : f32
    %374 = vector.broadcast %cst_94 : f32 to vector<64x96xf32>
    %375 = arith.addf %374, %373 : vector<64x96xf32>
    %376 = arith.divf %374, %375 : vector<64x96xf32>
    %377 = vector.extract_strided_slice %370 {offsets = [0, 96], sizes = [64, 32], strides = [1, 1]} : vector<64x128xf32> to vector<64x32xf32>
    %378 = math.tanh %377 : vector<64x32xf32>
    %379 = vector.extract_strided_slice %376 {offsets = [0, 0], sizes = [64, 32], strides = [1, 1]} : vector<64x96xf32> to vector<64x32xf32>
    %380 = vector.extract_strided_slice %376 {offsets = [0, 32], sizes = [64, 32], strides = [1, 1]} : vector<64x96xf32> to vector<64x32xf32>
    %381 = vector.extract_strided_slice %376 {offsets = [0, 64], sizes = [64, 32], strides = [1, 1]} : vector<64x96xf32> to vector<64x32xf32>
    %382 = arith.mulf %380, %335 : vector<64x32xf32>
    %383 = arith.mulf %379, %378 : vector<64x32xf32>
    %384 = arith.addf %382, %383 : vector<64x32xf32>
    %385 = math.tanh %384 : vector<64x32xf32>
    %386 = arith.mulf %381, %385 : vector<64x32xf32>
    %387 = arith.truncf %386 : vector<64x32xf32> to vector<64x32xbf16>
    %cst_95 = arith.constant dense<0.000000e+00> : vector<64x256xf32>
    %388 = tpu.matmul %387, %161, %cst_95 {dimension_numbers = #tpu.dot_dimension_numbers<[1], [0], [0], [1], [0, 0, 1, 1], [], []>} : vector<64x32xbf16>, vector<32x256xbf16>, vector<64x256xf32> -> vector<64x256xf32>
    %389 = vector.extract_strided_slice %388 {offsets = [0, 0], sizes = [64, 128], strides = [1, 1]} : vector<64x256xf32> to vector<64x128xf32>
    %390 = vector.extract_strided_slice %388 {offsets = [0, 128], sizes = [64, 128], strides = [1, 1]} : vector<64x256xf32> to vector<64x128xf32>
    %391 = arith.addf %390, %165 : vector<64x128xf32>
    %392 = arith.index_cast %c5_i32_93 : i32 to index
    %c0_96 = arith.constant 0 : index
    %c0_97 = arith.constant 0 : index
    %393 = vector.load %arg8[%392, %c0_96, %c0_97] : memref<8x64x128xf32, #tpu.memory_space<vmem>>, vector<1x64x128xf32>
    %394 = vector.shape_cast %393 : vector<1x64x128xf32> to vector<64x128xf32>
    %395 = vector.shape_cast %391 : vector<64x128xf32> to vector<1x64x128xf32>
    tpu.vector_store %arg8[%392, %c0_96, %c0_97], %395 {strides = array<i32>} : memref<8x64x128xf32, #tpu.memory_space<vmem>>, vector<1x64x128xf32>,
    %cst_98 = arith.constant dense<0xFF800000> : vector<64xf32>
    %396 = vector.multi_reduction <maximumf>, %391, %cst_98 [1] : vector<64x128xf32> to vector<64xf32>
    %397 = vector.shape_cast %396 : vector<64xf32> to vector<64x1xf32>
    %398 = tpu.iota {dimensions = array<i32: 1>} : vector<64x128xi32>
    %399 = vector.broadcast %397 : vector<64x1xf32> to vector<64x128xf32>
    %400 = arith.cmpf oeq, %391, %399 : vector<64x128xf32>
    %c2147483647_i32_99 = arith.constant 2147483647 : i32
    %401 = vector.broadcast %c2147483647_i32_99 : i32 to vector<64x128xi32>
    %402 = arith.select %400, %398, %401 : vector<64x128xi1>, vector<64x128xi32>
    %cst_100 = arith.constant dense<2147483647> : vector<64xi32>
    %403 = vector.multi_reduction <minsi>, %402, %cst_100 [1] : vector<64x128xi32> to vector<64xi32>
    %404 = vector.shape_cast %403 : vector<64xi32> to vector<64x1xi32>
    %405 = vector.broadcast %404 : vector<64x1xi32> to vector<64x128xi32>
    %406 = arith.cmpi eq, %398, %405 : vector<64x128xi32>
    %407 = arith.extui %406 : vector<64x128xi1> to vector<64x128xi32>
    %408 = arith.sitofp %407 : vector<64x128xi32> to vector<64x128xf32>
    %409 = arith.truncf %408 : vector<64x128xf32> to vector<64x128xbf16>
    %cst_101 = arith.constant dense<0.000000e+00> : vector<64x128xf32>
    %410 = tpu.matmul %409, %162, %cst_101 {dimension_numbers = #tpu.dot_dimension_numbers<[1], [0], [0], [1], [0, 0, 1, 1], [], []>} : vector<64x128xbf16>, vector<128x128xbf16>, vector<64x128xf32> -> vector<64x128xf32>
    %411 = arith.addf %410, %168 : vector<64x128xf32>
    %412 = arith.index_cast %c5_i32_93 : i32 to index
    %413 = memref.load %arg0[%412] : memref<8xi32, #tpu.memory_space<smem>>
    %c1_i32_102 = arith.constant 1 : i32
    %414 = arith.cmpi eq, %413, %c1_i32_102 : i32
    %415 = arith.index_cast %c5_i32_93 : i32 to index
    %c0_103 = arith.constant 0 : index
    %c0_104 = arith.constant 0 : index
    %416 = vector.load %arg2[%415, %c0_103, %c0_104] : memref<8x64x128xf32, #tpu.memory_space<vmem>>, vector<1x64x128xf32>
    %417 = vector.shape_cast %416 : vector<1x64x128xf32> to vector<64x128xf32>
    %418 = arith.select %414, %417, %411 : vector<64x128xf32>
    %c6_i32_105 = arith.constant 6 : i32
    %419 = arith.addf %418, %389 : vector<64x128xf32>
    %420 = vector.extract_strided_slice %419 {offsets = [0, 0], sizes = [64, 96], strides = [1, 1]} : vector<64x128xf32> to vector<64x96xf32>
    %421 = arith.negf %420 : vector<64x96xf32>
    %422 = math.exp %421 : vector<64x96xf32>
    %cst_106 = arith.constant 1.000000e+00 : f32
    %423 = vector.broadcast %cst_106 : f32 to vector<64x96xf32>
    %424 = arith.addf %423, %422 : vector<64x96xf32>
    %425 = arith.divf %423, %424 : vector<64x96xf32>
    %426 = vector.extract_strided_slice %419 {offsets = [0, 96], sizes = [64, 32], strides = [1, 1]} : vector<64x128xf32> to vector<64x32xf32>
    %427 = math.tanh %426 : vector<64x32xf32>
    %428 = vector.extract_strided_slice %425 {offsets = [0, 0], sizes = [64, 32], strides = [1, 1]} : vector<64x96xf32> to vector<64x32xf32>
    %429 = vector.extract_strided_slice %425 {offsets = [0, 32], sizes = [64, 32], strides = [1, 1]} : vector<64x96xf32> to vector<64x32xf32>
    %430 = vector.extract_strided_slice %425 {offsets = [0, 64], sizes = [64, 32], strides = [1, 1]} : vector<64x96xf32> to vector<64x32xf32>
    %431 = arith.mulf %429, %384 : vector<64x32xf32>
    %432 = arith.mulf %428, %427 : vector<64x32xf32>
    %433 = arith.addf %431, %432 : vector<64x32xf32>
    %434 = math.tanh %433 : vector<64x32xf32>
    %435 = arith.mulf %430, %434 : vector<64x32xf32>
    %436 = arith.truncf %435 : vector<64x32xf32> to vector<64x32xbf16>
    %cst_107 = arith.constant dense<0.000000e+00> : vector<64x256xf32>
    %437 = tpu.matmul %436, %161, %cst_107 {dimension_numbers = #tpu.dot_dimension_numbers<[1], [0], [0], [1], [0, 0, 1, 1], [], []>} : vector<64x32xbf16>, vector<32x256xbf16>, vector<64x256xf32> -> vector<64x256xf32>
    %438 = vector.extract_strided_slice %437 {offsets = [0, 0], sizes = [64, 128], strides = [1, 1]} : vector<64x256xf32> to vector<64x128xf32>
    %439 = vector.extract_strided_slice %437 {offsets = [0, 128], sizes = [64, 128], strides = [1, 1]} : vector<64x256xf32> to vector<64x128xf32>
    %440 = arith.addf %439, %165 : vector<64x128xf32>
    %441 = arith.index_cast %c6_i32_105 : i32 to index
    %c0_108 = arith.constant 0 : index
    %c0_109 = arith.constant 0 : index
    %442 = vector.load %arg8[%441, %c0_108, %c0_109] : memref<8x64x128xf32, #tpu.memory_space<vmem>>, vector<1x64x128xf32>
    %443 = vector.shape_cast %442 : vector<1x64x128xf32> to vector<64x128xf32>
    %444 = vector.shape_cast %440 : vector<64x128xf32> to vector<1x64x128xf32>
    tpu.vector_store %arg8[%441, %c0_108, %c0_109], %444 {strides = array<i32>} : memref<8x64x128xf32, #tpu.memory_space<vmem>>, vector<1x64x128xf32>,
    %cst_110 = arith.constant dense<0xFF800000> : vector<64xf32>
    %445 = vector.multi_reduction <maximumf>, %440, %cst_110 [1] : vector<64x128xf32> to vector<64xf32>
    %446 = vector.shape_cast %445 : vector<64xf32> to vector<64x1xf32>
    %447 = tpu.iota {dimensions = array<i32: 1>} : vector<64x128xi32>
    %448 = vector.broadcast %446 : vector<64x1xf32> to vector<64x128xf32>
    %449 = arith.cmpf oeq, %440, %448 : vector<64x128xf32>
    %c2147483647_i32_111 = arith.constant 2147483647 : i32
    %450 = vector.broadcast %c2147483647_i32_111 : i32 to vector<64x128xi32>
    %451 = arith.select %449, %447, %450 : vector<64x128xi1>, vector<64x128xi32>
    %cst_112 = arith.constant dense<2147483647> : vector<64xi32>
    %452 = vector.multi_reduction <minsi>, %451, %cst_112 [1] : vector<64x128xi32> to vector<64xi32>
    %453 = vector.shape_cast %452 : vector<64xi32> to vector<64x1xi32>
    %454 = vector.broadcast %453 : vector<64x1xi32> to vector<64x128xi32>
    %455 = arith.cmpi eq, %447, %454 : vector<64x128xi32>
    %456 = arith.extui %455 : vector<64x128xi1> to vector<64x128xi32>
    %457 = arith.sitofp %456 : vector<64x128xi32> to vector<64x128xf32>
    %458 = arith.truncf %457 : vector<64x128xf32> to vector<64x128xbf16>
    %cst_113 = arith.constant dense<0.000000e+00> : vector<64x128xf32>
    %459 = tpu.matmul %458, %162, %cst_113 {dimension_numbers = #tpu.dot_dimension_numbers<[1], [0], [0], [1], [0, 0, 1, 1], [], []>} : vector<64x128xbf16>, vector<128x128xbf16>, vector<64x128xf32> -> vector<64x128xf32>
    %460 = arith.addf %459, %168 : vector<64x128xf32>
    %461 = arith.index_cast %c6_i32_105 : i32 to index
    %462 = memref.load %arg0[%461] : memref<8xi32, #tpu.memory_space<smem>>
    %c1_i32_114 = arith.constant 1 : i32
    %463 = arith.cmpi eq, %462, %c1_i32_114 : i32
    %464 = arith.index_cast %c6_i32_105 : i32 to index
    %c0_115 = arith.constant 0 : index
    %c0_116 = arith.constant 0 : index
    %465 = vector.load %arg2[%464, %c0_115, %c0_116] : memref<8x64x128xf32, #tpu.memory_space<vmem>>, vector<1x64x128xf32>
    %466 = vector.shape_cast %465 : vector<1x64x128xf32> to vector<64x128xf32>
    %467 = arith.select %463, %466, %460 : vector<64x128xf32>
    %c7_i32_117 = arith.constant 7 : i32
    %468 = arith.addf %467, %438 : vector<64x128xf32>
    %469 = vector.extract_strided_slice %468 {offsets = [0, 0], sizes = [64, 96], strides = [1, 1]} : vector<64x128xf32> to vector<64x96xf32>
    %470 = arith.negf %469 : vector<64x96xf32>
    %471 = math.exp %470 : vector<64x96xf32>
    %cst_118 = arith.constant 1.000000e+00 : f32
    %472 = vector.broadcast %cst_118 : f32 to vector<64x96xf32>
    %473 = arith.addf %472, %471 : vector<64x96xf32>
    %474 = arith.divf %472, %473 : vector<64x96xf32>
    %475 = vector.extract_strided_slice %468 {offsets = [0, 96], sizes = [64, 32], strides = [1, 1]} : vector<64x128xf32> to vector<64x32xf32>
    %476 = math.tanh %475 : vector<64x32xf32>
    %477 = vector.extract_strided_slice %474 {offsets = [0, 0], sizes = [64, 32], strides = [1, 1]} : vector<64x96xf32> to vector<64x32xf32>
    %478 = vector.extract_strided_slice %474 {offsets = [0, 32], sizes = [64, 32], strides = [1, 1]} : vector<64x96xf32> to vector<64x32xf32>
    %479 = vector.extract_strided_slice %474 {offsets = [0, 64], sizes = [64, 32], strides = [1, 1]} : vector<64x96xf32> to vector<64x32xf32>
    %480 = arith.mulf %478, %433 : vector<64x32xf32>
    %481 = arith.mulf %477, %476 : vector<64x32xf32>
    %482 = arith.addf %480, %481 : vector<64x32xf32>
    %483 = math.tanh %482 : vector<64x32xf32>
    %484 = arith.mulf %479, %483 : vector<64x32xf32>
    %485 = arith.truncf %484 : vector<64x32xf32> to vector<64x32xbf16>
    %cst_119 = arith.constant dense<0.000000e+00> : vector<64x256xf32>
    %486 = tpu.matmul %485, %161, %cst_119 {dimension_numbers = #tpu.dot_dimension_numbers<[1], [0], [0], [1], [0, 0, 1, 1], [], []>} : vector<64x32xbf16>, vector<32x256xbf16>, vector<64x256xf32> -> vector<64x256xf32>
    %487 = vector.extract_strided_slice %486 {offsets = [0, 0], sizes = [64, 128], strides = [1, 1]} : vector<64x256xf32> to vector<64x128xf32>
    %488 = vector.extract_strided_slice %486 {offsets = [0, 128], sizes = [64, 128], strides = [1, 1]} : vector<64x256xf32> to vector<64x128xf32>
    %489 = arith.addf %488, %165 : vector<64x128xf32>
    %490 = arith.index_cast %c7_i32_117 : i32 to index
    %c0_120 = arith.constant 0 : index
    %c0_121 = arith.constant 0 : index
    %491 = vector.load %arg8[%490, %c0_120, %c0_121] : memref<8x64x128xf32, #tpu.memory_space<vmem>>, vector<1x64x128xf32>
    %492 = vector.shape_cast %491 : vector<1x64x128xf32> to vector<64x128xf32>
    %493 = vector.shape_cast %489 : vector<64x128xf32> to vector<1x64x128xf32>
    tpu.vector_store %arg8[%490, %c0_120, %c0_121], %493 {strides = array<i32>} : memref<8x64x128xf32, #tpu.memory_space<vmem>>, vector<1x64x128xf32>,
    %cst_122 = arith.constant dense<0xFF800000> : vector<64xf32>
    %494 = vector.multi_reduction <maximumf>, %489, %cst_122 [1] : vector<64x128xf32> to vector<64xf32>
    %495 = vector.shape_cast %494 : vector<64xf32> to vector<64x1xf32>
    %496 = tpu.iota {dimensions = array<i32: 1>} : vector<64x128xi32>
    %497 = vector.broadcast %495 : vector<64x1xf32> to vector<64x128xf32>
    %498 = arith.cmpf oeq, %489, %497 : vector<64x128xf32>
    %c2147483647_i32_123 = arith.constant 2147483647 : i32
    %499 = vector.broadcast %c2147483647_i32_123 : i32 to vector<64x128xi32>
    %500 = arith.select %498, %496, %499 : vector<64x128xi1>, vector<64x128xi32>
    %cst_124 = arith.constant dense<2147483647> : vector<64xi32>
    %501 = vector.multi_reduction <minsi>, %500, %cst_124 [1] : vector<64x128xi32> to vector<64xi32>
    %502 = vector.shape_cast %501 : vector<64xi32> to vector<64x1xi32>
    %503 = vector.broadcast %502 : vector<64x1xi32> to vector<64x128xi32>
    %504 = arith.cmpi eq, %496, %503 : vector<64x128xi32>
    %505 = arith.extui %504 : vector<64x128xi1> to vector<64x128xi32>
    %506 = arith.sitofp %505 : vector<64x128xi32> to vector<64x128xf32>
    %507 = arith.truncf %506 : vector<64x128xf32> to vector<64x128xbf16>
    %cst_125 = arith.constant dense<0.000000e+00> : vector<64x128xf32>
    %508 = tpu.matmul %507, %162, %cst_125 {dimension_numbers = #tpu.dot_dimension_numbers<[1], [0], [0], [1], [0, 0, 1, 1], [], []>} : vector<64x128xbf16>, vector<128x128xbf16>, vector<64x128xf32> -> vector<64x128xf32>
    %509 = arith.addf %508, %168 : vector<64x128xf32>
    %510 = arith.index_cast %c7_i32_117 : i32 to index
    %511 = memref.load %arg0[%510] : memref<8xi32, #tpu.memory_space<smem>>
    %c1_i32_126 = arith.constant 1 : i32
    %512 = arith.cmpi eq, %511, %c1_i32_126 : i32
    %513 = arith.index_cast %c7_i32_117 : i32 to index
    %c0_127 = arith.constant 0 : index
    %c0_128 = arith.constant 0 : index
    %514 = vector.load %arg2[%513, %c0_127, %c0_128] : memref<8x64x128xf32, #tpu.memory_space<vmem>>, vector<1x64x128xf32>
    %515 = vector.shape_cast %514 : vector<1x64x128xf32> to vector<64x128xf32>
    %516 = arith.select %512, %515, %509 : vector<64x128xf32>
    %c7_i32_129 = arith.constant 7 : i32
    return
  }
}

</mosaic_0001>

<bundles_post_ra>
// kernel: seq2seq_forward.1
= control target key start
LH: loop header
LB: loop body
LE: loop exit
PB: predicated region body
PF: predicated region fallthrough
CT: control target
= control target key end

     0   :  { %13 = vsyncpa [#allocation3], 0  ;;  %s10871_s0 = inlined_call_operand.vmem [shape: s32[8], index: 0, kind: input, shape index: {}]   ;;  %s10872_s1 = inlined_call_operand.vmem [shape: f32[7,64,128], index: 1, kind: input, shape index: {}]   ;;  %s10873_s2 = inlined_call_operand.vmem [shape: f32[8,64,128], index: 2, kind: input, shape index: {}]   ;;  %s10874_s3 = inlined_call_operand.vmem [shape: bf16[32,128], index: 3, kind: input, shape index: {}]   ;;  %s10875_s4 = inlined_call_operand.vmem [shape: bf16[32,256], index: 4, kind: input, shape index: {}]   ;;  %s10876_s5 = inlined_call_operand.vmem [shape: bf16[128,128], index: 5, kind: input, shape index: {}]   ;;  %s10877_s6 = inlined_call_operand.vmem [shape: f32[1,128], index: 6, kind: input, shape index: {}]   ;;  %s10878_s7 = inlined_call_operand.vmem [shape: f32[1,128], index: 7, kind: input, shape index: {}]   ;;  %s10879_s8 = inlined_call_operand.vmem [shape: f32[8,64,128], index: 8, kind: output, shape index: {}]  }
   0x1   :  { %s20_s29 = sshll.u32 %s10871_s0, 4  ;;  %s21_s29 = int_to_ptr.vmem [resolvable:$true] %s20_s29 }
   0x2   :  { %s7870_s30 = scalar_lea.vmem %s21_s29, 16  ;;  %p7875_p1 = scmp.lt.s32.totalorder %s21_s29, %s21_s29 }
   0x3   :  { %p7871_p0 = scmp.ne.s32.totalorder %s21_s29, %s7870_s30  ;;  %p7876_p2 = scmp.lt.s32.totalorder %s7870_s30, %s7870_s30 }
   0x5   :  { %p7877_p3 = por %p7876_p2, %p7875_p1 }
   0x7   :  { %p7878_p4 = pnand %p7877_p3, %p7871_p0 }
   0x9   :  { %7881 = shalt.err (!%p7878_p4)
}
   0xa   :  { %s7884_s9 = smov [#allocation2]  }
   0xb   :  { %23 = dma.vmem_to_smem %s21_s29, 16, %s7884_s9, [#allocation3]  }
   0xc   :  { %7882 = dma.done.wait [#allocation3], 16  }
   0xd   :  { %7883 = vsyncadd [#allocation3], 4294967280 }
   0xe   :  { %41 = sfence }
   0xf   :  { %v7941_v0 = vld [vmem:[%s10874_s3] sm:$0xff]   ;;  %v7885_v1 = vmov 0.0   ;;  %v7970_v2 = vld [vmem:[%s10874_s3 + $0x8] sm:$0xff]   ;;  %v7886_v3 = vmov 0   ;;  %v57_v4 = vld [vmem:[%s10872_s1 + $0x10] sm:$0xff]  ;;  %s7887_s20 = smov 32  }
  0x10   :  { %43 = vst [vmem:[%s10879_s8] sm:$0xff] %v7885_v1  ;;  %44 = vst [vmem:[%s10879_s8 + $0x8] sm:$0xff] %v7885_v1  ;;  %6690 = vmatprep.subr.bf16.mxu1 %v7941_v0  ;;  %6694 = vmatprep.mubr.bf16.mxu1 %v7886_v3  ;;  %v55_v5 = vld [vmem:[%s10872_s1] sm:$0xff]  ;;  %v58_v9 = vld [vmem:[%s10872_s1 + $0x18] sm:$0xff]  ;;  %s7888_s23 = smov 64   ;;  %vm75_vm0 = vcmask 261120   ;;  %s6322_s26 = sld [smem:[#allocation2 + $0x1]] }
  0x11   :  { %45 = vst [vmem:[%s10879_s8 + $0x10] sm:$0xff] %v7885_v1  ;;  %46 = vst [vmem:[%s10879_s8 + $0x18] sm:$0xff] %v7885_v1  ;;  %6691 = vmatpush3.bf16.msra.mxu1 %v7941_v0  ;;  %6714 = vmatprep.subr.bf16.mxu0 %v7941_v0  ;;  %v56_v12 = vld [vmem:[%s10872_s1 + $0x8] sm:$0xff]  ;;  %v59_v16 = vld [vmem:[%s10872_s1 + $0x20] sm:$0xff]  ;;  %s6367_s16 = sld [smem:[#allocation2 + $0x2]]  ;;  %s6412_s30 = sld [smem:[#allocation2 + $0x3]] }
  0x12   :  { %47 = vst [vmem:[%s10879_s8 + $0x20] sm:$0xff] %v7885_v1  ;;  %48 = vst [vmem:[%s10879_s8 + $0x28] sm:$0xff] %v7885_v1  ;;  %6692 = vmatprep.subr.bf16.mxu1 %v7970_v2  ;;  %6715 = vmatpush3.bf16.msra.mxu0 %v7941_v0  ;;  %v61_v18 = vld [vmem:[%s10872_s1 + $0x30] sm:$0xff]  ;;  %v60_v26 = vld [vmem:[%s10872_s1 + $0x28] sm:$0xff]  ;;  %s6502_s10 = sld [smem:[#allocation2 + $0x5]]  ;;  %s6547_s24 = sld [smem:[#allocation2 + $0x6]] }
  0x13   :  { %49 = vst [vmem:[%s10879_s8 + $0x30] sm:$0xff] %v7885_v1  ;;  %50 = vst [vmem:[%s10879_s8 + $0x38] sm:$0xff] %v7885_v1  ;;  %6716 = vmatprep.subr.bf16.mxu0 %v7970_v2  ;;  %v62_v27 = vld [vmem:[%s10872_s1 + $0x38] sm:$0xff] }
  0x15   :  { %6693 = vmatpush3.bf16.msra.mxu1 %v7970_v2 }
  0x16   :  { %6702 = vmatprep.subr.bf16.mxu1 %v7941_v0  ;;  %6717 = vmatpush3.bf16.msra.mxu0 %v7970_v2  ;;  %p2917_p5 = scmp.eq.s32.totalorder %s6322_s26, 1 }
  0x17   :  { %6738 = vmatprep.subr.bf16.mxu0 %v7941_v0  ;;  %p3494_p6 = scmp.eq.s32.totalorder %s6367_s16, 1  ;;  %p4071_p7 = scmp.eq.s32.totalorder %s6412_s30, 1 }
  0x18   :  { %6695 = vmatmul.mubr.bf16.vlgmr.msra.gmra.mrb[0].mxu1 %v7886_v3  ;;  %s2927_s27 = scalar_select %p2917_p5, 1, 0 }
  0x19   :  { %6698 = vmatprep.mubr.bf16.mxu1 %v7886_v3  ;;  %6703 = vmatpush3.bf16.msra.mxu1 %v7941_v0  ;;  %s3504_s17 = scalar_select %p3494_p6, 1, 0 }
  0x1a   :  { %6704 = vmatprep.subr.bf16.mxu1 %v7970_v2  ;;  %s4081_s9 = scalar_select %p4071_p7, 1, 0 }
  0x1b   :  { %p5225_p9 = scmp.eq.s32.totalorder %s6502_s10, 1  ;;  %p5802_p10 = scmp.eq.s32.totalorder %s6547_s24, 1 }
  0x1d   :  { %6705 = vmatpush3.bf16.msra.mxu1 %v7970_v2  ;;  %s5235_s11 = scalar_select %p5225_p9, 1, 0 }
  0x1e   :  { %6726 = vmatprep.subr.bf16.mxu1 %v7941_v0 }
  0x20   :  { %6699 = vmatmul.mubr.bf16.gmra.mrb[4].mxu1 %v7886_v3 }
  0xeb   :  { %v6696_v6 = vpop.f32.mrb[0].mxu1 }
  0xec   :  { %v146_v7 = vadd.f32 %v6696_v6, %v57_v4  ;;  %v113_v8 = vpop.f32.mrb[1].mxu1 }
  0xed   :  { %v144_v10 = vadd.f32 %v113_v8, %v55_v5  ;;  %v6697_v11 = vpop.f32.mrb[2].mxu1 }
  0xee   :  { %6940 = vtanh.f32 %v146_v7  ;;  %v116_v13 = vpop.f32.mrb[3].mxu1  ;;  %v147_v14 = vadd.f32 %v6697_v11, %v58_v9  ;;  %v6142_v37 = vmul.f32 -1.442695, %v146_v7 }
  0xef   :  { %6942 = vtanh.f32 %v144_v10  ;;  %v145_v15 = vadd.f32 %v116_v13, %v56_v12  ;;  %v6140_v36 = vmul.f32 -1.442695, %v144_v10 }
  0xf0   :  { %6944 = vtanh.f32 %v147_v14  ;;  %v6143_v39 = vmul.f32 -1.442695, %v147_v14 }
  0xf1   :  { %6946 = vtanh.f32 %v145_v15  ;;  %v6141_v38 = vmul.f32 -1.442695, %v145_v15 }
  0xf3   :  { %v6700_v17 = vpop.f32.mrb[4].mxu1 }
  0xf4   :  { %v129_v19 = vpop.f32.mrb[5].mxu1  ;;  %v150_v23 = vadd.f32 %v6700_v17, %v61_v18 }
  0xf5   :  { %v148_v20 = vadd.f32 %v129_v19, %v59_v16  ;;  %v6701_v21 = vpop.f32.mrb[6].mxu1 }
  0xf6   :  { %v132_v22 = vpop.f32.mrb[7].mxu1  ;;  %v151_v30 = vadd.f32 %v6701_v21, %v62_v27  ;;  %v6146_v42 = vmul.f32 -1.442695, %v150_v23 }
  0xf7   :  { %6948 = vtanh.f32 %v148_v20  ;;  %v149_v28 = vadd.f32 %v132_v22, %v60_v26  ;;  %v6144_v40 = vmul.f32 -1.442695, %v148_v20 }
  0xf8   :  { %v6941_v24 = vpop.eup %6940  ;;  %6950 = vtanh.f32 %v150_v23  ;;  %v6147_v47 = vmul.f32 -1.442695, %v151_v30 }
  0xf9   :  { %v6943_v25 = vpop.eup %6942  ;;  %228 = vrot.lane.b32.xlu1 %v6941_v24, %s7887_s20  ;;  %6952 = vtanh.f32 %v149_v28  ;;  %v6145_v43 = vmul.f32 -1.442695, %v149_v28 }
  0xfa   :  { %224 = vrot.lane.b32.xlu0 %v6943_v25, %s7887_s20  ;;  %v6945_v29 = vpop.eup %6944  ;;  %6954 = vtanh.f32 %v151_v30 }
  0xfb   :  { %v6947_v31 = vpop.eup %6946  ;;  %6956 = vpow2.f32 %v6140_v36 }
  0xfc   :  { %6958 = vpow2.f32 %v6142_v37 }
  0xfd   :  { %230 = vrot.lane.b32.xlu1 %v6945_v29, %s7887_s20  ;;  %6960 = vpow2.f32 %v6141_v38 }
  0xfe   :  { %226 = vrot.lane.b32.xlu0 %v6947_v31, %s7887_s20  ;;  %6962 = vpow2.f32 %v6143_v39 }
  0xff   :  { %6964 = vpow2.f32 %v6144_v40 }
 0x100   :  { %6966 = vpow2.f32 %v6146_v42 }
 0x101   :  { %v6949_v32 = vpop.eup %6948  ;;  %6968 = vpow2.f32 %v6145_v43 }
 0x102   :  { %232 = vrot.lane.b32.xlu0 %v6949_v32, %s7887_s20  ;;  %v6951_v33 = vpop.eup %6950 }
 0x103   :  { %v6953_v34 = vpop.eup %6952 }
 0x104   :  { %234 = vrot.lane.b32.xlu1 %v6953_v34, %s7887_s20  ;;  %v6955_v35 = vpop.eup %6954 }
 0x105   :  { %v6957_v41 = vpop.eup %6956 }
 0x106   :  { %236 = vrot.lane.b32.xlu0 %v6951_v33, %s7887_s20  ;;  %v176_v44 = vadd.f32 1.0, %v6957_v41  ;;  %v6959_v45 = vpop.eup %6958 }
 0x107   :  { %v6961_v46 = vpop.eup %6960  ;;  %v178_v48 = vadd.f32 1.0, %v6959_v45 }
 0x108   :  { %238 = vrot.lane.b32.xlu1 %v6955_v35, %s7887_s20  ;;  %6970 = vrcp.f32 %v176_v44  ;;  %v6963_v49 = vpop.eup %6962  ;;  %v177_v50 = vadd.f32 1.0, %v6961_v46 }
 0x109   :  { %v6965_v51 = vpop.eup %6964  ;;  %6972 = vpow2.f32 %v6147_v47  ;;  %v179_v52 = vadd.f32 1.0, %v6963_v49 }
 0x10a   :  { %6974 = vrcp.f32 %v178_v48  ;;  %v180_v53 = vadd.f32 1.0, %v6965_v51  ;;  %v6967_v54 = vpop.eup %6966 }
 0x10b   :  { %6976 = vrcp.f32 %v177_v50  ;;  %v6969_v55 = vpop.eup %6968  ;;  %v182_v57 = vadd.f32 1.0, %v6967_v54 }
 0x10c   :  { %6978 = vrcp.f32 %v179_v52  ;;  %v181_v62 = vadd.f32 1.0, %v6969_v55 }
 0x10d   :  { %6980 = vrcp.f32 %v180_v53 }
 0x10e   :  { %6982 = vrcp.f32 %v182_v57 }
 0x10f   :  { %6984 = vrcp.f32 %v181_v62 }
 0x112   :  { %v8022_v56 = vpop.eup %6970 }
 0x113   :  { %v6973_v61 = vpop.eup %6972  ;;  %v208_v23 = vmul.f32 0.0, %v8022_v56 }
 0x114   :  { %v8026_v63 = vpop.eup %6974  ;;  %v183_v6 = vadd.f32 1.0, %v6973_v61 }
 0x115   :  { %v8029_v4 = vpop.eup %6976  ;;  %v210_v26 = vmul.f32 0.0, %v8026_v63 }
 0x116   :  { %v8033_v9 = vpop.eup %6978  ;;  %6986 = vrcp.f32 %v183_v6  ;;  %v209_v29 = vmul.f32 0.0, %v8029_v4 }
 0x117   :  { %v8036_v10 = vpop.eup %6980  ;;  %v211_v33 = vmul.f32 0.0, %v8033_v9 }
 0x118   :  { %v8042_v14 = vpop.eup %6982  ;;  %v212_v32 = vmul.f32 0.0, %v8036_v10 }
 0x119   :  { %v8045_v17 = vpop.eup %6984  ;;  %v214_v39 = vmul.f32 0.0, %v8042_v14 }
 0x11a   :  { %v213_v42 = vmul.f32 0.0, %v8045_v17 }
 0x120   :  { %v8050_v20 = vpop.eup %6986 }
 0x121   :  { %v215_v47 = vmul.f32 0.0, %v8050_v20 }
 0x16b   :  { %v229_v60 = vpop.permute.xlu1 %228 }
 0x16c   :  { %v225_v58 = vpop.permute.xlu0 %224  ;;  %v250_v1 = vmul.f32 %v8026_v63, %v229_v60 }
 0x16d   :  { %v248_v59 = vmul.f32 %v8022_v56, %v225_v58 }
 0x16f   :  { %264 = vrot.lane.b32.xlu0 %v248_v59, %s7887_s20  ;;  %v231_v8 = vpop.permute.xlu1 %230 }
 0x170   :  { %v227_v5 = vpop.permute.xlu0 %226  ;;  %v251_v12 = vmul.f32 %v8033_v9, %v231_v8 }
 0x171   :  { %v249_v7 = vmul.f32 %v8029_v4, %v227_v5 }
 0x173   :  { %268 = vrot.lane.b32.xlu0 %v250_v1, %s7887_s20  ;;  %266 = vrot.lane.b32.xlu1 %v249_v7, %s7887_s20 }
 0x174   :  { %v233_v11 = vpop.permute.xlu0 %232 }
 0x175   :  { %v252_v13 = vmul.f32 %v8036_v10, %v233_v11 }
 0x176   :  { %v235_v18 = vpop.permute.xlu1 %234 }
 0x177   :  { %272 = vrot.lane.b32.xlu0 %v252_v13, %s7887_s20  ;;  %270 = vrot.lane.b32.xlu1 %v251_v12, %s7887_s20  ;;  %v253_v19 = vmul.f32 %v8045_v17, %v235_v18 }
 0x178   :  { %v237_v15 = vpop.permute.xlu0 %236 }
 0x179   :  { %v254_v16 = vmul.f32 %v8042_v14, %v237_v15 }
 0x17a   :  { %v239_v21 = vpop.permute.xlu1 %238 }
 0x17b   :  { %276 = vrot.lane.b32.xlu0 %v254_v16, %s7887_s20  ;;  %274 = vrot.lane.b32.xlu1 %v253_v19, %s7887_s20  ;;  %v255_v22 = vmul.f32 %v8050_v20, %v239_v21 }
 0x17f   :  { %278 = vrot.lane.b32.xlu1 %v255_v22, %s7887_s20 }
 0x1e1   :  { %v265_v24 = vpop.permute.xlu0 %264 }
 0x1e2   :  { %v8055_v25 = vadd.f32 %v265_v24, %v208_v23  ;;  %v6149_v24 = vld [vmem:[%s10872_s1 + $0x48] sm:$0xff] }
 0x1e4   :  { %6988 = vtanh.f32 %v8055_v25 }
 0x1e5   :  { %v269_v27 = vpop.permute.xlu0 %268  ;;  %v267_v30 = vpop.permute.xlu1 %266 }
 0x1e6   :  { %v8059_v28 = vadd.f32 %v269_v27, %v210_v26  ;;  %v8063_v31 = vadd.f32 %v267_v30, %v209_v29  ;;  %v6151_v29 = vld [vmem:[%s10872_s1 + $0x58] sm:$0xff] }
 0x1e8   :  { %6990 = vtanh.f32 %v8059_v28 }
 0x1e9   :  { %6992 = vtanh.f32 %v8063_v31  ;;  %v273_v34 = vpop.permute.xlu0 %272  ;;  %v271_v35 = vpop.permute.xlu1 %270 }
 0x1ea   :  { %v8068_v36 = vadd.f32 %v273_v34, %v212_v32  ;;  %v8070_v37 = vadd.f32 %v271_v35, %v211_v33  ;;  %v6152_v33 = vld [vmem:[%s10872_s1 + $0x60] sm:$0xff]  ;;  %v6154_v35 = vld [vmem:[%s10872_s1 + $0x70] sm:$0xff] }
 0x1ec   :  { %6994 = vtanh.f32 %v8068_v36 }
 0x1ed   :  { %6996 = vtanh.f32 %v8070_v37  ;;  %v277_v40 = vpop.permute.xlu0 %276  ;;  %v275_v44 = vpop.permute.xlu1 %274 }
 0x1ee   :  { %v6989_v38 = vpop.eup %6988  ;;  %v8076_v41 = vadd.f32 %v277_v40, %v214_v39  ;;  %v8080_v45 = vadd.f32 %v275_v44, %v213_v42 }
 0x1ef   :  { %312 = vrot.lane.b32.xlu0 %v6989_v38, %s7887_s20 }
 0x1f0   :  { %6998 = vtanh.f32 %v8076_v41 }
 0x1f1   :  { %7000 = vtanh.f32 %v8080_v45  ;;  %v279_v48 = vpop.permute.xlu1 %278 }
 0x1f2   :  { %v6991_v43 = vpop.eup %6990  ;;  %v8086_v49 = vadd.f32 %v279_v48, %v215_v47 }
 0x1f3   :  { %316 = vrot.lane.b32.xlu0 %v6991_v43, %s7887_s20  ;;  %v6993_v46 = vpop.eup %6992 }
 0x1f4   :  { %314 = vrot.lane.b32.xlu1 %v6993_v46, %s7887_s20  ;;  %7002 = vtanh.f32 %v8086_v49  ;;  %v6153_v46 = vld [vmem:[%s10872_s1 + $0x68] sm:$0xff] }
 0x1f6   :  { %v6995_v50 = vpop.eup %6994 }
 0x1f7   :  { %v6997_v51 = vpop.eup %6996  ;;  %320 = vrot.lane.b32.xlu0 %v6995_v50, %s7887_s20 }
 0x1f8   :  { %318 = vrot.lane.b32.xlu1 %v6997_v51, %s7887_s20  ;;  %v6155_v51 = vld [vmem:[%s10872_s1 + $0x78] sm:$0xff] }
 0x1fa   :  { %v6999_v52 = vpop.eup %6998 }
 0x1fb   :  { %324 = vrot.lane.b32.xlu0 %v6999_v52, %s7887_s20  ;;  %v7001_v53 = vpop.eup %7000 }
 0x1fc   :  { %322 = vrot.lane.b32.xlu1 %v7001_v53, %s7887_s20 }
 0x1fe   :  { %v7003_v54 = vpop.eup %7002 }
 0x200   :  { %326 = vrot.lane.b32.xlu1 %v7003_v54, %s7887_s20 }
 0x261   :  { %v313_v55 = vpop.permute.xlu0 %312 }
 0x262   :  { %v336_v58 = vmul.f32 %v8022_v56, %v313_v55 }
 0x265   :  { %v317_v59 = vpop.permute.xlu0 %316 }
 0x266   :  { %v315_v57 = vpop.permute.xlu1 %314  ;;  %v338_v1 = vmul.f32 %v8026_v63, %v317_v59 }
 0x267   :  { %v337_v60 = vmul.f32 %v8029_v4, %v315_v57 }
 0x269   :  { %v353_v61 = vpack.c.bf16 %v337_v60, %v336_v58  ;;  %v321_v6 = vpop.permute.xlu0 %320 }
 0x26a   :  { %v319_v62 = vpop.permute.xlu1 %318  ;;  %v340_v11 = vmul.f32 %v8036_v10, %v321_v6 }
 0x26b   :  { %361 = vrot.lane.b32.xlu0 %v353_v61, %s7888_s23  ;;  %v339_v5 = vmul.f32 %v8033_v9, %v319_v62 }
 0x26d   :  { %v354_v7 = vpack.c.bf16 %v339_v5, %v338_v1  ;;  %v325_v12 = vpop.permute.xlu0 %324 }
 0x26e   :  { %v323_v8 = vpop.permute.xlu1 %322  ;;  %v342_v15 = vmul.f32 %v8042_v14, %v325_v12 }
 0x26f   :  { %363 = vrot.lane.b32.xlu1 %v354_v7, %s7888_s23  ;;  %v341_v56 = vmul.f32 %v8045_v17, %v323_v8  ;;  %v6148_v17 = vld [vmem:[%s10872_s1 + $0x40] sm:$0xff] }
 0x271   :  { %v355_v4 = vpack.c.bf16 %v341_v56, %v340_v11 }
 0x272   :  { %v327_v13 = vpop.permute.xlu1 %326 }
 0x273   :  { %v343_v16 = vmul.f32 %v8050_v20, %v327_v13  ;;  %365 = vrot.lane.b32.xlu0 %v355_v4, %s7888_s23  ;;  %v6150_v20 = vld [vmem:[%s10872_s1 + $0x50] sm:$0xff] }
 0x275   :  { %v356_v63 = vpack.c.bf16 %v343_v16, %v342_v15 }
 0x277   :  { %367 = vrot.lane.b32.xlu1 %v356_v63, %s7888_s23 }
 0x2dd   :  { %v362_v9 = vpop.permute.xlu0 %361 }
 0x2de   :  { %6706 = vmatprep.mubr.msk.bf16.mxu1 %vm75_vm0, %v362_v9 }
 0x2e1   :  { %v364_v18 = vpop.permute.xlu1 %363 }
 0x2e2   :  { %6707 = vmatmul.mubr.msk.bf16.vlgmr.msra.gmra.mrb[8].mxu1 %vm75_vm0, %v364_v18 }
 0x2e3   :  { %6727 = vmatpush3.bf16.msra.mxu1 %v7941_v0 }
 0x2e4   :  { %6728 = vmatprep.subr.bf16.mxu1 %v7970_v2 }
 0x2e5   :  { %v366_v10 = vpop.permute.xlu0 %365 }
 0x2e6   :  { %6710 = vmatprep.mubr.msk.bf16.mxu1 %vm75_vm0, %v366_v10 }
 0x2e7   :  { %6729 = vmatpush3.bf16.msra.mxu1 %v7970_v2 }
 0x2e8   :  { %6750 = vmatprep.subr.bf16.mxu1 %v7941_v0 }
 0x2e9   :  { %v368_v14 = vpop.permute.xlu1 %367 }
 0x2ea   :  { %6711 = vmatmul.mubr.msk.bf16.gmra.mrb[12].mxu1 %vm75_vm0, %v368_v14 }
 0x3b5   :  { %v6708_v19 = vpop.f32.mrb[8].mxu1 }
 0x3b6   :  { %v415_v21 = vpop.f32.mrb[9].mxu1  ;;  %v448_v27 = vadd.f32 %v6708_v19, %v6150_v20 }
 0x3b7   :  { %v446_v22 = vadd.f32 %v6148_v17, %v415_v21  ;;  %v6709_v23 = vpop.f32.mrb[10].mxu1 }
 0x3b8   :  { %v418_v26 = vpop.f32.mrb[11].mxu1  ;;  %v449_v32 = vadd.f32 %v6709_v23, %v6151_v29  ;;  %v6162_v60 = vmul.f32 -1.442695, %v448_v27 }
 0x3b9   :  { %7004 = vtanh.f32 %v446_v22  ;;  %v447_v30 = vadd.f32 %v6149_v24, %v418_v26  ;;  %v6160_v59 = vmul.f32 -1.442695, %v446_v22 }
 0x3ba   :  { %7006 = vtanh.f32 %v448_v27  ;;  %v6163_v62 = vmul.f32 -1.442695, %v449_v32 }
 0x3bb   :  { %7008 = vtanh.f32 %v447_v30  ;;  %v6161_v61 = vmul.f32 -1.442695, %v447_v30 }
 0x3bc   :  { %7010 = vtanh.f32 %v449_v32 }
 0x3bd   :  { %v6712_v34 = vpop.f32.mrb[12].mxu1 }
 0x3be   :  { %v431_v38 = vpop.f32.mrb[13].mxu1  ;;  %v452_v44 = vadd.f32 %v6712_v34, %v6154_v35 }
 0x3bf   :  { %v450_v39 = vadd.f32 %v6152_v33, %v431_v38  ;;  %v6713_v40 = vpop.f32.mrb[14].mxu1 }
 0x3c0   :  { %v434_v42 = vpop.f32.mrb[15].mxu1  ;;  %v453_v54 = vadd.f32 %v6713_v40, %v6155_v51  ;;  %v6166_v6 = vmul.f32 -1.442695, %v452_v44 }
 0x3c1   :  { %7012 = vtanh.f32 %v450_v39  ;;  %v451_v50 = vadd.f32 %v6153_v46, %v434_v42  ;;  %v6164_v1 = vmul.f32 -1.442695, %v450_v39 }
 0x3c2   :  { %7014 = vtanh.f32 %v452_v44  ;;  %v6167_v16 = vmul.f32 -1.442695, %v453_v54 }
 0x3c3   :  { %v7005_v43 = vpop.eup %7004  ;;  %7016 = vtanh.f32 %v451_v50  ;;  %v6165_v56 = vmul.f32 -1.442695, %v451_v50 }
 0x3c4   :  { %526 = vrot.lane.b32.xlu0 %v7005_v43, %s7887_s20  ;;  %v7007_v47 = vpop.eup %7006  ;;  %7018 = vtanh.f32 %v453_v54 }
 0x3c5   :  { %v7009_v48 = vpop.eup %7008  ;;  %7020 = vpow2.f32 %v6160_v59 }
 0x3c6   :  { %528 = vrot.lane.b32.xlu1 %v7009_v48, %s7887_s20  ;;  %v7011_v52 = vpop.eup %7010  ;;  %7022 = vpow2.f32 %v6162_v60 }
 0x3c7   :  { %7024 = vpow2.f32 %v6161_v61 }
 0x3c8   :  { %530 = vrot.lane.b32.xlu0 %v7007_v47, %s7887_s20  ;;  %7026 = vpow2.f32 %v6163_v62 }
 0x3c9   :  { %7028 = vpow2.f32 %v6164_v1 }
 0x3ca   :  { %532 = vrot.lane.b32.xlu1 %v7011_v52, %s7887_s20  ;;  %7030 = vpow2.f32 %v6166_v6 }
 0x3cb   :  { %v7013_v53 = vpop.eup %7012 }
 0x3cc   :  { %534 = vrot.lane.b32.xlu0 %v7013_v53, %s7887_s20  ;;  %v7015_v55 = vpop.eup %7014 }
 0x3cd   :  { %v7017_v57 = vpop.eup %7016 }
 0x3ce   :  { %536 = vrot.lane.b32.xlu1 %v7017_v57, %s7887_s20  ;;  %v7019_v58 = vpop.eup %7018 }
 0x3cf   :  { %v7021_v5 = vpop.eup %7020 }
 0x3d0   :  { %538 = vrot.lane.b32.xlu0 %v7015_v55, %s7887_s20  ;;  %v478_v7 = vadd.f32 1.0, %v7021_v5  ;;  %v7023_v8 = vpop.eup %7022 }
 0x3d1   :  { %v7025_v11 = vpop.eup %7024  ;;  %v480_v12 = vadd.f32 1.0, %v7023_v8 }
 0x3d2   :  { %540 = vrot.lane.b32.xlu1 %v7019_v58, %s7887_s20  ;;  %7032 = vrcp.f32 %v478_v7  ;;  %v7027_v4 = vpop.eup %7026  ;;  %v479_v13 = vadd.f32 1.0, %v7025_v11 }
 0x3d3   :  { %v7029_v15 = vpop.eup %7028  ;;  %7034 = vpow2.f32 %v6165_v56  ;;  %v481_v63 = vadd.f32 1.0, %v7027_v4 }
 0x3d4   :  { %7036 = vrcp.f32 %v480_v12  ;;  %v482_v9 = vadd.f32 1.0, %v7029_v15  ;;  %v7031_v18 = vpop.eup %7030 }
 0x3d5   :  { %7038 = vrcp.f32 %v479_v13  ;;  %v484_v14 = vadd.f32 1.0, %v7031_v18 }
 0x3d6   :  { %7040 = vpow2.f32 %v6167_v16 }
 0x3d7   :  { %7042 = vrcp.f32 %v481_v63 }
 0x3d8   :  { %7044 = vrcp.f32 %v482_v9 }
 0x3d9   :  { %7046 = vrcp.f32 %v484_v14 }
 0x3dc   :  { %v8146_v10 = vpop.eup %7032 }
 0x3dd   :  { %v7035_v20 = vpop.eup %7034  ;;  %v510_v53 = vmul.f32 %v8146_v10, %v8055_v25 }
 0x3de   :  { %v8150_v21 = vpop.eup %7036  ;;  %v483_v26 = vadd.f32 1.0, %v7035_v20 }
 0x3df   :  { %v8153_v24 = vpop.eup %7038  ;;  %v512_v57 = vmul.f32 %v8150_v21, %v8059_v28 }
 0x3e0   :  { %v7041_v29 = vpop.eup %7040  ;;  %7048 = vrcp.f32 %v483_v26  ;;  %v511_v59 = vmul.f32 %v8153_v24, %v8063_v31 }
 0x3e1   :  { %v8157_v32 = vpop.eup %7042  ;;  %v485_v34 = vadd.f32 1.0, %v7041_v29 }
 0x3e2   :  { %v8160_v33 = vpop.eup %7044  ;;  %v513_v25 = vmul.f32 %v8157_v32, %v8070_v37 }
 0x3e3   :  { %v8166_v42 = vpop.eup %7046  ;;  %7050 = vrcp.f32 %v485_v34  ;;  %v514_v1 = vmul.f32 %v8160_v33, %v8068_v36 }
 0x3e4   :  { %v516_v8 = vmul.f32 %v8166_v42, %v8076_v41 }
 0x3ea   :  { %v8170_v46 = vpop.eup %7048 }
 0x3eb   :  { %v515_v12 = vmul.f32 %v8170_v46, %v8080_v45 }
 0x3ed   :  { %v8174_v50 = vpop.eup %7050 }
 0x3ee   :  { %v517_v15 = vmul.f32 %v8174_v50, %v8086_v49 }
 0x436   :  { %v527_v17 = vpop.permute.xlu0 %526 }
 0x437   :  { %v550_v19 = vmul.f32 %v8146_v10, %v527_v17 }
 0x438   :  { %v529_v27 = vpop.permute.xlu1 %528 }
 0x439   :  { %566 = vrot.lane.b32.xlu0 %v550_v19, %s7887_s20  ;;  %v551_v30 = vmul.f32 %v8153_v24, %v529_v27 }
 0x43a   :  { %v531_v22 = vpop.permute.xlu0 %530 }
 0x43b   :  { %v552_v23 = vmul.f32 %v8150_v21, %v531_v22  ;;  %568 = vrot.lane.b32.xlu1 %v551_v30, %s7887_s20 }
 0x43c   :  { %v533_v35 = vpop.permute.xlu1 %532 }
 0x43d   :  { %570 = vrot.lane.b32.xlu0 %v552_v23, %s7887_s20  ;;  %v553_v39 = vmul.f32 %v8157_v32, %v533_v35 }
 0x43e   :  { %v535_v38 = vpop.permute.xlu0 %534 }
 0x43f   :  { %v554_v40 = vmul.f32 %v8160_v33, %v535_v38  ;;  %572 = vrot.lane.b32.xlu1 %v553_v39, %s7887_s20 }
 0x440   :  { %v537_v47 = vpop.permute.xlu1 %536 }
 0x441   :  { %574 = vrot.lane.b32.xlu0 %v554_v40, %s7887_s20  ;;  %v555_v48 = vmul.f32 %v8170_v46, %v537_v47 }
 0x442   :  { %v539_v43 = vpop.permute.xlu0 %538 }
 0x443   :  { %v556_v44 = vmul.f32 %v8166_v42, %v539_v43  ;;  %576 = vrot.lane.b32.xlu1 %v555_v48, %s7887_s20 }
 0x444   :  { %v541_v51 = vpop.permute.xlu1 %540 }
 0x445   :  { %578 = vrot.lane.b32.xlu0 %v556_v44, %s7887_s20  ;;  %v557_v52 = vmul.f32 %v8174_v50, %v541_v51 }
 0x447   :  { %580 = vrot.lane.b32.xlu1 %v557_v52, %s7887_s20 }
 0x4ab   :  { %v567_v54 = vpop.permute.xlu0 %566 }
 0x4ac   :  { %v8180_v55 = vadd.f32 %v567_v54, %v510_v53 }
 0x4ad   :  { %v569_v61 = vpop.permute.xlu1 %568 }
 0x4ae   :  { %7052 = vtanh.f32 %v8180_v55  ;;  %v8189_v62 = vadd.f32 %v569_v61, %v511_v59 }
 0x4af   :  { %v571_v58 = vpop.permute.xlu0 %570 }
 0x4b0   :  { %v8187_v60 = vadd.f32 %v571_v58, %v512_v57  ;;  %v6171_v58 = vld [vmem:[%s10872_s1 + $0x98] sm:$0xff] }
 0x4b1   :  { %v573_v28 = vpop.permute.xlu1 %572 }
 0x4b2   :  { %7054 = vtanh.f32 %v8187_v60  ;;  %v8197_v6 = vadd.f32 %v573_v28, %v513_v25 }
 0x4b3   :  { %7056 = vtanh.f32 %v8189_v62  ;;  %v575_v5 = vpop.permute.xlu0 %574 }
 0x4b4   :  { %v8199_v31 = vadd.f32 %v575_v5, %v514_v1  ;;  %7058 = vtanh.f32 %v8197_v6  ;;  %v6172_v5 = vld [vmem:[%s10872_s1 + $0xa0] sm:$0xff] }
 0x4b5   :  { %v577_v4 = vpop.permute.xlu1 %576 }
 0x4b6   :  { %7060 = vtanh.f32 %v8199_v31  ;;  %v8213_v41 = vadd.f32 %v577_v4, %v515_v12  ;;  %v6173_v12 = vld [vmem:[%s10872_s1 + $0xa8] sm:$0xff] }
 0x4b7   :  { %v579_v11 = vpop.permute.xlu0 %578 }
 0x4b8   :  { %v7053_v7 = vpop.eup %7052  ;;  %v8206_v37 = vadd.f32 %v579_v11, %v516_v8 }
 0x4b9   :  { %614 = vrot.lane.b32.xlu0 %v7053_v7, %s7887_s20  ;;  %v581_v63 = vpop.permute.xlu1 %580 }
 0x4ba   :  { %7062 = vtanh.f32 %v8206_v37  ;;  %v8219_v9 = vadd.f32 %v581_v63, %v517_v15 }
 0x4bb   :  { %7064 = vtanh.f32 %v8213_v41 }
 0x4bc   :  { %v7055_v36 = vpop.eup %7054  ;;  %7066 = vtanh.f32 %v8219_v9 }
 0x4bd   :  { %618 = vrot.lane.b32.xlu0 %v7055_v36, %s7887_s20  ;;  %v7057_v56 = vpop.eup %7056  ;;  %v6174_v36 = vld [vmem:[%s10872_s1 + $0xb0] sm:$0xff] }
 0x4be   :  { %616 = vrot.lane.b32.xlu1 %v7057_v56, %s7887_s20  ;;  %v7059_v13 = vpop.eup %7058 }
 0x4c0   :  { %v7061_v16 = vpop.eup %7060 }
 0x4c1   :  { %622 = vrot.lane.b32.xlu0 %v7061_v16, %s7887_s20  ;;  %v6175_v16 = vld [vmem:[%s10872_s1 + $0xb8] sm:$0xff] }
 0x4c2   :  { %620 = vrot.lane.b32.xlu1 %v7059_v13, %s7887_s20 }
 0x4c4   :  { %v7063_v45 = vpop.eup %7062 }
 0x4c5   :  { %626 = vrot.lane.b32.xlu0 %v7063_v45, %s7887_s20  ;;  %v7065_v18 = vpop.eup %7064 }
 0x4c6   :  { %624 = vrot.lane.b32.xlu1 %v7065_v18, %s7887_s20  ;;  %v7067_v14 = vpop.eup %7066 }
 0x4ca   :  { %628 = vrot.lane.b32.xlu1 %v7067_v14, %s7887_s20 }
 0x52b   :  { %v615_v49 = vpop.permute.xlu0 %614 }
 0x52c   :  { %v638_v19 = vmul.f32 %v8146_v10, %v615_v49 }
 0x52f   :  { %v619_v22 = vpop.permute.xlu0 %618 }
 0x530   :  { %v617_v17 = vpop.permute.xlu1 %616  ;;  %v640_v27 = vmul.f32 %v8150_v21, %v619_v22 }
 0x531   :  { %v639_v20 = vmul.f32 %v8153_v24, %v617_v17 }
 0x533   :  { %v655_v23 = vpack.c.bf16 %v639_v20, %v638_v19  ;;  %v623_v34 = vpop.permute.xlu0 %622 }
 0x534   :  { %v621_v26 = vpop.permute.xlu1 %620  ;;  %v642_v38 = vmul.f32 %v8160_v33, %v623_v34 }
 0x535   :  { %v641_v29 = vmul.f32 %v8157_v32, %v621_v26  ;;  %663 = vrot.lane.b32.xlu0 %v655_v23, %s7888_s23 }
 0x537   :  { %v656_v30 = vpack.c.bf16 %v641_v29, %v640_v27  ;;  %v627_v39 = vpop.permute.xlu0 %626 }
 0x538   :  { %v625_v35 = vpop.permute.xlu1 %624  ;;  %v644_v43 = vmul.f32 %v8166_v42, %v627_v39 }
 0x539   :  { %665 = vrot.lane.b32.xlu1 %v656_v30, %s7888_s23  ;;  %v643_v10 = vmul.f32 %v8170_v46, %v625_v35  ;;  %v6168_v46 = vld [vmem:[%s10872_s1 + $0x80] sm:$0xff] }
 0x53b   :  { %v657_v24 = vpack.c.bf16 %v643_v10, %v642_v38 }
 0x53c   :  { %v629_v40 = vpop.permute.xlu1 %628 }
 0x53d   :  { %v645_v21 = vmul.f32 %v8174_v50, %v629_v40  ;;  %667 = vrot.lane.b32.xlu0 %v657_v24, %s7888_s23  ;;  %v6170_v50 = vld [vmem:[%s10872_s1 + $0x90] sm:$0xff] }
 0x53f   :  { %v658_v32 = vpack.c.bf16 %v645_v21, %v644_v43 }
 0x541   :  { %669 = vrot.lane.b32.xlu1 %v658_v32, %s7888_s23 }
 0x5a7   :  { %v664_v44 = vpop.permute.xlu0 %663 }
 0x5a8   :  { %6718 = vmatprep.mubr.msk.bf16.mxu0 %vm75_vm0, %v664_v44 }
 0x5ab   :  { %v666_v47 = vpop.permute.xlu1 %665 }
 0x5ac   :  { %6719 = vmatmul.mubr.msk.bf16.vlgmr.msra.gmra.mrb[0].mxu0 %vm75_vm0, %v666_v47 }
 0x5ad   :  { %6739 = vmatpush3.bf16.msra.mxu0 %v7941_v0 }
 0x5ae   :  { %6740 = vmatprep.subr.bf16.mxu0 %v7970_v2 }
 0x5af   :  { %v668_v33 = vpop.permute.xlu0 %667 }
 0x5b0   :  { %6722 = vmatprep.mubr.msk.bf16.mxu0 %vm75_vm0, %v668_v33 }
 0x5b1   :  { %6741 = vmatpush3.bf16.msra.mxu0 %v7970_v2 }
 0x5b2   :  { %6762 = vmatprep.subr.bf16.mxu0 %v7941_v0  ;;  %v6169_v0 = vld [vmem:[%s10872_s1 + $0x88] sm:$0xff] }
 0x5b3   :  { %v670_v42 = vpop.permute.xlu1 %669 }
 0x5b4   :  { %6723 = vmatmul.mubr.msk.bf16.gmra.mrb[4].mxu0 %vm75_vm0, %v670_v42 }
 0x67f   :  { %v6720_v48 = vpop.f32.mrb[0].mxu0 }
 0x680   :  { %v717_v51 = vpop.f32.mrb[1].mxu0  ;;  %v750_v54 = vadd.f32 %v6720_v48, %v6170_v50 }
 0x681   :  { %v748_v52 = vadd.f32 %v6168_v46, %v717_v51  ;;  %v6721_v2 = vpop.f32.mrb[2].mxu0 }
 0x682   :  { %v720_v53 = vpop.f32.mrb[3].mxu0  ;;  %v751_v59 = vadd.f32 %v6721_v2, %v6171_v58  ;;  %v6182_v19 = vmul.f32 -1.442695, %v750_v54 }
 0x683   :  { %7068 = vtanh.f32 %v748_v52  ;;  %v749_v57 = vadd.f32 %v6169_v0, %v720_v53  ;;  %v6180_v17 = vmul.f32 -1.442695, %v748_v52 }
 0x684   :  { %7070 = vtanh.f32 %v750_v54  ;;  %v6183_v22 = vmul.f32 -1.442695, %v751_v59 }
 0x685   :  { %7072 = vtanh.f32 %v749_v57  ;;  %v6181_v20 = vmul.f32 -1.442695, %v749_v57 }
 0x686   :  { %7074 = vtanh.f32 %v751_v59 }
 0x687   :  { %v6724_v25 = vpop.f32.mrb[4].mxu0 }
 0x688   :  { %v733_v1 = vpop.f32.mrb[5].mxu0  ;;  %v754_v4 = vadd.f32 %v6724_v25, %v6174_v36 }
 0x689   :  { %v6725_v28 = vpop.f32.mrb[6].mxu0  ;;  %v752_v56 = vadd.f32 %v6172_v5, %v733_v1 }
 0x68a   :  { %v736_v7 = vpop.f32.mrb[7].mxu0  ;;  %v755_v63 = vadd.f32 %v6725_v28, %v6175_v16  ;;  %v6186_v35 = vmul.f32 -1.442695, %v754_v4 }
 0x68b   :  { %7076 = vtanh.f32 %v752_v56  ;;  %v753_v15 = vadd.f32 %v6173_v12, %v736_v7  ;;  %v6184_v30 = vmul.f32 -1.442695, %v752_v56 }
 0x68c   :  { %7078 = vtanh.f32 %v754_v4  ;;  %v6187_v40 = vmul.f32 -1.442695, %v755_v63 }
 0x68d   :  { %v7069_v61 = vpop.eup %7068  ;;  %7080 = vtanh.f32 %v753_v15  ;;  %v6185_v39 = vmul.f32 -1.442695, %v753_v15 }
 0x68e   :  { %828 = vrot.lane.b32.xlu0 %v7069_v61, %s7887_s20  ;;  %v7071_v8 = vpop.eup %7070  ;;  %7082 = vtanh.f32 %v755_v63 }
 0x68f   :  { %v7073_v11 = vpop.eup %7072  ;;  %7084 = vpow2.f32 %v6180_v17 }
 0x690   :  { %830 = vrot.lane.b32.xlu1 %v7073_v11, %s7887_s20  ;;  %v7075_v13 = vpop.eup %7074  ;;  %7086 = vpow2.f32 %v6182_v19 }
 0x691   :  { %7088 = vpow2.f32 %v6181_v20 }
 0x692   :  { %832 = vrot.lane.b32.xlu0 %v7071_v8, %s7887_s20  ;;  %7090 = vpow2.f32 %v6183_v22 }
 0x694   :  { %834 = vrot.lane.b32.xlu1 %v7075_v13, %s7887_s20 }
 0x695   :  { %v7077_v45 = vpop.eup %7076 }
 0x696   :  { %836 = vrot.lane.b32.xlu0 %v7077_v45, %s7887_s20  ;;  %v7079_v18 = vpop.eup %7078 }
 0x697   :  { %v7081_v14 = vpop.eup %7080 }
 0x698   :  { %838 = vrot.lane.b32.xlu1 %v7081_v14, %s7887_s20  ;;  %v7083_v49 = vpop.eup %7082 }
 0x699   :  { %v7085_v23 = vpop.eup %7084 }
 0x69a   :  { %840 = vrot.lane.b32.xlu0 %v7079_v18, %s7887_s20  ;;  %v780_v26 = vadd.f32 1.0, %v7085_v23  ;;  %v7087_v27 = vpop.eup %7086 }
 0x69b   :  { %v7089_v29 = vpop.eup %7088  ;;  %v782_v34 = vadd.f32 1.0, %v7087_v27 }
 0x69c   :  { %842 = vrot.lane.b32.xlu1 %v7083_v49, %s7887_s20  ;;  %7092 = vrcp.f32 %v780_v26  ;;  %v781_v38 = vadd.f32 1.0, %v7089_v29  ;;  %v7091_v10 = vpop.eup %7090 }
 0x69d   :  { %7094 = vpow2.f32 %v6184_v30  ;;  %v783_v24 = vadd.f32 1.0, %v7091_v10 }
 0x69e   :  { %7096 = vrcp.f32 %v782_v34 }
 0x69f   :  { %7098 = vpow2.f32 %v6186_v35 }
 0x6a0   :  { %7100 = vrcp.f32 %v781_v38 }
 0x6a1   :  { %7102 = vpow2.f32 %v6185_v39 }
 0x6a2   :  { %7104 = vrcp.f32 %v783_v24 }
 0x6a3   :  { %7106 = vpow2.f32 %v6187_v40 }
 0x6a6   :  { %v8278_v43 = vpop.eup %7092 }
 0x6a7   :  { %v7095_v44 = vpop.eup %7094  ;;  %v812_v15 = vmul.f32 %v8278_v43, %v8180_v55 }
 0x6a8   :  { %v8282_v47 = vpop.eup %7096  ;;  %v784_v50 = vadd.f32 1.0, %v7095_v44 }
 0x6a9   :  { %v7099_v42 = vpop.eup %7098  ;;  %v814_v45 = vmul.f32 %v8282_v47, %v8187_v60 }
 0x6aa   :  { %v8285_v48 = vpop.eup %7100  ;;  %v786_v0 = vadd.f32 1.0, %v7099_v42  ;;  %7108 = vrcp.f32 %v784_v50 }
 0x6ab   :  { %v7103_v52 = vpop.eup %7102  ;;  %v813_v14 = vmul.f32 %v8285_v48, %v8189_v62 }
 0x6ac   :  { %v8290_v53 = vpop.eup %7104  ;;  %v785_v54 = vadd.f32 1.0, %v7103_v52  ;;  %7110 = vrcp.f32 %v786_v0 }
 0x6ad   :  { %v7107_v58 = vpop.eup %7106  ;;  %v815_v55 = vmul.f32 %v8290_v53, %v8197_v6 }
 0x6ae   :  { %v787_v61 = vadd.f32 1.0, %v7107_v58  ;;  %7112 = vrcp.f32 %v785_v54 }
 0x6b0   :  { %7114 = vrcp.f32 %v787_v61 }
 0x6b4   :  { %v8294_v25 = vpop.eup %7108 }
 0x6b5   :  { %v816_v26 = vmul.f32 %v8294_v25, %v8199_v31 }
 0x6b6   :  { %v8297_v5 = vpop.eup %7110 }
 0x6b7   :  { %v818_v34 = vmul.f32 %v8297_v5, %v8206_v37 }
 0x6b8   :  { %v8300_v7 = vpop.eup %7112 }
 0x6b9   :  { %v817_v30 = vmul.f32 %v8300_v7, %v8213_v41 }
 0x6ba   :  { %v8306_v12 = vpop.eup %7114 }
 0x6bb   :  { %v819_v39 = vmul.f32 %v8306_v12, %v8219_v9 }
 0x700   :  { %v829_v21 = vpop.permute.xlu0 %828 }
 0x701   :  { %v852_v32 = vmul.f32 %v8278_v43, %v829_v21 }
 0x702   :  { %v831_v51 = vpop.permute.xlu1 %830 }
 0x703   :  { %868 = vrot.lane.b32.xlu0 %v852_v32, %s7887_s20  ;;  %v853_v2 = vmul.f32 %v8285_v48, %v831_v51 }
 0x704   :  { %v833_v33 = vpop.permute.xlu0 %832 }
 0x705   :  { %v854_v46 = vmul.f32 %v8282_v47, %v833_v33  ;;  %870 = vrot.lane.b32.xlu1 %v853_v2, %s7887_s20 }
 0x706   :  { %v835_v57 = vpop.permute.xlu1 %834 }
 0x707   :  { %872 = vrot.lane.b32.xlu0 %v854_v46, %s7887_s20  ;;  %v855_v59 = vmul.f32 %v8290_v53, %v835_v57 }
 0x708   :  { %v837_v1 = vpop.permute.xlu0 %836 }
 0x709   :  { %874 = vrot.lane.b32.xlu1 %v855_v59, %s7887_s20  ;;  %v856_v28 = vmul.f32 %v8294_v25, %v837_v1 }
 0x70a   :  { %v839_v8 = vpop.permute.xlu1 %838 }
 0x70b   :  { %876 = vrot.lane.b32.xlu0 %v856_v28, %s7887_s20  ;;  %v857_v36 = vmul.f32 %v8300_v7, %v839_v8 }
 0x70c   :  { %v841_v11 = vpop.permute.xlu0 %840 }
 0x70d   :  { %v858_v56 = vmul.f32 %v8297_v5, %v841_v11  ;;  %878 = vrot.lane.b32.xlu1 %v857_v36, %s7887_s20  ;;  %v6188_v36 = vld [vmem:[%s10872_s1 + $0xc0] sm:$0xff] }
 0x70e   :  { %v843_v4 = vpop.permute.xlu1 %842 }
 0x70f   :  { %880 = vrot.lane.b32.xlu0 %v858_v56, %s7887_s20  ;;  %v859_v13 = vmul.f32 %v8306_v12, %v843_v4 }
 0x711   :  { %882 = vrot.lane.b32.xlu1 %v859_v13, %s7887_s20 }
 0x775   :  { %v869_v16 = vpop.permute.xlu0 %868 }
 0x776   :  { %v8312_v63 = vadd.f32 %v869_v16, %v812_v15  ;;  %v6189_v16 = vld [vmem:[%s10872_s1 + $0xc8] sm:$0xff] }
 0x777   :  { %v871_v17 = vpop.permute.xlu1 %870 }
 0x778   :  { %7116 = vtanh.f32 %v8312_v63  ;;  %v8321_v19 = vadd.f32 %v871_v17, %v813_v14  ;;  %v6191_v17 = vld [vmem:[%s10872_s1 + $0xd8] sm:$0xff] }
 0x779   :  { %v873_v18 = vpop.permute.xlu0 %872 }
 0x77a   :  { %v8319_v49 = vadd.f32 %v873_v18, %v814_v45 }
 0x77b   :  { %v875_v20 = vpop.permute.xlu1 %874 }
 0x77c   :  { %7118 = vtanh.f32 %v8319_v49  ;;  %v8327_v22 = vadd.f32 %v875_v20, %v815_v55 }
 0x77d   :  { %7120 = vtanh.f32 %v8321_v19  ;;  %v877_v27 = vpop.permute.xlu0 %876 }
 0x77e   :  { %7122 = vtanh.f32 %v8327_v22  ;;  %v8335_v29 = vadd.f32 %v877_v27, %v816_v26 }
 0x77f   :  { %v879_v35 = vpop.permute.xlu1 %878 }
 0x780   :  { %7124 = vtanh.f32 %v8335_v29  ;;  %v8343_v10 = vadd.f32 %v879_v35, %v817_v30  ;;  %v6194_v30 = vld [vmem:[%s10872_s1 + $0xf0] sm:$0xff] }
 0x781   :  { %v881_v38 = vpop.permute.xlu0 %880 }
 0x782   :  { %v7117_v60 = vpop.eup %7116  ;;  %v8345_v31 = vadd.f32 %v881_v38, %v818_v34  ;;  %7126 = vtanh.f32 %v8343_v10  ;;  %v6193_v38 = vld [vmem:[%s10872_s1 + $0xe8] sm:$0xff] }
 0x783   :  { %916 = vrot.lane.b32.xlu0 %v7117_v60, %s7887_s20  ;;  %v883_v24 = vpop.permute.xlu1 %882 }
 0x784   :  { %7128 = vtanh.f32 %v8345_v31  ;;  %v8351_v41 = vadd.f32 %v883_v24, %v819_v39 }
 0x786   :  { %v7119_v62 = vpop.eup %7118  ;;  %7130 = vtanh.f32 %v8351_v41 }
 0x787   :  { %920 = vrot.lane.b32.xlu0 %v7119_v62, %s7887_s20  ;;  %v7121_v23 = vpop.eup %7120 }
 0x788   :  { %918 = vrot.lane.b32.xlu1 %v7121_v23, %s7887_s20  ;;  %v7123_v6 = vpop.eup %7122  ;;  %v6192_v23 = vld [vmem:[%s10872_s1 + $0xe0] sm:$0xff] }
 0x78a   :  { %v7125_v37 = vpop.eup %7124 }
 0x78b   :  { %924 = vrot.lane.b32.xlu0 %v7125_v37, %s7887_s20 }
 0x78c   :  { %922 = vrot.lane.b32.xlu1 %v7123_v6, %s7887_s20  ;;  %v7127_v40 = vpop.eup %7126 }
 0x78e   :  { %v7129_v21 = vpop.eup %7128 }
 0x78f   :  { %928 = vrot.lane.b32.xlu0 %v7129_v21, %s7887_s20 }
 0x790   :  { %926 = vrot.lane.b32.xlu1 %v7127_v40, %s7887_s20  ;;  %v7131_v32 = vpop.eup %7130  ;;  %v6195_v40 = vld [vmem:[%s10872_s1 + $0xf8] sm:$0xff] }
 0x794   :  { %930 = vrot.lane.b32.xlu1 %v7131_v32, %s7887_s20 }
 0x7f5   :  { %v917_v9 = vpop.permute.xlu0 %916 }
 0x7f6   :  { %v940_v33 = vmul.f32 %v8278_v43, %v917_v9 }
 0x7f9   :  { %v921_v46 = vpop.permute.xlu0 %920 }
 0x7fa   :  { %v919_v44 = vpop.permute.xlu1 %918  ;;  %v942_v52 = vmul.f32 %v8282_v47, %v921_v46 }
 0x7fb   :  { %v941_v42 = vmul.f32 %v8285_v48, %v919_v44 }
 0x7fd   :  { %v957_v50 = vpack.c.bf16 %v941_v42, %v940_v33  ;;  %v925_v54 = vpop.permute.xlu0 %924 }
 0x7fe   :  { %v923_v51 = vpop.permute.xlu1 %922  ;;  %v944_v58 = vmul.f32 %v8294_v25, %v925_v54  ;;  %v8375_v25 = vld [vmem:[%s10874_s3] sm:$0xff]  }
 0x7ff   :  { %v943_v2 = vmul.f32 %v8290_v53, %v923_v51  ;;  %965 = vrot.lane.b32.xlu0 %v957_v50, %s7888_s23 }
 0x801   :  { %v958_v0 = vpack.c.bf16 %v943_v2, %v942_v52  ;;  %v929_v59 = vpop.permute.xlu0 %928 }
 0x802   :  { %v927_v57 = vpop.permute.xlu1 %926  ;;  %v946_v1 = vmul.f32 %v8297_v5, %v929_v59  ;;  %v8381_v5 = vld [vmem:[%s10874_s3 + $0x8] sm:$0xff]   ;;  %s6457_s3 = sld [smem:[#allocation2 + $0x4]] }
 0x803   :  { %967 = vrot.lane.b32.xlu1 %v958_v0, %s7888_s23  ;;  %v945_v43 = vmul.f32 %v8300_v7, %v927_v57 }
 0x805   :  { %v959_v48 = vpack.c.bf16 %v945_v43, %v944_v58 }
 0x806   :  { %v931_v61 = vpop.permute.xlu1 %930 }
 0x807   :  { %v947_v47 = vmul.f32 %v8306_v12, %v931_v61  ;;  %969 = vrot.lane.b32.xlu0 %v959_v48, %s7888_s23  ;;  %v6190_v12 = vld [vmem:[%s10872_s1 + $0xd0] sm:$0xff] }
 0x808   :  { %p4648_p8 = scmp.eq.s32.totalorder %s6457_s3, 1 }
 0x809   :  { %v960_v53 = vpack.c.bf16 %v947_v47, %v946_v1 }
 0x80a   :  { %s4658_s21 = scalar_select %p4648_p8, 1, 0 }
 0x80b   :  { %971 = vrot.lane.b32.xlu1 %v960_v53, %s7888_s23 }
 0x871   :  { %v966_v28 = vpop.permute.xlu0 %965 }
 0x872   :  { %6730 = vmatprep.mubr.msk.bf16.mxu1 %vm75_vm0, %v966_v28 }
 0x875   :  { %v968_v8 = vpop.permute.xlu1 %967 }
 0x876   :  { %6731 = vmatmul.mubr.msk.bf16.vlgmr.msra.gmra.mrb[16].mxu1 %vm75_vm0, %v968_v8 }
 0x877   :  { %6751 = vmatpush3.bf16.msra.mxu1 %v8375_v25 }
 0x878   :  { %6752 = vmatprep.subr.bf16.mxu1 %v8381_v5 }
 0x879   :  { %v970_v7 = vpop.permute.xlu0 %969 }
 0x87a   :  { %6734 = vmatprep.mubr.msk.bf16.mxu1 %vm75_vm0, %v970_v7 }
 0x87b   :  { %6753 = vmatpush3.bf16.msra.mxu1 %v8381_v5 }
 0x87d   :  { %v972_v11 = vpop.permute.xlu1 %971 }
 0x87e   :  { %6735 = vmatmul.mubr.msk.bf16.gmra.mrb[20].mxu1 %vm75_vm0, %v972_v11 }
 0x949   :  { %v6732_v56 = vpop.f32.mrb[16].mxu1 }
 0x94a   :  { %v1019_v4 = vpop.f32.mrb[17].mxu1  ;;  %v1052_v18 = vadd.f32 %v6732_v56, %v6190_v12 }
 0x94b   :  { %v1050_v13 = vadd.f32 %v6188_v36, %v1019_v4  ;;  %v6733_v15 = vpop.f32.mrb[18].mxu1 }
 0x94c   :  { %v1022_v45 = vpop.f32.mrb[19].mxu1  ;;  %v1053_v55 = vadd.f32 %v6733_v15, %v6191_v17  ;;  %v6202_v46 = vmul.f32 -1.442695, %v1052_v18 }
 0x94d   :  { %7132 = vtanh.f32 %v1050_v13  ;;  %v1051_v14 = vadd.f32 %v6189_v16, %v1022_v45  ;;  %v6200_v42 = vmul.f32 -1.442695, %v1050_v13 }
 0x94e   :  { %7134 = vtanh.f32 %v1052_v18  ;;  %v6203_v51 = vmul.f32 -1.442695, %v1053_v55 }
 0x94f   :  { %7136 = vtanh.f32 %v1051_v14  ;;  %v6201_v50 = vmul.f32 -1.442695, %v1051_v14 }
 0x950   :  { %7138 = vtanh.f32 %v1053_v55 }
 0x951   :  { %v6736_v62 = vpop.f32.mrb[20].mxu1 }
 0x952   :  { %v1035_v26 = vpop.f32.mrb[21].mxu1  ;;  %v1056_v24 = vadd.f32 %v6736_v62, %v6194_v30 }
 0x953   :  { %v6737_v6 = vpop.f32.mrb[22].mxu1  ;;  %v1054_v34 = vadd.f32 %v6192_v23, %v1035_v26 }
 0x954   :  { %v1038_v35 = vpop.f32.mrb[23].mxu1  ;;  %v1057_v21 = vadd.f32 %v6737_v6, %v6195_v40  ;;  %v6206_v48 = vmul.f32 -1.442695, %v1056_v24 }
 0x955   :  { %7140 = vtanh.f32 %v1054_v34  ;;  %v1055_v37 = vadd.f32 %v6193_v38, %v1038_v35  ;;  %v6204_v58 = vmul.f32 -1.442695, %v1054_v34 }
 0x956   :  { %7142 = vtanh.f32 %v1056_v24  ;;  %v6207_v47 = vmul.f32 -1.442695, %v1057_v21 }
 0x957   :  { %v7133_v20 = vpop.eup %7132  ;;  %7144 = vtanh.f32 %v1055_v37  ;;  %v6205_v61 = vmul.f32 -1.442695, %v1055_v37 }
 0x958   :  { %1130 = vrot.lane.b32.xlu0 %v7133_v20, %s7887_s20  ;;  %v7135_v60 = vpop.eup %7134  ;;  %7146 = vtanh.f32 %v1057_v21 }
 0x959   :  { %v7137_v27 = vpop.eup %7136  ;;  %7148 = vpow2.f32 %v6200_v42 }
 0x95a   :  { %1132 = vrot.lane.b32.xlu1 %v7137_v27, %s7887_s20  ;;  %v7139_v39 = vpop.eup %7138  ;;  %7150 = vpow2.f32 %v6202_v46 }
 0x95b   :  { %7152 = vpow2.f32 %v6201_v50 }
 0x95c   :  { %1134 = vrot.lane.b32.xlu0 %v7135_v60, %s7887_s20  ;;  %7154 = vpow2.f32 %v6203_v51 }
 0x95e   :  { %1136 = vrot.lane.b32.xlu1 %v7139_v39, %s7887_s20 }
 0x95f   :  { %v7141_v32 = vpop.eup %7140 }
 0x960   :  { %1138 = vrot.lane.b32.xlu0 %v7141_v32, %s7887_s20  ;;  %v7143_v9 = vpop.eup %7142 }
 0x961   :  { %v7145_v44 = vpop.eup %7144 }
 0x962   :  { %1140 = vrot.lane.b32.xlu1 %v7145_v44, %s7887_s20  ;;  %v7147_v33 = vpop.eup %7146 }
 0x963   :  { %v7149_v52 = vpop.eup %7148 }
 0x964   :  { %1142 = vrot.lane.b32.xlu0 %v7143_v9, %s7887_s20  ;;  %v7151_v2 = vpop.eup %7150  ;;  %v1082_v0 = vadd.f32 1.0, %v7149_v52 }
 0x965   :  { %v7153_v54 = vpop.eup %7152  ;;  %v1084_v57 = vadd.f32 1.0, %v7151_v2 }
 0x966   :  { %1144 = vrot.lane.b32.xlu1 %v7147_v33, %s7887_s20  ;;  %7156 = vrcp.f32 %v1082_v0  ;;  %v1083_v43 = vadd.f32 1.0, %v7153_v54  ;;  %v7155_v59 = vpop.eup %7154 }
 0x967   :  { %7158 = vrcp.f32 %v1084_v57  ;;  %v1085_v1 = vadd.f32 1.0, %v7155_v59 }
 0x968   :  { %7160 = vpow2.f32 %v6204_v58 }
 0x969   :  { %7162 = vrcp.f32 %v1083_v43 }
 0x96a   :  { %7164 = vpow2.f32 %v6206_v48 }
 0x96b   :  { %7166 = vpow2.f32 %v6205_v61 }
 0x96c   :  { %7168 = vrcp.f32 %v1085_v1 }
 0x96d   :  { %7170 = vpow2.f32 %v6207_v47 }
 0x970   :  { %v8419_v53 = vpop.eup %7156 }
 0x971   :  { %v8422_v7 = vpop.eup %7158  ;;  %v1114_v21 = vmul.f32 %v8419_v53, %v8312_v63 }
 0x972   :  { %v7161_v11 = vpop.eup %7160  ;;  %v1116_v44 = vmul.f32 %v8422_v7, %v8319_v49 }
 0x973   :  { %v8426_v12 = vpop.eup %7162  ;;  %v1086_v15 = vadd.f32 1.0, %v7161_v11 }
 0x974   :  { %v7165_v13 = vpop.eup %7164  ;;  %v1115_v42 = vmul.f32 %v8426_v12, %v8321_v19 }
 0x975   :  { %v7167_v45 = vpop.eup %7166  ;;  %v1088_v14 = vadd.f32 1.0, %v7165_v13  ;;  %7172 = vrcp.f32 %v1086_v15 }
 0x976   :  { %v8431_v18 = vpop.eup %7168  ;;  %v1087_v55 = vadd.f32 1.0, %v7167_v45 }
 0x977   :  { %v7171_v60 = vpop.eup %7170  ;;  %7174 = vrcp.f32 %v1088_v14  ;;  %v1117_v63 = vmul.f32 %v8431_v18, %v8327_v22 }
 0x978   :  { %v1089_v62 = vadd.f32 1.0, %v7171_v60  ;;  %7176 = vrcp.f32 %v1087_v55 }
 0x97a   :  { %7178 = vrcp.f32 %v1089_v62 }
 0x97f   :  { %v8435_v23 = vpop.eup %7172 }
 0x980   :  { %v1118_v54 = vmul.f32 %v8435_v23, %v8335_v29 }
 0x981   :  { %v8438_v6 = vpop.eup %7174 }
 0x982   :  { %v8441_v30 = vpop.eup %7176  ;;  %v1120_v59 = vmul.f32 %v8438_v6, %v8345_v31 }
 0x983   :  { %v1119_v43 = vmul.f32 %v8441_v30, %v8343_v10 }
 0x984   :  { %v8447_v24 = vpop.eup %7178 }
 0x985   :  { %v1121_v47 = vmul.f32 %v8447_v24, %v8351_v41 }
 0x9ca   :  { %v1131_v28 = vpop.permute.xlu0 %1130 }
 0x9cb   :  { %v1154_v8 = vmul.f32 %v8419_v53, %v1131_v28 }
 0x9cc   :  { %v1133_v4 = vpop.permute.xlu1 %1132 }
 0x9cd   :  { %1170 = vrot.lane.b32.xlu0 %v1154_v8, %s7887_s20  ;;  %v1155_v16 = vmul.f32 %v8426_v12, %v1133_v4 }
 0x9ce   :  { %v1135_v36 = vpop.permute.xlu0 %1134 }
 0x9cf   :  { %v1156_v56 = vmul.f32 %v8422_v7, %v1135_v36  ;;  %1172 = vrot.lane.b32.xlu1 %v1155_v16, %s7887_s20 }
 0x9d0   :  { %v1137_v17 = vpop.permute.xlu1 %1136 }
 0x9d1   :  { %1174 = vrot.lane.b32.xlu0 %v1156_v56, %s7887_s20  ;;  %v1157_v20 = vmul.f32 %v8431_v18, %v1137_v17 }
 0x9d2   :  { %v1139_v26 = vpop.permute.xlu0 %1138 }
 0x9d3   :  { %1176 = vrot.lane.b32.xlu1 %v1157_v20, %s7887_s20  ;;  %v1158_v27 = vmul.f32 %v8435_v23, %v1139_v26 }
 0x9d4   :  { %v1141_v34 = vpop.permute.xlu1 %1140 }
 0x9d5   :  { %1178 = vrot.lane.b32.xlu0 %v1158_v27, %s7887_s20  ;;  %v1159_v38 = vmul.f32 %v8441_v30, %v1141_v34 }
 0x9d6   :  { %v1143_v35 = vpop.permute.xlu0 %1142 }
 0x9d7   :  { %v1160_v39 = vmul.f32 %v8438_v6, %v1143_v35  ;;  %1180 = vrot.lane.b32.xlu1 %v1159_v38, %s7887_s20 }
 0x9d8   :  { %v1145_v37 = vpop.permute.xlu1 %1144 }
 0x9d9   :  { %1182 = vrot.lane.b32.xlu0 %v1160_v39, %s7887_s20  ;;  %v1161_v40 = vmul.f32 %v8447_v24, %v1145_v37 }
 0x9db   :  { %1184 = vrot.lane.b32.xlu1 %v1161_v40, %s7887_s20 }
 0xa3f   :  { %v1171_v32 = vpop.permute.xlu0 %1170 }
 0xa40   :  { %v8453_v9 = vadd.f32 %v1171_v32, %v1114_v21 }
 0xa41   :  { %v1173_v50 = vpop.permute.xlu1 %1172 }
 0xa42   :  { %7180 = vtanh.f32 %v8453_v9  ;;  %v8462_v51 = vadd.f32 %v1173_v50, %v1115_v42 }
 0xa43   :  { %v1175_v33 = vpop.permute.xlu0 %1174 }
 0xa44   :  { %v8460_v46 = vadd.f32 %v1175_v33, %v1116_v44  ;;  %v6211_v33 = vld [vmem:[%s10872_s1 + $0x118] sm:$0xff] }
 0xa45   :  { %v1177_v52 = vpop.permute.xlu1 %1176 }
 0xa46   :  { %7182 = vtanh.f32 %v8460_v46  ;;  %v8468_v2 = vadd.f32 %v1177_v52, %v1117_v63 }
 0xa47   :  { %7184 = vtanh.f32 %v8462_v51  ;;  %v1179_v57 = vpop.permute.xlu0 %1178 }
 0xa48   :  { %7186 = vtanh.f32 %v8468_v2  ;;  %v8476_v58 = vadd.f32 %v1179_v57, %v1118_v54  ;;  %v6214_v57 = vld [vmem:[%s10872_s1 + $0x130] sm:$0xff] }
 0xa49   :  { %v1181_v48 = vpop.permute.xlu1 %1180 }
 0xa4a   :  { %7188 = vtanh.f32 %v8476_v58  ;;  %v8484_v1 = vadd.f32 %v1181_v48, %v1119_v43 }
 0xa4b   :  { %v1183_v61 = vpop.permute.xlu0 %1182 }
 0xa4c   :  { %v7181_v49 = vpop.eup %7180  ;;  %v8486_v29 = vadd.f32 %v1183_v61, %v1120_v59  ;;  %7190 = vtanh.f32 %v8484_v1  ;;  %v6213_v59 = vld [vmem:[%s10872_s1 + $0x128] sm:$0xff] }
 0xa4d   :  { %1218 = vrot.lane.b32.xlu0 %v7181_v49, %s7887_s20  ;;  %v1185_v28 = vpop.permute.xlu1 %1184  ;;  %v6212_v49 = vld [vmem:[%s10872_s1 + $0x120] sm:$0xff] }
 0xa4e   :  { %7192 = vtanh.f32 %v8486_v29  ;;  %v8492_v10 = vadd.f32 %v1185_v28, %v1121_v47  ;;  %v6215_v28 = vld [vmem:[%s10872_s1 + $0x138] sm:$0xff] }
 0xa50   :  { %v7183_v19 = vpop.eup %7182  ;;  %7194 = vtanh.f32 %v8492_v10 }
 0xa51   :  { %1222 = vrot.lane.b32.xlu0 %v7183_v19, %s7887_s20  ;;  %v7185_v0 = vpop.eup %7184 }
 0xa52   :  { %1220 = vrot.lane.b32.xlu1 %v7185_v0, %s7887_s20  ;;  %v7187_v22 = vpop.eup %7186 }
 0xa54   :  { %v7189_v31 = vpop.eup %7188 }
 0xa55   :  { %1226 = vrot.lane.b32.xlu0 %v7189_v31, %s7887_s20 }
 0xa56   :  { %1224 = vrot.lane.b32.xlu1 %v7187_v22, %s7887_s20  ;;  %v7191_v8 = vpop.eup %7190 }
 0xa58   :  { %v7193_v11 = vpop.eup %7192 }
 0xa59   :  { %1230 = vrot.lane.b32.xlu0 %v7193_v11, %s7887_s20 }
 0xa5a   :  { %1228 = vrot.lane.b32.xlu1 %v7191_v8, %s7887_s20  ;;  %v7195_v36 = vpop.eup %7194 }
 0xa5e   :  { %1232 = vrot.lane.b32.xlu1 %v7195_v36, %s7887_s20 }
 0xabf   :  { %v1219_v41 = vpop.permute.xlu0 %1218 }
 0xac0   :  { %v1242_v4 = vmul.f32 %v8419_v53, %v1219_v41 }
 0xac3   :  { %v1223_v15 = vpop.permute.xlu0 %1222 }
 0xac4   :  { %v1221_v56 = vpop.permute.xlu1 %1220  ;;  %v1244_v14 = vmul.f32 %v8422_v7, %v1223_v15 }
 0xac5   :  { %v1243_v13 = vmul.f32 %v8426_v12, %v1221_v56 }
 0xac7   :  { %v1259_v16 = vpack.c.bf16 %v1243_v13, %v1242_v4  ;;  %v1227_v20 = vpop.permute.xlu0 %1226 }
 0xac8   :  { %v1225_v45 = vpop.permute.xlu1 %1224  ;;  %v1246_v62 = vmul.f32 %v8435_v23, %v1227_v20 }
 0xac9   :  { %v1245_v17 = vmul.f32 %v8431_v18, %v1225_v45  ;;  %1267 = vrot.lane.b32.xlu0 %v1259_v16, %s7888_s23 }
 0xacb   :  { %v1260_v55 = vpack.c.bf16 %v1245_v17, %v1244_v14  ;;  %v1231_v26 = vpop.permute.xlu0 %1230 }
 0xacc   :  { %v1229_v60 = vpop.permute.xlu1 %1228  ;;  %v1248_v34 = vmul.f32 %v8438_v6, %v1231_v26 }
 0xacd   :  { %1269 = vrot.lane.b32.xlu1 %v1260_v55, %s7888_s23  ;;  %v1247_v53 = vmul.f32 %v8441_v30, %v1229_v60  ;;  %v6208_v30 = vld [vmem:[%s10872_s1 + $0x100] sm:$0xff] }
 0xacf   :  { %v1261_v12 = vpack.c.bf16 %v1247_v53, %v1246_v62 }
 0xad0   :  { %v1233_v27 = vpop.permute.xlu1 %1232 }
 0xad1   :  { %v1249_v7 = vmul.f32 %v8447_v24, %v1233_v27  ;;  %1271 = vrot.lane.b32.xlu0 %v1261_v12, %s7888_s23  ;;  %v6210_v24 = vld [vmem:[%s10872_s1 + $0x110] sm:$0xff] }
 0xad3   :  { %v1262_v18 = vpack.c.bf16 %v1249_v7, %v1248_v34 }
 0xad5   :  { %1273 = vrot.lane.b32.xlu1 %v1262_v18, %s7888_s23 }
 0xb3b   :  { %v1268_v35 = vpop.permute.xlu0 %1267 }
 0xb3c   :  { %6742 = vmatprep.mubr.msk.bf16.mxu0 %vm75_vm0, %v1268_v35 }
 0xb3f   :  { %v1270_v38 = vpop.permute.xlu1 %1269 }
 0xb40   :  { %6743 = vmatmul.mubr.msk.bf16.vlgmr.msra.gmra.mrb[8].mxu0 %vm75_vm0, %v1270_v38 }
 0xb41   :  { %6763 = vmatpush3.bf16.msra.mxu0 %v8375_v25 }
 0xb42   :  { %6764 = vmatprep.subr.bf16.mxu0 %v8381_v5 }
 0xb43   :  { %v1272_v23 = vpop.permute.xlu0 %1271 }
 0xb44   :  { %6746 = vmatprep.mubr.msk.bf16.mxu0 %vm75_vm0, %v1272_v23 }
 0xb45   :  { %6765 = vmatpush3.bf16.msra.mxu0 %v8381_v5  ;;  %v6209_v5 = vld [vmem:[%s10872_s1 + $0x108] sm:$0xff] }
 0xb47   :  { %v1274_v6 = vpop.permute.xlu1 %1273 }
 0xb48   :  { %6747 = vmatmul.mubr.msk.bf16.gmra.mrb[12].mxu0 %vm75_vm0, %v1274_v6 }
 0xc13   :  { %v6744_v39 = vpop.f32.mrb[8].mxu0 }
 0xc14   :  { %v1321_v25 = vpop.f32.mrb[9].mxu0  ;;  %v1354_v32 = vadd.f32 %v6744_v39, %v6210_v24 }
 0xc15   :  { %v1352_v37 = vadd.f32 %v6208_v30, %v1321_v25  ;;  %v6745_v40 = vpop.f32.mrb[10].mxu0 }
 0xc16   :  { %v1324_v21 = vpop.f32.mrb[11].mxu0  ;;  %v1355_v42 = vadd.f32 %v6745_v40, %v6211_v33  ;;  %v6222_v4 = vmul.f32 -1.442695, %v1354_v32 }
 0xc17   :  { %7196 = vtanh.f32 %v1352_v37  ;;  %v1353_v44 = vadd.f32 %v6209_v5, %v1324_v21  ;;  %v6220_v56 = vmul.f32 -1.442695, %v1352_v37 }
 0xc18   :  { %7198 = vtanh.f32 %v1354_v32  ;;  %v6223_v15 = vmul.f32 -1.442695, %v1355_v42 }
 0xc19   :  { %7200 = vtanh.f32 %v1353_v44  ;;  %v6221_v13 = vmul.f32 -1.442695, %v1353_v44 }
 0xc1a   :  { %7202 = vtanh.f32 %v1355_v42 }
 0xc1b   :  { %v6748_v52 = vpop.f32.mrb[12].mxu0 }
 0xc1c   :  { %v1337_v0 = vpop.f32.mrb[13].mxu0  ;;  %v1358_v61 = vadd.f32 %v6748_v52, %v6214_v57 }
 0xc1d   :  { %v6749_v54 = vpop.f32.mrb[14].mxu0  ;;  %v1356_v22 = vadd.f32 %v6212_v49, %v1337_v0 }
 0xc1e   :  { %v1340_v43 = vpop.f32.mrb[15].mxu0  ;;  %v1359_v31 = vadd.f32 %v6749_v54, %v6215_v28  ;;  %v6226_v53 = vmul.f32 -1.442695, %v1358_v61 }
 0xc1f   :  { %7204 = vtanh.f32 %v1356_v22  ;;  %v1357_v47 = vadd.f32 %v6213_v59, %v1340_v43  ;;  %v6224_v20 = vmul.f32 -1.442695, %v1356_v22 }
 0xc20   :  { %7206 = vtanh.f32 %v1358_v61  ;;  %v6227_v27 = vmul.f32 -1.442695, %v1359_v31 }
 0xc21   :  { %v7197_v50 = vpop.eup %7196  ;;  %7208 = vtanh.f32 %v1357_v47  ;;  %v6225_v26 = vmul.f32 -1.442695, %v1357_v47 }
 0xc22   :  { %1432 = vrot.lane.b32.xlu0 %v7197_v50, %s7887_s20  ;;  %v7199_v63 = vpop.eup %7198  ;;  %7210 = vtanh.f32 %v1359_v31 }
 0xc23   :  { %v7201_v19 = vpop.eup %7200  ;;  %7212 = vpow2.f32 %v6220_v56 }
 0xc24   :  { %1434 = vrot.lane.b32.xlu1 %v7201_v19, %s7887_s20  ;;  %v7203_v48 = vpop.eup %7202  ;;  %7214 = vpow2.f32 %v6222_v4 }
 0xc25   :  { %7216 = vpow2.f32 %v6221_v13 }
 0xc26   :  { %1436 = vrot.lane.b32.xlu0 %v7199_v63, %s7887_s20  ;;  %7218 = vpow2.f32 %v6223_v15 }
 0xc28   :  { %1438 = vrot.lane.b32.xlu1 %v7203_v48, %s7887_s20 }
 0xc29   :  { %v7205_v8 = vpop.eup %7204 }
 0xc2a   :  { %1440 = vrot.lane.b32.xlu0 %v7205_v8, %s7887_s20  ;;  %v7207_v11 = vpop.eup %7206 }
 0xc2b   :  { %v7209_v36 = vpop.eup %7208 }
 0xc2c   :  { %1442 = vrot.lane.b32.xlu1 %v7209_v36, %s7887_s20  ;;  %v7211_v41 = vpop.eup %7210 }
 0xc2d   :  { %v7213_v16 = vpop.eup %7212 }
 0xc2e   :  { %1444 = vrot.lane.b32.xlu0 %v7207_v11, %s7887_s20  ;;  %v1384_v45 = vadd.f32 1.0, %v7213_v16  ;;  %v7215_v14 = vpop.eup %7214 }
 0xc2f   :  { %v7217_v17 = vpop.eup %7216  ;;  %v1386_v55 = vadd.f32 1.0, %v7215_v14 }
 0xc30   :  { %1446 = vrot.lane.b32.xlu1 %v7211_v41, %s7887_s20  ;;  %7220 = vrcp.f32 %v1384_v45  ;;  %v1385_v60 = vadd.f32 1.0, %v7217_v17  ;;  %v7219_v62 = vpop.eup %7218 }
 0xc31   :  { %7222 = vrcp.f32 %v1386_v55  ;;  %v1387_v12 = vadd.f32 1.0, %v7219_v62 }
 0xc32   :  { %7224 = vpow2.f32 %v6224_v20 }
 0xc33   :  { %7226 = vrcp.f32 %v1385_v60 }
 0xc34   :  { %7228 = vpow2.f32 %v6226_v53 }
 0xc35   :  { %7230 = vpow2.f32 %v6225_v26 }
 0xc36   :  { %7232 = vrcp.f32 %v1387_v12 }
 0xc37   :  { %7234 = vpow2.f32 %v6227_v27 }
 0xc3a   :  { %v8550_v34 = vpop.eup %7220 }
 0xc3b   :  { %v8554_v35 = vpop.eup %7222  ;;  %v1416_v47 = vmul.f32 %v8550_v34, %v8453_v9 }
 0xc3c   :  { %v7225_v23 = vpop.eup %7224  ;;  %v1418_v8 = vmul.f32 %v8554_v35, %v8460_v46 }
 0xc3d   :  { %v8557_v30 = vpop.eup %7226  ;;  %v1388_v37 = vadd.f32 1.0, %v7225_v23 }
 0xc3e   :  { %v7229_v25 = vpop.eup %7228  ;;  %v1417_v36 = vmul.f32 %v8557_v30, %v8462_v51 }
 0xc3f   :  { %v7231_v40 = vpop.eup %7230  ;;  %v1390_v32 = vadd.f32 1.0, %v7229_v25  ;;  %7236 = vrcp.f32 %v1388_v37 }
 0xc40   :  { %v8562_v5 = vpop.eup %7232  ;;  %v1389_v33 = vadd.f32 1.0, %v7231_v40 }
 0xc41   :  { %v7235_v42 = vpop.eup %7234  ;;  %7238 = vrcp.f32 %v1390_v32  ;;  %v1419_v9 = vmul.f32 %v8562_v5, %v8468_v2 }
 0xc42   :  { %v1391_v50 = vadd.f32 1.0, %v7235_v42  ;;  %7240 = vrcp.f32 %v1389_v33 }
 0xc44   :  { %7242 = vrcp.f32 %v1391_v50 }
 0xc49   :  { %v8566_v63 = vpop.eup %7236 }
 0xc4a   :  { %v1420_v45 = vmul.f32 %v8566_v63, %v8476_v58 }
 0xc4b   :  { %v8569_v19 = vpop.eup %7238 }
 0xc4c   :  { %v8572_v0 = vpop.eup %7240  ;;  %v1422_v20 = vmul.f32 %v8569_v19, %v8486_v29 }
 0xc4d   :  { %v1421_v55 = vmul.f32 %v8572_v0, %v8484_v1 }
 0xc4e   :  { %v8578_v59 = vpop.eup %7242 }
 0xc4f   :  { %v1423_v58 = vmul.f32 %v8578_v59, %v8492_v10 }
 0xc94   :  { %v1433_v7 = vpop.permute.xlu0 %1432 }
 0xc95   :  { %v1456_v18 = vmul.f32 %v8550_v34, %v1433_v7 }
 0xc96   :  { %v1435_v39 = vpop.permute.xlu1 %1434 }
 0xc97   :  { %1472 = vrot.lane.b32.xlu0 %v1456_v18, %s7887_s20  ;;  %v1457_v24 = vmul.f32 %v8557_v30, %v1435_v39 }
 0xc98   :  { %v1437_v38 = vpop.permute.xlu0 %1436 }
 0xc99   :  { %v1458_v6 = vmul.f32 %v8554_v35, %v1437_v38  ;;  %1474 = vrot.lane.b32.xlu1 %v1457_v24, %s7887_s20 }
 0xc9a   :  { %v1439_v21 = vpop.permute.xlu1 %1438 }
 0xc9b   :  { %1476 = vrot.lane.b32.xlu0 %v1458_v6, %s7887_s20  ;;  %v1459_v44 = vmul.f32 %v8562_v5, %v1439_v21 }
 0xc9c   :  { %v1441_v52 = vpop.permute.xlu0 %1440 }
 0xc9d   :  { %1478 = vrot.lane.b32.xlu1 %v1459_v44, %s7887_s20  ;;  %v1460_v49 = vmul.f32 %v8566_v63, %v1441_v52 }
 0xc9e   :  { %v1443_v54 = vpop.permute.xlu1 %1442 }
 0xc9f   :  { %1480 = vrot.lane.b32.xlu0 %v1460_v49, %s7887_s20  ;;  %v1461_v22 = vmul.f32 %v8572_v0, %v1443_v54 }
 0xca0   :  { %v1445_v57 = vpop.permute.xlu0 %1444 }
 0xca1   :  { %v1462_v43 = vmul.f32 %v8569_v19, %v1445_v57  ;;  %1482 = vrot.lane.b32.xlu1 %v1461_v22, %s7887_s20  ;;  %v6230_v22 = vld [vmem:[%s10872_s1 + $0x150] sm:$0xff] }
 0xca2   :  { %v1447_v48 = vpop.permute.xlu1 %1446 }
 0xca3   :  { %1484 = vrot.lane.b32.xlu0 %v1462_v43, %s7887_s20  ;;  %v1463_v61 = vmul.f32 %v8578_v59, %v1447_v48 }
 0xca5   :  { %1486 = vrot.lane.b32.xlu1 %v1463_v61, %s7887_s20  ;;  %v6229_v61 = vld [vmem:[%s10872_s1 + $0x148] sm:$0xff] }
 0xd09   :  { %v1473_v28 = vpop.permute.xlu0 %1472 }
 0xd0a   :  { %v8584_v31 = vadd.f32 %v1473_v28, %v1416_v47 }
 0xd0b   :  { %v1475_v56 = vpop.permute.xlu1 %1474 }
 0xd0c   :  { %7244 = vtanh.f32 %v8584_v31  ;;  %v8593_v4 = vadd.f32 %v1475_v56, %v1417_v36 }
 0xd0d   :  { %v1477_v11 = vpop.permute.xlu0 %1476 }
 0xd0e   :  { %v8591_v41 = vadd.f32 %v1477_v11, %v1418_v8  ;;  %v6231_v11 = vld [vmem:[%s10872_s1 + $0x158] sm:$0xff] }
 0xd0f   :  { %v1479_v13 = vpop.permute.xlu1 %1478 }
 0xd10   :  { %7246 = vtanh.f32 %v8591_v41  ;;  %v8599_v15 = vadd.f32 %v1479_v13, %v1419_v9  ;;  %v6232_v13 = vld [vmem:[%s10872_s1 + $0x160] sm:$0xff] }
 0xd11   :  { %7248 = vtanh.f32 %v8593_v4  ;;  %v1481_v14 = vpop.permute.xlu0 %1480 }
 0xd12   :  { %7250 = vtanh.f32 %v8599_v15  ;;  %v8607_v2 = vadd.f32 %v1481_v14, %v1420_v45 }
 0xd13   :  { %v1483_v60 = vpop.permute.xlu1 %1482 }
 0xd14   :  { %7252 = vtanh.f32 %v8607_v2  ;;  %v8615_v53 = vadd.f32 %v1483_v60, %v1421_v55  ;;  %v6233_v55 = vld [vmem:[%s10872_s1 + $0x168] sm:$0xff] }
 0xd15   :  { %v1485_v62 = vpop.permute.xlu0 %1484 }
 0xd16   :  { %v7245_v46 = vpop.eup %7244  ;;  %v8617_v26 = vadd.f32 %v1485_v62, %v1422_v20  ;;  %7254 = vtanh.f32 %v8615_v53 }
 0xd17   :  { %1520 = vrot.lane.b32.xlu0 %v7245_v46, %s7887_s20  ;;  %v1487_v12 = vpop.permute.xlu1 %1486 }
 0xd18   :  { %7256 = vtanh.f32 %v8617_v26  ;;  %v8623_v27 = vadd.f32 %v1487_v12, %v1423_v58  ;;  %v6235_v12 = vld [vmem:[%s10872_s1 + $0x178] sm:$0xff] }
 0xd1a   :  { %v7247_v51 = vpop.eup %7246  ;;  %7258 = vtanh.f32 %v8623_v27 }
 0xd1b   :  { %1524 = vrot.lane.b32.xlu0 %v7247_v51, %s7887_s20  ;;  %v7249_v16 = vpop.eup %7248 }
 0xd1c   :  { %1522 = vrot.lane.b32.xlu1 %v7249_v16, %s7887_s20  ;;  %v7251_v17 = vpop.eup %7250  ;;  %v6234_v16 = vld [vmem:[%s10872_s1 + $0x170] sm:$0xff] }
 0xd1e   :  { %v7253_v1 = vpop.eup %7252 }
 0xd1f   :  { %1528 = vrot.lane.b32.xlu0 %v7253_v1, %s7887_s20 }
 0xd20   :  { %1526 = vrot.lane.b32.xlu1 %v7251_v17, %s7887_s20  ;;  %v7255_v29 = vpop.eup %7254 }
 0xd22   :  { %v7257_v7 = vpop.eup %7256 }
 0xd23   :  { %1532 = vrot.lane.b32.xlu0 %v7257_v7, %s7887_s20 }
 0xd24   :  { %1530 = vrot.lane.b32.xlu1 %v7255_v29, %s7887_s20  ;;  %v7259_v18 = vpop.eup %7258 }
 0xd28   :  { %1534 = vrot.lane.b32.xlu1 %v7259_v18, %s7887_s20 }
 0xd89   :  { %v1521_v10 = vpop.permute.xlu0 %1520 }
 0xd8a   :  { %v1544_v23 = vmul.f32 %v8550_v34, %v1521_v10 }
 0xd8d   :  { %v1525_v39 = vpop.permute.xlu0 %1524 }
 0xd8e   :  { %v1523_v38 = vpop.permute.xlu1 %1522  ;;  %v1546_v37 = vmul.f32 %v8554_v35, %v1525_v39 }
 0xd8f   :  { %v1545_v6 = vmul.f32 %v8557_v30, %v1523_v38 }
 0xd91   :  { %v1561_v24 = vpack.c.bf16 %v1545_v6, %v1544_v23  ;;  %v1529_v32 = vpop.permute.xlu0 %1528 }
 0xd92   :  { %v1527_v25 = vpop.permute.xlu1 %1526  ;;  %v1548_v33 = vmul.f32 %v8566_v63, %v1529_v32 }
 0xd93   :  { %v1547_v40 = vmul.f32 %v8562_v5, %v1527_v25  ;;  %1569 = vrot.lane.b32.xlu0 %v1561_v24, %s7888_s23 }
 0xd95   :  { %v1562_v21 = vpack.c.bf16 %v1547_v40, %v1546_v37  ;;  %v1533_v42 = vpop.permute.xlu0 %1532 }
 0xd96   :  { %v1531_v44 = vpop.permute.xlu1 %1530  ;;  %v1550_v52 = vmul.f32 %v8569_v19, %v1533_v42  ;;  %v6228_v19 = vld [vmem:[%s10872_s1 + $0x140] sm:$0xff] }
 0xd97   :  { %1571 = vrot.lane.b32.xlu1 %v1562_v21, %s7888_s23  ;;  %v1549_v34 = vmul.f32 %v8572_v0, %v1531_v44 }
 0xd99   :  { %v1563_v30 = vpack.c.bf16 %v1549_v34, %v1548_v33 }
 0xd9a   :  { %v1535_v50 = vpop.permute.xlu1 %1534 }
 0xd9b   :  { %v1551_v35 = vmul.f32 %v8578_v59, %v1535_v50  ;;  %1573 = vrot.lane.b32.xlu0 %v1563_v30, %s7888_s23 }
 0xd9d   :  { %v1564_v5 = vpack.c.bf16 %v1551_v35, %v1550_v52 }
 0xd9f   :  { %1575 = vrot.lane.b32.xlu1 %v1564_v5, %s7888_s23 }
 0xe05   :  { %v1570_v49 = vpop.permute.xlu0 %1569 }
 0xe06   :  { %6754 = vmatprep.mubr.msk.bf16.mxu1 %vm75_vm0, %v1570_v49 }
 0xe09   :  { %v1572_v54 = vpop.permute.xlu1 %1571 }
 0xe0a   :  { %6755 = vmatmul.mubr.msk.bf16.vlgmr.msra.gmra.mrb[24].mxu1 %vm75_vm0, %v1572_v54 }
 0xe0d   :  { %v1574_v63 = vpop.permute.xlu0 %1573 }
 0xe0e   :  { %6758 = vmatprep.mubr.msk.bf16.mxu1 %vm75_vm0, %v1574_v63 }
 0xe11   :  { %v1576_v0 = vpop.permute.xlu1 %1575 }
 0xe12   :  { %6759 = vmatmul.mubr.msk.bf16.gmra.mrb[28].mxu1 %vm75_vm0, %v1576_v0 }
 0xe13   :  { %2270 = vmatprep.mubr.bf16.mxu1 %v7886_v3 }
 0xedd   :  { %v6756_v57 = vpop.f32.mrb[24].mxu1 }
 0xede   :  { %v1623_v43 = vpop.f32.mrb[25].mxu1  ;;  %v1656_v28 = vadd.f32 %v6756_v57, %v6230_v22 }
 0xedf   :  { %v1654_v59 = vadd.f32 %v6228_v19, %v1623_v43  ;;  %v6757_v48 = vpop.f32.mrb[26].mxu1 }
 0xee0   :  { %v1626_v47 = vpop.f32.mrb[27].mxu1  ;;  %v1657_v36 = vadd.f32 %v6757_v48, %v6231_v11  ;;  %v6242_v23 = vmul.f32 -1.442695, %v1656_v28 }
 0xee1   :  { %7260 = vtanh.f32 %v1654_v59  ;;  %v1655_v8 = vadd.f32 %v6229_v61, %v1626_v47  ;;  %v6240_v38 = vmul.f32 -1.442695, %v1654_v59 }
 0xee2   :  { %7262 = vtanh.f32 %v1656_v28  ;;  %v6243_v39 = vmul.f32 -1.442695, %v1657_v36 }
 0xee3   :  { %7264 = vtanh.f32 %v1655_v8  ;;  %v6241_v6 = vmul.f32 -1.442695, %v1655_v8 }
 0xee4   :  { %7266 = vtanh.f32 %v1657_v36 }
 0xee5   :  { %v6760_v51 = vpop.f32.mrb[28].mxu1 }
 0xee6   :  { %v1639_v45 = vpop.f32.mrb[29].mxu1  ;;  %v1660_v62 = vadd.f32 %v6760_v51, %v6234_v16 }
 0xee7   :  { %v1658_v14 = vadd.f32 %v6232_v13, %v1639_v45  ;;  %v6761_v17 = vpop.f32.mrb[30].mxu1 }
 0xee8   :  { %v1642_v20 = vpop.f32.mrb[31].mxu1  ;;  %v1661_v1 = vadd.f32 %v6761_v17, %v6235_v12  ;;  %v6246_v34 = vmul.f32 -1.442695, %v1660_v62 }
 0xee9   :  { %7268 = vtanh.f32 %v1658_v14  ;;  %v1659_v58 = vadd.f32 %v6233_v55, %v1642_v20  ;;  %v6244_v21 = vmul.f32 -1.442695, %v1658_v14 }
 0xeea   :  { %7270 = vtanh.f32 %v1660_v62  ;;  %v6247_v50 = vmul.f32 -1.442695, %v1661_v1 }
 0xeeb   :  { %v7261_v56 = vpop.eup %7260  ;;  %7272 = vtanh.f32 %v1659_v58  ;;  %v6245_v42 = vmul.f32 -1.442695, %v1659_v58 }
 0xeec   :  { %1734 = vrot.lane.b32.xlu0 %v7261_v56, %s7887_s20  ;;  %v7263_v9 = vpop.eup %7262  ;;  %7274 = vtanh.f32 %v1661_v1 }
 0xeed   :  { %v7265_v46 = vpop.eup %7264  ;;  %7276 = vpow2.f32 %v6240_v38 }
 0xeee   :  { %1736 = vrot.lane.b32.xlu1 %v7265_v46, %s7887_s20  ;;  %v7267_v60 = vpop.eup %7266  ;;  %7278 = vpow2.f32 %v6242_v23 }
 0xeef   :  { %7280 = vpow2.f32 %v6241_v6 }
 0xef0   :  { %1738 = vrot.lane.b32.xlu0 %v7263_v9, %s7887_s20  ;;  %7282 = vpow2.f32 %v6243_v39 }
 0xef2   :  { %1740 = vrot.lane.b32.xlu1 %v7267_v60, %s7887_s20 }
 0xef3   :  { %v7269_v29 = vpop.eup %7268 }
 0xef4   :  { %1742 = vrot.lane.b32.xlu0 %v7269_v29, %s7887_s20  ;;  %v7271_v7 = vpop.eup %7270 }
 0xef5   :  { %v7273_v18 = vpop.eup %7272 }
 0xef6   :  { %1744 = vrot.lane.b32.xlu1 %v7273_v18, %s7887_s20  ;;  %v7275_v10 = vpop.eup %7274 }
 0xef7   :  { %v7277_v24 = vpop.eup %7276 }
 0xef8   :  { %1746 = vrot.lane.b32.xlu0 %v7271_v7, %s7887_s20  ;;  %v1686_v25 = vadd.f32 1.0, %v7277_v24  ;;  %v7279_v37 = vpop.eup %7278 }
 0xef9   :  { %v7281_v40 = vpop.eup %7280  ;;  %v1688_v32 = vadd.f32 1.0, %v7279_v37 }
 0xefa   :  { %1748 = vrot.lane.b32.xlu1 %v7275_v10, %s7887_s20  ;;  %7284 = vrcp.f32 %v1686_v25  ;;  %v1687_v44 = vadd.f32 1.0, %v7281_v40  ;;  %v7283_v33 = vpop.eup %7282 }
 0xefb   :  { %7286 = vpow2.f32 %v6244_v21  ;;  %v1689_v30 = vadd.f32 1.0, %v7283_v33 }
 0xefc   :  { %7288 = vrcp.f32 %v1688_v32 }
 0xefd   :  { %7290 = vrcp.f32 %v1687_v44 }
 0xefe   :  { %7292 = vpow2.f32 %v6246_v34 }
 0xeff   :  { %7294 = vpow2.f32 %v6245_v42 }
 0xf00   :  { %7296 = vrcp.f32 %v1689_v30 }
 0xf01   :  { %7298 = vpow2.f32 %v6247_v50 }
 0xf04   :  { %v8679_v52 = vpop.eup %7284 }
 0xf05   :  { %v7287_v49 = vpop.eup %7286  ;;  %v1718_v58 = vmul.f32 %v8679_v52, %v8584_v31 }
 0xf06   :  { %v8683_v54 = vpop.eup %7288  ;;  %v1690_v57 = vadd.f32 1.0, %v7287_v49 }
 0xf07   :  { %v8686_v19 = vpop.eup %7290  ;;  %v1720_v29 = vmul.f32 %v8683_v54, %v8591_v41 }
 0xf08   :  { %v7293_v43 = vpop.eup %7292  ;;  %7300 = vrcp.f32 %v1690_v57  ;;  %v1719_v18 = vmul.f32 %v8686_v19, %v8593_v4 }
 0xf09   :  { %v7295_v48 = vpop.eup %7294  ;;  %v1692_v47 = vadd.f32 1.0, %v7293_v43 }
 0xf0a   :  { %v8691_v61 = vpop.eup %7296  ;;  %v1691_v11 = vadd.f32 1.0, %v7295_v48 }
 0xf0b   :  { %v7299_v36 = vpop.eup %7298  ;;  %7302 = vrcp.f32 %v1692_v47  ;;  %v1721_v31 = vmul.f32 %v8691_v61, %v8599_v15 }
 0xf0c   :  { %v1693_v56 = vadd.f32 1.0, %v7299_v36  ;;  %7304 = vrcp.f32 %v1691_v11 }
 0xf0e   :  { %7306 = vrcp.f32 %v1693_v56 }
 0xf12   :  { %v8695_v9 = vpop.eup %7300 }
 0xf13   :  { %v1722_v25 = vmul.f32 %v8695_v9, %v8607_v2 }
 0xf15   :  { %v8699_v51 = vpop.eup %7302 }
 0xf16   :  { %v8702_v14 = vpop.eup %7304  ;;  %v1724_v21 = vmul.f32 %v8699_v51, %v8617_v26 }
 0xf17   :  { %v1723_v44 = vmul.f32 %v8702_v14, %v8615_v53 }
 0xf18   :  { %v8707_v20 = vpop.eup %7306 }
 0xf19   :  { %v1725_v42 = vmul.f32 %v8707_v20, %v8623_v27 }
 0xf5e   :  { %v1735_v35 = vpop.permute.xlu0 %1734 }
 0xf5f   :  { %v1758_v5 = vmul.f32 %v8679_v52, %v1735_v35 }
 0xf60   :  { %v1737_v22 = vpop.permute.xlu1 %1736 }
 0xf61   :  { %1774 = vrot.lane.b32.xlu0 %v1758_v5, %s7887_s20  ;;  %v1759_v59 = vmul.f32 %v8686_v19, %v1737_v22 }
 0xf62   :  { %v1739_v63 = vpop.permute.xlu0 %1738 }
 0xf63   :  { %v1760_v0 = vmul.f32 %v8683_v54, %v1739_v63  ;;  %1776 = vrot.lane.b32.xlu1 %v1759_v59, %s7887_s20 }
 0xf64   :  { %v1741_v28 = vpop.permute.xlu1 %1740 }
 0xf65   :  { %1778 = vrot.lane.b32.xlu0 %v1760_v0, %s7887_s20  ;;  %v1761_v8 = vmul.f32 %v8691_v61, %v1741_v28 }
 0xf66   :  { %v1743_v13 = vpop.permute.xlu0 %1742 }
 0xf67   :  { %1780 = vrot.lane.b32.xlu1 %v1761_v8, %s7887_s20  ;;  %v1762_v46 = vmul.f32 %v8695_v9, %v1743_v13 }
 0xf68   :  { %v1745_v17 = vpop.permute.xlu1 %1744 }
 0xf69   :  { %1782 = vrot.lane.b32.xlu0 %v1762_v46, %s7887_s20  ;;  %v1763_v55 = vmul.f32 %v8702_v14, %v1745_v17  ;;  %v6250_v17 = vld [vmem:[%s10872_s1 + $0x190] sm:$0xff] }
 0xf6a   :  { %v1747_v16 = vpop.permute.xlu0 %1746 }
 0xf6b   :  { %v1764_v45 = vmul.f32 %v8699_v51, %v1747_v16  ;;  %1784 = vrot.lane.b32.xlu1 %v1763_v55, %s7887_s20 }
 0xf6c   :  { %v1749_v60 = vpop.permute.xlu1 %1748 }
 0xf6d   :  { %1786 = vrot.lane.b32.xlu0 %v1764_v45, %s7887_s20  ;;  %v1765_v62 = vmul.f32 %v8707_v20, %v1749_v60 }
 0xf6f   :  { %1788 = vrot.lane.b32.xlu1 %v1765_v62, %s7887_s20  ;;  %v6249_v62 = vld [vmem:[%s10872_s1 + $0x188] sm:$0xff] }
 0xfd3   :  { %v1775_v12 = vpop.permute.xlu0 %1774 }
 0xfd4   :  { %v8713_v1 = vadd.f32 %v1775_v12, %v1718_v58 }
 0xfd5   :  { %v1777_v38 = vpop.permute.xlu1 %1776 }
 0xfd6   :  { %7308 = vtanh.f32 %v8713_v1  ;;  %v8722_v23 = vadd.f32 %v1777_v38, %v1719_v18 }
 0xfd7   :  { %v1779_v7 = vpop.permute.xlu0 %1778 }
 0xfd8   :  { %v8720_v10 = vadd.f32 %v1779_v7, %v1720_v29  ;;  %v6251_v7 = vld [vmem:[%s10872_s1 + $0x198] sm:$0xff] }
 0xfd9   :  { %v1781_v6 = vpop.permute.xlu1 %1780 }
 0xfda   :  { %7310 = vtanh.f32 %v8720_v10  ;;  %v8728_v39 = vadd.f32 %v1781_v6, %v1721_v31  ;;  %v6252_v6 = vld [vmem:[%s10872_s1 + $0x1a0] sm:$0xff] }
 0xfdb   :  { %7312 = vtanh.f32 %v8722_v23  ;;  %v1783_v37 = vpop.permute.xlu0 %1782 }
 0xfdc   :  { %7314 = vtanh.f32 %v8728_v39  ;;  %v8736_v40 = vadd.f32 %v1783_v37, %v1722_v25 }
 0xfdd   :  { %v1785_v2 = vpop.permute.xlu1 %1784 }
 0xfde   :  { %7316 = vtanh.f32 %v8736_v40  ;;  %v8746_v34 = vadd.f32 %v1785_v2, %v1723_v44 }
 0xfdf   :  { %v1787_v32 = vpop.permute.xlu0 %1786 }
 0xfe0   :  { %v7309_v41 = vpop.eup %7308  ;;  %v8744_v33 = vadd.f32 %v1787_v32, %v1724_v21  ;;  %v6253_v21 = vld [vmem:[%s10872_s1 + $0x1a8] sm:$0xff] }
 0xfe1   :  { %1822 = vrot.lane.b32.xlu0 %v7309_v41, %s7887_s20  ;;  %v1789_v30 = vpop.permute.xlu1 %1788 }
 0xfe2   :  { %7318 = vtanh.f32 %v8744_v33  ;;  %v8752_v26 = vadd.f32 %v1789_v30, %v1725_v42  ;;  %v6255_v30 = vld [vmem:[%s10872_s1 + $0x1b8] sm:$0xff] }
 0xfe3   :  { %7320 = vtanh.f32 %v8746_v34 }
 0xfe4   :  { %v7311_v4 = vpop.eup %7310  ;;  %7322 = vtanh.f32 %v8752_v26 }
 0xfe5   :  { %1826 = vrot.lane.b32.xlu0 %v7311_v4, %s7887_s20  ;;  %v7313_v24 = vpop.eup %7312 }
 0xfe6   :  { %1824 = vrot.lane.b32.xlu1 %v7313_v24, %s7887_s20  ;;  %v7315_v15 = vpop.eup %7314  ;;  %v6254_v24 = vld [vmem:[%s10872_s1 + $0x1b0] sm:$0xff] }
 0xfe8   :  { %v7317_v50 = vpop.eup %7316 }
 0xfe9   :  { %1830 = vrot.lane.b32.xlu0 %v7317_v50, %s7887_s20 }
 0xfea   :  { %1828 = vrot.lane.b32.xlu1 %v7315_v15, %s7887_s20 }
 0xfec   :  { %v7319_v53 = vpop.eup %7318 }
 0xfed   :  { %1834 = vrot.lane.b32.xlu0 %v7319_v53, %s7887_s20  ;;  %v7321_v35 = vpop.eup %7320 }
 0xfee   :  { %1832 = vrot.lane.b32.xlu1 %v7321_v35, %s7887_s20  ;;  %v7323_v5 = vpop.eup %7322 }
 0xff2   :  { %1836 = vrot.lane.b32.xlu1 %v7323_v5, %s7887_s20 }
0x1053   :  { %v1823_v49 = vpop.permute.xlu0 %1822 }
0x1054   :  { %v1846_v27 = vmul.f32 %v8679_v52, %v1823_v49 }
0x1057   :  { %v1827_v57 = vpop.permute.xlu0 %1826 }
0x1058   :  { %v1825_v63 = vpop.permute.xlu1 %1824  ;;  %v1848_v59 = vmul.f32 %v8683_v54, %v1827_v57 }
0x1059   :  { %v1847_v0 = vmul.f32 %v8686_v19, %v1825_v63 }
0x105b   :  { %v1863_v22 = vpack.c.bf16 %v1847_v0, %v1846_v27  ;;  %v1831_v28 = vpop.permute.xlu0 %1830 }
0x105c   :  { %v1829_v43 = vpop.permute.xlu1 %1828  ;;  %v1850_v11 = vmul.f32 %v8695_v9, %v1831_v28 }
0x105d   :  { %v1849_v48 = vmul.f32 %v8691_v61, %v1829_v43  ;;  %1871 = vrot.lane.b32.xlu0 %v1863_v22, %s7888_s23 }
0x105f   :  { %v1864_v47 = vpack.c.bf16 %v1849_v48, %v1848_v59  ;;  %v1835_v36 = vpop.permute.xlu0 %1834 }
0x1060   :  { %v1833_v8 = vpop.permute.xlu1 %1832  ;;  %v1852_v13 = vmul.f32 %v8699_v51, %v1835_v36  ;;  %v6248_v51 = vld [vmem:[%s10872_s1 + $0x180] sm:$0xff] }
0x1061   :  { %1873 = vrot.lane.b32.xlu1 %v1864_v47, %s7888_s23  ;;  %v1851_v52 = vmul.f32 %v8702_v14, %v1833_v8 }
0x1063   :  { %v1865_v19 = vpack.c.bf16 %v1851_v52, %v1850_v11 }
0x1064   :  { %v1837_v56 = vpop.permute.xlu1 %1836 }
0x1065   :  { %v1853_v54 = vmul.f32 %v8707_v20, %v1837_v56  ;;  %1875 = vrot.lane.b32.xlu0 %v1865_v19, %s7888_s23 }
0x1067   :  { %v1866_v61 = vpack.c.bf16 %v1853_v54, %v1852_v13 }
0x1069   :  { %1877 = vrot.lane.b32.xlu1 %v1866_v61, %s7888_s23 }
0x10cf   :  { %v1872_v46 = vpop.permute.xlu0 %1871 }
0x10d0   :  { %6766 = vmatprep.mubr.msk.bf16.mxu0 %vm75_vm0, %v1872_v46 }
0x10d3   :  { %v1874_v16 = vpop.permute.xlu1 %1873 }
0x10d4   :  { %6767 = vmatmul.mubr.msk.bf16.vlgmr.msra.gmra.mrb[16].mxu0 %vm75_vm0, %v1874_v16 }
0x10d7   :  { %v1876_v9 = vpop.permute.xlu0 %1875 }
0x10d8   :  { %6770 = vmatprep.mubr.msk.bf16.mxu0 %vm75_vm0, %v1876_v9 }
0x10db   :  { %v1878_v45 = vpop.permute.xlu1 %1877 }
0x10dc   :  { %6771 = vmatmul.mubr.msk.bf16.gmra.mrb[20].mxu0 %vm75_vm0, %v1878_v45 }
0x10dd   :  { %2571 = vmatprep.mubr.bf16.mxu0 %v7886_v3 }
0x11a7   :  { %v6768_v14 = vpop.f32.mrb[16].mxu0 }
0x11a8   :  { %v1925_v55 = vpop.f32.mrb[17].mxu0  ;;  %v1958_v12 = vadd.f32 %v6768_v14, %v6250_v17 }
0x11a9   :  { %v1956_v20 = vadd.f32 %v6248_v51, %v1925_v55  ;;  %v6769_v60 = vpop.f32.mrb[18].mxu0 }
0x11aa   :  { %v1928_v58 = vpop.f32.mrb[19].mxu0  ;;  %v1959_v18 = vadd.f32 %v6769_v60, %v6251_v7  ;;  %v6262_v27 = vmul.f32 -1.442695, %v1958_v12 }
0x11ab   :  { %7324 = vtanh.f32 %v1956_v20  ;;  %v1957_v29 = vadd.f32 %v6249_v62, %v1928_v58  ;;  %v6260_v63 = vmul.f32 -1.442695, %v1956_v20 }
0x11ac   :  { %7326 = vtanh.f32 %v1958_v12  ;;  %v6263_v57 = vmul.f32 -1.442695, %v1959_v18 }
0x11ad   :  { %7328 = vtanh.f32 %v1957_v29  ;;  %v6261_v0 = vmul.f32 -1.442695, %v1957_v29 }
0x11ae   :  { %7330 = vtanh.f32 %v1959_v18 }
0x11af   :  { %v6772_v4 = vpop.f32.mrb[20].mxu0 }
0x11b0   :  { %v1941_v25 = vpop.f32.mrb[21].mxu0  ;;  %v1962_v2 = vadd.f32 %v6772_v4, %v6254_v24 }
0x11b1   :  { %v1960_v37 = vadd.f32 %v6252_v6, %v1941_v25  ;;  %v6773_v15 = vpop.f32.mrb[22].mxu0 }
0x11b2   :  { %v1944_v32 = vpop.f32.mrb[23].mxu0  ;;  %v1963_v50 = vadd.f32 %v6773_v15, %v6255_v30  ;;  %v6266_v52 = vmul.f32 -1.442695, %v1962_v2 }
0x11b3   :  { %7332 = vtanh.f32 %v1960_v37  ;;  %v1961_v42 = vadd.f32 %v6253_v21, %v1944_v32  ;;  %v6264_v47 = vmul.f32 -1.442695, %v1960_v37 }
0x11b4   :  { %7334 = vtanh.f32 %v1962_v2  ;;  %v6267_v56 = vmul.f32 -1.442695, %v1963_v50 }
0x11b5   :  { %v7325_v38 = vpop.eup %7324  ;;  %7336 = vtanh.f32 %v1961_v42  ;;  %v6265_v36 = vmul.f32 -1.442695, %v1961_v42 }
0x11b6   :  { %2036 = vrot.lane.b32.xlu0 %v7325_v38, %s7887_s20  ;;  %v7327_v31 = vpop.eup %7326  ;;  %7338 = vtanh.f32 %v1963_v50 }
0x11b7   :  { %v7329_v41 = vpop.eup %7328  ;;  %7340 = vpow2.f32 %v6260_v63 }
0x11b8   :  { %2038 = vrot.lane.b32.xlu1 %v7329_v41, %s7887_s20  ;;  %v7331_v44 = vpop.eup %7330  ;;  %7342 = vpow2.f32 %v6262_v27 }
0x11b9   :  { %7344 = vpow2.f32 %v6261_v0 }
0x11ba   :  { %2040 = vrot.lane.b32.xlu0 %v7327_v31, %s7887_s20  ;;  %7346 = vpow2.f32 %v6263_v57 }
0x11bc   :  { %2042 = vrot.lane.b32.xlu1 %v7331_v44, %s7887_s20 }
0x11bd   :  { %v7333_v53 = vpop.eup %7332 }
0x11be   :  { %2044 = vrot.lane.b32.xlu0 %v7333_v53, %s7887_s20  ;;  %v7335_v35 = vpop.eup %7334 }
0x11bf   :  { %v7337_v5 = vpop.eup %7336 }
0x11c0   :  { %2046 = vrot.lane.b32.xlu1 %v7337_v5, %s7887_s20  ;;  %v7339_v49 = vpop.eup %7338 }
0x11c1   :  { %v7341_v22 = vpop.eup %7340 }
0x11c2   :  { %2048 = vrot.lane.b32.xlu0 %v7335_v35, %s7887_s20  ;;  %v1988_v43 = vadd.f32 1.0, %v7341_v22  ;;  %v7343_v59 = vpop.eup %7342 }
0x11c3   :  { %v7345_v48 = vpop.eup %7344  ;;  %v1990_v28 = vadd.f32 1.0, %v7343_v59 }
0x11c4   :  { %2050 = vrot.lane.b32.xlu1 %v7339_v49, %s7887_s20  ;;  %7348 = vrcp.f32 %v1988_v43  ;;  %v1989_v8 = vadd.f32 1.0, %v7345_v48  ;;  %v7347_v11 = vpop.eup %7346 }
0x11c5   :  { %7350 = vpow2.f32 %v6264_v47  ;;  %v1991_v19 = vadd.f32 1.0, %v7347_v11 }
0x11c6   :  { %7352 = vrcp.f32 %v1990_v28 }
0x11c7   :  { %7354 = vrcp.f32 %v1989_v8 }
0x11c8   :  { %7356 = vpow2.f32 %v6266_v52 }
0x11c9   :  { %7358 = vpow2.f32 %v6265_v36 }
0x11ca   :  { %7360 = vrcp.f32 %v1991_v19 }
0x11cb   :  { %7362 = vpow2.f32 %v6267_v56 }
0x11ce   :  { %v8808_v13 = vpop.eup %7348 }
0x11cf   :  { %v7351_v46 = vpop.eup %7350  ;;  %v2020_v42 = vmul.f32 %v8808_v13, %v8713_v1 }
0x11d0   :  { %v8812_v16 = vpop.eup %7352  ;;  %v1992_v14 = vadd.f32 1.0, %v7351_v46  ;;  %v8907_v46 = vld [vmem:[%s10875_s4 + $0x10] ss:$8 sps:$4 sm:$0xff]  }
0x11d1   :  { %v8815_v51 = vpop.eup %7354  ;;  %v2022_v53 = vmul.f32 %v8812_v16, %v8720_v10 }
0x11d2   :  { %v7357_v55 = vpop.eup %7356  ;;  %7364 = vrcp.f32 %v1992_v14  ;;  %v2021_v5 = vmul.f32 %v8815_v51, %v8722_v23 }
0x11d3   :  { %v7359_v60 = vpop.eup %7358  ;;  %v1994_v58 = vadd.f32 1.0, %v7357_v55 }
0x11d4   :  { %v8820_v62 = vpop.eup %7360  ;;  %v1993_v7 = vadd.f32 1.0, %v7359_v60 }
0x11d5   :  { %v7363_v18 = vpop.eup %7362  ;;  %7366 = vrcp.f32 %v1994_v58  ;;  %v2023_v1 = vmul.f32 %v8820_v62, %v8728_v39 }
0x11d6   :  { %v1995_v38 = vadd.f32 1.0, %v7363_v18  ;;  %7368 = vrcp.f32 %v1993_v7 }
0x11d8   :  { %7370 = vrcp.f32 %v1995_v38 }
0x11dc   :  { %v8824_v31 = vpop.eup %7364 }
0x11dd   :  { %v2024_v43 = vmul.f32 %v8824_v31, %v8736_v40 }
0x11df   :  { %v8828_v4 = vpop.eup %7366 }
0x11e0   :  { %v8831_v37 = vpop.eup %7368  ;;  %v2026_v47 = vmul.f32 %v8828_v4, %v8744_v33 }
0x11e1   :  { %v2025_v8 = vmul.f32 %v8831_v37, %v8746_v34  ;;  %v8888_v34 = vld [vmem:[%s10875_s4 + $0x4] ss:$8 sps:$4 sm:$0xff]  }
0x11e2   :  { %v8836_v32 = vpop.eup %7370  ;;  %2238 = vmatprep.subr.bf16.mxu1 %v8888_v34  ;;  %2539 = vmatprep.subr.bf16.mxu0 %v8888_v34 }
0x11e3   :  { %v2027_v36 = vmul.f32 %v8836_v32, %v8752_v26  ;;  %v8898_v26 = vld [vmem:[%s10875_s4 + $0x14] ss:$8 sps:$4 sm:$0xff]  }
0x1228   :  { %v2037_v54 = vpop.permute.xlu0 %2036 }
0x1229   :  { %v2060_v61 = vmul.f32 %v8808_v13, %v2037_v54  ;;  %v8893_v54 = vld [vmem:[%s10875_s4] ss:$8 sps:$4 sm:$0xff]  }
0x122a   :  { %v2039_v17 = vpop.permute.xlu1 %2038  ;;  %2239 = vmatpush1.bf16.msra.mxu1 %v8893_v54  ;;  %2540 = vmatpush1.bf16.msra.mxu0 %v8893_v54 }
0x122b   :  { %2076 = vrot.lane.b32.xlu0 %v2060_v61, %s7887_s20  ;;  %v2061_v20 = vmul.f32 %v8815_v51, %v2039_v17  ;;  %2240 = vmatprep.subr.bf16.mxu1 %v8898_v26 }
0x122c   :  { %v2041_v9 = vpop.permute.xlu0 %2040  ;;  %2541 = vmatprep.subr.bf16.mxu0 %v8898_v26 }
0x122d   :  { %v2062_v45 = vmul.f32 %v8812_v16, %v2041_v9  ;;  %2078 = vrot.lane.b32.xlu1 %v2061_v20, %s7887_s20 }
0x122e   :  { %v2043_v12 = vpop.permute.xlu1 %2042  ;;  %2241 = vmatpush1.bf16.msra.mxu1 %v8907_v46  ;;  %2542 = vmatpush1.bf16.msra.mxu0 %v8907_v46 }
0x122f   :  { %2080 = vrot.lane.b32.xlu0 %v2062_v45, %s7887_s20  ;;  %v2063_v29 = vmul.f32 %v8820_v62, %v2043_v12  ;;  %3166 = vmatprep.subr.bf16.mxu0 %v8888_v34 }
0x1230   :  { %v2045_v6 = vpop.permute.xlu0 %2044 }
0x1231   :  { %2082 = vrot.lane.b32.xlu1 %v2063_v29, %s7887_s20  ;;  %v2064_v41 = vmul.f32 %v8824_v31, %v2045_v6 }
0x1232   :  { %v2047_v15 = vpop.permute.xlu1 %2046 }
0x1233   :  { %2084 = vrot.lane.b32.xlu0 %v2064_v41, %s7887_s20  ;;  %v2065_v21 = vmul.f32 %v8831_v37, %v2047_v15 }
0x1234   :  { %v2049_v24 = vpop.permute.xlu0 %2048 }
0x1235   :  { %v2066_v25 = vmul.f32 %v8828_v4, %v2049_v24  ;;  %2086 = vrot.lane.b32.xlu1 %v2065_v21, %s7887_s20 }
0x1236   :  { %v2051_v44 = vpop.permute.xlu1 %2050 }
0x1237   :  { %2088 = vrot.lane.b32.xlu0 %v2066_v25, %s7887_s20  ;;  %v2067_v2 = vmul.f32 %v8836_v32, %v2051_v44 }
0x1239   :  { %2090 = vrot.lane.b32.xlu1 %v2067_v2, %s7887_s20  ;;  %v2304_v2 = vld [vmem:[%s10873_s2 + $0x8] sm:$0xff] }
0x129d   :  { %v2077_v30 = vpop.permute.xlu0 %2076 }
0x129e   :  { %v8842_v50 = vadd.f32 %v2077_v30, %v2020_v42 }
0x129f   :  { %v2079_v63 = vpop.permute.xlu1 %2078 }
0x12a0   :  { %7372 = vtanh.f32 %v8842_v50  ;;  %v8851_v27 = vadd.f32 %v2079_v63, %v2021_v5  ;;  %v2305_v63 = vld [vmem:[%s10873_s2 + $0x10] sm:$0xff] }
0x12a1   :  { %v2081_v35 = vpop.permute.xlu0 %2080 }
0x12a2   :  { %v8849_v49 = vadd.f32 %v2081_v35, %v2022_v53 }
0x12a3   :  { %v2083_v0 = vpop.permute.xlu1 %2082 }
0x12a4   :  { %7374 = vtanh.f32 %v8849_v49  ;;  %v8857_v57 = vadd.f32 %v2083_v0, %v2023_v1  ;;  %v2306_v0 = vld [vmem:[%s10873_s2 + $0x18] sm:$0xff] }
0x12a5   :  { %7376 = vtanh.f32 %v8851_v27  ;;  %v2085_v59 = vpop.permute.xlu0 %2084 }
0x12a6   :  { %7378 = vtanh.f32 %v8857_v57  ;;  %v8865_v48 = vadd.f32 %v2085_v59, %v2024_v43 }
0x12a7   :  { %v2087_v40 = vpop.permute.xlu1 %2086 }
0x12a8   :  { %7380 = vtanh.f32 %v8865_v48  ;;  %v8875_v52 = vadd.f32 %v2087_v40, %v2025_v8 }
0x12a9   :  { %v2089_v28 = vpop.permute.xlu0 %2088 }
0x12aa   :  { %v7373_v10 = vpop.eup %7372  ;;  %v8873_v11 = vadd.f32 %v2089_v28, %v2026_v47  ;;  %v2307_v28 = vld [vmem:[%s10873_s2 + $0x20] sm:$0xff] }
0x12ab   :  { %2124 = vrot.lane.b32.xlu0 %v7373_v10, %s7887_s20  ;;  %v2091_v19 = vpop.permute.xlu1 %2090 }
0x12ac   :  { %7382 = vtanh.f32 %v8873_v11  ;;  %v8881_v33 = vadd.f32 %v2091_v19, %v2027_v36 }
0x12ad   :  { %7384 = vtanh.f32 %v8875_v52 }
0x12ae   :  { %v7375_v23 = vpop.eup %7374  ;;  %7386 = vtanh.f32 %v8881_v33 }
0x12af   :  { %2128 = vrot.lane.b32.xlu0 %v7375_v23, %s7887_s20  ;;  %v7377_v22 = vpop.eup %7376 }
0x12b0   :  { %2126 = vrot.lane.b32.xlu1 %v7377_v22, %s7887_s20  ;;  %v7379_v39 = vpop.eup %7378 }
0x12b2   :  { %v7381_v56 = vpop.eup %7380 }
0x12b3   :  { %2132 = vrot.lane.b32.xlu0 %v7381_v56, %s7887_s20 }
0x12b4   :  { %2130 = vrot.lane.b32.xlu1 %v7379_v39, %s7887_s20 }
0x12b6   :  { %v7383_v61 = vpop.eup %7382 }
0x12b7   :  { %2136 = vrot.lane.b32.xlu0 %v7383_v61, %s7887_s20  ;;  %v7385_v9 = vpop.eup %7384  ;;  %v2308_v61 = vld [vmem:[%s10873_s2 + $0x28] sm:$0xff] }
0x12b8   :  { %2134 = vrot.lane.b32.xlu1 %v7385_v9, %s7887_s20  ;;  %v7387_v45 = vpop.eup %7386 }
0x12bc   :  { %2138 = vrot.lane.b32.xlu1 %v7387_v45, %s7887_s20 }
0x131d   :  { %v2125_v14 = vpop.permute.xlu0 %2124 }
0x131e   :  { %v2148_v55 = vmul.f32 %v8808_v13, %v2125_v14 }
0x1321   :  { %v2129_v60 = vpop.permute.xlu0 %2128 }
0x1322   :  { %v2127_v17 = vpop.permute.xlu1 %2126  ;;  %v2150_v29 = vmul.f32 %v8812_v16, %v2129_v60 }
0x1323   :  { %v2149_v20 = vmul.f32 %v8815_v51, %v2127_v17  ;;  %v2309_v17 = vld [vmem:[%s10873_s2 + $0x30] sm:$0xff] }
0x1325   :  { %v2190_v58 = vpack.c.bf16 %v2149_v20, %v2148_v55  ;;  %v2133_v38 = vpop.permute.xlu0 %2132  ;;  %v2310_v20 = vld [vmem:[%s10873_s2 + $0x38] sm:$0xff] }
0x1326   :  { %v2131_v12 = vpop.permute.xlu1 %2130  ;;  %v2152_v41 = vmul.f32 %v8824_v31, %v2133_v38 }
0x1327   :  { %v2151_v7 = vmul.f32 %v8820_v62, %v2131_v12  ;;  %2198 = vrot.lane.b32.xlu0 %v2190_v58, %s7888_s23 }
0x1329   :  { %v2191_v18 = vpack.c.bf16 %v2151_v7, %v2150_v29  ;;  %v2137_v24 = vpop.permute.xlu0 %2136 }
0x132a   :  { %v2135_v6 = vpop.permute.xlu1 %2134  ;;  %v2154_v15 = vmul.f32 %v8828_v4, %v2137_v24 }
0x132b   :  { %2200 = vrot.lane.b32.xlu1 %v2191_v18, %s7888_s23  ;;  %v2153_v13 = vmul.f32 %v8831_v37, %v2135_v6 }
0x132d   :  { %v2192_v51 = vpack.c.bf16 %v2153_v13, %v2152_v41 }
0x132e   :  { %v2139_v25 = vpop.permute.xlu1 %2138 }
0x132f   :  { %v2155_v16 = vmul.f32 %v8836_v32, %v2139_v25  ;;  %2202 = vrot.lane.b32.xlu0 %v2192_v51, %s7888_s23  ;;  %v2303_v32 = vld [vmem:[%s10873_s2] sm:$0xff] }
0x1331   :  { %v2193_v62 = vpack.c.bf16 %v2155_v16, %v2154_v15 }
0x1333   :  { %2204 = vrot.lane.b32.xlu1 %v2193_v62, %s7888_s23 }
0x1399   :  { %v2199_v21 = vpop.permute.xlu0 %2198 }
0x139a   :  { %6274 = vmatmul.mubr.msk.bf16.vlgmr.msra.gmra.mrb[32].mxu1 %vm75_vm0, %v2199_v21 }
0x139b   :  { %2278 = vmatprep.mubr.bf16.mxu1 %v7886_v3 }
0x139d   :  { %v2201_v31 = vpop.permute.xlu1 %2200 }
0x13a1   :  { %v2203_v37 = vpop.permute.xlu0 %2202 }
0x13a2   :  { %6275 = vmatmul.mubr.msk.bf16.gmra.mrb[36].mxu1 %vm75_vm0, %v2201_v31 }
0x13a3   :  { %2286 = vmatprep.mubr.bf16.mxu1 %v7886_v3 }
0x13a5   :  { %v2205_v4 = vpop.permute.xlu1 %2204 }
0x13aa   :  { %6276 = vmatmul.mubr.msk.bf16.gmra.mrb[40].mxu1 %vm75_vm0, %v2203_v37 }
0x13ab   :  { %2294 = vmatprep.mubr.bf16.mxu1 %v7886_v3 }
0x13b2   :  { %6277 = vmatmul.mubr.msk.bf16.gmra.mrb[44].mxu1 %vm75_vm0, %v2205_v4 }
0x146d   :  { %v2272_v44 = vpop.f32.mrb[32].mxu1 }
0x146e   :  { %v2311_v42 = vadd.f32 %v2303_v32, %v2272_v44  ;;  %v2274_v30 = vpop.f32.mrb[33].mxu1 }
0x146f   :  { %v2275_v53 = vpop.f32.mrb[34].mxu1 }
0x1470   :  { %7388 = vtanh.f32 %v2311_v42  ;;  %v2312_v35 = vadd.f32 %v2304_v2, %v2275_v53  ;;  %v2277_v5 = vpop.f32.mrb[35].mxu1  ;;  %v6278_v13 = vmul.f32 -1.442695, %v2311_v42 }
0x1472   :  { %7390 = vtanh.f32 %v2312_v35  ;;  %v6279_v24 = vmul.f32 -1.442695, %v2312_v35 }
0x1475   :  { %v2280_v1 = vpop.f32.mrb[36].mxu1 }
0x1476   :  { %v2313_v10 = vadd.f32 %v2305_v63, %v2280_v1  ;;  %v2282_v23 = vpop.f32.mrb[37].mxu1 }
0x1477   :  { %v2283_v22 = vpop.f32.mrb[38].mxu1 }
0x1478   :  { %7392 = vtanh.f32 %v2313_v10  ;;  %v2314_v43 = vadd.f32 %v2306_v0, %v2283_v22  ;;  %v2285_v59 = vpop.f32.mrb[39].mxu1  ;;  %v6280_v51 = vmul.f32 -1.442695, %v2313_v10 }
0x147a   :  { %v7389_v39 = vpop.eup %7388  ;;  %7394 = vtanh.f32 %v2314_v43  ;;  %v6281_v25 = vmul.f32 -1.442695, %v2314_v43 }
0x147b   :  { %2391 = vrot.lane.b32.xlu0 %v7389_v39, %s7887_s20 }
0x147c   :  { %v7391_v47 = vpop.eup %7390 }
0x147d   :  { %2393 = vrot.lane.b32.xlu1 %v7391_v47, %s7887_s20  ;;  %v2288_v8 = vpop.f32.mrb[40].mxu1 }
0x147e   :  { %v2315_v36 = vadd.f32 %v2307_v28, %v2288_v8  ;;  %v2290_v19 = vpop.f32.mrb[41].mxu1 }
0x147f   :  { %v2291_v56 = vpop.f32.mrb[42].mxu1 }
0x1480   :  { %7396 = vtanh.f32 %v2315_v36  ;;  %v2293_v9 = vpop.f32.mrb[43].mxu1  ;;  %v2316_v14 = vadd.f32 %v2308_v61, %v2291_v56  ;;  %v6282_v31 = vmul.f32 -1.442695, %v2315_v36 }
0x1482   :  { %v7393_v40 = vpop.eup %7392  ;;  %7398 = vtanh.f32 %v2316_v14  ;;  %v6283_v44 = vmul.f32 -1.442695, %v2316_v14 }
0x1483   :  { %2395 = vrot.lane.b32.xlu0 %v7393_v40, %s7887_s20 }
0x1484   :  { %v7395_v45 = vpop.eup %7394 }
0x1485   :  { %2397 = vrot.lane.b32.xlu1 %v7395_v45, %s7887_s20  ;;  %v2296_v55 = vpop.f32.mrb[44].mxu1 }
0x1486   :  { %v2317_v60 = vadd.f32 %v2309_v17, %v2296_v55  ;;  %v2298_v58 = vpop.f32.mrb[45].mxu1 }
0x1487   :  { %v2299_v12 = vpop.f32.mrb[46].mxu1 }
0x1488   :  { %7400 = vtanh.f32 %v2317_v60  ;;  %v2318_v29 = vadd.f32 %v2310_v20, %v2299_v12  ;;  %v2301_v7 = vpop.f32.mrb[47].mxu1  ;;  %v6284_v42 = vmul.f32 -1.442695, %v2317_v60 }
0x148a   :  { %v7397_v18 = vpop.eup %7396  ;;  %7402 = vtanh.f32 %v2318_v29  ;;  %v6285_v53 = vmul.f32 -1.442695, %v2318_v29 }
0x148b   :  { %2399 = vrot.lane.b32.xlu0 %v7397_v18, %s7887_s20  ;;  %7404 = vpow2.f32 %v6278_v13 }
0x148c   :  { %v7399_v38 = vpop.eup %7398  ;;  %7406 = vpow2.f32 %v6279_v24 }
0x148d   :  { %2401 = vrot.lane.b32.xlu1 %v7399_v38, %s7887_s20  ;;  %7408 = vpow2.f32 %v6280_v51 }
0x148e   :  { %7410 = vpow2.f32 %v6281_v25 }
0x1492   :  { %v7401_v6 = vpop.eup %7400 }
0x1493   :  { %2403 = vrot.lane.b32.xlu0 %v7401_v6, %s7887_s20 }
0x1494   :  { %v7403_v41 = vpop.eup %7402 }
0x1495   :  { %2405 = vrot.lane.b32.xlu1 %v7403_v41, %s7887_s20  ;;  %v7405_v15 = vpop.eup %7404 }
0x1496   :  { %v7407_v16 = vpop.eup %7406  ;;  %v2343_v62 = vadd.f32 1.0, %v7405_v15 }
0x1497   :  { %v2344_v21 = vadd.f32 1.0, %v7407_v16  ;;  %v7409_v37 = vpop.eup %7408 }
0x1498   :  { %7412 = vrcp.f32 %v2343_v62  ;;  %v7411_v4 = vpop.eup %7410  ;;  %v2345_v32 = vadd.f32 1.0, %v7409_v37 }
0x1499   :  { %7414 = vrcp.f32 %v2344_v21  ;;  %v2346_v2 = vadd.f32 1.0, %v7411_v4 }
0x149a   :  { %7416 = vpow2.f32 %v6282_v31 }
0x149b   :  { %7418 = vrcp.f32 %v2345_v32 }
0x149c   :  { %7420 = vpow2.f32 %v6283_v44 }
0x149d   :  { %7422 = vrcp.f32 %v2346_v2 }
0x149e   :  { %7424 = vpow2.f32 %v6284_v42 }
0x149f   :  { %7426 = vpow2.f32 %v6285_v53 }
0x14a2   :  { %v8968_v30 = vpop.eup %7412 }
0x14a3   :  { %v8971_v63 = vpop.eup %7414  ;;  %v2375_v38 = vmul.f32 %v8968_v30, %v8842_v50 }
0x14a4   :  { %v7417_v1 = vpop.eup %7416  ;;  %v2376_v13 = vmul.f32 %v8971_v63, %v8851_v27 }
0x14a5   :  { %v2347_v23 = vadd.f32 1.0, %v7417_v1  ;;  %v8976_v22 = vpop.eup %7418 }
0x14a6   :  { %v7421_v59 = vpop.eup %7420  ;;  %v2377_v25 = vmul.f32 %v8976_v22, %v8849_v49 }
0x14a7   :  { %v8979_v47 = vpop.eup %7422  ;;  %7428 = vrcp.f32 %v2347_v23  ;;  %v2348_v40 = vadd.f32 1.0, %v7421_v59 }
0x14a8   :  { %v7425_v28 = vpop.eup %7424  ;;  %v2378_v50 = vmul.f32 %v8979_v47, %v8857_v57 }
0x14a9   :  { %v7427_v19 = vpop.eup %7426  ;;  %v2349_v56 = vadd.f32 1.0, %v7425_v28  ;;  %7430 = vrcp.f32 %v2348_v40 }
0x14aa   :  { %v2350_v61 = vadd.f32 1.0, %v7427_v19 }
0x14ab   :  { %7432 = vrcp.f32 %v2349_v56 }
0x14ac   :  { %7434 = vrcp.f32 %v2350_v61 }
0x14b1   :  { %v8984_v9 = vpop.eup %7428 }
0x14b2   :  { %v2379_v49 = vmul.f32 %v8984_v9, %v8865_v48 }
0x14b3   :  { %v8988_v17 = vpop.eup %7430 }
0x14b4   :  { %v2380_v44 = vmul.f32 %v8988_v17, %v8875_v52 }
0x14b5   :  { %v8991_v60 = vpop.eup %7432 }
0x14b6   :  { %v8995_v29 = vpop.eup %7434  ;;  %v2381_v48 = vmul.f32 %v8991_v60, %v8873_v11 }
0x14ed   :  { %v2392_v35 = vpop.permute.xlu0 %2391 }
0x14ee   :  { %v2415_v5 = vmul.f32 %v8968_v30, %v2392_v35 }
0x14ef   :  { %v2394_v0 = vpop.permute.xlu1 %2393 }
0x14f0   :  { %2431 = vrot.lane.b32.xlu0 %v2415_v5, %s7887_s20  ;;  %v2416_v10 = vmul.f32 %v8971_v63, %v2394_v0  ;;  %v2382_v5 = vmul.f32 %v8995_v29, %v8881_v33 }
0x14f2   :  { %2433 = vrot.lane.b32.xlu1 %v2416_v10, %s7887_s20 }
0x14f5   :  { %v2396_v43 = vpop.permute.xlu0 %2395 }
0x14f6   :  { %v2417_v39 = vmul.f32 %v8976_v22, %v2396_v43 }
0x14f7   :  { %v2398_v8 = vpop.permute.xlu1 %2397 }
0x14f8   :  { %2435 = vrot.lane.b32.xlu0 %v2417_v39, %s7887_s20  ;;  %v2418_v36 = vmul.f32 %v8979_v47, %v2398_v8 }
0x14fa   :  { %2437 = vrot.lane.b32.xlu1 %v2418_v36, %s7887_s20 }
0x14fd   :  { %v2400_v45 = vpop.permute.xlu0 %2399 }
0x14fe   :  { %v2419_v14 = vmul.f32 %v8984_v9, %v2400_v45 }
0x14ff   :  { %v2402_v55 = vpop.permute.xlu1 %2401 }
0x1500   :  { %2439 = vrot.lane.b32.xlu0 %v2419_v14, %s7887_s20  ;;  %v2420_v20 = vmul.f32 %v8988_v17, %v2402_v55 }
0x1502   :  { %2441 = vrot.lane.b32.xlu1 %v2420_v20, %s7887_s20 }
0x1505   :  { %v2404_v58 = vpop.permute.xlu0 %2403 }
0x1506   :  { %v2421_v12 = vmul.f32 %v8991_v60, %v2404_v58 }
0x1507   :  { %v2406_v7 = vpop.permute.xlu1 %2405 }
0x1508   :  { %2443 = vrot.lane.b32.xlu0 %v2421_v12, %s7887_s20  ;;  %v2422_v18 = vmul.f32 %v8995_v29, %v2406_v7 }
0x150a   :  { %2445 = vrot.lane.b32.xlu1 %v2422_v18, %s7887_s20 }
0x1562   :  { %v2432_v6 = vpop.permute.xlu0 %2431 }
0x1563   :  { %v9002_v41 = vadd.f32 %v2432_v6, %v2375_v38 }
0x1564   :  { %v2434_v24 = vpop.permute.xlu1 %2433 }
0x1565   :  { %7436 = vtanh.f32 %v9002_v41  ;;  %v9007_v51 = vadd.f32 %v2434_v24, %v2376_v13 }
0x1567   :  { %7438 = vtanh.f32 %v9007_v51 }
0x156a   :  { %v2436_v15 = vpop.permute.xlu0 %2435 }
0x156b   :  { %v9012_v16 = vadd.f32 %v2436_v15, %v2377_v25 }
0x156c   :  { %v2438_v62 = vpop.permute.xlu1 %2437 }
0x156d   :  { %7440 = vtanh.f32 %v9012_v16  ;;  %v9017_v27 = vadd.f32 %v2438_v62, %v2378_v50 }
0x156f   :  { %v7437_v21 = vpop.eup %7436  ;;  %7442 = vtanh.f32 %v9017_v27 }
0x1570   :  { %2479 = vrot.lane.b32.xlu0 %v7437_v21, %s7887_s20 }
0x1571   :  { %v7439_v31 = vpop.eup %7438 }
0x1572   :  { %2481 = vrot.lane.b32.xlu1 %v7439_v31, %s7887_s20  ;;  %v2440_v37 = vpop.permute.xlu0 %2439 }
0x1573   :  { %v9024_v32 = vadd.f32 %v2440_v37, %v2379_v49 }
0x1574   :  { %v2442_v2 = vpop.permute.xlu1 %2441 }
0x1575   :  { %7444 = vtanh.f32 %v9024_v32  ;;  %v9031_v42 = vadd.f32 %v2442_v2, %v2380_v44 }
0x1577   :  { %v7441_v4 = vpop.eup %7440  ;;  %7446 = vtanh.f32 %v9031_v42 }
0x1578   :  { %2483 = vrot.lane.b32.xlu0 %v7441_v4, %s7887_s20 }
0x1579   :  { %v7443_v57 = vpop.eup %7442 }
0x157a   :  { %2485 = vrot.lane.b32.xlu1 %v7443_v57, %s7887_s20  ;;  %v2444_v53 = vpop.permute.xlu0 %2443 }
0x157b   :  { %v9036_v35 = vadd.f32 %v2444_v53, %v2381_v48 }
0x157c   :  { %v2446_v1 = vpop.permute.xlu1 %2445 }
0x157d   :  { %7448 = vtanh.f32 %v9036_v35  ;;  %v9041_v52 = vadd.f32 %v2446_v1, %v2382_v5  ;;  %v2645_v5 = vlaneseq }
0x157f   :  { %v7445_v0 = vpop.eup %7444  ;;  %7450 = vtanh.f32 %v9041_v52  ;;  %v9125_v1 = vand.u32 127, %v2645_v5 }
0x1580   :  { %2487 = vrot.lane.b32.xlu0 %v7445_v0, %s7887_s20 }
0x1581   :  { %v7447_v10 = vpop.eup %7446 }
0x1582   :  { %2489 = vrot.lane.b32.xlu1 %v7447_v10, %s7887_s20 }
0x1587   :  { %v7449_v11 = vpop.eup %7448 }
0x1588   :  { %2491 = vrot.lane.b32.xlu0 %v7449_v11, %s7887_s20 }
0x1589   :  { %v7451_v23 = vpop.eup %7450 }
0x158a   :  { %2493 = vrot.lane.b32.xlu1 %v7451_v23, %s7887_s20 }
0x15e2   :  { %v2480_v33 = vpop.permute.xlu0 %2479 }
0x15e3   :  { %v2503_v59 = vmul.f32 %v8968_v30, %v2480_v33 }
0x15e4   :  { %v2482_v43 = vpop.permute.xlu1 %2481 }
0x15e5   :  { %v2504_v39 = vmul.f32 %v8971_v63, %v2482_v43 }
0x15e7   :  { %v2511_v28 = vpack.c.bf16 %v2504_v39, %v2503_v59 }
0x15e9   :  { %2519 = vrot.lane.b32.xlu0 %v2511_v28, %s7888_s23 }
0x15ea   :  { %v2484_v8 = vpop.permute.xlu0 %2483 }
0x15eb   :  { %v2505_v36 = vmul.f32 %v8976_v22, %v2484_v8 }
0x15ec   :  { %v2486_v40 = vpop.permute.xlu1 %2485 }
0x15ed   :  { %v2506_v19 = vmul.f32 %v8979_v47, %v2486_v40 }
0x15ef   :  { %v2512_v56 = vpack.c.bf16 %v2506_v19, %v2505_v36 }
0x15f1   :  { %2521 = vrot.lane.b32.xlu1 %v2512_v56, %s7888_s23 }
0x15f2   :  { %v2488_v61 = vpop.permute.xlu0 %2487 }
0x15f3   :  { %v2507_v14 = vmul.f32 %v8984_v9, %v2488_v61 }
0x15f4   :  { %v2490_v45 = vpop.permute.xlu1 %2489 }
0x15f5   :  { %v2508_v30 = vmul.f32 %v8988_v17, %v2490_v45 }
0x15f7   :  { %v2513_v55 = vpack.c.bf16 %v2508_v30, %v2507_v14 }
0x15f9   :  { %2523 = vrot.lane.b32.xlu0 %v2513_v55, %s7888_s23 }
0x15fa   :  { %v2492_v63 = vpop.permute.xlu0 %2491 }
0x15fb   :  { %v2509_v58 = vmul.f32 %v8991_v60, %v2492_v63 }
0x15fc   :  { %v2494_v20 = vpop.permute.xlu1 %2493 }
0x15fd   :  { %v2510_v22 = vmul.f32 %v8995_v29, %v2494_v20 }
0x15ff   :  { %v2514_v12 = vpack.c.bf16 %v2510_v22, %v2509_v58 }
0x1601   :  { %2525 = vrot.lane.b32.xlu1 %v2514_v12, %s7888_s23 }
0x165b   :  { %v2520_v47 = vpop.permute.xlu0 %2519 }
0x165c   :  { %6286 = vmatmul.mubr.msk.bf16.vlgmr.msra.gmra.mrb[24].mxu0 %vm75_vm0, %v2520_v47 }
0x165d   :  { %2581 = vmatprep.mubr.bf16.mxu0 %v7886_v3  ;;  %3167 = vmatpush1.bf16.msra.mxu0 %v8893_v54  ;;  %v9075_v54 = vld [vmem:[%s10878_s7] ss:$0 sm:$0xff] }
0x165e   :  { %3168 = vmatprep.subr.bf16.mxu0 %v8898_v26 }
0x1661   :  { %3169 = vmatpush1.bf16.msra.mxu0 %v8907_v46 }
0x1662   :  { %3743 = vmatprep.subr.bf16.mxu0 %v8888_v34 }
0x1663   :  { %v2522_v9 = vpop.permute.xlu1 %2521 }
0x1664   :  { %6287 = vmatmul.mubr.msk.bf16.gmra.mrb[28].mxu0 %vm75_vm0, %v2522_v9 }
0x1665   :  { %2591 = vmatprep.mubr.bf16.mxu0 %v7886_v3 }
0x166b   :  { %v2524_v17 = vpop.permute.xlu0 %2523 }
0x166c   :  { %6288 = vmatmul.mubr.msk.bf16.gmra.mrb[32].mxu0 %vm75_vm0, %v2524_v17 }
0x166d   :  { %2601 = vmatprep.mubr.bf16.mxu0 %v7886_v3 }
0x1673   :  { %v2526_v60 = vpop.permute.xlu1 %2525 }
0x1674   :  { %6289 = vmatmul.mubr.msk.bf16.gmra.mrb[36].mxu0 %vm75_vm0, %v2526_v60 }
0x1675   :  { %3198 = vmatprep.mubr.bf16.mxu0 %v7886_v3 }
0x172f   :  { %v9077_v34 = vpop.f32.mrb[24].mxu0 }
0x1730   :  { %v2575_v26 = vpop.f32.mrb[25].mxu0 }
0x1731   :  { %v2612_v46 = vadd.f32 %v9075_v54, %v2575_v26  ;;  %v9080_v29 = vpop.f32.mrb[26].mxu0 }
0x1732   :  { %v2579_v7 = vpop.f32.mrb[27].mxu0 }
0x1733   :  { %6290 = vst [vmem:[%s10879_s8 + $0x40] sm:$0xff] %v2612_v46  ;;  %v2613_v18 = vadd.f32 %v9075_v54, %v2579_v7  ;;  %2629 = vmax.xlane.f32.xlu0 %v2612_v46 }
0x1735   :  { %6291 = vst [vmem:[%s10879_s8 + $0x48] sm:$0xff] %v2613_v18  ;;  %2631 = vmax.xlane.f32.xlu1 %v2613_v18 }
0x1737   :  { %v9089_v38 = vpop.f32.mrb[28].mxu0 }
0x1738   :  { %v2585_v6 = vpop.f32.mrb[29].mxu0 }
0x1739   :  { %v2614_v13 = vadd.f32 %v9075_v54, %v2585_v6  ;;  %v9092_v24 = vpop.f32.mrb[30].mxu0  ;;  %v9162_v6 = vld [vmem:[%s10876_s5] sm:$0xff]  }
0x173a   :  { %v2589_v25 = vpop.f32.mrb[31].mxu0  ;;  %6774 = vmatprep.subr.bf16.mxu1 %v9162_v6 }
0x173b   :  { %6292 = vst [vmem:[%s10879_s8 + $0x50] sm:$0xff] %v2614_v13  ;;  %v2615_v15 = vadd.f32 %v9075_v54, %v2589_v25  ;;  %2633 = vmax.xlane.f32.xlu0 %v2614_v13  ;;  %6775 = vmatpush3.bf16.msra.mxu1 %v9162_v6  ;;  %v9175_v25 = vld [vmem:[%s10876_s5 + $0x10] sm:$0xff]  }
0x173d   :  { %6293 = vst [vmem:[%s10879_s8 + $0x58] sm:$0xff] %v2615_v15 }
0x173f   :  { %2635 = vmax.xlane.f32.xlu0 %v2615_v15  ;;  %v9101_v50 = vpop.f32.mrb[32].mxu0 }
0x1740   :  { %v2595_v62 = vpop.f32.mrb[33].mxu0 }
0x1741   :  { %v2616_v21 = vadd.f32 %v9075_v54, %v2595_v62  ;;  %v9104_v31 = vpop.f32.mrb[34].mxu0 }
0x1742   :  { %v2599_v49 = vpop.f32.mrb[35].mxu0 }
0x1743   :  { %6294 = vst [vmem:[%s10879_s8 + $0x60] sm:$0xff] %v2616_v21  ;;  %v2617_v37 = vadd.f32 %v9075_v54, %v2599_v49  ;;  %2637 = vmax.xlane.f32.xlu1 %v2616_v21 }
0x1745   :  { %6295 = vst [vmem:[%s10879_s8 + $0x68] sm:$0xff] %v2617_v37  ;;  %2639 = vmax.xlane.f32.xlu0 %v2617_v37 }
0x1747   :  { %v9113_v4 = vpop.f32.mrb[36].mxu0 }
0x1748   :  { %v2605_v57 = vpop.f32.mrb[37].mxu0 }
0x1749   :  { %v2618_v44 = vadd.f32 %v9075_v54, %v2605_v57  ;;  %v9116_v2 = vpop.f32.mrb[38].mxu0 }
0x174a   :  { %v2609_v48 = vpop.f32.mrb[39].mxu0 }
0x174b   :  { %6296 = vst [vmem:[%s10879_s8 + $0x70] sm:$0xff] %v2618_v44  ;;  %v2619_v53 = vadd.f32 %v9075_v54, %v2609_v48  ;;  %2641 = vmax.xlane.f32.xlu1 %v2618_v44 }
0x174d   :  { %6297 = vst [vmem:[%s10879_s8 + $0x78] sm:$0xff] %v2619_v53  ;;  %2643 = vmax.xlane.f32.xlu0 %v2619_v53 }
0x17c0   :  { %v2630_v0 = vpop.xlane.xlu0 %2629 }
0x17c1   :  { %vm2647_vm1 = vcmp.eq.f32.partialorder %v2612_v46, %v2630_v0 }
0x17c2   :  { %v2655_v10 = vsel %vm2647_vm1, %v9125_v1, 2147483647  ;;  %v2632_v11 = vpop.xlane.xlu1 %2631 }
0x17c3   :  { %v2664_v23 = vshra.s32 %v2655_v10, 16  ;;  %vm2648_vm2 = vcmp.eq.f32.partialorder %v2613_v18, %v2632_v11  ;;  %v2663_v62 = vand.u32 65535, %v2655_v10 }
0x17c4   :  { %v2656_v33 = vsel %vm2648_vm2, %v9125_v1, 2147483647 }
0x17c5   :  { %v2678_v43 = vshra.s32 %v2656_v33, 16  ;;  %v2666_v59 = vcvt.s32.f32 %v2664_v23 }
0x17c7   :  { %2667 = vmin.xlane.f32.xlu1 %v2666_v59  ;;  %v2680_v39 = vcvt.s32.f32 %v2678_v43 }
0x17c8   :  { %v2634_v28 = vpop.xlane.xlu0 %2633 }
0x17c9   :  { %vm2649_vm3 = vcmp.eq.f32.partialorder %v2614_v13, %v2634_v28  ;;  %2681 = vmin.xlane.f32.xlu0 %v2680_v39  ;;  %v9167_v13 = vld [vmem:[%s10876_s5 + $0x8] sm:$0xff]   ;;  %v9197_v28 = vld [vmem:[%s10876_s5 + $0x20] sm:$0xff]  }
0x17ca   :  { %v2657_v8 = vsel %vm2649_vm3, %v9125_v1, 2147483647  ;;  %6776 = vmatprep.subr.bf16.mxu1 %v9167_v13 }
0x17cb   :  { %v2692_v40 = vshra.s32 %v2657_v8, 16  ;;  %6777 = vmatpush3.bf16.msra.mxu1 %v9167_v13 }
0x17cc   :  { %v2636_v36 = vpop.xlane.xlu0 %2635  ;;  %6778 = vmatprep.subr.bf16.mxu1 %v9175_v25 }
0x17cd   :  { %vm2650_vm4 = vcmp.eq.f32.partialorder %v2615_v15, %v2636_v36  ;;  %v2694_v19 = vcvt.s32.f32 %v2692_v40  ;;  %v9182_v15 = vld [vmem:[%s10876_s5 + $0x18] sm:$0xff]   ;;  %v9204_v40 = vld [vmem:[%s10876_s5 + $0x28] sm:$0xff]  }
0x17ce   :  { %v2658_v56 = vsel %vm2650_vm4, %v9125_v1, 2147483647 }
0x17cf   :  { %v2706_v61 = vshra.s32 %v2658_v56, 16  ;;  %2695 = vmin.xlane.f32.xlu1 %v2694_v19  ;;  %6779 = vmatpush3.bf16.msra.mxu1 %v9175_v25  ;;  %v2705_v0 = vand.u32 65535, %v2658_v56 }
0x17d0   :  { %v2638_v14 = vpop.xlane.xlu1 %2637  ;;  %6780 = vmatprep.subr.bf16.mxu1 %v9182_v15 }
0x17d1   :  { %v2708_v45 = vcvt.s32.f32 %v2706_v61  ;;  %vm2651_vm5 = vcmp.eq.f32.partialorder %v2616_v21, %v2638_v14  ;;  %v2677_v21 = vand.u32 65535, %v2656_v33  ;;  %v2707_v33 = vcvt.s32.f32 %v2705_v0 }
0x17d2   :  { %v9132_v30 = vsel %vm2651_vm5, %v9125_v1, 2147483647  ;;  %v2640_v55 = vpop.xlane.xlu0 %2639 }
0x17d3   :  { %2709 = vmin.xlane.f32.xlu0 %v2708_v45  ;;  %v2720_v63 = vshra.s32 %v9132_v30, 16  ;;  %vm2652_vm6 = vcmp.eq.f32.partialorder %v2617_v37, %v2640_v55  ;;  %6781 = vmatpush3.bf16.msra.mxu1 %v9182_v15  ;;  %v2665_v37 = vcvt.s32.f32 %v2663_v62  ;;  %v2679_v48 = vcvt.s32.f32 %v2677_v21 }
0x17d4   :  { %v9136_v20 = vsel %vm2652_vm6, %v9125_v1, 2147483647  ;;  %6782 = vmatprep.subr.bf16.mxu1 %v9197_v28 }
0x17d5   :  { %v2734_v58 = vshra.s32 %v9136_v20, 16  ;;  %v9139_v22 = vcvt.s32.f32 %v2720_v63  ;;  %v9222_v63 = vld [vmem:[%s10876_s5 + $0x30] sm:$0xff]  }
0x17d7   :  { %2723 = vmin.xlane.f32.xlu1 %v9139_v22  ;;  %v9142_v12 = vcvt.s32.f32 %v2734_v58  ;;  %6783 = vmatpush3.bf16.msra.mxu1 %v9197_v28 }
0x17d8   :  { %v2642_v47 = vpop.xlane.xlu1 %2641  ;;  %6784 = vmatprep.subr.bf16.mxu1 %v9204_v40 }
0x17d9   :  { %vm2653_vm7 = vcmp.eq.f32.partialorder %v2618_v44, %v2642_v47  ;;  %2737 = vmin.xlane.f32.xlu0 %v9142_v12 }
0x17da   :  { %v9146_v9 = vsel %vm2653_vm7, %v9125_v1, 2147483647  ;;  %v2644_v17 = vpop.xlane.xlu0 %2643 }
0x17db   :  { %v2748_v60 = vshra.s32 %v9146_v9, 16  ;;  %vm2654_vm8 = vcmp.eq.f32.partialorder %v2619_v53, %v2644_v17  ;;  %v2691_v53 = vand.u32 65535, %v2657_v8  ;;  %v2733_v8 = vand.u32 65535, %v9136_v20  ;;  %6785 = vmatpush3.bf16.msra.mxu1 %v9204_v40 }
0x17dc   :  { %v9150_v26 = vsel %vm2654_vm8, %v9125_v1, 2147483647  ;;  %v2747_v14 = vand.u32 65535, %v9146_v9  ;;  %6786 = vmatprep.subr.bf16.mxu1 %v9222_v63  ;;  %v9237_v9 = vld [vmem:[%s10876_s5 + $0x38] sm:$0xff]  }
0x17dd   :  { %v2762_v46 = vshra.s32 %v9150_v26, 16  ;;  %v9153_v7 = vcvt.s32.f32 %v2748_v60  ;;  %v2693_v23 = vcvt.s32.f32 %v2691_v53  ;;  %v2761_v55 = vand.u32 65535, %v9150_v26 }
0x17de   :  { %v2749_v58 = vcvt.s32.f32 %v2747_v14 }
0x17df   :  { %2751 = vmin.xlane.f32.xlu1 %v9153_v7  ;;  %v9156_v18 = vcvt.s32.f32 %v2762_v46  ;;  %6787 = vmatpush3.bf16.msra.mxu1 %v9222_v63  ;;  %v2763_v47 = vcvt.s32.f32 %v2761_v55 }
0x17e0   :  { %6788 = vmatprep.subr.bf16.mxu1 %v9237_v9 }
0x17e1   :  { %2765 = vmin.xlane.f32.xlu0 %v9156_v18 }
0x17e3   :  { %6789 = vmatpush3.bf16.msra.mxu1 %v9237_v9 }
0x17e4   :  { %6798 = vmatprep.subr.bf16.mxu1 %v9162_v6 }
0x1854   :  { %v2668_v49 = vpop.xlane.xlu1 %2667 }
0x1855   :  { %vm2669_vm9 = vcmp.eq.f32.partialorder %v2666_v59, %v2668_v49  ;;  %v2674_v60 = vcvt.f32.s32 %v2668_v49 }
0x1856   :  { %v2682_v57 = vpop.xlane.xlu0 %2681  ;;  %v2670_v44 = vsel %vm2669_vm9, %v2665_v37, inf }
0x1857   :  { %2671 = vmin.xlane.f32.xlu1 %v2670_v44  ;;  %vm2683_vm10 = vcmp.eq.f32.partialorder %v2680_v39, %v2682_v57  ;;  %v2719_v39 = vand.u32 65535, %v9132_v30  ;;  %v2688_v26 = vcvt.f32.s32 %v2682_v57  ;;  %v7889_v57 = vmov 1.0|1.0  }
0x1858   :  { %v2684_v5 = vsel %vm2683_vm10, %v2679_v48, inf }
0x1859   :  { %2685 = vmin.xlane.f32.xlu0 %v2684_v5 }
0x185c   :  { %v9187_v11 = vpop.xlane.xlu1 %2695 }
0x185d   :  { %vm2697_vm11 = vcmp.eq.f32.partialorder %v2694_v19, %v9187_v11  ;;  %v2721_v19 = vcvt.s32.f32 %v2719_v39  ;;  %v2702_v53 = vcvt.f32.s32 %v9187_v11 }
0x185e   :  { %v2698_v43 = vsel %vm2697_vm11, %v2693_v23, inf }
0x185f   :  { %2699 = vmin.xlane.f32.xlu1 %v2698_v43  ;;  %v2703_v23 = vshll.u32 %v2702_v53, 16  ;;  %v6324_v53 = vld [vmem:[%s10873_s2 + $0x48] sm:$0xff] }
0x1860   :  { %v9190_v10 = vpop.xlane.xlu0 %2709 }
0x1861   :  { %vm2711_vm12 = vcmp.eq.f32.partialorder %v2708_v45, %v9190_v10  ;;  %v2735_v45 = vcvt.s32.f32 %v2733_v8  ;;  %v2716_v0 = vcvt.f32.s32 %v9190_v10 }
0x1862   :  { %v2712_v59 = vsel %vm2711_vm12, %v2707_v33, inf }
0x1863   :  { %2713 = vmin.xlane.f32.xlu0 %v2712_v59  ;;  %v2717_v33 = vshll.u32 %v2716_v0, 16 }
0x1864   :  { %v9207_v36 = vpop.xlane.xlu1 %2723 }
0x1865   :  { %vm2725_vm13 = vcmp.eq.f32.partialorder %v9139_v22, %v9207_v36  ;;  %v2730_v11 = vcvt.f32.s32 %v9207_v36 }
0x1866   :  { %v9212_v56 = vpop.xlane.xlu0 %2737  ;;  %v2726_v61 = vsel %vm2725_vm13, %v2721_v19, inf }
0x1867   :  { %2727 = vmin.xlane.f32.xlu1 %v2726_v61  ;;  %vm2739_vm14 = vcmp.eq.f32.partialorder %v9142_v12, %v9212_v56  ;;  %v2744_v10 = vcvt.f32.s32 %v9212_v56  ;;  %v2731_v61 = vshll.u32 %v2730_v11, 16 }
0x1868   :  { %v2740_v30 = vsel %vm2739_vm14, %v2735_v45, inf }
0x1869   :  { %2741 = vmin.xlane.f32.xlu0 %v2740_v30  ;;  %v2745_v30 = vshll.u32 %v2744_v10, 16 }
0x186c   :  { %v9224_v20 = vpop.xlane.xlu1 %2751 }
0x186d   :  { %vm2753_vm15 = vcmp.eq.f32.partialorder %v9153_v7, %v9224_v20  ;;  %v2675_v7 = vshll.u32 %v2674_v60, 16 }
0x186e   :  { %v9230_v22 = vpop.xlane.xlu0 %2765  ;;  %v2754_v12 = vsel %vm2753_vm15, %v2749_v58, inf }
0x186f   :  { %2755 = vmin.xlane.f32.xlu1 %v2754_v12  ;;  %vm2767_vm1 = vcmp.eq.f32.partialorder %v9156_v18, %v9230_v22  ;;  %v2689_v18 = vshll.u32 %v2688_v26, 16  ;;  %v2758_v12 = vcvt.f32.s32 %v9224_v20  ;;  %v2772_v56 = vcvt.f32.s32 %v9230_v22 }
0x1870   :  { %v2768_v17 = vsel %vm2767_vm1, %v2763_v47, inf }
0x1871   :  { %2769 = vmin.xlane.f32.xlu0 %v2768_v17  ;;  %v2759_v47 = vshll.u32 %v2758_v12, 16  ;;  %v6328_v12 = vld [vmem:[%s10873_s2 + $0x68] sm:$0xff] }
0x18e4   :  { %v2672_v46 = vpop.xlane.xlu1 %2671 }
0x18e5   :  { %v2673_v62 = vcvt.f32.s32 %v2672_v46 }
0x18e6   :  { %v2686_v21 = vpop.xlane.xlu0 %2685 }
0x18e7   :  { %v2676_v37 = vadd.s32 %v2675_v7, %v2673_v62  ;;  %v2687_v44 = vcvt.f32.s32 %v2686_v21  ;;  %v6323_v7 = vld [vmem:[%s10873_s2 + $0x40] sm:$0xff] }
0x18e9   :  { %v2690_v48 = vadd.s32 %v2689_v18, %v2687_v44  ;;  %vm2775_vm2 = vcmp.eq.s32.totalorder %v9125_v1, %v2676_v37  ;;  %v6326_v18 = vld [vmem:[%s10873_s2 + $0x58] sm:$0xff] }
0x18eb   :  { %vm2776_vm3 = vcmp.eq.s32.totalorder %v9125_v1, %v2690_v48 }
0x18ec   :  { %v2700_v5 = vpop.xlane.xlu1 %2699  ;;  %vm6314_vm4 = vmpackc.low %vm2776_vm3, %vm2775_vm2 }
0x18ed   :  { %v2701_v49 = vcvt.f32.s32 %v2700_v5  ;;  %6790 = vmatprep.mubr.msk.bf16.mxu1 %vm6314_vm4, %v7889_v57 }
0x18ef   :  { %v2704_v59 = vadd.s32 %v2703_v23, %v2701_v49 }
0x18f0   :  { %v2714_v43 = vpop.xlane.xlu0 %2713 }
0x18f1   :  { %v2715_v39 = vcvt.f32.s32 %v2714_v43  ;;  %vm2777_vm5 = vcmp.eq.s32.totalorder %v9125_v1, %v2704_v59 }
0x18f3   :  { %v2718_v8 = vadd.s32 %v2717_v33, %v2715_v39 }
0x18f4   :  { %v2728_v19 = vpop.xlane.xlu1 %2727 }
0x18f5   :  { %vm2778_vm6 = vcmp.eq.s32.totalorder %v9125_v1, %v2718_v8  ;;  %v2729_v45 = vcvt.f32.s32 %v2728_v19  ;;  %v6327_v19 = vld [vmem:[%s10873_s2 + $0x60] sm:$0xff] }
0x18f6   :  { %vm6316_vm7 = vmpackc.low %vm2778_vm6, %vm2777_vm5  ;;  %v2742_v14 = vpop.xlane.xlu0 %2741 }
0x18f7   :  { %6791 = vmatmul.mubr.msk.bf16.vlgmr.msra.gmra.mrb[48].mxu1 %vm6316_vm7, %v7889_v57  ;;  %v2732_v55 = vadd.s32 %v2731_v61, %v2729_v45  ;;  %v2743_v58 = vcvt.f32.s32 %v2742_v14  ;;  %v6330_v14 = vld [vmem:[%s10873_s2 + $0x78] sm:$0xff] }
0x18f8   :  { %6799 = vmatpush3.bf16.msra.mxu1 %v9162_v6 }
0x18f9   :  { %6800 = vmatprep.subr.bf16.mxu1 %v9167_v13  ;;  %v2746_v36 = vadd.s32 %v2745_v30, %v2743_v58  ;;  %vm2779_vm8 = vcmp.eq.s32.totalorder %v9125_v1, %v2732_v55 }
0x18fb   :  { %vm2780_vm9 = vcmp.eq.s32.totalorder %v9125_v1, %v2746_v36 }
0x18fc   :  { %6801 = vmatpush3.bf16.msra.mxu1 %v9167_v13  ;;  %v2756_v13 = vpop.xlane.xlu1 %2755  ;;  %vm6318_vm10 = vmpackc.low %vm2780_vm9, %vm2779_vm8 }
0x18fd   :  { %6802 = vmatprep.subr.bf16.mxu1 %v9175_v25  ;;  %v2757_v17 = vcvt.f32.s32 %v2756_v13  ;;  %6794 = vmatprep.mubr.msk.bf16.mxu1 %vm6318_vm10, %v7889_v57 }
0x18fe   :  { %v2770_v20 = vpop.xlane.xlu0 %2769 }
0x18ff   :  { %v2760_v60 = vadd.s32 %v2759_v47, %v2757_v17  ;;  %v2771_v26 = vcvt.f32.s32 %v2770_v20 }
0x1900   :  { %6803 = vmatpush3.bf16.msra.mxu1 %v9175_v25  ;;  %v2773_v25 = vshll.u32 %v2772_v56, 16 }
0x1901   :  { %6804 = vmatprep.subr.bf16.mxu1 %v9182_v15  ;;  %vm2781_vm11 = vcmp.eq.s32.totalorder %v9125_v1, %v2760_v60 }
0x1902   :  { %v2774_v46 = vadd.s32 %v2773_v25, %v2771_v26 }
0x1904   :  { %6805 = vmatpush3.bf16.msra.mxu1 %v9182_v15  ;;  %vm2782_vm12 = vcmp.eq.s32.totalorder %v9125_v1, %v2774_v46  ;;  %v2928_v15 = vstv %s2927_s27 }
0x1905   :  { %6806 = vmatprep.subr.bf16.mxu1 %v9197_v28  ;;  %vm6320_vm13 = vmpackc.low %vm2782_vm12, %vm2781_vm11  ;;  %vm9284_vm14 = vcmp.eq.s32.totalorder %v2928_v15, 1 }
0x1906   :  { %6795 = vmatmul.mubr.msk.bf16.gmra.mrb[52].mxu1 %vm6320_vm13, %v7889_v57 }
0x1908   :  { %6807 = vmatpush3.bf16.msra.mxu1 %v9197_v28  ;;  %v9279_v28 = vld [vmem:[%s10877_s6] ss:$0 sm:$0xff] }
0x1909   :  { %6808 = vmatprep.subr.bf16.mxu1 %v9204_v40 }
0x190c   :  { %6809 = vmatpush3.bf16.msra.mxu1 %v9204_v40 }
0x190d   :  { %6810 = vmatprep.subr.bf16.mxu1 %v9222_v63 }
0x1910   :  { %6811 = vmatpush3.bf16.msra.mxu1 %v9222_v63  ;;  %v6325_v63 = vld [vmem:[%s10873_s2 + $0x50] sm:$0xff] }
0x1911   :  { %6812 = vmatprep.subr.bf16.mxu1 %v9237_v9 }
0x1914   :  { %6813 = vmatpush3.bf16.msra.mxu1 %v9237_v9 }
0x1915   :  { %6822 = vmatprep.subr.bf16.mxu1 %v9162_v6 }
0x19ca   :  { %v6792_v40 = vpop.f32.mrb[48].mxu1 }
0x19cb   :  { %v2894_v6 = vadd.f32 %v6792_v40, %v9279_v28  ;;  %v2885_v9 = vpop.f32.mrb[49].mxu1 }
0x19cc   :  { %v2886_v62 = vadd.f32 %v9279_v28, %v2885_v9  ;;  %v6793_v21 = vpop.f32.mrb[50].mxu1 }
0x19cd   :  { %v2932_v37 = vsel %vm9284_vm14, %v6325_v63, %v2894_v6  ;;  %v2897_v44 = vadd.f32 %v6793_v21, %v9279_v28  ;;  %v2888_v48 = vpop.f32.mrb[51].mxu1 }
0x19ce   :  { %v2940_v5 = vadd.f32 %v2932_v37, %v9089_v38  ;;  %v2930_v0 = vsel %vm9284_vm14, %v6323_v7, %v2886_v62  ;;  %v2889_v49 = vadd.f32 %v9279_v28, %v2888_v48 }
0x19cf   :  { %v2938_v23 = vadd.f32 %v2930_v0, %v9077_v34  ;;  %v2933_v43 = vsel %vm9284_vm14, %v6326_v18, %v2897_v44  ;;  %v6329_v34 = vld [vmem:[%s10873_s2 + $0x70] sm:$0xff] }
0x19d0   :  { %v2941_v33 = vadd.f32 %v2933_v43, %v9092_v24  ;;  %v2931_v59 = vsel %vm9284_vm14, %v6324_v53, %v2889_v49  ;;  %v6333_v40 = vmul.f32 -1.442695, %v2940_v5 }
0x19d1   :  { %7452 = vtanh.f32 %v2938_v23  ;;  %v2939_v39 = vadd.f32 %v2931_v59, %v9080_v29 }
0x19d2   :  { %7454 = vtanh.f32 %v2940_v5 }
0x19d3   :  { %7456 = vtanh.f32 %v2939_v39  ;;  %v6332_v63 = vmul.f32 -1.442695, %v2939_v39 }
0x19d4   :  { %7458 = vtanh.f32 %v2941_v33 }
0x19d9   :  { %v6796_v11 = vpop.f32.mrb[52].mxu1 }
0x19da   :  { %v2910_v24 = vadd.f32 %v6796_v11, %v9279_v28  ;;  %v2901_v10 = vpop.f32.mrb[53].mxu1 }
0x19db   :  { %v7453_v38 = vpop.eup %7452  ;;  %v2902_v61 = vadd.f32 %v9279_v28, %v2901_v10  ;;  %v6797_v45 = vpop.f32.mrb[54].mxu1 }
0x19dc   :  { %3018 = vrot.lane.b32.xlu1 %v7453_v38, %s7887_s20  ;;  %v7455_v8 = vpop.eup %7454  ;;  %v2936_v30 = vsel %vm9284_vm14, %v6329_v34, %v2910_v24  ;;  %v2913_v55 = vadd.f32 %v6797_v45, %v9279_v28  ;;  %v2904_v58 = vpop.f32.mrb[55].mxu1 }
0x19dd   :  { %v7457_v29 = vpop.eup %7456  ;;  %v2944_v56 = vadd.f32 %v2936_v30, %v9113_v4  ;;  %v2934_v13 = vsel %vm9284_vm14, %v6327_v19, %v2902_v61  ;;  %v2905_v47 = vadd.f32 %v9279_v28, %v2904_v58 }
0x19de   :  { %3020 = vrot.lane.b32.xlu0 %v7457_v29, %s7887_s20  ;;  %v7459_v36 = vpop.eup %7458  ;;  %v2942_v17 = vadd.f32 %v2934_v13, %v9101_v50  ;;  %v2937_v20 = vsel %vm9284_vm14, %v6330_v14, %v2913_v55 }
0x19df   :  { %v2945_v25 = vadd.f32 %v2937_v20, %v9116_v2  ;;  %v2935_v60 = vsel %vm9284_vm14, %v6328_v12, %v2905_v47  ;;  %v6331_v2 = vmul.f32 -1.442695, %v2938_v23  ;;  %v6337_v48 = vmul.f32 -1.442695, %v2944_v56 }
0x19e0   :  { %3022 = vrot.lane.b32.xlu1 %v7455_v8, %s7887_s20  ;;  %7460 = vtanh.f32 %v2942_v17  ;;  %v2943_v4 = vadd.f32 %v2935_v60, %v9104_v31  ;;  %v6334_v31 = vmul.f32 -1.442695, %v2941_v33  ;;  %v6335_v18 = vmul.f32 -1.442695, %v2942_v17 }
0x19e1   :  { %7462 = vtanh.f32 %v2944_v56  ;;  %v6338_v0 = vmul.f32 -1.442695, %v2945_v25 }
0x19e2   :  { %7464 = vtanh.f32 %v2943_v4  ;;  %v6336_v53 = vmul.f32 -1.442695, %v2943_v4 }
0x19e3   :  { %7466 = vtanh.f32 %v2945_v25 }
0x19e4   :  { %3024 = vrot.lane.b32.xlu1 %v7459_v36, %s7887_s20  ;;  %7468 = vpow2.f32 %v6331_v2 }
0x19e5   :  { %7470 = vpow2.f32 %v6333_v40 }
0x19e6   :  { %7472 = vpow2.f32 %v6332_v63 }
0x19e7   :  { %7474 = vpow2.f32 %v6334_v31 }
0x19ea   :  { %v7461_v26 = vpop.eup %7460 }
0x19eb   :  { %3026 = vrot.lane.b32.xlu0 %v7461_v26, %s7887_s20  ;;  %v7463_v50 = vpop.eup %7462 }
0x19ec   :  { %v7465_v46 = vpop.eup %7464 }
0x19ed   :  { %3028 = vrot.lane.b32.xlu1 %v7465_v46, %s7887_s20  ;;  %v7467_v15 = vpop.eup %7466 }
0x19ee   :  { %v7469_v22 = vpop.eup %7468 }
0x19ef   :  { %3030 = vrot.lane.b32.xlu0 %v7463_v50, %s7887_s20  ;;  %v7471_v6 = vpop.eup %7470  ;;  %v2970_v9 = vadd.f32 1.0, %v7469_v22 }
0x19f0   :  { %v7473_v7 = vpop.eup %7472  ;;  %v2972_v62 = vadd.f32 1.0, %v7471_v6 }
0x19f1   :  { %3032 = vrot.lane.b32.xlu1 %v7467_v15, %s7887_s20  ;;  %v7475_v21 = vpop.eup %7474  ;;  %7476 = vrcp.f32 %v2970_v9  ;;  %v2971_v37 = vadd.f32 1.0, %v7473_v7 }
0x19f2   :  { %7478 = vrcp.f32 %v2972_v62  ;;  %v2973_v44 = vadd.f32 1.0, %v7475_v21 }
0x19f3   :  { %7480 = vpow2.f32 %v6335_v18 }
0x19f4   :  { %7482 = vrcp.f32 %v2971_v37 }
0x19f5   :  { %7484 = vrcp.f32 %v2973_v44 }
0x19f6   :  { %7486 = vpow2.f32 %v6337_v48 }
0x19f7   :  { %7488 = vpow2.f32 %v6336_v53 }
0x19f8   :  { %7490 = vpow2.f32 %v6338_v0 }
0x19fb   :  { %v9349_v5 = vpop.eup %7476 }
0x19fc   :  { %v9352_v43 = vpop.eup %7478  ;;  %v3002_v50 = vmul.f32 %v9349_v5, %v9002_v41 }
0x19fd   :  { %v7481_v33 = vpop.eup %7480  ;;  %v3004_v2 = vmul.f32 %v9352_v43, %v9012_v16 }
0x19fe   :  { %v9356_v38 = vpop.eup %7482  ;;  %v2974_v34 = vadd.f32 1.0, %v7481_v33 }
0x19ff   :  { %v9358_v11 = vpop.eup %7484  ;;  %v3003_v63 = vmul.f32 %v9356_v38, %v9007_v51 }
0x1a00   :  { %v7487_v10 = vpop.eup %7486  ;;  %7492 = vrcp.f32 %v2974_v34  ;;  %v3005_v41 = vmul.f32 %v9358_v11, %v9017_v27 }
0x1a01   :  { %v7489_v61 = vpop.eup %7488  ;;  %v2976_v45 = vadd.f32 1.0, %v7487_v10 }
0x1a02   :  { %v2975_v14 = vadd.f32 1.0, %v7489_v61  ;;  %v7491_v30 = vpop.eup %7490 }
0x1a03   :  { %7494 = vrcp.f32 %v2976_v45  ;;  %v2977_v55 = vadd.f32 1.0, %v7491_v30 }
0x1a04   :  { %7496 = vrcp.f32 %v2975_v14 }
0x1a05   :  { %7498 = vrcp.f32 %v2977_v55 }
0x1a0a   :  { %v9365_v58 = vpop.eup %7492 }
0x1a0b   :  { %v3006_v21 = vmul.f32 %v9365_v58, %v9024_v32 }
0x1a0d   :  { %v9369_v56 = vpop.eup %7494 }
0x1a0e   :  { %v9372_v17 = vpop.eup %7496  ;;  %v3008_v44 = vmul.f32 %v9369_v56, %v9036_v35 }
0x1a0f   :  { %v9377_v60 = vpop.eup %7498  ;;  %v3007_v53 = vmul.f32 %v9372_v17, %v9031_v42 }
0x1a4e   :  { %v3019_v49 = vpop.permute.xlu1 %3018 }
0x1a4f   :  { %v3042_v23 = vmul.f32 %v9349_v5, %v3019_v49 }
0x1a50   :  { %v3021_v8 = vpop.permute.xlu0 %3020 }
0x1a51   :  { %3058 = vrot.lane.b32.xlu0 %v3042_v23, %s7887_s20  ;;  %v3043_v24 = vmul.f32 %v9356_v38, %v3021_v8  ;;  %v3009_v23 = vmul.f32 %v9377_v60, %v9041_v52 }
0x1a52   :  { %v3023_v59 = vpop.permute.xlu1 %3022 }
0x1a53   :  { %v3044_v39 = vmul.f32 %v9352_v43, %v3023_v59  ;;  %3060 = vrot.lane.b32.xlu1 %v3043_v24, %s7887_s20 }
0x1a55   :  { %3062 = vrot.lane.b32.xlu0 %v3044_v39, %s7887_s20 }
0x1a56   :  { %v3025_v19 = vpop.permute.xlu1 %3024 }
0x1a57   :  { %v3045_v29 = vmul.f32 %v9358_v11, %v3025_v19 }
0x1a59   :  { %3064 = vrot.lane.b32.xlu1 %v3045_v29, %s7887_s20 }
0x1a5d   :  { %v3027_v12 = vpop.permute.xlu0 %3026 }
0x1a5e   :  { %v3046_v36 = vmul.f32 %v9365_v58, %v3027_v12 }
0x1a5f   :  { %v3029_v20 = vpop.permute.xlu1 %3028 }
0x1a60   :  { %3066 = vrot.lane.b32.xlu0 %v3046_v36, %s7887_s20  ;;  %v3047_v25 = vmul.f32 %v9372_v17, %v3029_v20 }
0x1a61   :  { %v3031_v13 = vpop.permute.xlu0 %3030 }
0x1a62   :  { %v3048_v47 = vmul.f32 %v9369_v56, %v3031_v13  ;;  %3068 = vrot.lane.b32.xlu1 %v3047_v25, %s7887_s20 }
0x1a63   :  { %v3033_v4 = vpop.permute.xlu1 %3032 }
0x1a64   :  { %3070 = vrot.lane.b32.xlu0 %v3048_v47, %s7887_s20  ;;  %v3049_v26 = vmul.f32 %v9377_v60, %v3033_v4 }
0x1a66   :  { %3072 = vrot.lane.b32.xlu1 %v3049_v26, %s7887_s20 }
0x1ac3   :  { %v3059_v46 = vpop.permute.xlu0 %3058 }
0x1ac4   :  { %v9383_v15 = vadd.f32 %v3059_v46, %v3002_v50 }
0x1ac5   :  { %v3061_v22 = vpop.permute.xlu1 %3060 }
0x1ac6   :  { %7500 = vtanh.f32 %v9383_v15  ;;  %v9392_v6 = vadd.f32 %v3061_v22, %v3003_v63 }
0x1ac7   :  { %v3063_v40 = vpop.permute.xlu0 %3062 }
0x1ac8   :  { %v9390_v31 = vadd.f32 %v3063_v40, %v3004_v2 }
0x1aca   :  { %7502 = vtanh.f32 %v9390_v31 }
0x1acb   :  { %7504 = vtanh.f32 %v9392_v6  ;;  %v3065_v9 = vpop.permute.xlu1 %3064 }
0x1acc   :  { %v9398_v7 = vadd.f32 %v3065_v9, %v3005_v41 }
0x1ace   :  { %7506 = vtanh.f32 %v9398_v7 }
0x1ad0   :  { %v7501_v16 = vpop.eup %7500 }
0x1ad1   :  { %3106 = vrot.lane.b32.xlu0 %v7501_v16, %s7887_s20 }
0x1ad2   :  { %v3067_v18 = vpop.permute.xlu0 %3066 }
0x1ad3   :  { %v9406_v37 = vadd.f32 %v3067_v18, %v3006_v21 }
0x1ad4   :  { %v7503_v51 = vpop.eup %7502  ;;  %v3069_v32 = vpop.permute.xlu1 %3068 }
0x1ad5   :  { %3110 = vrot.lane.b32.xlu0 %v7503_v51, %s7887_s20  ;;  %v7505_v62 = vpop.eup %7504  ;;  %7508 = vtanh.f32 %v9406_v37  ;;  %v9416_v49 = vadd.f32 %v3069_v32, %v3007_v53 }
0x1ad6   :  { %3108 = vrot.lane.b32.xlu1 %v7505_v62, %s7887_s20  ;;  %v3071_v48 = vpop.permute.xlu0 %3070 }
0x1ad7   :  { %v9414_v0 = vadd.f32 %v3071_v48, %v3008_v44 }
0x1ad8   :  { %v7507_v27 = vpop.eup %7506  ;;  %v3073_v33 = vpop.permute.xlu1 %3072 }
0x1ad9   :  { %7510 = vtanh.f32 %v9414_v0  ;;  %v9422_v35 = vadd.f32 %v3073_v33, %v3009_v23 }
0x1ada   :  { %3112 = vrot.lane.b32.xlu1 %v7507_v27, %s7887_s20  ;;  %7512 = vtanh.f32 %v9416_v49 }
0x1adb   :  { %7514 = vtanh.f32 %v9422_v35 }
0x1adf   :  { %v7509_v59 = vpop.eup %7508 }
0x1ae0   :  { %3114 = vrot.lane.b32.xlu0 %v7509_v59, %s7887_s20 }
0x1ae3   :  { %v7511_v42 = vpop.eup %7510 }
0x1ae4   :  { %3118 = vrot.lane.b32.xlu0 %v7511_v42, %s7887_s20  ;;  %v7513_v39 = vpop.eup %7512 }
0x1ae5   :  { %3116 = vrot.lane.b32.xlu1 %v7513_v39, %s7887_s20  ;;  %v7515_v8 = vpop.eup %7514 }
0x1ae9   :  { %3120 = vrot.lane.b32.xlu1 %v7515_v8, %s7887_s20 }
0x1b43   :  { %v3107_v34 = vpop.permute.xlu0 %3106 }
0x1b44   :  { %v3130_v52 = vmul.f32 %v9349_v5, %v3107_v34 }
0x1b47   :  { %v3111_v19 = vpop.permute.xlu0 %3110 }
0x1b48   :  { %v3109_v24 = vpop.permute.xlu1 %3108  ;;  %v3132_v45 = vmul.f32 %v9352_v43, %v3111_v19 }
0x1b49   :  { %v3131_v10 = vmul.f32 %v9356_v38, %v3109_v24 }
0x1b4b   :  { %v3138_v29 = vpack.c.bf16 %v3131_v10, %v3130_v52 }
0x1b4c   :  { %v3113_v61 = vpop.permute.xlu1 %3112 }
0x1b4d   :  { %3146 = vrot.lane.b32.xlu0 %v3138_v29, %s7888_s23  ;;  %v3133_v14 = vmul.f32 %v9358_v11, %v3113_v61 }
0x1b4f   :  { %v3139_v30 = vpack.c.bf16 %v3133_v14, %v3132_v45 }
0x1b51   :  { %3148 = vrot.lane.b32.xlu1 %v3139_v30, %s7888_s23 }
0x1b52   :  { %v3115_v55 = vpop.permute.xlu0 %3114 }
0x1b53   :  { %v3134_v36 = vmul.f32 %v9365_v58, %v3115_v55  ;;  %v9446_v58 = vld [vmem:[%s10875_s4] ss:$8 sps:$4 sm:$0xff]  }
0x1b56   :  { %v3119_v13 = vpop.permute.xlu0 %3118 }
0x1b57   :  { %v3117_v12 = vpop.permute.xlu1 %3116  ;;  %v3136_v20 = vmul.f32 %v9369_v56, %v3119_v13  ;;  %v9452_v56 = vld [vmem:[%s10875_s4 + $0x14] ss:$8 sps:$4 sm:$0xff]  }
0x1b58   :  { %v3135_v5 = vmul.f32 %v9372_v17, %v3117_v12  ;;  %v9458_v17 = vld [vmem:[%s10875_s4 + $0x10] ss:$8 sps:$4 sm:$0xff]  }
0x1b5a   :  { %v3140_v38 = vpack.c.bf16 %v3135_v5, %v3134_v36 }
0x1b5b   :  { %v3121_v47 = vpop.permute.xlu1 %3120 }
0x1b5c   :  { %v3137_v43 = vmul.f32 %v9377_v60, %v3121_v47  ;;  %3150 = vrot.lane.b32.xlu0 %v3140_v38, %s7888_s23  ;;  %v9464_v60 = vld [vmem:[%s10875_s4 + $0x4] ss:$8 sps:$4 sm:$0xff]  }
0x1b5e   :  { %v3141_v25 = vpack.c.bf16 %v3137_v43, %v3136_v20 }
0x1b60   :  { %3152 = vrot.lane.b32.xlu1 %v3141_v25, %s7888_s23 }
0x1bbf   :  { %v3147_v11 = vpop.permute.xlu0 %3146 }
0x1bc0   :  { %6339 = vmatmul.mubr.msk.bf16.vlgmr.msra.gmra.mrb[40].mxu0 %vm75_vm0, %v3147_v11 }
0x1bc1   :  { %3208 = vmatprep.mubr.bf16.mxu0 %v7886_v3  ;;  %3744 = vmatpush1.bf16.msra.mxu0 %v9446_v58 }
0x1bc2   :  { %3745 = vmatprep.subr.bf16.mxu0 %v9452_v56 }
0x1bc3   :  { %v3149_v4 = vpop.permute.xlu1 %3148 }
0x1bc5   :  { %3746 = vmatpush1.bf16.msra.mxu0 %v9458_v17 }
0x1bc6   :  { %4320 = vmatprep.subr.bf16.mxu0 %v9464_v60 }
0x1bc8   :  { %6340 = vmatmul.mubr.msk.bf16.gmra.mrb[44].mxu0 %vm75_vm0, %v3149_v4 }
0x1bc9   :  { %3218 = vmatprep.mubr.bf16.mxu0 %v7886_v3 }
0x1bce   :  { %v3151_v26 = vpop.permute.xlu0 %3150 }
0x1bd0   :  { %6341 = vmatmul.mubr.msk.bf16.gmra.mrb[48].mxu0 %vm75_vm0, %v3151_v26 }
0x1bd1   :  { %3228 = vmatprep.mubr.bf16.mxu0 %v7886_v3 }
0x1bd2   :  { %v3153_v50 = vpop.permute.xlu1 %3152 }
0x1bd8   :  { %6342 = vmatmul.mubr.msk.bf16.gmra.mrb[52].mxu0 %vm75_vm0, %v3153_v50 }
0x1bd9   :  { %3775 = vmatprep.mubr.bf16.mxu0 %v7886_v3 }
0x1c93   :  { %v9473_v46 = vpop.f32.mrb[40].mxu0 }
0x1c94   :  { %v3202_v2 = vpop.f32.mrb[41].mxu0 }
0x1c95   :  { %v3239_v40 = vadd.f32 %v9075_v54, %v3202_v2  ;;  %v9476_v63 = vpop.f32.mrb[42].mxu0 }
0x1c96   :  { %v3206_v22 = vpop.f32.mrb[43].mxu0 }
0x1c97   :  { %6343 = vst [vmem:[%s10879_s8 + $0x80] sm:$0xff] %v3239_v40  ;;  %v3240_v41 = vadd.f32 %v9075_v54, %v3206_v22  ;;  %3256 = vmax.xlane.f32.xlu0 %v3239_v40 }
0x1c99   :  { %6344 = vst [vmem:[%s10879_s8 + $0x88] sm:$0xff] %v3240_v41  ;;  %3258 = vmax.xlane.f32.xlu1 %v3240_v41 }
0x1c9b   :  { %v9485_v9 = vpop.f32.mrb[44].mxu0 }
0x1c9c   :  { %v3212_v16 = vpop.f32.mrb[45].mxu0 }
0x1c9d   :  { %v3241_v51 = vadd.f32 %v9075_v54, %v3212_v16  ;;  %v9488_v62 = vpop.f32.mrb[46].mxu0 }
0x1c9e   :  { %v3216_v21 = vpop.f32.mrb[47].mxu0 }
0x1c9f   :  { %6345 = vst [vmem:[%s10879_s8 + $0x90] sm:$0xff] %v3241_v51  ;;  %v3242_v18 = vadd.f32 %v9075_v54, %v3216_v21  ;;  %3260 = vmax.xlane.f32.xlu0 %v3241_v51 }
0x1ca1   :  { %6346 = vst [vmem:[%s10879_s8 + $0x98] sm:$0xff] %v3242_v18 }
0x1ca3   :  { %3262 = vmax.xlane.f32.xlu0 %v3242_v18  ;;  %v9497_v27 = vpop.f32.mrb[48].mxu0 }
0x1ca4   :  { %v3222_v44 = vpop.f32.mrb[49].mxu0 }
0x1ca5   :  { %v3243_v48 = vadd.f32 %v9075_v54, %v3222_v44  ;;  %v9500_v53 = vpop.f32.mrb[50].mxu0 }
0x1ca6   :  { %v3226_v32 = vpop.f32.mrb[51].mxu0 }
0x1ca7   :  { %6347 = vst [vmem:[%s10879_s8 + $0xa0] sm:$0xff] %v3243_v48  ;;  %v3244_v23 = vadd.f32 %v9075_v54, %v3226_v32  ;;  %3264 = vmax.xlane.f32.xlu1 %v3243_v48 }
0x1ca9   :  { %6348 = vst [vmem:[%s10879_s8 + $0xa8] sm:$0xff] %v3244_v23  ;;  %3266 = vmax.xlane.f32.xlu0 %v3244_v23 }
0x1cab   :  { %v9509_v33 = vpop.f32.mrb[52].mxu0 }
0x1cac   :  { %v3232_v59 = vpop.f32.mrb[53].mxu0 }
0x1cad   :  { %v3245_v42 = vadd.f32 %v9075_v54, %v3232_v59  ;;  %v9512_v39 = vpop.f32.mrb[54].mxu0 }
0x1cae   :  { %v3236_v8 = vpop.f32.mrb[55].mxu0 }
0x1caf   :  { %6349 = vst [vmem:[%s10879_s8 + $0xb0] sm:$0xff] %v3245_v42  ;;  %v3246_v34 = vadd.f32 %v9075_v54, %v3236_v8  ;;  %3268 = vmax.xlane.f32.xlu1 %v3245_v42 }
0x1cb1   :  { %6350 = vst [vmem:[%s10879_s8 + $0xb8] sm:$0xff] %v3246_v34  ;;  %3270 = vmax.xlane.f32.xlu0 %v3246_v34 }
0x1d24   :  { %v3257_v24 = vpop.xlane.xlu0 %3256 }
0x1d25   :  { %vm3272_vm15 = vcmp.eq.f32.partialorder %v3239_v40, %v3257_v24 }
0x1d26   :  { %v3280_v52 = vsel %vm3272_vm15, %v9125_v1, 2147483647  ;;  %v3259_v10 = vpop.xlane.xlu1 %3258 }
0x1d27   :  { %v3289_v19 = vshra.s32 %v3280_v52, 16  ;;  %vm3273_vm1 = vcmp.eq.f32.partialorder %v3240_v41, %v3259_v10  ;;  %v3288_v44 = vand.u32 65535, %v3280_v52 }
0x1d28   :  { %v3281_v29 = vsel %vm3273_vm1, %v9125_v1, 2147483647 }
0x1d29   :  { %v3303_v61 = vshra.s32 %v3281_v29, 16  ;;  %v3291_v45 = vcvt.s32.f32 %v3289_v19 }
0x1d2b   :  { %3292 = vmin.xlane.f32.xlu1 %v3291_v45  ;;  %v3305_v14 = vcvt.s32.f32 %v3303_v61 }
0x1d2c   :  { %v3261_v54 = vpop.xlane.xlu0 %3260 }
0x1d2d   :  { %vm3274_vm2 = vcmp.eq.f32.partialorder %v3241_v51, %v3261_v54  ;;  %3306 = vmin.xlane.f32.xlu0 %v3305_v14 }
0x1d2e   :  { %v3282_v30 = vsel %vm3274_vm2, %v9125_v1, 2147483647 }
0x1d2f   :  { %v3317_v55 = vshra.s32 %v3282_v30, 16  ;;  %v3316_v24 = vand.u32 65535, %v3282_v30 }
0x1d30   :  { %v3263_v12 = vpop.xlane.xlu0 %3262 }
0x1d31   :  { %vm3275_vm3 = vcmp.eq.f32.partialorder %v3242_v18, %v3263_v12  ;;  %v3319_v36 = vcvt.s32.f32 %v3317_v55  ;;  %v3318_v61 = vcvt.s32.f32 %v3316_v24 }
0x1d32   :  { %v3283_v5 = vsel %vm3275_vm3, %v9125_v1, 2147483647 }
0x1d33   :  { %v3331_v13 = vshra.s32 %v3283_v5, 16  ;;  %3320 = vmin.xlane.f32.xlu1 %v3319_v36 }
0x1d34   :  { %v3265_v47 = vpop.xlane.xlu1 %3264 }
0x1d35   :  { %v3333_v38 = vcvt.s32.f32 %v3331_v13  ;;  %vm3276_vm4 = vcmp.eq.f32.partialorder %v3243_v48, %v3265_v47  ;;  %v3302_v48 = vand.u32 65535, %v3281_v29 }
0x1d36   :  { %v3284_v20 = vsel %vm3276_vm4, %v9125_v1, 2147483647  ;;  %v3267_v43 = vpop.xlane.xlu0 %3266 }
0x1d37   :  { %3334 = vmin.xlane.f32.xlu0 %v3333_v38  ;;  %v3345_v25 = vshra.s32 %v3284_v20, 16  ;;  %vm3277_vm5 = vcmp.eq.f32.partialorder %v3244_v23, %v3267_v43  ;;  %v3290_v23 = vcvt.s32.f32 %v3288_v44  ;;  %v3304_v8 = vcvt.s32.f32 %v3302_v48 }
0x1d38   :  { %v3285_v11 = vsel %vm3277_vm5, %v9125_v1, 2147483647 }
0x1d39   :  { %v3359_v4 = vshra.s32 %v3285_v11, 16  ;;  %v3347_v26 = vcvt.s32.f32 %v3345_v25  ;;  %v3358_v12 = vand.u32 65535, %v3285_v11 }
0x1d3b   :  { %3348 = vmin.xlane.f32.xlu1 %v3347_v26  ;;  %v3361_v50 = vcvt.s32.f32 %v3359_v4  ;;  %v3360_v43 = vcvt.s32.f32 %v3358_v12 }
0x1d3c   :  { %v3269_v2 = vpop.xlane.xlu1 %3268 }
0x1d3d   :  { %vm3278_vm6 = vcmp.eq.f32.partialorder %v3245_v42, %v3269_v2  ;;  %3362 = vmin.xlane.f32.xlu0 %v3361_v50 }
0x1d3e   :  { %v3286_v40 = vsel %vm3278_vm6, %v9125_v1, 2147483647  ;;  %v3271_v22 = vpop.xlane.xlu0 %3270 }
0x1d3f   :  { %v3373_v41 = vshra.s32 %v3286_v40, 16  ;;  %vm3279_vm7 = vcmp.eq.f32.partialorder %v3246_v34, %v3271_v22  ;;  %v3330_v34 = vand.u32 65535, %v3283_v5  ;;  %v3372_v5 = vand.u32 65535, %v3286_v40 }
0x1d40   :  { %v3287_v16 = vsel %vm3279_vm7, %v9125_v1, 2147483647 }
0x1d41   :  { %v3387_v51 = vshra.s32 %v3287_v16, 16  ;;  %v3375_v21 = vcvt.s32.f32 %v3373_v41  ;;  %v3332_v52 = vcvt.s32.f32 %v3330_v34  ;;  %v3374_v2 = vcvt.s32.f32 %v3372_v5  ;;  %v9557_v5 = vld [vmem:[%s10876_s5 + $0x10] sm:$0xff]  }
0x1d43   :  { %3376 = vmin.xlane.f32.xlu1 %v3375_v21  ;;  %v3389_v18 = vcvt.s32.f32 %v3387_v51 }
0x1d45   :  { %3390 = vmin.xlane.f32.xlu0 %v3389_v18 }
0x1db8   :  { %v3293_v32 = vpop.xlane.xlu1 %3292 }
0x1db9   :  { %vm3294_vm8 = vcmp.eq.f32.partialorder %v3291_v45, %v3293_v32  ;;  %v3344_v45 = vand.u32 65535, %v3284_v20  ;;  %v3299_v22 = vcvt.f32.s32 %v3293_v32 }
0x1dba   :  { %v3307_v59 = vpop.xlane.xlu0 %3306  ;;  %v3295_v42 = vsel %vm3294_vm8, %v3290_v23, inf }
0x1dbb   :  { %3296 = vmin.xlane.f32.xlu1 %v3295_v42  ;;  %vm3308_vm9 = vcmp.eq.f32.partialorder %v3305_v14, %v3307_v59  ;;  %v3346_v47 = vcvt.s32.f32 %v3344_v45  ;;  %v3300_v41 = vshll.u32 %v3299_v22, 16  ;;  %v9550_v45 = vld [vmem:[%s10876_s5 + $0x8] sm:$0xff]  }
0x1dbc   :  { %v3309_v10 = vsel %vm3308_vm9, %v3304_v8, inf }
0x1dbd   :  { %3310 = vmin.xlane.f32.xlu0 %v3309_v10 }
0x1dc0   :  { %v3321_v19 = vpop.xlane.xlu1 %3320 }
0x1dc1   :  { %vm3322_vm10 = vcmp.eq.f32.partialorder %v3319_v36, %v3321_v19  ;;  %v3386_v36 = vand.u32 65535, %v3287_v16 }
0x1dc2   :  { %v3323_v54 = vsel %vm3322_vm10, %v3318_v61, inf }
0x1dc3   :  { %3324 = vmin.xlane.f32.xlu1 %v3323_v54  ;;  %v3388_v11 = vcvt.s32.f32 %v3386_v36 }
0x1dc4   :  { %v3335_v55 = vpop.xlane.xlu0 %3334 }
0x1dc5   :  { %vm3336_vm11 = vcmp.eq.f32.partialorder %v3333_v38, %v3335_v55 }
0x1dc6   :  { %v3337_v29 = vsel %vm3336_vm11, %v3332_v52, inf }
0x1dc7   :  { %3338 = vmin.xlane.f32.xlu0 %v3337_v29 }
0x1dc8   :  { %v3349_v13 = vpop.xlane.xlu1 %3348 }
0x1dc9   :  { %vm3350_vm12 = vcmp.eq.f32.partialorder %v3347_v26, %v3349_v13 }
0x1dca   :  { %v3363_v14 = vpop.xlane.xlu0 %3362  ;;  %v3351_v30 = vsel %vm3350_vm12, %v3346_v47, inf }
0x1dcb   :  { %3352 = vmin.xlane.f32.xlu1 %v3351_v30  ;;  %vm3364_vm13 = vcmp.eq.f32.partialorder %v3361_v50, %v3363_v14  ;;  %v3313_v50 = vcvt.f32.s32 %v3307_v59  ;;  %v3369_v52 = vcvt.f32.s32 %v3363_v14 }
0x1dcc   :  { %v3365_v25 = vsel %vm3364_vm13, %v3360_v43, inf }
0x1dcd   :  { %3366 = vmin.xlane.f32.xlu0 %v3365_v25  ;;  %v3314_v44 = vshll.u32 %v3313_v50, 16  ;;  %v3370_v30 = vshll.u32 %v3369_v52, 16  ;;  %v6369_v52 = vld [vmem:[%s10873_s2 + $0x88] sm:$0xff] }
0x1dd0   :  { %v9529_v4 = vpop.xlane.xlu1 %3376 }
0x1dd1   :  { %vm3378_vm14 = vcmp.eq.f32.partialorder %v3375_v21, %v9529_v4  ;;  %v3327_v21 = vcvt.f32.s32 %v3321_v19  ;;  %v3355_v19 = vcvt.f32.s32 %v3349_v13  ;;  %v3383_v25 = vcvt.f32.s32 %v9529_v4 }
0x1dd2   :  { %v9532_v38 = vpop.xlane.xlu0 %3390  ;;  %v3379_v20 = vsel %vm3378_vm14, %v3374_v2, inf }
0x1dd3   :  { %3380 = vmin.xlane.f32.xlu1 %v3379_v20  ;;  %vm3392_vm15 = vcmp.eq.f32.partialorder %v3389_v18, %v9532_v38  ;;  %v3341_v18 = vcvt.f32.s32 %v3335_v55  ;;  %v3328_v32 = vshll.u32 %v3327_v21, 16  ;;  %v9544_v55 = vld [vmem:[%s10876_s5] sm:$0xff]   ;;  %v3356_v12 = vshll.u32 %v3355_v19, 16  ;;  %v6370_v21 = vld [vmem:[%s10873_s2 + $0x90] sm:$0xff] }
0x1dd4   :  { %v3393_v26 = vsel %vm3392_vm15, %v3388_v11, inf  ;;  %v3397_v2 = vcvt.f32.s32 %v9532_v38  ;;  %v9568_v11 = vld [vmem:[%s10876_s5 + $0x18] sm:$0xff]  }
0x1dd5   :  { %3394 = vmin.xlane.f32.xlu0 %v3393_v26  ;;  %v3342_v10 = vshll.u32 %v3341_v18, 16  ;;  %v3384_v26 = vshll.u32 %v3383_v25, 16 }
0x1dd6   :  { %v3398_v22 = vshll.u32 %v3397_v2, 16 }
0x1e48   :  { %v3297_v40 = vpop.xlane.xlu1 %3296 }
0x1e49   :  { %v3298_v51 = vcvt.f32.s32 %v3297_v40 }
0x1e4a   :  { %v3311_v16 = vpop.xlane.xlu0 %3310 }
0x1e4b   :  { %v3301_v48 = vadd.s32 %v3300_v41, %v3298_v51  ;;  %v3312_v23 = vcvt.f32.s32 %v3311_v16  ;;  %v9576_v41 = vld [vmem:[%s10876_s5 + $0x20] sm:$0xff]   ;;  %v9585_v16 = vld [vmem:[%s10876_s5 + $0x28] sm:$0xff]  }
0x1e4d   :  { %v3315_v42 = vadd.s32 %v3314_v44, %v3312_v23  ;;  %vm3400_vm1 = vcmp.eq.s32.totalorder %v9125_v1, %v3301_v48  ;;  %v9593_v44 = vld [vmem:[%s10876_s5 + $0x30] sm:$0xff]   ;;  %v9600_v48 = vld [vmem:[%s10876_s5 + $0x38] sm:$0xff]   ;;  %v3505_v23 = vstv %s3504_s17 }
0x1e4e   :  { %vm9608_vm13 = vcmp.eq.s32.totalorder %v3505_v23, 1 }
0x1e4f   :  { %vm3401_vm2 = vcmp.eq.s32.totalorder %v9125_v1, %v3315_v42 }
0x1e50   :  { %v3325_v8 = vpop.xlane.xlu1 %3324  ;;  %vm6359_vm3 = vmpackc.low %vm3401_vm2, %vm3400_vm1 }
0x1e51   :  { %v3326_v24 = vcvt.f32.s32 %v3325_v8  ;;  %6814 = vmatprep.mubr.msk.bf16.mxu1 %vm6359_vm3, %v7889_v57 }
0x1e53   :  { %v3329_v34 = vadd.s32 %v3328_v32, %v3326_v24  ;;  %v6368_v32 = vld [vmem:[%s10873_s2 + $0x80] sm:$0xff] }
0x1e54   :  { %v3339_v59 = vpop.xlane.xlu0 %3338 }
0x1e55   :  { %v3340_v61 = vcvt.f32.s32 %v3339_v59  ;;  %vm3402_vm4 = vcmp.eq.s32.totalorder %v9125_v1, %v3329_v34  ;;  %v6371_v34 = vld [vmem:[%s10873_s2 + $0x98] sm:$0xff] }
0x1e57   :  { %v3343_v54 = vadd.s32 %v3342_v10, %v3340_v61 }
0x1e58   :  { %v3353_v29 = vpop.xlane.xlu1 %3352 }
0x1e59   :  { %vm3403_vm5 = vcmp.eq.s32.totalorder %v9125_v1, %v3343_v54  ;;  %v3354_v13 = vcvt.f32.s32 %v3353_v29 }
0x1e5a   :  { %vm6361_vm6 = vmpackc.low %vm3403_vm5, %vm3402_vm4  ;;  %v3367_v47 = vpop.xlane.xlu0 %3366 }
0x1e5b   :  { %6815 = vmatmul.mubr.msk.bf16.vlgmr.msra.gmra.mrb[56].mxu1 %vm6361_vm6, %v7889_v57  ;;  %v3357_v14 = vadd.s32 %v3356_v12, %v3354_v13  ;;  %v3368_v43 = vcvt.f32.s32 %v3367_v47 }
0x1e5c   :  { %6823 = vmatpush3.bf16.msra.mxu1 %v9544_v55 }
0x1e5d   :  { %6824 = vmatprep.subr.bf16.mxu1 %v9550_v45  ;;  %v3371_v36 = vadd.s32 %v3370_v30, %v3368_v43  ;;  %vm3404_vm7 = vcmp.eq.s32.totalorder %v9125_v1, %v3357_v14 }
0x1e5f   :  { %vm3405_vm8 = vcmp.eq.s32.totalorder %v9125_v1, %v3371_v36 }
0x1e60   :  { %6825 = vmatpush3.bf16.msra.mxu1 %v9550_v45  ;;  %v3381_v20 = vpop.xlane.xlu1 %3380  ;;  %vm6363_vm9 = vmpackc.low %vm3405_vm8, %vm3404_vm7 }
0x1e61   :  { %6826 = vmatprep.subr.bf16.mxu1 %v9557_v5  ;;  %v3382_v4 = vcvt.f32.s32 %v3381_v20  ;;  %6818 = vmatprep.mubr.msk.bf16.mxu1 %vm6363_vm9, %v7889_v57  ;;  %v6372_v20 = vld [vmem:[%s10873_s2 + $0xa0] sm:$0xff] }
0x1e62   :  { %v3395_v38 = vpop.xlane.xlu0 %3394 }
0x1e63   :  { %v3385_v50 = vadd.s32 %v3384_v26, %v3382_v4  ;;  %v3396_v40 = vcvt.f32.s32 %v3395_v38  ;;  %v6375_v38 = vld [vmem:[%s10873_s2 + $0xb8] sm:$0xff] }
0x1e64   :  { %6827 = vmatpush3.bf16.msra.mxu1 %v9557_v5 }
0x1e65   :  { %6828 = vmatprep.subr.bf16.mxu1 %v9568_v11  ;;  %v3399_v51 = vadd.s32 %v3398_v22, %v3396_v40  ;;  %vm3406_vm10 = vcmp.eq.s32.totalorder %v9125_v1, %v3385_v50 }
0x1e67   :  { %vm3407_vm11 = vcmp.eq.s32.totalorder %v9125_v1, %v3399_v51 }
0x1e68   :  { %6829 = vmatpush3.bf16.msra.mxu1 %v9568_v11  ;;  %vm6365_vm12 = vmpackc.low %vm3407_vm11, %vm3406_vm10 }
0x1e69   :  { %6830 = vmatprep.subr.bf16.mxu1 %v9576_v41  ;;  %6819 = vmatmul.mubr.msk.bf16.gmra.mrb[60].mxu1 %vm6365_vm12, %v7889_v57 }
0x1e6c   :  { %6831 = vmatpush3.bf16.msra.mxu1 %v9576_v41 }
0x1e6d   :  { %6832 = vmatprep.subr.bf16.mxu1 %v9585_v16 }
0x1e70   :  { %6833 = vmatpush3.bf16.msra.mxu1 %v9585_v16 }
0x1e71   :  { %6834 = vmatprep.subr.bf16.mxu1 %v9593_v44 }
0x1e74   :  { %6835 = vmatpush3.bf16.msra.mxu1 %v9593_v44 }
0x1e75   :  { %6836 = vmatprep.subr.bf16.mxu1 %v9600_v48 }
0x1e78   :  { %6837 = vmatpush3.bf16.msra.mxu1 %v9600_v48 }
0x1e79   :  { %6846 = vmatprep.subr.bf16.mxu1 %v9544_v55 }
0x1f2e   :  { %v6816_v42 = vpop.f32.mrb[56].mxu1 }
0x1f2f   :  { %v3471_v18 = vadd.f32 %v6816_v42, %v9279_v28  ;;  %v3462_v24 = vpop.f32.mrb[57].mxu1 }
0x1f30   :  { %v3463_v59 = vadd.f32 %v9279_v28, %v3462_v24  ;;  %v6817_v10 = vpop.f32.mrb[58].mxu1 }
0x1f31   :  { %v3509_v61 = vsel %vm9608_vm13, %v6370_v21, %v3471_v18  ;;  %v3474_v54 = vadd.f32 %v6817_v10, %v9279_v28  ;;  %v3465_v19 = vpop.f32.mrb[59].mxu1  ;;  %v6373_v21 = vld [vmem:[%s10873_s2 + $0xa8] sm:$0xff] }
0x1f32   :  { %v3517_v29 = vadd.f32 %v3509_v61, %v9485_v9  ;;  %v3507_v12 = vsel %vm9608_vm13, %v6368_v32, %v3463_v59  ;;  %v3466_v13 = vadd.f32 %v9279_v28, %v3465_v19 }
0x1f33   :  { %v3515_v47 = vadd.f32 %v3507_v12, %v9473_v46  ;;  %v3510_v30 = vsel %vm9608_vm13, %v6371_v34, %v3474_v54  ;;  %v6374_v46 = vld [vmem:[%s10873_s2 + $0xb0] sm:$0xff] }
0x1f34   :  { %v3518_v14 = vadd.f32 %v3510_v30, %v9488_v62  ;;  %v3508_v43 = vsel %vm9608_vm13, %v6369_v52, %v3466_v13  ;;  %v6378_v54 = vmul.f32 -1.442695, %v3517_v29 }
0x1f35   :  { %7516 = vtanh.f32 %v3515_v47  ;;  %v3516_v25 = vadd.f32 %v3508_v43, %v9476_v63  ;;  %v6376_v8 = vmul.f32 -1.442695, %v3515_v47 }
0x1f36   :  { %7518 = vtanh.f32 %v3517_v29  ;;  %v6379_v19 = vmul.f32 -1.442695, %v3518_v14 }
0x1f37   :  { %7520 = vtanh.f32 %v3516_v25 }
0x1f38   :  { %7522 = vtanh.f32 %v3518_v14 }
0x1f3c   :  { %v6820_v36 = vpop.f32.mrb[60].mxu1 }
0x1f3d   :  { %v3487_v2 = vadd.f32 %v6820_v36, %v9279_v28  ;;  %v3478_v62 = vpop.f32.mrb[61].mxu1 }
0x1f3e   :  { %v3479_v63 = vadd.f32 %v9279_v28, %v3478_v62  ;;  %v6821_v4 = vpop.f32.mrb[62].mxu1 }
0x1f3f   :  { %v7517_v9 = vpop.eup %7516  ;;  %v3513_v22 = vsel %vm9608_vm13, %v6374_v46, %v3487_v2  ;;  %v3490_v50 = vadd.f32 %v6821_v4, %v9279_v28  ;;  %v3481_v40 = vpop.f32.mrb[63].mxu1 }
0x1f40   :  { %3595 = vrot.lane.b32.xlu1 %v7517_v9, %s7887_s20  ;;  %v7519_v26 = vpop.eup %7518  ;;  %v3521_v23 = vadd.f32 %v3513_v22, %v9509_v33  ;;  %v3511_v42 = vsel %vm9608_vm13, %v6372_v20, %v3479_v63  ;;  %v3482_v32 = vadd.f32 %v9279_v28, %v3481_v40 }
0x1f41   :  { %v7521_v51 = vpop.eup %7520  ;;  %v3519_v18 = vadd.f32 %v3511_v42, %v9497_v27  ;;  %v3514_v24 = vsel %vm9608_vm13, %v6375_v38, %v3490_v50 }
0x1f42   :  { %3597 = vrot.lane.b32.xlu0 %v7521_v51, %s7887_s20  ;;  %v7523_v59 = vpop.eup %7522  ;;  %v3522_v10 = vadd.f32 %v3514_v24, %v9512_v39  ;;  %v3512_v33 = vsel %vm9608_vm13, %v6373_v21, %v3482_v32  ;;  %v6382_v62 = vmul.f32 -1.442695, %v3521_v23 }
0x1f43   :  { %v3520_v34 = vadd.f32 %v3512_v33, %v9500_v53  ;;  %7524 = vtanh.f32 %v3519_v18  ;;  %v6377_v53 = vmul.f32 -1.442695, %v3516_v25  ;;  %v6380_v36 = vmul.f32 -1.442695, %v3519_v18 }
0x1f44   :  { %3599 = vrot.lane.b32.xlu1 %v7519_v26, %s7887_s20  ;;  %7526 = vtanh.f32 %v3521_v23  ;;  %v6383_v47 = vmul.f32 -1.442695, %v3522_v10 }
0x1f45   :  { %7528 = vtanh.f32 %v3520_v34  ;;  %v6381_v29 = vmul.f32 -1.442695, %v3520_v34 }
0x1f46   :  { %7530 = vtanh.f32 %v3522_v10 }
0x1f47   :  { %7532 = vpow2.f32 %v6376_v8 }
0x1f48   :  { %3601 = vrot.lane.b32.xlu1 %v7523_v59, %s7887_s20  ;;  %7534 = vpow2.f32 %v6378_v54 }
0x1f49   :  { %7536 = vpow2.f32 %v6377_v53 }
0x1f4a   :  { %7538 = vpow2.f32 %v6379_v19 }
0x1f4d   :  { %v7525_v27 = vpop.eup %7524 }
0x1f4e   :  { %3603 = vrot.lane.b32.xlu0 %v7525_v27, %s7887_s20  ;;  %v7527_v28 = vpop.eup %7526 }
0x1f4f   :  { %v7529_v61 = vpop.eup %7528 }
0x1f50   :  { %3605 = vrot.lane.b32.xlu1 %v7529_v61, %s7887_s20  ;;  %v7531_v39 = vpop.eup %7530 }
0x1f51   :  { %v7533_v52 = vpop.eup %7532 }
0x1f52   :  { %3607 = vrot.lane.b32.xlu0 %v7527_v28, %s7887_s20  ;;  %v3547_v12 = vadd.f32 1.0, %v7533_v52  ;;  %v7535_v13 = vpop.eup %7534 }
0x1f53   :  { %v7537_v30 = vpop.eup %7536  ;;  %v3549_v9 = vadd.f32 1.0, %v7535_v13 }
0x1f54   :  { %3609 = vrot.lane.b32.xlu1 %v7531_v39, %s7887_s20  ;;  %v7539_v43 = vpop.eup %7538  ;;  %7540 = vrcp.f32 %v3547_v12  ;;  %v3548_v46 = vadd.f32 1.0, %v7537_v30 }
0x1f55   :  { %v3550_v2 = vadd.f32 1.0, %v7539_v43  ;;  %7542 = vrcp.f32 %v3549_v9 }
0x1f56   :  { %7544 = vpow2.f32 %v6380_v36 }
0x1f57   :  { %7546 = vrcp.f32 %v3548_v46 }
0x1f58   :  { %7548 = vrcp.f32 %v3550_v2 }
0x1f59   :  { %7550 = vpow2.f32 %v6382_v62 }
0x1f5a   :  { %7552 = vpow2.f32 %v6381_v29 }
0x1f5b   :  { %7554 = vpow2.f32 %v6383_v47 }
0x1f5e   :  { %v9673_v14 = vpop.eup %7540 }
0x1f5f   :  { %v9677_v26 = vpop.eup %7542  ;;  %v3579_v30 = vmul.f32 %v9673_v14, %v9383_v15 }
0x1f60   :  { %v7545_v4 = vpop.eup %7544  ;;  %v3581_v36 = vmul.f32 %v9677_v26, %v9390_v31 }
0x1f61   :  { %v9680_v22 = vpop.eup %7546  ;;  %v3551_v42 = vadd.f32 1.0, %v7545_v4 }
0x1f62   :  { %v9682_v40 = vpop.eup %7548  ;;  %v3580_v2 = vmul.f32 %v9680_v22, %v9392_v6 }
0x1f63   :  { %v7551_v23 = vpop.eup %7550  ;;  %7556 = vrcp.f32 %v3551_v42  ;;  %v3582_v15 = vmul.f32 %v9682_v40, %v9398_v7 }
0x1f64   :  { %v7553_v18 = vpop.eup %7552  ;;  %v3553_v32 = vadd.f32 1.0, %v7551_v23 }
0x1f65   :  { %v3552_v59 = vadd.f32 1.0, %v7553_v18  ;;  %v7555_v10 = vpop.eup %7554 }
0x1f66   :  { %7558 = vrcp.f32 %v3553_v32  ;;  %v3554_v33 = vadd.f32 1.0, %v7555_v10 }
0x1f67   :  { %7560 = vrcp.f32 %v3552_v59 }
0x1f68   :  { %7562 = vrcp.f32 %v3554_v33 }
0x1f6d   :  { %v9689_v34 = vpop.eup %7556 }
0x1f6e   :  { %v3583_v4 = vmul.f32 %v9689_v34, %v9406_v37 }
0x1f70   :  { %v9692_v61 = vpop.eup %7558 }
0x1f71   :  { %v9695_v39 = vpop.eup %7560  ;;  %v3585_v23 = vmul.f32 %v9692_v61, %v9414_v0 }
0x1f72   :  { %v9701_v52 = vpop.eup %7562 }
0x1f73   :  { %v3586_v37 = vmul.f32 %v9701_v52, %v9422_v35 }
0x1fb2   :  { %v3596_v25 = vpop.permute.xlu1 %3595 }
0x1fb3   :  { %v3619_v20 = vmul.f32 %v9673_v14, %v3596_v25 }
0x1fb4   :  { %v3598_v50 = vpop.permute.xlu0 %3597 }
0x1fb5   :  { %3635 = vrot.lane.b32.xlu0 %v3619_v20, %s7887_s20  ;;  %v3620_v51 = vmul.f32 %v9680_v22, %v3598_v50 }
0x1fb6   :  { %v3600_v63 = vpop.permute.xlu1 %3599 }
0x1fb7   :  { %v3621_v38 = vmul.f32 %v9677_v26, %v3600_v63  ;;  %3637 = vrot.lane.b32.xlu1 %v3620_v51, %s7887_s20  ;;  %v3584_v51 = vmul.f32 %v9695_v39, %v9416_v49 }
0x1fb9   :  { %3639 = vrot.lane.b32.xlu0 %v3621_v38, %s7887_s20 }
0x1fba   :  { %v3602_v21 = vpop.permute.xlu1 %3601 }
0x1fbb   :  { %v3622_v24 = vmul.f32 %v9682_v40, %v3602_v21 }
0x1fbd   :  { %3641 = vrot.lane.b32.xlu1 %v3622_v24, %s7887_s20 }
0x1fc0   :  { %v3604_v27 = vpop.permute.xlu0 %3603 }
0x1fc1   :  { %v3623_v28 = vmul.f32 %v9689_v34, %v3604_v27 }
0x1fc2   :  { %v3606_v8 = vpop.permute.xlu1 %3605 }
0x1fc3   :  { %3643 = vrot.lane.b32.xlu0 %v3623_v28, %s7887_s20  ;;  %v3624_v53 = vmul.f32 %v9695_v39, %v3606_v8 }
0x1fc4   :  { %v3608_v54 = vpop.permute.xlu0 %3607 }
0x1fc5   :  { %v3625_v19 = vmul.f32 %v9692_v61, %v3608_v54  ;;  %3645 = vrot.lane.b32.xlu1 %v3624_v53, %s7887_s20 }
0x1fc6   :  { %v3610_v12 = vpop.permute.xlu1 %3609 }
0x1fc7   :  { %3647 = vrot.lane.b32.xlu0 %v3625_v19, %s7887_s20  ;;  %v3626_v13 = vmul.f32 %v9701_v52, %v3610_v12 }
0x1fc9   :  { %3649 = vrot.lane.b32.xlu1 %v3626_v13, %s7887_s20 }
0x2027   :  { %v3636_v43 = vpop.permute.xlu0 %3635 }
0x2028   :  { %v9707_v9 = vadd.f32 %v3636_v43, %v3579_v30 }
0x2029   :  { %v3638_v29 = vpop.permute.xlu1 %3637 }
0x202a   :  { %7564 = vtanh.f32 %v9707_v9  ;;  %v9716_v47 = vadd.f32 %v3638_v29, %v3580_v2 }
0x202b   :  { %v3640_v46 = vpop.permute.xlu0 %3639 }
0x202c   :  { %v9714_v62 = vadd.f32 %v3640_v46, %v3581_v36 }
0x202e   :  { %7566 = vtanh.f32 %v9714_v62 }
0x202f   :  { %7568 = vtanh.f32 %v9716_v47  ;;  %v3642_v25 = vpop.permute.xlu1 %3641 }
0x2030   :  { %v9722_v20 = vadd.f32 %v3642_v25, %v3582_v15 }
0x2032   :  { %7570 = vtanh.f32 %v9722_v20 }
0x2034   :  { %v7565_v31 = vpop.eup %7564 }
0x2035   :  { %3683 = vrot.lane.b32.xlu0 %v7565_v31, %s7887_s20  ;;  %v3644_v38 = vpop.permute.xlu0 %3643 }
0x2036   :  { %v9730_v7 = vadd.f32 %v3644_v38, %v3583_v4 }
0x2037   :  { %v3646_v42 = vpop.permute.xlu1 %3645 }
0x2038   :  { %v7567_v6 = vpop.eup %7566  ;;  %7572 = vtanh.f32 %v9730_v7  ;;  %v9738_v18 = vadd.f32 %v3646_v42, %v3584_v51 }
0x2039   :  { %3687 = vrot.lane.b32.xlu0 %v7567_v6, %s7887_s20  ;;  %v7569_v63 = vpop.eup %7568  ;;  %v3648_v21 = vpop.permute.xlu0 %3647 }
0x203a   :  { %3685 = vrot.lane.b32.xlu1 %v7569_v63, %s7887_s20  ;;  %v9740_v24 = vadd.f32 %v3648_v21, %v3585_v23  ;;  %7574 = vtanh.f32 %v9738_v18 }
0x203b   :  { %v3650_v32 = vpop.permute.xlu1 %3649 }
0x203c   :  { %v7571_v50 = vpop.eup %7570  ;;  %7576 = vtanh.f32 %v9740_v24  ;;  %v9746_v59 = vadd.f32 %v3650_v32, %v3586_v37 }
0x203e   :  { %3689 = vrot.lane.b32.xlu1 %v7571_v50, %s7887_s20  ;;  %7578 = vtanh.f32 %v9746_v59 }
0x2042   :  { %v7573_v49 = vpop.eup %7572 }
0x2043   :  { %3691 = vrot.lane.b32.xlu0 %v7573_v49, %s7887_s20 }
0x2044   :  { %v7575_v0 = vpop.eup %7574 }
0x2045   :  { %3693 = vrot.lane.b32.xlu1 %v7575_v0, %s7887_s20 }
0x2046   :  { %v7577_v10 = vpop.eup %7576 }
0x2047   :  { %3695 = vrot.lane.b32.xlu0 %v7577_v10, %s7887_s20 }
0x2048   :  { %v7579_v33 = vpop.eup %7578 }
0x2049   :  { %3697 = vrot.lane.b32.xlu1 %v7579_v33, %s7887_s20 }
0x20a7   :  { %v3684_v35 = vpop.permute.xlu0 %3683 }
0x20a8   :  { %v3707_v28 = vmul.f32 %v9673_v14, %v3684_v35 }
0x20ab   :  { %v3688_v54 = vpop.permute.xlu0 %3687 }
0x20ac   :  { %v3686_v27 = vpop.permute.xlu1 %3685  ;;  %v3709_v12 = vmul.f32 %v9677_v26, %v3688_v54 }
0x20ad   :  { %v3708_v8 = vmul.f32 %v9680_v22, %v3686_v27 }
0x20af   :  { %v3715_v53 = vpack.c.bf16 %v3708_v8, %v3707_v28 }
0x20b0   :  { %v3690_v19 = vpop.permute.xlu1 %3689 }
0x20b1   :  { %3723 = vrot.lane.b32.xlu0 %v3715_v53, %s7888_s23  ;;  %v3710_v13 = vmul.f32 %v9682_v40, %v3690_v19 }
0x20b3   :  { %v3716_v30 = vpack.c.bf16 %v3710_v13, %v3709_v12 }
0x20b5   :  { %3725 = vrot.lane.b32.xlu1 %v3716_v30, %s7888_s23  ;;  %v3692_v43 = vpop.permute.xlu0 %3691 }
0x20b6   :  { %v3711_v46 = vmul.f32 %v9689_v34, %v3692_v43 }
0x20b7   :  { %v3694_v36 = vpop.permute.xlu1 %3693 }
0x20b8   :  { %v3712_v14 = vmul.f32 %v9695_v39, %v3694_v36 }
0x20b9   :  { %v3696_v2 = vpop.permute.xlu0 %3695 }
0x20ba   :  { %v3717_v22 = vpack.c.bf16 %v3712_v14, %v3711_v46  ;;  %v3713_v15 = vmul.f32 %v9692_v61, %v3696_v2 }
0x20bb   :  { %v3698_v29 = vpop.permute.xlu1 %3697 }
0x20bc   :  { %v3714_v26 = vmul.f32 %v9701_v52, %v3698_v29  ;;  %3727 = vrot.lane.b32.xlu0 %v3717_v22, %s7888_s23 }
0x20be   :  { %v3718_v25 = vpack.c.bf16 %v3714_v26, %v3713_v15 }
0x20c0   :  { %3729 = vrot.lane.b32.xlu1 %v3718_v25, %s7888_s23 }
0x2123   :  { %v3724_v40 = vpop.permute.xlu0 %3723 }
0x2124   :  { %6384 = vmatmul.mubr.msk.bf16.vlgmr.msra.gmra.mrb[56].mxu0 %vm75_vm0, %v3724_v40 }
0x2125   :  { %3785 = vmatprep.mubr.bf16.mxu0 %v7886_v3  ;;  %4321 = vmatpush1.bf16.msra.mxu0 %v9446_v58 }
0x2126   :  { %4322 = vmatprep.subr.bf16.mxu0 %v9452_v56 }
0x2127   :  { %v3726_v34 = vpop.permute.xlu1 %3725 }
0x2129   :  { %4323 = vmatpush1.bf16.msra.mxu0 %v9458_v17  ;;  %v9782_v17 = vld [vmem:[%s10878_s7] ss:$0 sm:$0xff] }
0x212a   :  { %4897 = vmatprep.subr.bf16.mxu0 %v9464_v60 }
0x212c   :  { %6385 = vmatmul.mubr.msk.bf16.gmra.mrb[60].mxu0 %vm75_vm0, %v3726_v34 }
0x212d   :  { %3795 = vmatprep.mubr.bf16.mxu0 %v7886_v3 }
0x212e   :  { %v3728_v61 = vpop.permute.xlu0 %3727 }
0x2132   :  { %v3730_v39 = vpop.permute.xlu1 %3729 }
0x2134   :  { %6386 = vmatmul.mubr.msk.bf16.gmra.mrb[64].mxu0 %vm75_vm0, %v3728_v61 }
0x2135   :  { %3805 = vmatprep.mubr.bf16.mxu0 %v7886_v3 }
0x213c   :  { %6387 = vmatmul.mubr.msk.bf16.gmra.mrb[68].mxu0 %vm75_vm0, %v3730_v39 }
0x213d   :  { %4352 = vmatprep.mubr.bf16.mxu0 %v7886_v3 }
0x21f7   :  { %v9777_v58 = vpop.f32.mrb[56].mxu0 }
0x21f8   :  { %v3779_v56 = vpop.f32.mrb[57].mxu0 }
0x21f9   :  { %v3816_v60 = vadd.f32 %v9782_v17, %v3779_v56  ;;  %v9785_v52 = vpop.f32.mrb[58].mxu0 }
0x21fa   :  { %v3783_v31 = vpop.f32.mrb[59].mxu0 }
0x21fb   :  { %6388 = vst [vmem:[%s10879_s8 + $0xc0] sm:$0xff] %v3816_v60  ;;  %v3817_v6 = vadd.f32 %v9782_v17, %v3783_v31  ;;  %3833 = vmax.xlane.f32.xlu0 %v3816_v60 }
0x21fd   :  { %6389 = vst [vmem:[%s10879_s8 + $0xc8] sm:$0xff] %v3817_v6  ;;  %3835 = vmax.xlane.f32.xlu1 %v3817_v6 }
0x21ff   :  { %v9794_v63 = vpop.f32.mrb[60].mxu0 }
0x2200   :  { %v3789_v4 = vpop.f32.mrb[61].mxu0 }
0x2201   :  { %v3818_v38 = vadd.f32 %v9782_v17, %v3789_v4  ;;  %v9797_v50 = vpop.f32.mrb[62].mxu0 }
0x2202   :  { %v3793_v51 = vpop.f32.mrb[63].mxu0 }
0x2203   :  { %6390 = vst [vmem:[%s10879_s8 + $0xd0] sm:$0xff] %v3818_v38  ;;  %v3819_v23 = vadd.f32 %v9782_v17, %v3793_v51  ;;  %3837 = vmax.xlane.f32.xlu0 %v3818_v38 }
0x2205   :  { %6391 = vst [vmem:[%s10879_s8 + $0xd8] sm:$0xff] %v3819_v23 }
0x2207   :  { %3839 = vmax.xlane.f32.xlu0 %v3819_v23  ;;  %v9806_v42 = vpop.f32.mrb[64].mxu0 }
0x2208   :  { %v3799_v21 = vpop.f32.mrb[65].mxu0 }
0x2209   :  { %v3820_v37 = vadd.f32 %v9782_v17, %v3799_v21  ;;  %v9809_v32 = vpop.f32.mrb[66].mxu0 }
0x220a   :  { %v3803_v49 = vpop.f32.mrb[67].mxu0 }
0x220b   :  { %6392 = vst [vmem:[%s10879_s8 + $0xe0] sm:$0xff] %v3820_v37  ;;  %v3821_v0 = vadd.f32 %v9782_v17, %v3803_v49  ;;  %3841 = vmax.xlane.f32.xlu1 %v3820_v37 }
0x220d   :  { %6393 = vst [vmem:[%s10879_s8 + $0xe8] sm:$0xff] %v3821_v0  ;;  %3843 = vmax.xlane.f32.xlu0 %v3821_v0 }
0x220f   :  { %v9818_v10 = vpop.f32.mrb[68].mxu0 }
0x2210   :  { %v3809_v33 = vpop.f32.mrb[69].mxu0 }
0x2211   :  { %v3822_v35 = vadd.f32 %v9782_v17, %v3809_v33  ;;  %v9821_v27 = vpop.f32.mrb[70].mxu0 }
0x2212   :  { %v3813_v28 = vpop.f32.mrb[71].mxu0 }
0x2213   :  { %6394 = vst [vmem:[%s10879_s8 + $0xf0] sm:$0xff] %v3822_v35  ;;  %v3823_v8 = vadd.f32 %v9782_v17, %v3813_v28  ;;  %3845 = vmax.xlane.f32.xlu1 %v3822_v35 }
0x2215   :  { %6395 = vst [vmem:[%s10879_s8 + $0xf8] sm:$0xff] %v3823_v8  ;;  %3847 = vmax.xlane.f32.xlu0 %v3823_v8 }
0x2288   :  { %v3834_v54 = vpop.xlane.xlu0 %3833 }
0x2289   :  { %vm3849_vm14 = vcmp.eq.f32.partialorder %v3816_v60, %v3834_v54 }
0x228a   :  { %v3857_v53 = vsel %vm3849_vm14, %v9125_v1, 2147483647  ;;  %v3836_v19 = vpop.xlane.xlu1 %3835 }
0x228b   :  { %v3866_v12 = vshra.s32 %v3857_v53, 16  ;;  %vm3850_vm15 = vcmp.eq.f32.partialorder %v3817_v6, %v3836_v19  ;;  %v3865_v33 = vand.u32 65535, %v3857_v53 }
0x228c   :  { %v3858_v13 = vsel %vm3850_vm15, %v9125_v1, 2147483647 }
0x228d   :  { %v3880_v30 = vshra.s32 %v3858_v13, 16  ;;  %v3868_v43 = vcvt.s32.f32 %v3866_v12  ;;  %v3879_v28 = vand.u32 65535, %v3858_v13  ;;  %v3867_v19 = vcvt.s32.f32 %v3865_v33 }
0x228f   :  { %3869 = vmin.xlane.f32.xlu1 %v3868_v43  ;;  %v3882_v36 = vcvt.s32.f32 %v3880_v30  ;;  %v3881_v30 = vcvt.s32.f32 %v3879_v28 }
0x2290   :  { %v3838_v46 = vpop.xlane.xlu0 %3837 }
0x2291   :  { %vm3851_vm1 = vcmp.eq.f32.partialorder %v3818_v38, %v3838_v46  ;;  %3883 = vmin.xlane.f32.xlu0 %v3882_v36 }
0x2292   :  { %v3859_v14 = vsel %vm3851_vm1, %v9125_v1, 2147483647 }
0x2293   :  { %v3894_v2 = vshra.s32 %v3859_v14, 16  ;;  %v3893_v46 = vand.u32 65535, %v3859_v14 }
0x2294   :  { %v3840_v22 = vpop.xlane.xlu0 %3839 }
0x2295   :  { %vm3852_vm2 = vcmp.eq.f32.partialorder %v3819_v23, %v3840_v22  ;;  %v3896_v29 = vcvt.s32.f32 %v3894_v2 }
0x2296   :  { %v3860_v15 = vsel %vm3852_vm2, %v9125_v1, 2147483647 }
0x2297   :  { %v3908_v26 = vshra.s32 %v3860_v15, 16  ;;  %3897 = vmin.xlane.f32.xlu1 %v3896_v29 }
0x2298   :  { %v3842_v40 = vpop.xlane.xlu1 %3841 }
0x2299   :  { %v3910_v25 = vcvt.s32.f32 %v3908_v26  ;;  %vm3853_vm3 = vcmp.eq.f32.partialorder %v3820_v37, %v3842_v40  ;;  %v3895_v26 = vcvt.s32.f32 %v3893_v46 }
0x229a   :  { %v3861_v34 = vsel %vm3853_vm3, %v9125_v1, 2147483647  ;;  %v3844_v61 = vpop.xlane.xlu0 %3843 }
0x229b   :  { %3911 = vmin.xlane.f32.xlu0 %v3910_v25  ;;  %v3922_v39 = vshra.s32 %v3861_v34, 16  ;;  %vm3854_vm4 = vcmp.eq.f32.partialorder %v3821_v0, %v3844_v61 }
0x229c   :  { %v3862_v56 = vsel %vm3854_vm4, %v9125_v1, 2147483647 }
0x229d   :  { %v3936_v60 = vshra.s32 %v3862_v56, 16  ;;  %v3924_v31 = vcvt.s32.f32 %v3922_v39  ;;  %v3935_v39 = vand.u32 65535, %v3862_v56 }
0x229f   :  { %3925 = vmin.xlane.f32.xlu1 %v3924_v31  ;;  %v3938_v6 = vcvt.s32.f32 %v3936_v60 }
0x22a0   :  { %v3846_v4 = vpop.xlane.xlu1 %3845 }
0x22a1   :  { %vm3855_vm5 = vcmp.eq.f32.partialorder %v3822_v35, %v3846_v4  ;;  %3939 = vmin.xlane.f32.xlu0 %v3938_v6 }
0x22a2   :  { %v3863_v38 = vsel %vm3855_vm5, %v9125_v1, 2147483647  ;;  %v3848_v51 = vpop.xlane.xlu0 %3847 }
0x22a3   :  { %v3950_v23 = vshra.s32 %v3863_v38, 16  ;;  %vm3856_vm6 = vcmp.eq.f32.partialorder %v3823_v8, %v3848_v51  ;;  %v3907_v8 = vand.u32 65535, %v3860_v15  ;;  %v3937_v51 = vcvt.s32.f32 %v3935_v39 }
0x22a4   :  { %v3864_v21 = vsel %vm3856_vm6, %v9125_v1, 2147483647  ;;  %v3949_v15 = vand.u32 65535, %v3863_v38 }
0x22a5   :  { %v3964_v37 = vshra.s32 %v3864_v21, 16  ;;  %v3952_v49 = vcvt.s32.f32 %v3950_v23  ;;  %v3909_v53 = vcvt.s32.f32 %v3907_v8 }
0x22a6   :  { %v3951_v33 = vcvt.s32.f32 %v3949_v15 }
0x22a7   :  { %3953 = vmin.xlane.f32.xlu1 %v3952_v49  ;;  %v3966_v0 = vcvt.s32.f32 %v3964_v37 }
0x22a9   :  { %3967 = vmin.xlane.f32.xlu0 %v3966_v0 }
0x231c   :  { %v3870_v54 = vpop.xlane.xlu1 %3869 }
0x231d   :  { %vm3871_vm7 = vcmp.eq.f32.partialorder %v3868_v43, %v3870_v54  ;;  %v3921_v43 = vand.u32 65535, %v3861_v34  ;;  %v3876_v56 = vcvt.f32.s32 %v3870_v54 }
0x231e   :  { %v3884_v12 = vpop.xlane.xlu0 %3883  ;;  %v3872_v35 = vsel %vm3871_vm7, %v3867_v19, inf }
0x231f   :  { %3873 = vmin.xlane.f32.xlu1 %v3872_v35  ;;  %vm3885_vm8 = vcmp.eq.f32.partialorder %v3882_v36, %v3884_v12  ;;  %v3923_v4 = vcvt.s32.f32 %v3921_v43 }
0x2320   :  { %v3886_v2 = vsel %vm3885_vm8, %v3881_v30, inf  ;;  %v3877_v30 = vshll.u32 %v3876_v56, 16 }
0x2321   :  { %3887 = vmin.xlane.f32.xlu0 %v3886_v2 }
0x2324   :  { %v3898_v22 = vpop.xlane.xlu1 %3897 }
0x2325   :  { %vm3899_vm9 = vcmp.eq.f32.partialorder %v3896_v29, %v3898_v22  ;;  %v3963_v29 = vand.u32 65535, %v3864_v21 }
0x2326   :  { %v3900_v40 = vsel %vm3899_vm9, %v3895_v26, inf  ;;  %v3904_v26 = vcvt.f32.s32 %v3898_v22 }
0x2327   :  { %3901 = vmin.xlane.f32.xlu1 %v3900_v40  ;;  %v3965_v19 = vcvt.s32.f32 %v3963_v29 }
0x2328   :  { %v3912_v61 = vpop.xlane.xlu0 %3911  ;;  %v3905_v54 = vshll.u32 %v3904_v26, 16  ;;  %v6414_v26 = vld [vmem:[%s10873_s2 + $0xc8] sm:$0xff] }
0x2329   :  { %vm3913_vm10 = vcmp.eq.f32.partialorder %v3910_v25, %v3912_v61 }
0x232a   :  { %v3914_v13 = vsel %vm3913_vm10, %v3909_v53, inf }
0x232b   :  { %3915 = vmin.xlane.f32.xlu0 %v3914_v13 }
0x232c   :  { %v3926_v60 = vpop.xlane.xlu1 %3925 }
0x232d   :  { %vm3927_vm11 = vcmp.eq.f32.partialorder %v3924_v31, %v3926_v60  ;;  %v3890_v31 = vcvt.f32.s32 %v3884_v12 }
0x232e   :  { %v3940_v36 = vpop.xlane.xlu0 %3939  ;;  %v3928_v14 = vsel %vm3927_vm11, %v3923_v4, inf  ;;  %v3932_v4 = vcvt.f32.s32 %v3926_v60 }
0x232f   :  { %3929 = vmin.xlane.f32.xlu1 %v3928_v14  ;;  %vm3941_vm12 = vcmp.eq.f32.partialorder %v3938_v6, %v3940_v36  ;;  %v3891_v38 = vshll.u32 %v3890_v31, 16  ;;  %v3946_v22 = vcvt.f32.s32 %v3940_v36 }
0x2330   :  { %v3942_v23 = vsel %vm3941_vm12, %v3937_v51, inf }
0x2331   :  { %3943 = vmin.xlane.f32.xlu0 %v3942_v23  ;;  %v3947_v23 = vshll.u32 %v3946_v22, 16  ;;  %v6417_v22 = vld [vmem:[%s10873_s2 + $0xe0] sm:$0xff] }
0x2334   :  { %v3954_v37 = vpop.xlane.xlu1 %3953 }
0x2335   :  { %vm3955_vm13 = vcmp.eq.f32.partialorder %v3952_v49, %v3954_v37  ;;  %v3960_v60 = vcvt.f32.s32 %v3954_v37 }
0x2336   :  { %v3968_v25 = vpop.xlane.xlu0 %3967  ;;  %v3956_v28 = vsel %vm3955_vm13, %v3951_v33, inf }
0x2337   :  { %3957 = vmin.xlane.f32.xlu1 %v3956_v28  ;;  %vm3969_vm14 = vcmp.eq.f32.partialorder %v3966_v0, %v3968_v25  ;;  %v3918_v0 = vcvt.f32.s32 %v3912_v61  ;;  %v3933_v61 = vshll.u32 %v3932_v4, 16  ;;  %v3974_v36 = vcvt.f32.s32 %v3968_v25 }
0x2338   :  { %v3970_v34 = vsel %vm3969_vm14, %v3965_v19, inf }
0x2339   :  { %3971 = vmin.xlane.f32.xlu0 %v3970_v34  ;;  %v3919_v53 = vshll.u32 %v3918_v0, 16  ;;  %v3961_v34 = vshll.u32 %v3960_v60, 16  ;;  %v3975_v37 = vshll.u32 %v3974_v36, 16 }
0x23ac   :  { %v3874_v35 = vpop.xlane.xlu1 %3873 }
0x23ad   :  { %v3875_v46 = vcvt.f32.s32 %v3874_v35 }
0x23ae   :  { %v3888_v6 = vpop.xlane.xlu0 %3887 }
0x23af   :  { %v3878_v2 = vadd.s32 %v3877_v30, %v3875_v46  ;;  %v3889_v8 = vcvt.f32.s32 %v3888_v6  ;;  %v6413_v30 = vld [vmem:[%s10873_s2 + $0xc0] sm:$0xff] }
0x23b1   :  { %v3892_v21 = vadd.s32 %v3891_v38, %v3889_v8  ;;  %vm3977_vm15 = vcmp.eq.s32.totalorder %v9125_v1, %v3878_v2  ;;  %v6416_v38 = vld [vmem:[%s10873_s2 + $0xd8] sm:$0xff] }
0x23b3   :  { %vm3978_vm1 = vcmp.eq.s32.totalorder %v9125_v1, %v3892_v21 }
0x23b4   :  { %v3902_v49 = vpop.xlane.xlu1 %3901  ;;  %vm6404_vm2 = vmpackc.low %vm3978_vm1, %vm3977_vm15 }
0x23b5   :  { %v3903_v40 = vcvt.f32.s32 %v3902_v49  ;;  %6838 = vmatprep.mubr.msk.bf16.mxu1 %vm6404_vm2, %v7889_v57 }
0x23b7   :  { %v3906_v13 = vadd.s32 %v3905_v54, %v3903_v40 }
0x23b8   :  { %v3916_v12 = vpop.xlane.xlu0 %3915 }
0x23b9   :  { %v3917_v43 = vcvt.f32.s32 %v3916_v12  ;;  %vm3979_vm3 = vcmp.eq.s32.totalorder %v9125_v1, %v3906_v13 }
0x23bb   :  { %v3920_v39 = vadd.s32 %v3919_v53, %v3917_v43 }
0x23bc   :  { %v3930_v14 = vpop.xlane.xlu1 %3929 }
0x23bd   :  { %vm3980_vm4 = vcmp.eq.s32.totalorder %v9125_v1, %v3920_v39  ;;  %v3931_v51 = vcvt.f32.s32 %v3930_v14 }
0x23be   :  { %vm6406_vm5 = vmpackc.low %vm3980_vm4, %vm3979_vm3  ;;  %v3944_v15 = vpop.xlane.xlu0 %3943 }
0x23bf   :  { %6839 = vmatmul.mubr.msk.bf16.vlgmr.msra.gmra.mrb[64].mxu1 %vm6406_vm5, %v7889_v57  ;;  %v3934_v29 = vadd.s32 %v3933_v61, %v3931_v51  ;;  %v3945_v33 = vcvt.f32.s32 %v3944_v15  ;;  %v6420_v61 = vld [vmem:[%s10873_s2 + $0xf8] sm:$0xff] }
0x23c0   :  { %6847 = vmatpush3.bf16.msra.mxu1 %v9544_v55 }
0x23c1   :  { %6848 = vmatprep.subr.bf16.mxu1 %v9550_v45  ;;  %v3948_v28 = vadd.s32 %v3947_v23, %v3945_v33  ;;  %vm3981_vm6 = vcmp.eq.s32.totalorder %v9125_v1, %v3934_v29  ;;  %v6418_v33 = vld [vmem:[%s10873_s2 + $0xe8] sm:$0xff] }
0x23c3   :  { %vm3982_vm7 = vcmp.eq.s32.totalorder %v9125_v1, %v3948_v28 }
0x23c4   :  { %6849 = vmatpush3.bf16.msra.mxu1 %v9550_v45  ;;  %v3958_v19 = vpop.xlane.xlu1 %3957  ;;  %vm6408_vm8 = vmpackc.low %vm3982_vm7, %vm3981_vm6 }
0x23c5   :  { %6850 = vmatprep.subr.bf16.mxu1 %v9557_v5  ;;  %v3959_v56 = vcvt.f32.s32 %v3958_v19  ;;  %6842 = vmatprep.mubr.msk.bf16.mxu1 %vm6408_vm8, %v7889_v57 }
0x23c6   :  { %v3972_v45 = vpop.xlane.xlu0 %3971 }
0x23c7   :  { %v3962_v31 = vadd.s32 %v3961_v34, %v3959_v56  ;;  %v3973_v35 = vcvt.f32.s32 %v3972_v45 }
0x23c8   :  { %6851 = vmatpush3.bf16.msra.mxu1 %v9557_v5  ;;  %v4082_v5 = vstv %s4081_s9 }
0x23c9   :  { %6852 = vmatprep.subr.bf16.mxu1 %v9568_v11  ;;  %v3976_v25 = vadd.s32 %v3975_v37, %v3973_v35  ;;  %vm3983_vm9 = vcmp.eq.s32.totalorder %v9125_v1, %v3962_v31  ;;  %vm9869_vm12 = vcmp.eq.s32.totalorder %v4082_v5, 1 }
0x23cb   :  { %vm3984_vm10 = vcmp.eq.s32.totalorder %v9125_v1, %v3976_v25 }
0x23cc   :  { %6853 = vmatpush3.bf16.msra.mxu1 %v9568_v11  ;;  %vm6410_vm11 = vmpackc.low %vm3984_vm10, %vm3983_vm9 }
0x23cd   :  { %6854 = vmatprep.subr.bf16.mxu1 %v9576_v41  ;;  %6843 = vmatmul.mubr.msk.bf16.gmra.mrb[68].mxu1 %vm6410_vm11, %v7889_v57 }
0x23d0   :  { %6855 = vmatpush3.bf16.msra.mxu1 %v9576_v41  ;;  %v6415_v41 = vld [vmem:[%s10873_s2 + $0xd0] sm:$0xff] }
0x23d1   :  { %6856 = vmatprep.subr.bf16.mxu1 %v9585_v16 }
0x23d4   :  { %6857 = vmatpush3.bf16.msra.mxu1 %v9585_v16 }
0x23d5   :  { %6858 = vmatprep.subr.bf16.mxu1 %v9593_v44 }
0x23d8   :  { %6859 = vmatpush3.bf16.msra.mxu1 %v9593_v44  ;;  %v9876_v44 = vld [vmem:[%s10877_s6] ss:$0 sm:$0xff] }
0x23d9   :  { %6860 = vmatprep.subr.bf16.mxu1 %v9600_v48 }
0x23dc   :  { %6861 = vmatpush3.bf16.msra.mxu1 %v9600_v48 }
0x23dd   :  { %6870 = vmatprep.subr.bf16.mxu1 %v9544_v55 }
0x2492   :  { %v6840_v11 = vpop.f32.mrb[64].mxu1 }
0x2493   :  { %v4048_v55 = vadd.f32 %v9876_v44, %v6840_v11  ;;  %v4039_v48 = vpop.f32.mrb[65].mxu1 }
0x2494   :  { %v4040_v46 = vadd.f32 %v9876_v44, %v4039_v48  ;;  %v6841_v6 = vpop.f32.mrb[66].mxu1 }
0x2495   :  { %v4086_v2 = vsel %vm9869_vm12, %v6415_v41, %v4048_v55  ;;  %v4051_v8 = vadd.f32 %v9876_v44, %v6841_v6  ;;  %v4042_v21 = vpop.f32.mrb[67].mxu1 }
0x2496   :  { %v4094_v49 = vadd.f32 %v4086_v2, %v9794_v63  ;;  %v4084_v0 = vsel %vm9869_vm12, %v6413_v30, %v4040_v46  ;;  %v4043_v40 = vadd.f32 %v9876_v44, %v4042_v21 }
0x2497   :  { %v4092_v54 = vadd.f32 %v4084_v0, %v9777_v58  ;;  %v4087_v12 = vsel %vm9869_vm12, %v6416_v38, %v4051_v8  ;;  %v6419_v58 = vld [vmem:[%s10873_s2 + $0xf0] sm:$0xff] }
0x2498   :  { %v4095_v53 = vadd.f32 %v4087_v12, %v9797_v50  ;;  %v4085_v13 = vsel %vm9869_vm12, %v6414_v26, %v4043_v40 }
0x2499   :  { %7580 = vtanh.f32 %v4092_v54  ;;  %v4093_v43 = vadd.f32 %v4085_v13, %v9785_v52  ;;  %v6421_v5 = vmul.f32 -1.442695, %v4092_v54 }
0x249a   :  { %7582 = vtanh.f32 %v4094_v49  ;;  %v6424_v11 = vmul.f32 -1.442695, %v4095_v53 }
0x249b   :  { %7584 = vtanh.f32 %v4093_v43  ;;  %v6422_v41 = vmul.f32 -1.442695, %v4093_v43 }
0x249c   :  { %7586 = vtanh.f32 %v4095_v53 }
0x24a0   :  { %v6844_v39 = vpop.f32.mrb[68].mxu1 }
0x24a1   :  { %v4064_v4 = vadd.f32 %v9876_v44, %v6844_v39  ;;  %v4055_v50 = vpop.f32.mrb[69].mxu1 }
0x24a2   :  { %v4056_v52 = vadd.f32 %v9876_v44, %v4055_v50  ;;  %v6845_v14 = vpop.f32.mrb[70].mxu1 }
0x24a3   :  { %v7581_v63 = vpop.eup %7580  ;;  %v4090_v15 = vsel %vm9869_vm12, %v6419_v58, %v4064_v4  ;;  %v4067_v23 = vadd.f32 %v9876_v44, %v6845_v14  ;;  %v4058_v29 = vpop.f32.mrb[71].mxu1 }
0x24a4   :  { %4172 = vrot.lane.b32.xlu1 %v7581_v63, %s7887_s20  ;;  %v7583_v51 = vpop.eup %7582  ;;  %v4098_v60 = vadd.f32 %v4090_v15, %v9818_v10  ;;  %v4088_v28 = vsel %vm9869_vm12, %v6417_v22, %v4056_v52  ;;  %v4059_v36 = vadd.f32 %v9876_v44, %v4058_v29 }
0x24a5   :  { %v7585_v19 = vpop.eup %7584  ;;  %v4096_v34 = vadd.f32 %v4088_v28, %v9806_v42  ;;  %v4091_v56 = vsel %vm9869_vm12, %v6420_v61, %v4067_v23 }
0x24a6   :  { %v4099_v45 = vadd.f32 %v4091_v56, %v9821_v27  ;;  %v4089_v37 = vsel %vm9869_vm12, %v6418_v33, %v4059_v36  ;;  %4174 = vrot.lane.b32.xlu0 %v7585_v19, %s7887_s20  ;;  %v7587_v10 = vpop.eup %7586  ;;  %v6427_v21 = vmul.f32 -1.442695, %v4098_v60 }
0x24a7   :  { %v4097_v31 = vadd.f32 %v4089_v37, %v9809_v32  ;;  %7588 = vtanh.f32 %v4096_v34  ;;  %v6423_v32 = vmul.f32 -1.442695, %v4094_v49  ;;  %v6425_v38 = vmul.f32 -1.442695, %v4096_v34 }
0x24a8   :  { %4176 = vrot.lane.b32.xlu1 %v7583_v51, %s7887_s20  ;;  %7590 = vtanh.f32 %v4098_v60  ;;  %v6428_v49 = vmul.f32 -1.442695, %v4099_v45 }
0x24a9   :  { %7592 = vtanh.f32 %v4097_v31  ;;  %v6426_v26 = vmul.f32 -1.442695, %v4097_v31 }
0x24aa   :  { %7594 = vtanh.f32 %v4099_v45 }
0x24ab   :  { %7596 = vpow2.f32 %v6421_v5 }
0x24ac   :  { %4178 = vrot.lane.b32.xlu1 %v7587_v10, %s7887_s20  ;;  %7598 = vpow2.f32 %v6423_v32 }
0x24ad   :  { %7600 = vpow2.f32 %v6424_v11 }
0x24ae   :  { %7602 = vpow2.f32 %v6422_v41 }
0x24b1   :  { %v7589_v42 = vpop.eup %7588 }
0x24b2   :  { %4180 = vrot.lane.b32.xlu0 %v7589_v42, %s7887_s20  ;;  %v7591_v35 = vpop.eup %7590 }
0x24b3   :  { %v7593_v25 = vpop.eup %7592 }
0x24b4   :  { %4182 = vrot.lane.b32.xlu1 %v7593_v25, %s7887_s20  ;;  %v7595_v27 = vpop.eup %7594 }
0x24b5   :  { %v7597_v16 = vpop.eup %7596 }
0x24b6   :  { %4184 = vrot.lane.b32.xlu0 %v7591_v35, %s7887_s20  ;;  %v7599_v55 = vpop.eup %7598  ;;  %v4124_v48 = vadd.f32 1.0, %v7597_v16 }
0x24b7   :  { %v7601_v30 = vpop.eup %7600  ;;  %v4126_v6 = vadd.f32 1.0, %v7599_v55 }
0x24b8   :  { %4186 = vrot.lane.b32.xlu1 %v7595_v27, %s7887_s20  ;;  %v7603_v46 = vpop.eup %7602  ;;  %7604 = vrcp.f32 %v4124_v48  ;;  %v4127_v2 = vadd.f32 1.0, %v7601_v30 }
0x24b9   :  { %v4125_v8 = vadd.f32 1.0, %v7603_v46  ;;  %7606 = vrcp.f32 %v4126_v6 }
0x24ba   :  { %7608 = vpow2.f32 %v6425_v38 }
0x24bb   :  { %7610 = vrcp.f32 %v4127_v2 }
0x24bc   :  { %7612 = vrcp.f32 %v4125_v8 }
0x24bd   :  { %7614 = vpow2.f32 %v6427_v21 }
0x24be   :  { %7616 = vpow2.f32 %v6426_v26 }
0x24bf   :  { %7618 = vpow2.f32 %v6428_v49 }
0x24c2   :  { %v9939_v0 = vpop.eup %7604 }
0x24c3   :  { %v9942_v12 = vpop.eup %7606  ;;  %v4156_v35 = vmul.f32 %v9939_v0, %v9707_v9 }
0x24c4   :  { %v7609_v53 = vpop.eup %7608  ;;  %v4158_v5 = vmul.f32 %v9942_v12, %v9714_v62 }
0x24c5   :  { %v9945_v43 = vpop.eup %7610  ;;  %v4128_v50 = vadd.f32 1.0, %v7609_v53 }
0x24c6   :  { %v9948_v39 = vpop.eup %7612  ;;  %v4159_v9 = vmul.f32 %v9945_v43, %v9722_v20 }
0x24c7   :  { %v7615_v4 = vpop.eup %7614  ;;  %7620 = vrcp.f32 %v4128_v50  ;;  %v4157_v11 = vmul.f32 %v9948_v39, %v9716_v47 }
0x24c8   :  { %v7617_v52 = vpop.eup %7616  ;;  %v4130_v51 = vadd.f32 1.0, %v7615_v4 }
0x24c9   :  { %v4129_v15 = vadd.f32 1.0, %v7617_v52  ;;  %v7619_v23 = vpop.eup %7618 }
0x24ca   :  { %7622 = vrcp.f32 %v4130_v51  ;;  %v4131_v29 = vadd.f32 1.0, %v7619_v23 }
0x24cb   :  { %7624 = vrcp.f32 %v4129_v15 }
0x24cc   :  { %7626 = vrcp.f32 %v4131_v29 }
0x24d1   :  { %v9955_v33 = vpop.eup %7620 }
0x24d2   :  { %v4160_v6 = vmul.f32 %v9955_v33, %v9730_v7 }
0x24d4   :  { %v9958_v36 = vpop.eup %7622 }
0x24d5   :  { %v9961_v19 = vpop.eup %7624  ;;  %v4162_v21 = vmul.f32 %v9958_v36, %v9740_v24 }
0x24d6   :  { %v9967_v10 = vpop.eup %7626  ;;  %v4161_v8 = vmul.f32 %v9961_v19, %v9738_v18 }
0x2516   :  { %v4173_v40 = vpop.permute.xlu1 %4172 }
0x2517   :  { %v4196_v54 = vmul.f32 %v9939_v0, %v4173_v40 }
0x2518   :  { %v4175_v58 = vpop.permute.xlu0 %4174 }
0x2519   :  { %4212 = vrot.lane.b32.xlu0 %v4196_v54, %s7887_s20  ;;  %v4197_v22 = vmul.f32 %v9948_v39, %v4175_v58  ;;  %v4163_v54 = vmul.f32 %v9967_v10, %v9746_v59 }
0x251a   :  { %v4177_v13 = vpop.permute.xlu1 %4176 }
0x251b   :  { %v4198_v63 = vmul.f32 %v9942_v12, %v4177_v13  ;;  %4214 = vrot.lane.b32.xlu1 %v4197_v22, %s7887_s20 }
0x251d   :  { %4216 = vrot.lane.b32.xlu0 %v4198_v63, %s7887_s20 }
0x251e   :  { %v4179_v14 = vpop.permute.xlu1 %4178 }
0x251f   :  { %v4199_v61 = vmul.f32 %v9945_v43, %v4179_v14 }
0x2521   :  { %4218 = vrot.lane.b32.xlu1 %v4199_v61, %s7887_s20 }
0x2524   :  { %v4181_v60 = vpop.permute.xlu0 %4180 }
0x2525   :  { %v4200_v28 = vmul.f32 %v9955_v33, %v4181_v60 }
0x2526   :  { %v4183_v34 = vpop.permute.xlu1 %4182 }
0x2527   :  { %4220 = vrot.lane.b32.xlu0 %v4200_v28, %s7887_s20  ;;  %v4201_v45 = vmul.f32 %v9961_v19, %v4183_v34 }
0x2528   :  { %v4185_v56 = vpop.permute.xlu0 %4184 }
0x2529   :  { %v4202_v37 = vmul.f32 %v9958_v36, %v4185_v56  ;;  %4222 = vrot.lane.b32.xlu1 %v4201_v45, %s7887_s20 }
0x252a   :  { %v4187_v31 = vpop.permute.xlu1 %4186 }
0x252b   :  { %4224 = vrot.lane.b32.xlu0 %v4202_v37, %s7887_s20  ;;  %v4203_v42 = vmul.f32 %v9967_v10, %v4187_v31 }
0x252d   :  { %4226 = vrot.lane.b32.xlu1 %v4203_v42, %s7887_s20 }
0x258b   :  { %v4213_v25 = vpop.permute.xlu0 %4212 }
0x258c   :  { %v9973_v27 = vadd.f32 %v4213_v25, %v4156_v35 }
0x258d   :  { %v4215_v16 = vpop.permute.xlu1 %4214 }
0x258e   :  { %7628 = vtanh.f32 %v9973_v27  ;;  %v9982_v55 = vadd.f32 %v4215_v16, %v4157_v11 }
0x258f   :  { %v4217_v32 = vpop.permute.xlu0 %4216 }
0x2590   :  { %v9980_v41 = vadd.f32 %v4217_v32, %v4158_v5 }
0x2592   :  { %7630 = vtanh.f32 %v9980_v41 }
0x2593   :  { %7632 = vtanh.f32 %v9982_v55  ;;  %v4219_v48 = vpop.permute.xlu1 %4218 }
0x2594   :  { %v9988_v30 = vadd.f32 %v4219_v48, %v4159_v9 }
0x2596   :  { %7634 = vtanh.f32 %v9988_v30 }
0x2598   :  { %v7629_v62 = vpop.eup %7628 }
0x2599   :  { %4260 = vrot.lane.b32.xlu0 %v7629_v62, %s7887_s20  ;;  %v4221_v38 = vpop.permute.xlu0 %4220 }
0x259a   :  { %v9996_v2 = vadd.f32 %v4221_v38, %v4160_v6 }
0x259b   :  { %v4223_v26 = vpop.permute.xlu1 %4222 }
0x259c   :  { %v7631_v47 = vpop.eup %7630  ;;  %7636 = vtanh.f32 %v9996_v2  ;;  %v10004_v40 = vadd.f32 %v4223_v26, %v4161_v8 }
0x259d   :  { %4264 = vrot.lane.b32.xlu0 %v7631_v47, %s7887_s20  ;;  %v7633_v46 = vpop.eup %7632  ;;  %v4225_v49 = vpop.permute.xlu0 %4224 }
0x259e   :  { %4262 = vrot.lane.b32.xlu1 %v7633_v46, %s7887_s20  ;;  %v10006_v7 = vadd.f32 %v4225_v49, %v4162_v21  ;;  %7638 = vtanh.f32 %v10004_v40 }
0x259f   :  { %v4227_v53 = vpop.permute.xlu1 %4226 }
0x25a0   :  { %v7635_v20 = vpop.eup %7634  ;;  %7640 = vtanh.f32 %v10006_v7  ;;  %v10012_v18 = vadd.f32 %v4227_v53, %v4163_v54 }
0x25a2   :  { %4266 = vrot.lane.b32.xlu1 %v7635_v20, %s7887_s20  ;;  %7642 = vtanh.f32 %v10012_v18 }
0x25a6   :  { %v7637_v24 = vpop.eup %7636 }
0x25a7   :  { %4268 = vrot.lane.b32.xlu0 %v7637_v24, %s7887_s20 }
0x25a8   :  { %v7639_v13 = vpop.eup %7638 }
0x25a9   :  { %4270 = vrot.lane.b32.xlu1 %v7639_v13, %s7887_s20 }
0x25aa   :  { %v7641_v63 = vpop.eup %7640 }
0x25ab   :  { %4272 = vrot.lane.b32.xlu0 %v7641_v63, %s7887_s20 }
0x25ac   :  { %v7643_v58 = vpop.eup %7642 }
0x25ad   :  { %4274 = vrot.lane.b32.xlu1 %v7643_v58, %s7887_s20 }
0x260b   :  { %v4261_v59 = vpop.permute.xlu0 %4260 }
0x260c   :  { %v4284_v50 = vmul.f32 %v9939_v0, %v4261_v59 }
0x260f   :  { %v4265_v52 = vpop.permute.xlu0 %4264 }
0x2610   :  { %v4263_v4 = vpop.permute.xlu1 %4262  ;;  %v4286_v51 = vmul.f32 %v9942_v12, %v4265_v52 }
0x2611   :  { %v4285_v22 = vmul.f32 %v9948_v39, %v4263_v4 }
0x2613   :  { %v4292_v14 = vpack.c.bf16 %v4285_v22, %v4284_v50 }
0x2614   :  { %v4267_v61 = vpop.permute.xlu1 %4266 }
0x2615   :  { %4300 = vrot.lane.b32.xlu0 %v4292_v14, %s7888_s23  ;;  %v4287_v15 = vmul.f32 %v9945_v43, %v4267_v61 }
0x2617   :  { %v4293_v23 = vpack.c.bf16 %v4287_v15, %v4286_v51 }
0x2619   :  { %4302 = vrot.lane.b32.xlu1 %v4293_v23, %s7888_s23  ;;  %v4269_v29 = vpop.permute.xlu0 %4268 }
0x261a   :  { %v4288_v28 = vmul.f32 %v9955_v33, %v4269_v29  ;;  %v10036_v33 = vld [vmem:[%s10875_s4] ss:$8 sps:$4 sm:$0xff]  }
0x261b   :  { %v4271_v60 = vpop.permute.xlu1 %4270 }
0x261c   :  { %v4289_v0 = vmul.f32 %v9961_v19, %v4271_v60  ;;  %v10048_v19 = vld [vmem:[%s10875_s4 + $0x10] ss:$8 sps:$4 sm:$0xff]  }
0x261d   :  { %v4273_v34 = vpop.permute.xlu0 %4272 }
0x261e   :  { %v4294_v39 = vpack.c.bf16 %v4289_v0, %v4288_v28  ;;  %v4290_v45 = vmul.f32 %v9958_v36, %v4273_v34  ;;  %v10042_v36 = vld [vmem:[%s10875_s4 + $0x14] ss:$8 sps:$4 sm:$0xff]  }
0x261f   :  { %v4275_v56 = vpop.permute.xlu1 %4274 }
0x2620   :  { %v4291_v12 = vmul.f32 %v9967_v10, %v4275_v56  ;;  %4304 = vrot.lane.b32.xlu0 %v4294_v39, %s7888_s23  ;;  %v10054_v10 = vld [vmem:[%s10875_s4 + $0x4] ss:$8 sps:$4 sm:$0xff]  }
0x2622   :  { %v4295_v37 = vpack.c.bf16 %v4291_v12, %v4290_v45 }
0x2624   :  { %4306 = vrot.lane.b32.xlu1 %v4295_v37, %s7888_s23 }
0x2687   :  { %v4301_v43 = vpop.permute.xlu0 %4300 }
0x2688   :  { %6429 = vmatmul.mubr.msk.bf16.vlgmr.msra.gmra.mrb[72].mxu0 %vm75_vm0, %v4301_v43 }
0x2689   :  { %4362 = vmatprep.mubr.bf16.mxu0 %v7886_v3  ;;  %4898 = vmatpush1.bf16.msra.mxu0 %v10036_v33 }
0x268a   :  { %4899 = vmatprep.subr.bf16.mxu0 %v10042_v36 }
0x268b   :  { %v4303_v31 = vpop.permute.xlu1 %4302 }
0x268d   :  { %4900 = vmatpush1.bf16.msra.mxu0 %v10048_v19 }
0x268e   :  { %5474 = vmatprep.subr.bf16.mxu0 %v10054_v10 }
0x2690   :  { %6430 = vmatmul.mubr.msk.bf16.gmra.mrb[76].mxu0 %vm75_vm0, %v4303_v31 }
0x2691   :  { %4372 = vmatprep.mubr.bf16.mxu0 %v7886_v3 }
0x2692   :  { %v4305_v42 = vpop.permute.xlu0 %4304 }
0x2696   :  { %v4307_v35 = vpop.permute.xlu1 %4306 }
0x2698   :  { %6431 = vmatmul.mubr.msk.bf16.gmra.mrb[80].mxu0 %vm75_vm0, %v4305_v42 }
0x2699   :  { %4382 = vmatprep.mubr.bf16.mxu0 %v7886_v3 }
0x26a0   :  { %6432 = vmatmul.mubr.msk.bf16.gmra.mrb[84].mxu0 %vm75_vm0, %v4307_v35 }
0x26a1   :  { %4929 = vmatprep.mubr.bf16.mxu0 %v7886_v3 }
0x275b   :  { %v10063_v25 = vpop.f32.mrb[72].mxu0 }
0x275c   :  { %v4356_v5 = vpop.f32.mrb[73].mxu0 }
0x275d   :  { %v4393_v32 = vadd.f32 %v9782_v17, %v4356_v5  ;;  %v10066_v11 = vpop.f32.mrb[74].mxu0 }
0x275e   :  { %v4360_v16 = vpop.f32.mrb[75].mxu0 }
0x275f   :  { %6433 = vst [vmem:[%s10879_s8 + $0x100] sm:$0xff] %v4393_v32  ;;  %v4394_v9 = vadd.f32 %v9782_v17, %v4360_v16  ;;  %4410 = vmax.xlane.f32.xlu0 %v4393_v32 }
0x2761   :  { %6434 = vst [vmem:[%s10879_s8 + $0x108] sm:$0xff] %v4394_v9  ;;  %4412 = vmax.xlane.f32.xlu1 %v4394_v9 }
0x2763   :  { %v10075_v48 = vpop.f32.mrb[76].mxu0 }
0x2764   :  { %v4366_v62 = vpop.f32.mrb[77].mxu0 }
0x2765   :  { %v4395_v47 = vadd.f32 %v9782_v17, %v4366_v62  ;;  %v10078_v46 = vpop.f32.mrb[78].mxu0 }
0x2766   :  { %v4370_v6 = vpop.f32.mrb[79].mxu0 }
0x2767   :  { %6435 = vst [vmem:[%s10879_s8 + $0x110] sm:$0xff] %v4395_v47  ;;  %v4396_v38 = vadd.f32 %v9782_v17, %v4370_v6  ;;  %4414 = vmax.xlane.f32.xlu0 %v4395_v47 }
0x2769   :  { %6436 = vst [vmem:[%s10879_s8 + $0x118] sm:$0xff] %v4396_v38 }
0x276b   :  { %4416 = vmax.xlane.f32.xlu0 %v4396_v38  ;;  %v10087_v20 = vpop.f32.mrb[80].mxu0 }
0x276c   :  { %v4376_v8 = vpop.f32.mrb[81].mxu0 }
0x276d   :  { %v4397_v21 = vadd.f32 %v9782_v17, %v4376_v8  ;;  %v10090_v26 = vpop.f32.mrb[82].mxu0 }
0x276e   :  { %v4380_v49 = vpop.f32.mrb[83].mxu0 }
0x276f   :  { %6437 = vst [vmem:[%s10879_s8 + $0x120] sm:$0xff] %v4397_v21  ;;  %v4398_v54 = vadd.f32 %v9782_v17, %v4380_v49  ;;  %4418 = vmax.xlane.f32.xlu1 %v4397_v21 }
0x2771   :  { %6438 = vst [vmem:[%s10879_s8 + $0x128] sm:$0xff] %v4398_v54  ;;  %4420 = vmax.xlane.f32.xlu0 %v4398_v54 }
0x2773   :  { %v10099_v53 = vpop.f32.mrb[84].mxu0 }
0x2774   :  { %v4386_v24 = vpop.f32.mrb[85].mxu0 }
0x2775   :  { %v4399_v13 = vadd.f32 %v9782_v17, %v4386_v24  ;;  %v10102_v63 = vpop.f32.mrb[86].mxu0 }
0x2776   :  { %v4390_v58 = vpop.f32.mrb[87].mxu0 }
0x2777   :  { %6439 = vst [vmem:[%s10879_s8 + $0x130] sm:$0xff] %v4399_v13  ;;  %v4400_v59 = vadd.f32 %v9782_v17, %v4390_v58  ;;  %4422 = vmax.xlane.f32.xlu1 %v4399_v13 }
0x2779   :  { %6440 = vst [vmem:[%s10879_s8 + $0x138] sm:$0xff] %v4400_v59  ;;  %4424 = vmax.xlane.f32.xlu0 %v4400_v59 }
0x27ec   :  { %v4411_v4 = vpop.xlane.xlu0 %4410 }
0x27ed   :  { %vm4426_vm13 = vcmp.eq.f32.partialorder %v4393_v32, %v4411_v4 }
0x27ee   :  { %v4434_v50 = vsel %vm4426_vm13, %v9125_v1, 2147483647  ;;  %v4413_v22 = vpop.xlane.xlu1 %4412 }
0x27ef   :  { %v4443_v52 = vshra.s32 %v4434_v50, 16  ;;  %vm4427_vm14 = vcmp.eq.f32.partialorder %v4394_v9, %v4413_v22  ;;  %v4442_v8 = vand.u32 65535, %v4434_v50 }
0x27f0   :  { %v4435_v14 = vsel %vm4427_vm14, %v9125_v1, 2147483647 }
0x27f1   :  { %v4457_v61 = vshra.s32 %v4435_v14, 16  ;;  %v4445_v51 = vcvt.s32.f32 %v4443_v52 }
0x27f3   :  { %4446 = vmin.xlane.f32.xlu1 %v4445_v51  ;;  %v4459_v15 = vcvt.s32.f32 %v4457_v61 }
0x27f4   :  { %v4415_v17 = vpop.xlane.xlu0 %4414 }
0x27f5   :  { %vm4428_vm15 = vcmp.eq.f32.partialorder %v4395_v47, %v4415_v17  ;;  %4460 = vmin.xlane.f32.xlu0 %v4459_v15 }
0x27f6   :  { %v4436_v23 = vsel %vm4428_vm15, %v9125_v1, 2147483647 }
0x27f7   :  { %v4471_v29 = vshra.s32 %v4436_v23, 16  ;;  %v4470_v4 = vand.u32 65535, %v4436_v23 }
0x27f8   :  { %v4417_v60 = vpop.xlane.xlu0 %4416 }
0x27f9   :  { %vm4429_vm1 = vcmp.eq.f32.partialorder %v4396_v38, %v4417_v60  ;;  %v4473_v28 = vcvt.s32.f32 %v4471_v29  ;;  %v4472_v61 = vcvt.s32.f32 %v4470_v4 }
0x27fa   :  { %v4437_v0 = vsel %vm4429_vm1, %v9125_v1, 2147483647 }
0x27fb   :  { %v4485_v34 = vshra.s32 %v4437_v0, 16  ;;  %4474 = vmin.xlane.f32.xlu1 %v4473_v28 }
0x27fc   :  { %v4419_v56 = vpop.xlane.xlu1 %4418 }
0x27fd   :  { %v4487_v39 = vcvt.s32.f32 %v4485_v34  ;;  %vm4430_vm2 = vcmp.eq.f32.partialorder %v4397_v21, %v4419_v56  ;;  %v4456_v21 = vand.u32 65535, %v4435_v14 }
0x27fe   :  { %v4438_v45 = vsel %vm4430_vm2, %v9125_v1, 2147483647  ;;  %v4421_v12 = vpop.xlane.xlu0 %4420 }
0x27ff   :  { %4488 = vmin.xlane.f32.xlu0 %v4487_v39  ;;  %v4499_v37 = vshra.s32 %v4438_v45, 16  ;;  %vm4431_vm3 = vcmp.eq.f32.partialorder %v4398_v54, %v4421_v12  ;;  %v4444_v54 = vcvt.s32.f32 %v4442_v8  ;;  %v4458_v58 = vcvt.s32.f32 %v4456_v21 }
0x2800   :  { %v4439_v43 = vsel %vm4431_vm3, %v9125_v1, 2147483647  ;;  %v4498_v60 = vand.u32 65535, %v4438_v45 }
0x2801   :  { %v4513_v31 = vshra.s32 %v4439_v43, 16  ;;  %v4501_v42 = vcvt.s32.f32 %v4499_v37 }
0x2802   :  { %v4500_v56 = vcvt.s32.f32 %v4498_v60 }
0x2803   :  { %4502 = vmin.xlane.f32.xlu1 %v4501_v42  ;;  %v4515_v35 = vcvt.s32.f32 %v4513_v31 }
0x2804   :  { %v4423_v5 = vpop.xlane.xlu1 %4422 }
0x2805   :  { %vm4432_vm4 = vcmp.eq.f32.partialorder %v4399_v13, %v4423_v5  ;;  %4516 = vmin.xlane.f32.xlu0 %v4515_v35 }
0x2806   :  { %v4440_v32 = vsel %vm4432_vm4, %v9125_v1, 2147483647  ;;  %v4425_v16 = vpop.xlane.xlu0 %4424 }
0x2807   :  { %v4527_v9 = vshra.s32 %v4440_v32, 16  ;;  %vm4433_vm5 = vcmp.eq.f32.partialorder %v4400_v59, %v4425_v16  ;;  %v4484_v59 = vand.u32 65535, %v4437_v0  ;;  %v4526_v0 = vand.u32 65535, %v4440_v32 }
0x2808   :  { %v4441_v62 = vsel %vm4433_vm5, %v9125_v1, 2147483647 }
0x2809   :  { %v4541_v47 = vshra.s32 %v4441_v62, 16  ;;  %v4529_v6 = vcvt.s32.f32 %v4527_v9  ;;  %v4486_v50 = vcvt.s32.f32 %v4484_v59  ;;  %v4528_v5 = vcvt.s32.f32 %v4526_v0 }
0x280b   :  { %4530 = vmin.xlane.f32.xlu1 %v4529_v6  ;;  %v4543_v38 = vcvt.s32.f32 %v4541_v47 }
0x280d   :  { %4544 = vmin.xlane.f32.xlu0 %v4543_v38 }
0x2880   :  { %v4447_v49 = vpop.xlane.xlu1 %4446 }
0x2881   :  { %vm4448_vm6 = vcmp.eq.f32.partialorder %v4445_v51, %v4447_v49  ;;  %v4512_v51 = vand.u32 65535, %v4439_v43 }
0x2882   :  { %v4461_v24 = vpop.xlane.xlu0 %4460  ;;  %v4449_v13 = vsel %vm4448_vm6, %v4444_v54, inf }
0x2883   :  { %4450 = vmin.xlane.f32.xlu1 %v4449_v13  ;;  %vm4462_vm7 = vcmp.eq.f32.partialorder %v4459_v15, %v4461_v24  ;;  %v4514_v12 = vcvt.s32.f32 %v4512_v51  ;;  %v4467_v9 = vcvt.f32.s32 %v4461_v24  ;;  %v10131_v51 = vld [vmem:[%s10876_s5] sm:$0xff]  }
0x2884   :  { %v4463_v22 = vsel %vm4462_vm7, %v4458_v58, inf }
0x2885   :  { %4464 = vmin.xlane.f32.xlu0 %v4463_v22  ;;  %v4468_v21 = vshll.u32 %v4467_v9, 16 }
0x2888   :  { %v4475_v52 = vpop.xlane.xlu1 %4474 }
0x2889   :  { %vm4476_vm8 = vcmp.eq.f32.partialorder %v4473_v28, %v4475_v52  ;;  %v4540_v28 = vand.u32 65535, %v4441_v62 }
0x288a   :  { %v4477_v17 = vsel %vm4476_vm8, %v4472_v61, inf }
0x288b   :  { %4478 = vmin.xlane.f32.xlu1 %v4477_v17  ;;  %v4542_v16 = vcvt.s32.f32 %v4540_v28  ;;  %v10144_v28 = vld [vmem:[%s10876_s5 + $0x10] sm:$0xff]  }
0x288c   :  { %v4489_v29 = vpop.xlane.xlu0 %4488 }
0x288d   :  { %vm4490_vm9 = vcmp.eq.f32.partialorder %v4487_v39, %v4489_v29 }
0x288e   :  { %v4491_v14 = vsel %vm4490_vm9, %v4486_v50, inf }
0x288f   :  { %4492 = vmin.xlane.f32.xlu0 %v4491_v14 }
0x2890   :  { %v4503_v34 = vpop.xlane.xlu1 %4502 }
0x2891   :  { %vm4504_vm10 = vcmp.eq.f32.partialorder %v4501_v42, %v4503_v34  ;;  %v4453_v42 = vcvt.f32.s32 %v4447_v49  ;;  %v4509_v50 = vcvt.f32.s32 %v4503_v34  ;;  %v10137_v34 = vld [vmem:[%s10876_s5 + $0x8] sm:$0xff]  }
0x2892   :  { %v4517_v15 = vpop.xlane.xlu0 %4516  ;;  %v4505_v23 = vsel %vm4504_vm10, %v4500_v56, inf }
0x2893   :  { %4506 = vmin.xlane.f32.xlu1 %v4505_v23  ;;  %vm4518_vm11 = vcmp.eq.f32.partialorder %v4515_v35, %v4517_v15  ;;  %v4454_v35 = vshll.u32 %v4453_v42, 16  ;;  %v10155_v42 = vld [vmem:[%s10876_s5 + $0x18] sm:$0xff]  }
0x2894   :  { %v4519_v37 = vsel %vm4518_vm11, %v4514_v12, inf }
0x2895   :  { %4520 = vmin.xlane.f32.xlu0 %v4519_v37 }
0x2898   :  { %v4531_v31 = vpop.xlane.xlu1 %4530 }
0x2899   :  { %vm4532_vm12 = vcmp.eq.f32.partialorder %v4529_v6, %v4531_v31  ;;  %v4481_v6 = vcvt.f32.s32 %v4475_v52  ;;  %v4523_v52 = vcvt.f32.s32 %v4517_v15  ;;  %v4537_v0 = vcvt.f32.s32 %v4531_v31 }
0x289a   :  { %v10119_v39 = vpop.xlane.xlu0 %4544  ;;  %v4533_v45 = vsel %vm4532_vm12, %v4528_v5, inf }
0x289b   :  { %4534 = vmin.xlane.f32.xlu1 %v4533_v45  ;;  %vm4546_vm13 = vcmp.eq.f32.partialorder %v4543_v38, %v10119_v39  ;;  %v4495_v38 = vcvt.f32.s32 %v4489_v29  ;;  %v4482_v49 = vshll.u32 %v4481_v6, 16  ;;  %v4510_v29 = vshll.u32 %v4509_v50, 16  ;;  %v6460_v6 = vld [vmem:[%s10873_s2 + $0x110] sm:$0xff] }
0x289c   :  { %v4547_v43 = vsel %vm4546_vm13, %v4542_v16, inf  ;;  %v4524_v15 = vshll.u32 %v4523_v52, 16  ;;  %v4551_v5 = vcvt.f32.s32 %v10119_v39  ;;  %v4538_v16 = vshll.u32 %v4537_v0, 16  ;;  %v6459_v52 = vld [vmem:[%s10873_s2 + $0x108] sm:$0xff] }
0x289d   :  { %4548 = vmin.xlane.f32.xlu0 %v4547_v43  ;;  %v4496_v22 = vshll.u32 %v4495_v38, 16 }
0x289e   :  { %v4552_v39 = vshll.u32 %v4551_v5, 16 }
0x2910   :  { %v4451_v47 = vpop.xlane.xlu1 %4450 }
0x2911   :  { %v4452_v32 = vcvt.f32.s32 %v4451_v47 }
0x2912   :  { %v4465_v8 = vpop.xlane.xlu0 %4464 }
0x2913   :  { %v4455_v62 = vadd.s32 %v4454_v35, %v4452_v32  ;;  %v4466_v54 = vcvt.f32.s32 %v4465_v8  ;;  %v10162_v32 = vld [vmem:[%s10876_s5 + $0x20] sm:$0xff]   ;;  %v10172_v8 = vld [vmem:[%s10876_s5 + $0x28] sm:$0xff]  }
0x2915   :  { %v4469_v13 = vadd.s32 %v4468_v21, %v4466_v54  ;;  %vm4554_vm14 = vcmp.eq.s32.totalorder %v9125_v1, %v4455_v62  ;;  %v10179_v21 = vld [vmem:[%s10876_s5 + $0x30] sm:$0xff]   ;;  %v10186_v62 = vld [vmem:[%s10876_s5 + $0x38] sm:$0xff]   ;;  %v4659_v54 = vstv %s4658_s21  ;;  %s5812_s5 = scalar_select %p5802_p10, 1, 0 }
0x2916   :  { %vm10194_vm11 = vcmp.eq.s32.totalorder %v4659_v54, 1 }
0x2917   :  { %vm4555_vm15 = vcmp.eq.s32.totalorder %v9125_v1, %v4469_v13 }
0x2918   :  { %v4479_v58 = vpop.xlane.xlu1 %4478  ;;  %vm6449_vm1 = vmpackc.low %vm4555_vm15, %vm4554_vm14 }
0x2919   :  { %v4480_v4 = vcvt.f32.s32 %v4479_v58  ;;  %6862 = vmatprep.mubr.msk.bf16.mxu1 %vm6449_vm1, %v7889_v57 }
0x291b   :  { %v4483_v59 = vadd.s32 %v4482_v49, %v4480_v4  ;;  %v6458_v49 = vld [vmem:[%s10873_s2 + $0x100] sm:$0xff] }
0x291c   :  { %v4493_v24 = vpop.xlane.xlu0 %4492 }
0x291d   :  { %v4494_v61 = vcvt.f32.s32 %v4493_v24  ;;  %vm4556_vm2 = vcmp.eq.s32.totalorder %v9125_v1, %v4483_v59  ;;  %v6461_v59 = vld [vmem:[%s10873_s2 + $0x118] sm:$0xff] }
0x291f   :  { %v4497_v17 = vadd.s32 %v4496_v22, %v4494_v61 }
0x2920   :  { %v4507_v14 = vpop.xlane.xlu1 %4506 }
0x2921   :  { %vm4557_vm3 = vcmp.eq.s32.totalorder %v9125_v1, %v4497_v17  ;;  %v4508_v60 = vcvt.f32.s32 %v4507_v14 }
0x2922   :  { %vm6451_vm4 = vmpackc.low %vm4557_vm3, %vm4556_vm2  ;;  %v4521_v56 = vpop.xlane.xlu0 %4520 }
0x2923   :  { %6863 = vmatmul.mubr.msk.bf16.vlgmr.msra.gmra.mrb[72].mxu1 %vm6451_vm4, %v7889_v57  ;;  %v4511_v23 = vadd.s32 %v4510_v29, %v4508_v60  ;;  %v4522_v12 = vcvt.f32.s32 %v4521_v56 }
0x2924   :  { %6871 = vmatpush3.bf16.msra.mxu1 %v10131_v51 }
0x2925   :  { %6872 = vmatprep.subr.bf16.mxu1 %v10137_v34  ;;  %v4525_v37 = vadd.s32 %v4524_v15, %v4522_v12  ;;  %vm4558_vm5 = vcmp.eq.s32.totalorder %v9125_v1, %v4511_v23 }
0x2927   :  { %vm4559_vm6 = vcmp.eq.s32.totalorder %v9125_v1, %v4525_v37 }
0x2928   :  { %6873 = vmatpush3.bf16.msra.mxu1 %v10137_v34  ;;  %v4535_v45 = vpop.xlane.xlu1 %4534  ;;  %vm6453_vm7 = vmpackc.low %vm4559_vm6, %vm4558_vm5 }
0x2929   :  { %6874 = vmatprep.subr.bf16.mxu1 %v10144_v28  ;;  %v4536_v31 = vcvt.f32.s32 %v4535_v45  ;;  %6866 = vmatprep.mubr.msk.bf16.mxu1 %vm6453_vm7, %v7889_v57 }
0x292a   :  { %v4549_v43 = vpop.xlane.xlu0 %4548 }
0x292b   :  { %v4539_v9 = vadd.s32 %v4538_v16, %v4536_v31  ;;  %v4550_v47 = vcvt.f32.s32 %v4549_v43  ;;  %v6465_v31 = vld [vmem:[%s10873_s2 + $0x138] sm:$0xff] }
0x292c   :  { %6875 = vmatpush3.bf16.msra.mxu1 %v10144_v28 }
0x292d   :  { %6876 = vmatprep.subr.bf16.mxu1 %v10155_v42  ;;  %v4553_v35 = vadd.s32 %v4552_v39, %v4550_v47  ;;  %vm4560_vm8 = vcmp.eq.s32.totalorder %v9125_v1, %v4539_v9 }
0x292f   :  { %vm4561_vm9 = vcmp.eq.s32.totalorder %v9125_v1, %v4553_v35 }
0x2930   :  { %6877 = vmatpush3.bf16.msra.mxu1 %v10155_v42  ;;  %vm6455_vm10 = vmpackc.low %vm4561_vm9, %vm4560_vm8 }
0x2931   :  { %6878 = vmatprep.subr.bf16.mxu1 %v10162_v32  ;;  %6867 = vmatmul.mubr.msk.bf16.gmra.mrb[76].mxu1 %vm6455_vm10, %v7889_v57 }
0x2934   :  { %6879 = vmatpush3.bf16.msra.mxu1 %v10162_v32 }
0x2935   :  { %6880 = vmatprep.subr.bf16.mxu1 %v10172_v8 }
0x2938   :  { %6881 = vmatpush3.bf16.msra.mxu1 %v10172_v8 }
0x2939   :  { %6882 = vmatprep.subr.bf16.mxu1 %v10179_v21 }
0x293c   :  { %6883 = vmatpush3.bf16.msra.mxu1 %v10179_v21 }
0x293d   :  { %6884 = vmatprep.subr.bf16.mxu1 %v10186_v62 }
0x2940   :  { %6885 = vmatpush3.bf16.msra.mxu1 %v10186_v62 }
0x2941   :  { %6894 = vmatprep.subr.bf16.mxu1 %v10131_v51 }
0x29f6   :  { %v6864_v13 = vpop.f32.mrb[72].mxu1 }
0x29f7   :  { %v4625_v38 = vadd.f32 %v9876_v44, %v6864_v13  ;;  %v4616_v4 = vpop.f32.mrb[73].mxu1  ;;  %v6463_v13 = vld [vmem:[%s10873_s2 + $0x128] sm:$0xff] }
0x29f8   :  { %v4617_v24 = vadd.f32 %v9876_v44, %v4616_v4  ;;  %v6865_v22 = vpop.f32.mrb[74].mxu1 }
0x29f9   :  { %v4663_v61 = vsel %vm10194_vm11, %v6460_v6, %v4625_v38  ;;  %v4628_v17 = vadd.f32 %v9876_v44, %v6865_v22  ;;  %v4619_v50 = vpop.f32.mrb[75].mxu1 }
0x29fa   :  { %v4671_v14 = vadd.f32 %v4663_v61, %v10075_v48  ;;  %v4661_v29 = vsel %vm10194_vm11, %v6458_v49, %v4617_v24  ;;  %v4620_v60 = vadd.f32 %v9876_v44, %v4619_v50 }
0x29fb   :  { %v4669_v56 = vadd.f32 %v4661_v29, %v10063_v25  ;;  %v4664_v15 = vsel %vm10194_vm11, %v6461_v59, %v4628_v17  ;;  %v6464_v25 = vld [vmem:[%s10873_s2 + $0x130] sm:$0xff] }
0x29fc   :  { %v4672_v23 = vadd.f32 %v4664_v15, %v10078_v46  ;;  %v4662_v12 = vsel %vm10194_vm11, %v6459_v52, %v4620_v60  ;;  %v6462_v46 = vld [vmem:[%s10873_s2 + $0x120] sm:$0xff] }
0x29fd   :  { %7644 = vtanh.f32 %v4669_v56  ;;  %v4670_v0 = vadd.f32 %v4662_v12, %v10066_v11  ;;  %v6466_v58 = vmul.f32 -1.442695, %v4669_v56 }
0x29fe   :  { %7646 = vtanh.f32 %v4671_v14  ;;  %v6469_v17 = vmul.f32 -1.442695, %v4672_v23 }
0x29ff   :  { %7648 = vtanh.f32 %v4670_v0  ;;  %v6467_v50 = vmul.f32 -1.442695, %v4670_v0 }
0x2a00   :  { %7650 = vtanh.f32 %v4672_v23 }
0x2a04   :  { %v6868_v37 = vpop.f32.mrb[76].mxu1 }
0x2a05   :  { %v4641_v5 = vadd.f32 %v9876_v44, %v6868_v37  ;;  %v4632_v45 = vpop.f32.mrb[77].mxu1 }
0x2a06   :  { %v4633_v11 = vadd.f32 %v9876_v44, %v4632_v45  ;;  %v6869_v16 = vpop.f32.mrb[78].mxu1 }
0x2a07   :  { %v7645_v48 = vpop.eup %7644  ;;  %v4667_v43 = vsel %vm10194_vm11, %v6464_v25, %v4641_v5  ;;  %v4644_v39 = vadd.f32 %v9876_v44, %v6869_v16  ;;  %v4635_v9 = vpop.f32.mrb[79].mxu1 }
0x2a08   :  { %4749 = vrot.lane.b32.xlu1 %v7645_v48, %s7887_s20  ;;  %v7647_v47 = vpop.eup %7646  ;;  %v4675_v35 = vadd.f32 %v4667_v43, %v10099_v53  ;;  %v4665_v54 = vsel %vm10194_vm11, %v6462_v46, %v4633_v11  ;;  %v4636_v4 = vadd.f32 %v9876_v44, %v4635_v9 }
0x2a09   :  { %v4673_v6 = vadd.f32 %v4665_v54, %v10087_v20  ;;  %v4668_v38 = vsel %vm10194_vm11, %v6465_v31, %v4644_v39  ;;  %v7649_v49 = vpop.eup %7648 }
0x2a0a   :  { %v4676_v24 = vadd.f32 %v4668_v38, %v10102_v63  ;;  %v4666_v53 = vsel %vm10194_vm11, %v6463_v13, %v4636_v4  ;;  %4751 = vrot.lane.b32.xlu0 %v7649_v49, %s7887_s20  ;;  %v7651_v22 = vpop.eup %7650  ;;  %v6472_v45 = vmul.f32 -1.442695, %v4675_v35 }
0x2a0b   :  { %v4674_v59 = vadd.f32 %v4666_v53, %v10090_v26  ;;  %7652 = vtanh.f32 %v4673_v6  ;;  %v6468_v26 = vmul.f32 -1.442695, %v4671_v14  ;;  %v6470_v37 = vmul.f32 -1.442695, %v4673_v6 }
0x2a0c   :  { %4753 = vrot.lane.b32.xlu1 %v7647_v47, %s7887_s20  ;;  %7654 = vtanh.f32 %v4675_v35  ;;  %v6473_v56 = vmul.f32 -1.442695, %v4676_v24 }
0x2a0d   :  { %7656 = vtanh.f32 %v4674_v59  ;;  %v6471_v14 = vmul.f32 -1.442695, %v4674_v59 }
0x2a0e   :  { %7658 = vtanh.f32 %v4676_v24 }
0x2a0f   :  { %7660 = vpow2.f32 %v6466_v58 }
0x2a10   :  { %4755 = vrot.lane.b32.xlu1 %v7651_v22, %s7887_s20  ;;  %7662 = vpow2.f32 %v6468_v26 }
0x2a11   :  { %7664 = vpow2.f32 %v6469_v17 }
0x2a12   :  { %7666 = vpow2.f32 %v6467_v50 }
0x2a15   :  { %v7653_v44 = vpop.eup %7652 }
0x2a16   :  { %4757 = vrot.lane.b32.xlu0 %v7653_v44, %s7887_s20  ;;  %v7655_v20 = vpop.eup %7654 }
0x2a17   :  { %v7657_v61 = vpop.eup %7656 }
0x2a18   :  { %4759 = vrot.lane.b32.xlu1 %v7657_v61, %s7887_s20  ;;  %v7659_v63 = vpop.eup %7658 }
0x2a19   :  { %v7661_v52 = vpop.eup %7660 }
0x2a1a   :  { %4761 = vrot.lane.b32.xlu0 %v7655_v20, %s7887_s20  ;;  %v7663_v29 = vpop.eup %7662  ;;  %v4701_v60 = vadd.f32 1.0, %v7661_v52 }
0x2a1b   :  { %v7665_v15 = vpop.eup %7664  ;;  %v4703_v48 = vadd.f32 1.0, %v7663_v29 }
0x2a1c   :  { %4763 = vrot.lane.b32.xlu1 %v7659_v63, %s7887_s20  ;;  %v7667_v12 = vpop.eup %7666  ;;  %7668 = vrcp.f32 %v4701_v60  ;;  %v4704_v25 = vadd.f32 1.0, %v7665_v15 }
0x2a1d   :  { %v4702_v5 = vadd.f32 1.0, %v7667_v12  ;;  %7670 = vrcp.f32 %v4703_v48 }
0x2a1e   :  { %7672 = vpow2.f32 %v6470_v37 }
0x2a1f   :  { %7674 = vrcp.f32 %v4704_v25 }
0x2a20   :  { %7676 = vrcp.f32 %v4702_v5 }
0x2a21   :  { %7678 = vpow2.f32 %v6472_v45 }
0x2a22   :  { %7680 = vpow2.f32 %v6471_v14 }
0x2a23   :  { %7682 = vpow2.f32 %v6473_v56 }
0x2a26   :  { %v10259_v23 = vpop.eup %7668 }
0x2a27   :  { %v10262_v11 = vpop.eup %7670  ;;  %v4733_v15 = vmul.f32 %v10259_v23, %v9973_v27 }
0x2a28   :  { %v7673_v16 = vpop.eup %7672  ;;  %v4735_v37 = vmul.f32 %v10262_v11, %v9980_v41 }
0x2a29   :  { %v10265_v43 = vpop.eup %7674  ;;  %v4705_v54 = vadd.f32 1.0, %v7673_v16 }
0x2a2a   :  { %v10268_v9 = vpop.eup %7676  ;;  %v4736_v27 = vmul.f32 %v10265_v43, %v9988_v30 }
0x2a2b   :  { %v7679_v35 = vpop.eup %7678  ;;  %7684 = vrcp.f32 %v4705_v54  ;;  %v4734_v5 = vmul.f32 %v10268_v9, %v9982_v55 }
0x2a2c   :  { %v7681_v6 = vpop.eup %7680  ;;  %v4707_v49 = vadd.f32 1.0, %v7679_v35 }
0x2a2d   :  { %v4706_v24 = vadd.f32 1.0, %v7681_v6  ;;  %v7683_v53 = vpop.eup %7682 }
0x2a2e   :  { %7686 = vrcp.f32 %v4707_v49  ;;  %v4708_v22 = vadd.f32 1.0, %v7683_v53 }
0x2a2f   :  { %7688 = vrcp.f32 %v4706_v24 }
0x2a30   :  { %7690 = vrcp.f32 %v4708_v22 }
0x2a35   :  { %v10275_v59 = vpop.eup %7684 }
0x2a38   :  { %v10278_v61 = vpop.eup %7686 }
0x2a39   :  { %v10281_v63 = vpop.eup %7688  ;;  %v4739_v54 = vmul.f32 %v10278_v61, %v10006_v7 }
0x2a3a   :  { %v10287_v52 = vpop.eup %7690  ;;  %v4738_v35 = vmul.f32 %v10281_v63, %v10004_v40 }
0x2a7a   :  { %v4750_v0 = vpop.permute.xlu1 %4749 }
0x2a7b   :  { %v4773_v46 = vmul.f32 %v10259_v23, %v4750_v0 }
0x2a7c   :  { %v4752_v47 = vpop.permute.xlu0 %4751 }
0x2a7d   :  { %4789 = vrot.lane.b32.xlu0 %v4773_v46, %s7887_s20  ;;  %v4774_v13 = vmul.f32 %v10268_v9, %v4752_v47 }
0x2a7e   :  { %v4754_v31 = vpop.permute.xlu1 %4753 }
0x2a7f   :  { %v4775_v39 = vmul.f32 %v10262_v11, %v4754_v31  ;;  %4791 = vrot.lane.b32.xlu1 %v4774_v13, %s7887_s20  ;;  %v4737_v31 = vmul.f32 %v10275_v59, %v9996_v2 }
0x2a81   :  { %4793 = vrot.lane.b32.xlu0 %v4775_v39, %s7887_s20 }
0x2a82   :  { %v4756_v38 = vpop.permute.xlu1 %4755 }
0x2a83   :  { %v4776_v4 = vmul.f32 %v10265_v43, %v4756_v38 }
0x2a85   :  { %4795 = vrot.lane.b32.xlu1 %v4776_v4, %s7887_s20  ;;  %v4740_v4 = vmul.f32 %v10287_v52, %v10012_v18 }
0x2a88   :  { %v4758_v44 = vpop.permute.xlu0 %4757 }
0x2a89   :  { %v4777_v20 = vmul.f32 %v10275_v59, %v4758_v44 }
0x2a8a   :  { %v4760_v58 = vpop.permute.xlu1 %4759 }
0x2a8b   :  { %4797 = vrot.lane.b32.xlu0 %v4777_v20, %s7887_s20  ;;  %v4778_v17 = vmul.f32 %v10281_v63, %v4760_v58 }
0x2a8c   :  { %v4762_v26 = vpop.permute.xlu0 %4761 }
0x2a8d   :  { %v4779_v50 = vmul.f32 %v10278_v61, %v4762_v26  ;;  %4799 = vrot.lane.b32.xlu1 %v4778_v17, %s7887_s20 }
0x2a8e   :  { %v4764_v29 = vpop.permute.xlu1 %4763 }
0x2a8f   :  { %4801 = vrot.lane.b32.xlu0 %v4779_v50, %s7887_s20  ;;  %v4780_v60 = vmul.f32 %v10287_v52, %v4764_v29 }
0x2a91   :  { %4803 = vrot.lane.b32.xlu1 %v4780_v60, %s7887_s20 }
0x2aef   :  { %v4790_v12 = vpop.permute.xlu0 %4789 }
0x2af0   :  { %v10293_v48 = vadd.f32 %v4790_v12, %v4733_v15 }
0x2af1   :  { %v4792_v14 = vpop.permute.xlu1 %4791 }
0x2af2   :  { %7692 = vtanh.f32 %v10293_v48  ;;  %v10302_v56 = vadd.f32 %v4792_v14, %v4734_v5 }
0x2af3   :  { %v4794_v25 = vpop.permute.xlu0 %4793 }
0x2af4   :  { %v10300_v45 = vadd.f32 %v4794_v25, %v4735_v37 }
0x2af6   :  { %7694 = vtanh.f32 %v10300_v45 }
0x2af7   :  { %7696 = vtanh.f32 %v10302_v56  ;;  %v4796_v0 = vpop.permute.xlu1 %4795 }
0x2af8   :  { %v10308_v46 = vadd.f32 %v4796_v0, %v4736_v27 }
0x2afa   :  { %7698 = vtanh.f32 %v10308_v46 }
0x2afc   :  { %v7693_v41 = vpop.eup %7692 }
0x2afd   :  { %4837 = vrot.lane.b32.xlu0 %v7693_v41, %s7887_s20  ;;  %v4798_v39 = vpop.permute.xlu0 %4797 }
0x2afe   :  { %v10316_v47 = vadd.f32 %v4798_v39, %v4737_v31 }
0x2aff   :  { %v4800_v13 = vpop.permute.xlu1 %4799 }
0x2b00   :  { %v7695_v55 = vpop.eup %7694  ;;  %7700 = vtanh.f32 %v10316_v47  ;;  %v10324_v38 = vadd.f32 %v4800_v13, %v4738_v35 }
0x2b01   :  { %4841 = vrot.lane.b32.xlu0 %v7695_v55, %s7887_s20  ;;  %v7697_v16 = vpop.eup %7696  ;;  %v4802_v6 = vpop.permute.xlu0 %4801 }
0x2b02   :  { %4839 = vrot.lane.b32.xlu1 %v7697_v16, %s7887_s20  ;;  %v10326_v2 = vadd.f32 %v4802_v6, %v4739_v54  ;;  %7702 = vtanh.f32 %v10324_v38 }
0x2b03   :  { %v4804_v49 = vpop.permute.xlu1 %4803 }
0x2b04   :  { %v7699_v30 = vpop.eup %7698  ;;  %7704 = vtanh.f32 %v10326_v2  ;;  %v10332_v40 = vadd.f32 %v4804_v49, %v4740_v4 }
0x2b06   :  { %4843 = vrot.lane.b32.xlu1 %v7699_v30, %s7887_s20  ;;  %7706 = vtanh.f32 %v10332_v40 }
0x2b0a   :  { %v7701_v7 = vpop.eup %7700 }
0x2b0b   :  { %4845 = vrot.lane.b32.xlu0 %v7701_v7, %s7887_s20 }
0x2b0c   :  { %v7703_v24 = vpop.eup %7702 }
0x2b0d   :  { %4847 = vrot.lane.b32.xlu1 %v7703_v24, %s7887_s20 }
0x2b0e   :  { %v7705_v53 = vpop.eup %7704 }
0x2b0f   :  { %4849 = vrot.lane.b32.xlu0 %v7705_v53, %s7887_s20 }
0x2b10   :  { %v7707_v22 = vpop.eup %7706 }
0x2b11   :  { %4851 = vrot.lane.b32.xlu1 %v7707_v22, %s7887_s20 }
0x2b6f   :  { %v4838_v18 = vpop.permute.xlu0 %4837 }
0x2b70   :  { %v4861_v20 = vmul.f32 %v10259_v23, %v4838_v18 }
0x2b73   :  { %v4842_v26 = vpop.permute.xlu0 %4841 }
0x2b74   :  { %v4840_v44 = vpop.permute.xlu1 %4839  ;;  %v4863_v29 = vmul.f32 %v10262_v11, %v4842_v26 }
0x2b75   :  { %v4862_v58 = vmul.f32 %v10268_v9, %v4840_v44 }
0x2b77   :  { %v4869_v17 = vpack.c.bf16 %v4862_v58, %v4861_v20 }
0x2b78   :  { %v4844_v50 = vpop.permute.xlu1 %4843 }
0x2b79   :  { %4877 = vrot.lane.b32.xlu0 %v4869_v17, %s7888_s23  ;;  %v4864_v60 = vmul.f32 %v10265_v43, %v4844_v50 }
0x2b7b   :  { %v4870_v15 = vpack.c.bf16 %v4864_v60, %v4863_v29 }
0x2b7d   :  { %4879 = vrot.lane.b32.xlu1 %v4870_v15, %s7888_s23  ;;  %v4846_v12 = vpop.permute.xlu0 %4845 }
0x2b7e   :  { %v4865_v25 = vmul.f32 %v10275_v59, %v4846_v12 }
0x2b7f   :  { %v4848_v37 = vpop.permute.xlu1 %4847 }
0x2b80   :  { %v4866_v23 = vmul.f32 %v10281_v63, %v4848_v37 }
0x2b81   :  { %v4850_v5 = vpop.permute.xlu0 %4849 }
0x2b82   :  { %v4871_v9 = vpack.c.bf16 %v4866_v23, %v4865_v25  ;;  %v4867_v27 = vmul.f32 %v10278_v61, %v4850_v5 }
0x2b83   :  { %v4852_v14 = vpop.permute.xlu1 %4851 }
0x2b84   :  { %v4868_v11 = vmul.f32 %v10287_v52, %v4852_v14  ;;  %4881 = vrot.lane.b32.xlu0 %v4871_v9, %s7888_s23 }
0x2b86   :  { %v4872_v0 = vpack.c.bf16 %v4868_v11, %v4867_v27 }
0x2b88   :  { %4883 = vrot.lane.b32.xlu1 %v4872_v0, %s7888_s23 }
0x2beb   :  { %v4878_v43 = vpop.permute.xlu0 %4877 }
0x2bec   :  { %6474 = vmatmul.mubr.msk.bf16.vlgmr.msra.gmra.mrb[88].mxu0 %vm75_vm0, %v4878_v43 }
0x2bed   :  { %4939 = vmatprep.mubr.bf16.mxu0 %v7886_v3  ;;  %5475 = vmatpush1.bf16.msra.mxu0 %v10036_v33 }
0x2bee   :  { %5476 = vmatprep.subr.bf16.mxu0 %v10042_v36 }
0x2bef   :  { %v4880_v59 = vpop.permute.xlu1 %4879 }
0x2bf1   :  { %5477 = vmatpush1.bf16.msra.mxu0 %v10048_v19  ;;  %v10368_v19 = vld [vmem:[%s10878_s7] ss:$0 sm:$0xff] }
0x2bf2   :  { %6051 = vmatprep.subr.bf16.mxu0 %v10054_v10 }
0x2bf4   :  { %6475 = vmatmul.mubr.msk.bf16.gmra.mrb[92].mxu0 %vm75_vm0, %v4880_v59 }
0x2bf5   :  { %4949 = vmatprep.mubr.bf16.mxu0 %v7886_v3 }
0x2bf6   :  { %v4882_v61 = vpop.permute.xlu0 %4881 }
0x2bfa   :  { %v4884_v63 = vpop.permute.xlu1 %4883 }
0x2bfc   :  { %6476 = vmatmul.mubr.msk.bf16.gmra.mrb[96].mxu0 %vm75_vm0, %v4882_v61 }
0x2bfd   :  { %4959 = vmatprep.mubr.bf16.mxu0 %v7886_v3 }
0x2c04   :  { %6477 = vmatmul.mubr.msk.bf16.gmra.mrb[100].mxu0 %vm75_vm0, %v4884_v63 }
0x2c05   :  { %5506 = vmatprep.mubr.bf16.mxu0 %v7886_v3 }
0x2cbf   :  { %v10363_v33 = vpop.f32.mrb[88].mxu0 }
0x2cc0   :  { %v4933_v36 = vpop.f32.mrb[89].mxu0 }
0x2cc1   :  { %v4970_v10 = vadd.f32 %v10368_v19, %v4933_v36  ;;  %v10371_v52 = vpop.f32.mrb[90].mxu0 }
0x2cc2   :  { %v4937_v41 = vpop.f32.mrb[91].mxu0 }
0x2cc3   :  { %6478 = vst [vmem:[%s10879_s8 + $0x140] sm:$0xff] %v4970_v10  ;;  %v4971_v55 = vadd.f32 %v10368_v19, %v4937_v41  ;;  %4987 = vmax.xlane.f32.xlu0 %v4970_v10 }
0x2cc5   :  { %6479 = vst [vmem:[%s10879_s8 + $0x148] sm:$0xff] %v4971_v55  ;;  %4989 = vmax.xlane.f32.xlu1 %v4971_v55 }
0x2cc7   :  { %v10380_v16 = vpop.f32.mrb[92].mxu0 }
0x2cc8   :  { %v4943_v31 = vpop.f32.mrb[93].mxu0 }
0x2cc9   :  { %v4972_v39 = vadd.f32 %v10368_v19, %v4943_v31  ;;  %v10383_v30 = vpop.f32.mrb[94].mxu0 }
0x2cca   :  { %v4947_v35 = vpop.f32.mrb[95].mxu0 }
0x2ccb   :  { %6480 = vst [vmem:[%s10879_s8 + $0x150] sm:$0xff] %v4972_v39  ;;  %v4973_v54 = vadd.f32 %v10368_v19, %v4947_v35  ;;  %4991 = vmax.xlane.f32.xlu0 %v4972_v39 }
0x2ccd   :  { %6481 = vst [vmem:[%s10879_s8 + $0x158] sm:$0xff] %v4973_v54 }
0x2ccf   :  { %4993 = vmax.xlane.f32.xlu0 %v4973_v54  ;;  %v10392_v13 = vpop.f32.mrb[96].mxu0 }
0x2cd0   :  { %v4953_v6 = vpop.f32.mrb[97].mxu0 }
0x2cd1   :  { %v4974_v4 = vadd.f32 %v10368_v19, %v4953_v6  ;;  %v10395_v49 = vpop.f32.mrb[98].mxu0 }
0x2cd2   :  { %v4957_v7 = vpop.f32.mrb[99].mxu0 }
0x2cd3   :  { %6482 = vst [vmem:[%s10879_s8 + $0x160] sm:$0xff] %v4974_v4  ;;  %v4975_v24 = vadd.f32 %v10368_v19, %v4957_v7  ;;  %4995 = vmax.xlane.f32.xlu1 %v4974_v4 }
0x2cd5   :  { %6483 = vst [vmem:[%s10879_s8 + $0x168] sm:$0xff] %v4975_v24  ;;  %4997 = vmax.xlane.f32.xlu0 %v4975_v24 }
0x2cd7   :  { %v10404_v53 = vpop.f32.mrb[100].mxu0 }
0x2cd8   :  { %v4963_v22 = vpop.f32.mrb[101].mxu0 }
0x2cd9   :  { %v4976_v18 = vadd.f32 %v10368_v19, %v4963_v22  ;;  %v10407_v44 = vpop.f32.mrb[102].mxu0 }
0x2cda   :  { %v4967_v20 = vpop.f32.mrb[103].mxu0 }
0x2cdb   :  { %6484 = vst [vmem:[%s10879_s8 + $0x170] sm:$0xff] %v4976_v18  ;;  %v4977_v58 = vadd.f32 %v10368_v19, %v4967_v20  ;;  %4999 = vmax.xlane.f32.xlu1 %v4976_v18 }
0x2cdd   :  { %6485 = vst [vmem:[%s10879_s8 + $0x178] sm:$0xff] %v4977_v58  ;;  %5001 = vmax.xlane.f32.xlu0 %v4977_v58 }
0x2d50   :  { %v4988_v26 = vpop.xlane.xlu0 %4987 }
0x2d51   :  { %vm5003_vm12 = vcmp.eq.f32.partialorder %v4970_v10, %v4988_v26 }
0x2d52   :  { %v5011_v17 = vsel %vm5003_vm12, %v9125_v1, 2147483647  ;;  %v4990_v50 = vpop.xlane.xlu1 %4989 }
0x2d53   :  { %v5020_v29 = vshra.s32 %v5011_v17, 16  ;;  %vm5004_vm13 = vcmp.eq.f32.partialorder %v4971_v55, %v4990_v50 }
0x2d54   :  { %v5012_v60 = vsel %vm5004_vm13, %v9125_v1, 2147483647 }
0x2d55   :  { %v5034_v15 = vshra.s32 %v5012_v60, 16  ;;  %v5022_v12 = vcvt.s32.f32 %v5020_v29  ;;  %v5033_v20 = vand.u32 65535, %v5012_v60 }
0x2d57   :  { %5023 = vmin.xlane.f32.xlu1 %v5022_v12  ;;  %v5036_v37 = vcvt.s32.f32 %v5034_v15  ;;  %v5035_v15 = vcvt.s32.f32 %v5033_v20 }
0x2d58   :  { %v4992_v25 = vpop.xlane.xlu0 %4991 }
0x2d59   :  { %vm5005_vm14 = vcmp.eq.f32.partialorder %v4972_v39, %v4992_v25  ;;  %5037 = vmin.xlane.f32.xlu0 %v5036_v37 }
0x2d5a   :  { %v5013_v23 = vsel %vm5005_vm14, %v9125_v1, 2147483647 }
0x2d5b   :  { %v5048_v5 = vshra.s32 %v5013_v23, 16  ;;  %v5047_v25 = vand.u32 65535, %v5013_v23 }
0x2d5c   :  { %v4994_v9 = vpop.xlane.xlu0 %4993 }
0x2d5d   :  { %vm5006_vm15 = vcmp.eq.f32.partialorder %v4973_v54, %v4994_v9  ;;  %v5050_v14 = vcvt.s32.f32 %v5048_v5 }
0x2d5e   :  { %v5014_v27 = vsel %vm5006_vm15, %v9125_v1, 2147483647 }
0x2d5f   :  { %v5062_v11 = vshra.s32 %v5014_v27, 16  ;;  %5051 = vmin.xlane.f32.xlu1 %v5050_v14 }
0x2d60   :  { %v4996_v43 = vpop.xlane.xlu1 %4995 }
0x2d61   :  { %v5064_v0 = vcvt.s32.f32 %v5062_v11  ;;  %vm5007_vm1 = vcmp.eq.f32.partialorder %v4974_v4, %v4996_v43  ;;  %v5049_v11 = vcvt.s32.f32 %v5047_v25 }
0x2d62   :  { %v5015_v59 = vsel %vm5007_vm1, %v9125_v1, 2147483647  ;;  %v4998_v61 = vpop.xlane.xlu0 %4997 }
0x2d63   :  { %5065 = vmin.xlane.f32.xlu0 %v5064_v0  ;;  %v5076_v63 = vshra.s32 %v5015_v59, 16  ;;  %vm5008_vm2 = vcmp.eq.f32.partialorder %v4975_v24, %v4998_v61  ;;  %v5019_v24 = vand.u32 65535, %v5011_v17 }
0x2d64   :  { %v5016_v36 = vsel %vm5008_vm2, %v9125_v1, 2147483647 }
0x2d65   :  { %v5090_v10 = vshra.s32 %v5016_v36, 16  ;;  %v5078_v41 = vcvt.s32.f32 %v5076_v63  ;;  %v5021_v50 = vcvt.s32.f32 %v5019_v24  ;;  %v5075_v63 = vand.u32 65535, %v5015_v59 }
0x2d67   :  { %v5092_v55 = vcvt.s32.f32 %v5090_v10  ;;  %5079 = vmin.xlane.f32.xlu1 %v5078_v41 }
0x2d68   :  { %v5000_v31 = vpop.xlane.xlu1 %4999 }
0x2d69   :  { %vm5009_vm3 = vcmp.eq.f32.partialorder %v4976_v18, %v5000_v31  ;;  %5093 = vmin.xlane.f32.xlu0 %v5092_v55  ;;  %v5077_v31 = vcvt.s32.f32 %v5075_v63 }
0x2d6a   :  { %v5017_v39 = vsel %vm5009_vm3, %v9125_v1, 2147483647  ;;  %v5002_v35 = vpop.xlane.xlu0 %5001 }
0x2d6b   :  { %v5104_v54 = vshra.s32 %v5017_v39, 16  ;;  %vm5010_vm4 = vcmp.eq.f32.partialorder %v4977_v58, %v5002_v35  ;;  %v5061_v58 = vand.u32 65535, %v5014_v27  ;;  %v5103_v27 = vand.u32 65535, %v5017_v39 }
0x2d6c   :  { %v5018_v6 = vsel %vm5010_vm4, %v9125_v1, 2147483647 }
0x2d6d   :  { %v5118_v4 = vshra.s32 %v5018_v6, 16  ;;  %v5106_v7 = vcvt.s32.f32 %v5104_v54  ;;  %v5063_v17 = vcvt.s32.f32 %v5061_v58  ;;  %v5105_v24 = vcvt.s32.f32 %v5103_v27 }
0x2d6f   :  { %v5120_v22 = vcvt.s32.f32 %v5118_v4  ;;  %5107 = vmin.xlane.f32.xlu1 %v5106_v7 }
0x2d71   :  { %5121 = vmin.xlane.f32.xlu0 %v5120_v22 }
0x2de4   :  { %v5024_v26 = vpop.xlane.xlu1 %5023 }
0x2de5   :  { %vm5025_vm5 = vcmp.eq.f32.partialorder %v5022_v12, %v5024_v26  ;;  %v5089_v12 = vand.u32 65535, %v5016_v36 }
0x2de6   :  { %v5038_v29 = vpop.xlane.xlu0 %5037  ;;  %v5026_v18 = vsel %vm5025_vm5, %v5021_v50, inf }
0x2de7   :  { %vm5039_vm6 = vcmp.eq.f32.partialorder %v5036_v37, %v5038_v29  ;;  %5027 = vmin.xlane.f32.xlu1 %v5026_v18  ;;  %v5091_v37 = vcvt.s32.f32 %v5089_v12  ;;  %v5044_v50 = vcvt.f32.s32 %v5038_v29 }
0x2de8   :  { %v5040_v5 = vsel %vm5039_vm6, %v5035_v15, inf }
0x2de9   :  { %5041 = vmin.xlane.f32.xlu0 %v5040_v5  ;;  %v5045_v39 = vshll.u32 %v5044_v50, 16 }
0x2dec   :  { %v5052_v9 = vpop.xlane.xlu1 %5051 }
0x2ded   :  { %vm5053_vm7 = vcmp.eq.f32.partialorder %v5050_v14, %v5052_v9  ;;  %v5117_v14 = vand.u32 65535, %v5018_v6 }
0x2dee   :  { %v5054_v43 = vsel %vm5053_vm7, %v5049_v11, inf  ;;  %v5058_v11 = vcvt.f32.s32 %v5052_v9 }
0x2def   :  { %5055 = vmin.xlane.f32.xlu1 %v5054_v43 }
0x2df0   :  { %v5066_v61 = vpop.xlane.xlu0 %5065 }
0x2df1   :  { %vm5067_vm8 = vcmp.eq.f32.partialorder %v5064_v0, %v5066_v61  ;;  %v5119_v0 = vcvt.s32.f32 %v5117_v14 }
0x2df2   :  { %v5068_v60 = vsel %vm5067_vm8, %v5063_v17, inf }
0x2df3   :  { %5069 = vmin.xlane.f32.xlu0 %v5068_v60 }
0x2df4   :  { %v5080_v10 = vpop.xlane.xlu1 %5079 }
0x2df5   :  { %vm5081_vm9 = vcmp.eq.f32.partialorder %v5078_v41, %v5080_v10  ;;  %v5030_v41 = vcvt.f32.s32 %v5024_v26  ;;  %v5059_v26 = vshll.u32 %v5058_v11, 16  ;;  %v6504_v11 = vld [vmem:[%s10873_s2 + $0x148] sm:$0xff] }
0x2df6   :  { %v5094_v23 = vpop.xlane.xlu0 %5093  ;;  %v5082_v35 = vsel %vm5081_vm9, %v5077_v31, inf  ;;  %v5086_v31 = vcvt.f32.s32 %v5080_v10 }
0x2df7   :  { %vm5095_vm10 = vcmp.eq.f32.partialorder %v5092_v55, %v5094_v23  ;;  %5083 = vmin.xlane.f32.xlu1 %v5082_v35  ;;  %v5031_v15 = vshll.u32 %v5030_v41, 16  ;;  %v5100_v9 = vcvt.f32.s32 %v5094_v23 }
0x2df8   :  { %v5096_v54 = vsel %vm5095_vm10, %v5091_v37, inf }
0x2df9   :  { %5097 = vmin.xlane.f32.xlu0 %v5096_v54  ;;  %v5101_v54 = vshll.u32 %v5100_v9, 16 }
0x2dfc   :  { %v5108_v4 = vpop.xlane.xlu1 %5107 }
0x2dfd   :  { %vm5109_vm11 = vcmp.eq.f32.partialorder %v5106_v7, %v5108_v4  ;;  %v5114_v10 = vcvt.f32.s32 %v5108_v4 }
0x2dfe   :  { %v5122_v20 = vpop.xlane.xlu0 %5121  ;;  %v5110_v59 = vsel %vm5109_vm11, %v5105_v24, inf }
0x2dff   :  { %vm5123_vm12 = vcmp.eq.f32.partialorder %v5120_v22, %v5122_v20  ;;  %5111 = vmin.xlane.f32.xlu1 %v5110_v59  ;;  %v5072_v22 = vcvt.f32.s32 %v5066_v61  ;;  %v5087_v61 = vshll.u32 %v5086_v31, 16  ;;  %v5128_v23 = vcvt.f32.s32 %v5122_v20 }
0x2e00   :  { %v5124_v36 = vsel %vm5123_vm12, %v5119_v0, inf }
0x2e01   :  { %5125 = vmin.xlane.f32.xlu0 %v5124_v36  ;;  %v5073_v17 = vshll.u32 %v5072_v22, 16  ;;  %v5129_v4 = vshll.u32 %v5128_v23, 16 }
0x2e74   :  { %v5028_v18 = vpop.xlane.xlu1 %5027 }
0x2e75   :  { %v5029_v55 = vcvt.f32.s32 %v5028_v18 }
0x2e76   :  { %v5042_v25 = vpop.xlane.xlu0 %5041 }
0x2e77   :  { %v5032_v5 = vadd.s32 %v5031_v15, %v5029_v55  ;;  %v5043_v58 = vcvt.f32.s32 %v5042_v25  ;;  %v6503_v15 = vld [vmem:[%s10873_s2 + $0x140] sm:$0xff] }
0x2e79   :  { %v5046_v6 = vadd.s32 %v5045_v39, %v5043_v58  ;;  %vm5131_vm13 = vcmp.eq.s32.totalorder %v9125_v1, %v5032_v5  ;;  %v6506_v39 = vld [vmem:[%s10873_s2 + $0x158] sm:$0xff] }
0x2e7b   :  { %vm5132_vm14 = vcmp.eq.s32.totalorder %v9125_v1, %v5046_v6 }
0x2e7c   :  { %v5056_v7 = vpop.xlane.xlu1 %5055  ;;  %vm6494_vm15 = vmpackc.low %vm5132_vm14, %vm5131_vm13 }
0x2e7d   :  { %v5057_v43 = vcvt.f32.s32 %v5056_v7  ;;  %6886 = vmatprep.mubr.msk.bf16.mxu1 %vm6494_vm15, %v7889_v57 }
0x2e7f   :  { %v5060_v60 = vadd.s32 %v5059_v26, %v5057_v43 }
0x2e80   :  { %v5070_v29 = vpop.xlane.xlu0 %5069 }
0x2e81   :  { %v5071_v63 = vcvt.f32.s32 %v5070_v29  ;;  %vm5133_vm1 = vcmp.eq.s32.totalorder %v9125_v1, %v5060_v60 }
0x2e83   :  { %v5074_v12 = vadd.s32 %v5073_v17, %v5071_v63 }
0x2e84   :  { %v5084_v37 = vpop.xlane.xlu1 %5083 }
0x2e85   :  { %vm5134_vm2 = vcmp.eq.s32.totalorder %v9125_v1, %v5074_v12  ;;  %v5085_v35 = vcvt.f32.s32 %v5084_v37 }
0x2e86   :  { %vm6496_vm3 = vmpackc.low %vm5134_vm2, %vm5133_vm1  ;;  %v5098_v27 = vpop.xlane.xlu0 %5097 }
0x2e87   :  { %6887 = vmatmul.mubr.msk.bf16.vlgmr.msra.gmra.mrb[80].mxu1 %vm6496_vm3, %v7889_v57  ;;  %v5088_v14 = vadd.s32 %v5087_v61, %v5085_v35  ;;  %v5099_v24 = vcvt.f32.s32 %v5098_v27  ;;  %v6510_v61 = vld [vmem:[%s10873_s2 + $0x178] sm:$0xff] }
0x2e88   :  { %6895 = vmatpush3.bf16.msra.mxu1 %v10131_v51  ;;  %v5115_v51 = vshll.u32 %v5114_v10, 16 }
0x2e89   :  { %6896 = vmatprep.subr.bf16.mxu1 %v10137_v34  ;;  %v5102_v0 = vadd.s32 %v5101_v54, %v5099_v24  ;;  %vm5135_vm4 = vcmp.eq.s32.totalorder %v9125_v1, %v5088_v14 }
0x2e8b   :  { %vm5136_vm5 = vcmp.eq.s32.totalorder %v9125_v1, %v5102_v0  ;;  %v6508_v0 = vld [vmem:[%s10873_s2 + $0x168] sm:$0xff] }
0x2e8c   :  { %6897 = vmatpush3.bf16.msra.mxu1 %v10137_v34  ;;  %v5112_v59 = vpop.xlane.xlu1 %5111  ;;  %vm6498_vm6 = vmpackc.low %vm5136_vm5, %vm5135_vm4 }
0x2e8d   :  { %6898 = vmatprep.subr.bf16.mxu1 %v10144_v28  ;;  %v5113_v36 = vcvt.f32.s32 %v5112_v59  ;;  %6890 = vmatprep.mubr.msk.bf16.mxu1 %vm6498_vm6, %v7889_v57 }
0x2e8e   :  { %v5126_v41 = vpop.xlane.xlu0 %5125 }
0x2e8f   :  { %v5116_v34 = vadd.s32 %v5115_v51, %v5113_v36  ;;  %v5127_v50 = vcvt.f32.s32 %v5126_v41 }
0x2e90   :  { %6899 = vmatpush3.bf16.msra.mxu1 %v10144_v28  ;;  %v5236_v28 = vstv %s5235_s11 }
0x2e91   :  { %6900 = vmatprep.subr.bf16.mxu1 %v10155_v42  ;;  %v5130_v18 = vadd.s32 %v5129_v4, %v5127_v50  ;;  %vm5137_vm7 = vcmp.eq.s32.totalorder %v9125_v1, %v5116_v34  ;;  %vm10454_vm10 = vcmp.eq.s32.totalorder %v5236_v28, 1 }
0x2e93   :  { %vm5138_vm8 = vcmp.eq.s32.totalorder %v9125_v1, %v5130_v18 }
0x2e94   :  { %6901 = vmatpush3.bf16.msra.mxu1 %v10155_v42  ;;  %vm6500_vm9 = vmpackc.low %vm5138_vm8, %vm5137_vm7 }
0x2e95   :  { %6902 = vmatprep.subr.bf16.mxu1 %v10162_v32  ;;  %6891 = vmatmul.mubr.msk.bf16.gmra.mrb[84].mxu1 %vm6500_vm9, %v7889_v57 }
0x2e98   :  { %6903 = vmatpush3.bf16.msra.mxu1 %v10162_v32  ;;  %v6505_v32 = vld [vmem:[%s10873_s2 + $0x150] sm:$0xff] }
0x2e99   :  { %6904 = vmatprep.subr.bf16.mxu1 %v10172_v8 }
0x2e9c   :  { %6905 = vmatpush3.bf16.msra.mxu1 %v10172_v8  ;;  %v10461_v8 = vld [vmem:[%s10877_s6] ss:$0 sm:$0xff] }
0x2e9d   :  { %6906 = vmatprep.subr.bf16.mxu1 %v10179_v21 }
0x2ea0   :  { %6907 = vmatpush3.bf16.msra.mxu1 %v10179_v21 }
0x2ea1   :  { %6908 = vmatprep.subr.bf16.mxu1 %v10186_v62 }
0x2ea4   :  { %6909 = vmatpush3.bf16.msra.mxu1 %v10186_v62 }
0x2f5a   :  { %v6888_v42 = vpop.f32.mrb[80].mxu1 }
0x2f5b   :  { %v5202_v21 = vadd.f32 %v10461_v8, %v6888_v42  ;;  %v5193_v62 = vpop.f32.mrb[81].mxu1 }
0x2f5c   :  { %v5194_v55 = vadd.f32 %v10461_v8, %v5193_v62  ;;  %v6889_v25 = vpop.f32.mrb[82].mxu1 }
0x2f5d   :  { %v5240_v5 = vsel %vm10454_vm10, %v6505_v32, %v5202_v21  ;;  %v5205_v58 = vadd.f32 %v10461_v8, %v6889_v25  ;;  %v5196_v6 = vpop.f32.mrb[83].mxu1 }
0x2f5e   :  { %v5248_v7 = vadd.f32 %v5240_v5, %v10380_v16  ;;  %v5238_v22 = vsel %vm10454_vm10, %v6503_v15, %v5194_v55  ;;  %v5197_v43 = vadd.f32 %v10461_v8, %v5196_v6 }
0x2f5f   :  { %v5246_v26 = vadd.f32 %v5238_v22, %v10363_v33  ;;  %v5241_v29 = vsel %vm10454_vm10, %v6506_v39, %v5205_v58  ;;  %v6509_v33 = vld [vmem:[%s10873_s2 + $0x170] sm:$0xff] }
0x2f60   :  { %v5249_v17 = vadd.f32 %v5241_v29, %v10383_v30  ;;  %v5239_v60 = vsel %vm10454_vm10, %v6504_v11, %v5197_v43  ;;  %v6507_v30 = vld [vmem:[%s10873_s2 + $0x160] sm:$0xff] }
0x2f61   :  { %7708 = vtanh.f32 %v5246_v26  ;;  %v5247_v63 = vadd.f32 %v5239_v60, %v10371_v52  ;;  %v6511_v28 = vmul.f32 -1.442695, %v5246_v26 }
0x2f62   :  { %7710 = vtanh.f32 %v5248_v7  ;;  %v6514_v42 = vmul.f32 -1.442695, %v5249_v17 }
0x2f63   :  { %7712 = vtanh.f32 %v5247_v63  ;;  %v6512_v32 = vmul.f32 -1.442695, %v5247_v63 }
0x2f64   :  { %7714 = vtanh.f32 %v5249_v17 }
0x2f68   :  { %v6892_v12 = vpop.f32.mrb[84].mxu1 }
0x2f69   :  { %v5218_v31 = vadd.f32 %v10461_v8, %v6892_v12  ;;  %v5209_v9 = vpop.f32.mrb[85].mxu1 }
0x2f6a   :  { %v5210_v52 = vadd.f32 %v10461_v8, %v5209_v9  ;;  %v6893_v37 = vpop.f32.mrb[86].mxu1 }
0x2f6b   :  { %v7709_v16 = vpop.eup %7708  ;;  %v5244_v35 = vsel %vm10454_vm10, %v6509_v33, %v5218_v31  ;;  %v5221_v27 = vadd.f32 %v10461_v8, %v6893_v37  ;;  %v5212_v54 = vpop.f32.mrb[87].mxu1 }
0x2f6c   :  { %5326 = vrot.lane.b32.xlu1 %v7709_v16, %s7887_s20  ;;  %v7711_v14 = vpop.eup %7710  ;;  %v5252_v24 = vadd.f32 %v5244_v35, %v10404_v53  ;;  %v5242_v10 = vsel %vm10454_vm10, %v6507_v30, %v5210_v52  ;;  %v5213_v51 = vadd.f32 %v10461_v8, %v5212_v54 }
0x2f6d   :  { %v5250_v23 = vadd.f32 %v5242_v10, %v10392_v13  ;;  %v5245_v59 = vsel %vm10454_vm10, %v6510_v61, %v5221_v27  ;;  %v7713_v36 = vpop.eup %7712 }
0x2f6e   :  { %v5253_v41 = vadd.f32 %v5245_v59, %v10407_v44  ;;  %v5243_v53 = vsel %vm10454_vm10, %v6508_v0, %v5213_v51  ;;  %5328 = vrot.lane.b32.xlu0 %v7713_v36, %s7887_s20  ;;  %v7715_v4 = vpop.eup %7714  ;;  %v6517_v6 = vmul.f32 -1.442695, %v5252_v24 }
0x2f6f   :  { %v5251_v34 = vadd.f32 %v5243_v53, %v10395_v49  ;;  %7716 = vtanh.f32 %v5250_v23  ;;  %v6513_v49 = vmul.f32 -1.442695, %v5248_v7  ;;  %v6515_v39 = vmul.f32 -1.442695, %v5250_v23 }
0x2f70   :  { %5330 = vrot.lane.b32.xlu1 %v7711_v14, %s7887_s20  ;;  %7718 = vtanh.f32 %v5252_v24  ;;  %v6518_v7 = vmul.f32 -1.442695, %v5253_v41 }
0x2f71   :  { %7720 = vtanh.f32 %v5251_v34  ;;  %v6516_v11 = vmul.f32 -1.442695, %v5251_v34 }
0x2f72   :  { %7722 = vtanh.f32 %v5253_v41 }
0x2f73   :  { %7724 = vpow2.f32 %v6511_v28 }
0x2f74   :  { %5332 = vrot.lane.b32.xlu1 %v7715_v4, %s7887_s20  ;;  %7726 = vpow2.f32 %v6513_v49 }
0x2f75   :  { %7728 = vpow2.f32 %v6514_v42 }
0x2f76   :  { %7730 = vpow2.f32 %v6512_v32 }
0x2f79   :  { %v7717_v13 = vpop.eup %7716 }
0x2f7a   :  { %5334 = vrot.lane.b32.xlu0 %v7717_v13, %s7887_s20  ;;  %v7719_v50 = vpop.eup %7718 }
0x2f7b   :  { %v7721_v18 = vpop.eup %7720 }
0x2f7c   :  { %5336 = vrot.lane.b32.xlu1 %v7721_v18, %s7887_s20  ;;  %v7723_v44 = vpop.eup %7722 }
0x2f7d   :  { %v7725_v20 = vpop.eup %7724 }
0x2f7e   :  { %5338 = vrot.lane.b32.xlu0 %v7719_v50, %s7887_s20  ;;  %v7727_v21 = vpop.eup %7726  ;;  %v5278_v62 = vadd.f32 1.0, %v7725_v20 }
0x2f7f   :  { %v7729_v15 = vpop.eup %7728  ;;  %v5280_v25 = vadd.f32 1.0, %v7727_v21 }
0x2f80   :  { %5340 = vrot.lane.b32.xlu1 %v7723_v44, %s7887_s20  ;;  %v7731_v55 = vpop.eup %7730  ;;  %7732 = vrcp.f32 %v5278_v62  ;;  %v5281_v5 = vadd.f32 1.0, %v7729_v15 }
0x2f81   :  { %v5279_v58 = vadd.f32 1.0, %v7731_v55  ;;  %7734 = vrcp.f32 %v5280_v25 }
0x2f82   :  { %7736 = vpow2.f32 %v6515_v39 }
0x2f83   :  { %7738 = vrcp.f32 %v5281_v5 }
0x2f84   :  { %7740 = vrcp.f32 %v5279_v58 }
0x2f85   :  { %7742 = vpow2.f32 %v6517_v6 }
0x2f86   :  { %7744 = vpow2.f32 %v6516_v11 }
0x2f87   :  { %7746 = vpow2.f32 %v6518_v7 }
0x2f8a   :  { %v10524_v22 = vpop.eup %7732 }
0x2f8b   :  { %v10527_v29 = vpop.eup %7734  ;;  %v5310_v50 = vmul.f32 %v10524_v22, %v10293_v48 }
0x2f8c   :  { %v7737_v17 = vpop.eup %7736  ;;  %v5312_v28 = vmul.f32 %v10527_v29, %v10300_v45 }
0x2f8d   :  { %v10530_v63 = vpop.eup %7738  ;;  %v5282_v9 = vadd.f32 1.0, %v7737_v17 }
0x2f8e   :  { %v10533_v12 = vpop.eup %7740  ;;  %v5313_v48 = vmul.f32 %v10530_v63, %v10308_v46 }
0x2f8f   :  { %v7743_v31 = vpop.eup %7742  ;;  %7748 = vrcp.f32 %v5282_v9  ;;  %v5311_v42 = vmul.f32 %v10533_v12, %v10302_v56 }
0x2f90   :  { %v7745_v52 = vpop.eup %7744  ;;  %v5284_v35 = vadd.f32 1.0, %v7743_v31 }
0x2f91   :  { %v5283_v27 = vadd.f32 1.0, %v7745_v52  ;;  %v7747_v54 = vpop.eup %7746 }
0x2f92   :  { %7750 = vrcp.f32 %v5284_v35  ;;  %v5285_v14 = vadd.f32 1.0, %v7747_v54 }
0x2f93   :  { %7752 = vrcp.f32 %v5283_v27 }
0x2f94   :  { %7754 = vrcp.f32 %v5285_v14 }
0x2f99   :  { %v10540_v24 = vpop.eup %7748 }
0x2f9a   :  { %v5314_v25 = vmul.f32 %v10540_v24, %v10316_v47 }
0x2f9c   :  { %v10543_v23 = vpop.eup %7750 }
0x2f9d   :  { %v10546_v59 = vpop.eup %7752  ;;  %v5316_v6 = vmul.f32 %v10543_v23, %v10326_v2 }
0x2f9e   :  { %v10552_v4 = vpop.eup %7754  ;;  %v5315_v58 = vmul.f32 %v10546_v59, %v10324_v38 }
0x2fde   :  { %v5327_v43 = vpop.permute.xlu1 %5326 }
0x2fdf   :  { %v5350_v26 = vmul.f32 %v10524_v22, %v5327_v43 }
0x2fe0   :  { %v5329_v33 = vpop.permute.xlu0 %5328 }
0x2fe1   :  { %5366 = vrot.lane.b32.xlu0 %v5350_v26, %s7887_s20  ;;  %v5351_v30 = vmul.f32 %v10533_v12, %v5329_v33  ;;  %v5317_v26 = vmul.f32 %v10552_v4, %v10332_v40 }
0x2fe2   :  { %v5331_v60 = vpop.permute.xlu1 %5330 }
0x2fe3   :  { %v5352_v16 = vmul.f32 %v10527_v29, %v5331_v60  ;;  %5368 = vrot.lane.b32.xlu1 %v5351_v30, %s7887_s20 }
0x2fe5   :  { %5370 = vrot.lane.b32.xlu0 %v5352_v16, %s7887_s20 }
0x2fe6   :  { %v5333_v37 = vpop.permute.xlu1 %5332 }
0x2fe7   :  { %v5353_v61 = vmul.f32 %v10530_v63, %v5333_v37 }
0x2fe9   :  { %5372 = vrot.lane.b32.xlu1 %v5353_v61, %s7887_s20 }
0x2fec   :  { %v5335_v10 = vpop.permute.xlu0 %5334 }
0x2fed   :  { %v5354_v0 = vmul.f32 %v10540_v24, %v5335_v10 }
0x2fee   :  { %v5337_v51 = vpop.permute.xlu1 %5336 }
0x2fef   :  { %5374 = vrot.lane.b32.xlu0 %v5354_v0, %s7887_s20  ;;  %v5355_v41 = vmul.f32 %v10546_v59, %v5337_v51 }
0x2ff0   :  { %v5339_v36 = vpop.permute.xlu0 %5338 }
0x2ff1   :  { %v5356_v53 = vmul.f32 %v10543_v23, %v5339_v36  ;;  %5376 = vrot.lane.b32.xlu1 %v5355_v41, %s7887_s20 }
0x2ff2   :  { %v5341_v34 = vpop.permute.xlu1 %5340 }
0x2ff3   :  { %5378 = vrot.lane.b32.xlu0 %v5356_v53, %s7887_s20  ;;  %v5357_v13 = vmul.f32 %v10552_v4, %v5341_v34 }
0x2ff5   :  { %5380 = vrot.lane.b32.xlu1 %v5357_v13, %s7887_s20 }
0x3053   :  { %v5367_v18 = vpop.permute.xlu0 %5366 }
0x3054   :  { %v10558_v44 = vadd.f32 %v5367_v18, %v5310_v50 }
0x3055   :  { %v5369_v20 = vpop.permute.xlu1 %5368 }
0x3056   :  { %7756 = vtanh.f32 %v10558_v44  ;;  %v10567_v21 = vadd.f32 %v5369_v20, %v5311_v42 }
0x3057   :  { %v5371_v49 = vpop.permute.xlu0 %5370 }
0x3058   :  { %v10565_v32 = vadd.f32 %v5371_v49, %v5312_v28 }
0x305a   :  { %7758 = vtanh.f32 %v10565_v32 }
0x305b   :  { %7760 = vtanh.f32 %v10567_v21  ;;  %v5373_v62 = vpop.permute.xlu1 %5372 }
0x305c   :  { %v10573_v15 = vadd.f32 %v5373_v62, %v5313_v48 }
0x305e   :  { %7762 = vtanh.f32 %v10573_v15 }
0x3060   :  { %v7757_v45 = vpop.eup %7756 }
0x3061   :  { %5414 = vrot.lane.b32.xlu0 %v7757_v45, %s7887_s20  ;;  %v5375_v39 = vpop.permute.xlu0 %5374 }
0x3062   :  { %v10581_v5 = vadd.f32 %v5375_v39, %v5314_v25 }
0x3063   :  { %v5377_v11 = vpop.permute.xlu1 %5376 }
0x3064   :  { %v7759_v56 = vpop.eup %7758  ;;  %7764 = vtanh.f32 %v10581_v5  ;;  %v10589_v43 = vadd.f32 %v5377_v11, %v5315_v58 }
0x3065   :  { %5418 = vrot.lane.b32.xlu0 %v7759_v56, %s7887_s20  ;;  %v7761_v55 = vpop.eup %7760  ;;  %v5379_v7 = vpop.permute.xlu0 %5378 }
0x3066   :  { %5416 = vrot.lane.b32.xlu1 %v7761_v55, %s7887_s20  ;;  %v10591_v47 = vadd.f32 %v5379_v7, %v5316_v6  ;;  %7766 = vtanh.f32 %v10589_v43 }
0x3067   :  { %v5381_v17 = vpop.permute.xlu1 %5380 }
0x3068   :  { %v7763_v46 = vpop.eup %7762  ;;  %7768 = vtanh.f32 %v10591_v47  ;;  %v10597_v38 = vadd.f32 %v5381_v17, %v5317_v26 }
0x306a   :  { %5420 = vrot.lane.b32.xlu1 %v7763_v46, %s7887_s20  ;;  %7770 = vtanh.f32 %v10597_v38 }
0x306e   :  { %v7765_v2 = vpop.eup %7764 }
0x306f   :  { %5422 = vrot.lane.b32.xlu0 %v7765_v2, %s7887_s20 }
0x3070   :  { %v7767_v60 = vpop.eup %7766 }
0x3071   :  { %5424 = vrot.lane.b32.xlu1 %v7767_v60, %s7887_s20 }
0x3072   :  { %v7769_v16 = vpop.eup %7768 }
0x3073   :  { %5426 = vrot.lane.b32.xlu0 %v7769_v16, %s7887_s20 }
0x3074   :  { %v7771_v33 = vpop.eup %7770 }
0x3075   :  { %5428 = vrot.lane.b32.xlu1 %v7771_v33, %s7887_s20 }
0x30d3   :  { %v5415_v40 = vpop.permute.xlu0 %5414 }
0x30d4   :  { %v5438_v9 = vmul.f32 %v10524_v22, %v5415_v40 }
0x30d7   :  { %v5419_v52 = vpop.permute.xlu0 %5418 }
0x30d8   :  { %v5417_v31 = vpop.permute.xlu1 %5416  ;;  %v5440_v35 = vmul.f32 %v10527_v29, %v5419_v52 }
0x30d9   :  { %v5439_v30 = vmul.f32 %v10533_v12, %v5417_v31 }
0x30db   :  { %v5446_v37 = vpack.c.bf16 %v5439_v30, %v5438_v9 }
0x30dc   :  { %v5421_v61 = vpop.permute.xlu1 %5420 }
0x30dd   :  { %5454 = vrot.lane.b32.xlu0 %v5446_v37, %s7888_s23  ;;  %v5441_v27 = vmul.f32 %v10530_v63, %v5421_v61 }
0x30df   :  { %v5447_v54 = vpack.c.bf16 %v5441_v27, %v5440_v35 }
0x30e1   :  { %5456 = vrot.lane.b32.xlu1 %v5447_v54, %s7888_s23  ;;  %v5423_v14 = vpop.permute.xlu0 %5422 }
0x30e2   :  { %v5442_v0 = vmul.f32 %v10540_v24, %v5423_v14  ;;  %v7866_v24 = vld [vmem:[%s10875_s4] ss:$8 sps:$4 sm:$0xff]  }
0x30e3   :  { %v5425_v10 = vpop.permute.xlu1 %5424 }
0x30e4   :  { %v5443_v22 = vmul.f32 %v10546_v59, %v5425_v10  ;;  %v7868_v59 = vld [vmem:[%s10875_s4 + $0x10] ss:$8 sps:$4 sm:$0xff]  }
0x30e5   :  { %v5427_v51 = vpop.permute.xlu0 %5426 }
0x30e6   :  { %v5448_v12 = vpack.c.bf16 %v5443_v22, %v5442_v0  ;;  %v5444_v41 = vmul.f32 %v10543_v23, %v5427_v51  ;;  %v7867_v23 = vld [vmem:[%s10875_s4 + $0x14] ss:$8 sps:$4 sm:$0xff]  }
0x30e7   :  { %v5429_v36 = vpop.permute.xlu1 %5428 }
0x30e8   :  { %v5445_v29 = vmul.f32 %v10552_v4, %v5429_v36  ;;  %5458 = vrot.lane.b32.xlu0 %v5448_v12, %s7888_s23 }
0x30ea   :  { %v5449_v53 = vpack.c.bf16 %v5445_v29, %v5444_v41 }
0x30ec   :  { %5460 = vrot.lane.b32.xlu1 %v5449_v53, %s7888_s23 }
0x314f   :  { %v5455_v63 = vpop.permute.xlu0 %5454 }
0x3150   :  { %6519 = vmatmul.mubr.msk.bf16.vlgmr.msra.gmra.mrb[104].mxu0 %vm75_vm0, %v5455_v63 }
0x3151   :  { %5516 = vmatprep.mubr.bf16.mxu0 %v7886_v3  ;;  %6052 = vmatpush1.bf16.msra.mxu0 %v7866_v24 }
0x3152   :  { %6053 = vmatprep.subr.bf16.mxu0 %v7867_v23 }
0x3153   :  { %v5457_v4 = vpop.permute.xlu1 %5456 }
0x3155   :  { %6054 = vmatpush1.bf16.msra.mxu0 %v7868_v59 }
0x3158   :  { %6520 = vmatmul.mubr.msk.bf16.gmra.mrb[108].mxu0 %vm75_vm0, %v5457_v4 }
0x3159   :  { %5526 = vmatprep.mubr.bf16.mxu0 %v7886_v3 }
0x315a   :  { %v5459_v34 = vpop.permute.xlu0 %5458 }
0x315e   :  { %v5461_v13 = vpop.permute.xlu1 %5460 }
0x3160   :  { %6521 = vmatmul.mubr.msk.bf16.gmra.mrb[112].mxu0 %vm75_vm0, %v5459_v34 }
0x3161   :  { %5536 = vmatprep.mubr.bf16.mxu0 %v7886_v3 }
0x3168   :  { %6522 = vmatmul.mubr.msk.bf16.gmra.mrb[116].mxu0 %vm75_vm0, %v5461_v13 }
0x3169   :  { %6083 = vmatprep.mubr.bf16.mxu0 %v7886_v3 }
0x3223   :  { %v10633_v50 = vpop.f32.mrb[104].mxu0 }
0x3224   :  { %v5510_v18 = vpop.f32.mrb[105].mxu0 }
0x3225   :  { %v5547_v28 = vadd.f32 %v10368_v19, %v5510_v18  ;;  %v10636_v49 = vpop.f32.mrb[106].mxu0 }
0x3226   :  { %v5514_v42 = vpop.f32.mrb[107].mxu0 }
0x3227   :  { %6523 = vst [vmem:[%s10879_s8 + $0x180] sm:$0xff] %v5547_v28  ;;  %v5548_v20 = vadd.f32 %v10368_v19, %v5514_v42  ;;  %5564 = vmax.xlane.f32.xlu0 %v5547_v28 }
0x3229   :  { %6524 = vst [vmem:[%s10879_s8 + $0x188] sm:$0xff] %v5548_v20  ;;  %5566 = vmax.xlane.f32.xlu1 %v5548_v20 }
0x322b   :  { %v10645_v48 = vpop.f32.mrb[108].mxu0 }
0x322c   :  { %v5520_v62 = vpop.f32.mrb[109].mxu0 }
0x322d   :  { %v5549_v45 = vadd.f32 %v10368_v19, %v5520_v62  ;;  %v10648_v56 = vpop.f32.mrb[110].mxu0 }
0x322e   :  { %v5524_v55 = vpop.f32.mrb[111].mxu0 }
0x322f   :  { %6525 = vst [vmem:[%s10879_s8 + $0x190] sm:$0xff] %v5549_v45  ;;  %v5550_v25 = vadd.f32 %v10368_v19, %v5524_v55  ;;  %5568 = vmax.xlane.f32.xlu0 %v5549_v45 }
0x3231   :  { %6526 = vst [vmem:[%s10879_s8 + $0x198] sm:$0xff] %v5550_v25 }
0x3233   :  { %5570 = vmax.xlane.f32.xlu0 %v5550_v25  ;;  %v10657_v39 = vpop.f32.mrb[112].mxu0 }
0x3234   :  { %v5530_v46 = vpop.f32.mrb[113].mxu0 }
0x3235   :  { %v5551_v58 = vadd.f32 %v10368_v19, %v5530_v46  ;;  %v10660_v6 = vpop.f32.mrb[114].mxu0 }
0x3236   :  { %v5534_v11 = vpop.f32.mrb[115].mxu0 }
0x3237   :  { %6527 = vst [vmem:[%s10879_s8 + $0x1a0] sm:$0xff] %v5551_v58  ;;  %v5552_v7 = vadd.f32 %v10368_v19, %v5534_v11  ;;  %5572 = vmax.xlane.f32.xlu1 %v5551_v58 }
0x3239   :  { %6528 = vst [vmem:[%s10879_s8 + $0x1a8] sm:$0xff] %v5552_v7  ;;  %5574 = vmax.xlane.f32.xlu0 %v5552_v7 }
0x323b   :  { %v10669_v26 = vpop.f32.mrb[116].mxu0 }
0x323c   :  { %v5540_v17 = vpop.f32.mrb[117].mxu0 }
0x323d   :  { %v5553_v2 = vadd.f32 %v10368_v19, %v5540_v17  ;;  %v10672_v60 = vpop.f32.mrb[118].mxu0 }
0x323e   :  { %v5544_v16 = vpop.f32.mrb[119].mxu0 }
0x323f   :  { %6529 = vst [vmem:[%s10879_s8 + $0x1b0] sm:$0xff] %v5553_v2  ;;  %v5554_v33 = vadd.f32 %v10368_v19, %v5544_v16  ;;  %5576 = vmax.xlane.f32.xlu1 %v5553_v2 }
0x3241   :  { %6530 = vst [vmem:[%s10879_s8 + $0x1b8] sm:$0xff] %v5554_v33  ;;  %5578 = vmax.xlane.f32.xlu0 %v5554_v33 }
0x32b4   :  { %v5565_v40 = vpop.xlane.xlu0 %5564 }
0x32b5   :  { %vm5580_vm11 = vcmp.eq.f32.partialorder %v5547_v28, %v5565_v40 }
0x32b6   :  { %v5588_v31 = vsel %vm5580_vm11, %v9125_v1, 2147483647  ;;  %v5567_v9 = vpop.xlane.xlu1 %5566 }
0x32b7   :  { %v5597_v30 = vshra.s32 %v5588_v31, 16  ;;  %vm5581_vm12 = vcmp.eq.f32.partialorder %v5548_v20, %v5567_v9  ;;  %v5596_v62 = vand.u32 65535, %v5588_v31 }
0x32b8   :  { %v5589_v52 = vsel %vm5581_vm12, %v9125_v1, 2147483647 }
0x32b9   :  { %v5599_v37 = vcvt.s32.f32 %v5597_v30  ;;  %v5611_v61 = vshra.s32 %v5589_v52, 16  ;;  %v5598_v55 = vcvt.s32.f32 %v5596_v62 }
0x32bb   :  { %v5613_v35 = vcvt.s32.f32 %v5611_v61  ;;  %5600 = vmin.xlane.f32.xlu1 %v5599_v37 }
0x32bc   :  { %v5569_v19 = vpop.xlane.xlu0 %5568 }
0x32bd   :  { %vm5582_vm13 = vcmp.eq.f32.partialorder %v5549_v45, %v5569_v19  ;;  %5614 = vmin.xlane.f32.xlu0 %v5613_v35  ;;  %v5610_v45 = vand.u32 65535, %v5589_v52 }
0x32be   :  { %v5590_v27 = vsel %vm5582_vm13, %v9125_v1, 2147483647 }
0x32bf   :  { %v5625_v54 = vshra.s32 %v5590_v27, 16  ;;  %v5612_v46 = vcvt.s32.f32 %v5610_v45 }
0x32c0   :  { %v5571_v14 = vpop.xlane.xlu0 %5570 }
0x32c1   :  { %v5627_v10 = vcvt.s32.f32 %v5625_v54  ;;  %vm5583_vm14 = vcmp.eq.f32.partialorder %v5550_v25, %v5571_v14 }
0x32c2   :  { %v5591_v0 = vsel %vm5583_vm14, %v9125_v1, 2147483647 }
0x32c3   :  { %v5639_v22 = vshra.s32 %v5591_v0, 16  ;;  %5628 = vmin.xlane.f32.xlu1 %v5627_v10  ;;  %v5638_v16 = vand.u32 65535, %v5591_v0 }
0x32c4   :  { %v5573_v12 = vpop.xlane.xlu1 %5572 }
0x32c5   :  { %v5641_v51 = vcvt.s32.f32 %v5639_v22  ;;  %vm5584_vm15 = vcmp.eq.f32.partialorder %v5551_v58, %v5573_v12  ;;  %v5640_v9 = vcvt.s32.f32 %v5638_v16 }
0x32c6   :  { %v5592_v36 = vsel %vm5584_vm15, %v9125_v1, 2147483647  ;;  %v5575_v41 = vpop.xlane.xlu0 %5574 }
0x32c7   :  { %5642 = vmin.xlane.f32.xlu0 %v5641_v51  ;;  %v5653_v29 = vshra.s32 %v5592_v36, 16  ;;  %vm5585_vm1 = vcmp.eq.f32.partialorder %v5552_v7, %v5575_v41  ;;  %v5624_v7 = vand.u32 65535, %v5590_v27  ;;  %v5652_v52 = vand.u32 65535, %v5592_v36 }
0x32c8   :  { %v5593_v53 = vsel %vm5585_vm1, %v9125_v1, 2147483647 }
0x32c9   :  { %v5655_v63 = vcvt.s32.f32 %v5653_v29  ;;  %v5667_v24 = vshra.s32 %v5593_v53, 16  ;;  %v5654_v61 = vcvt.s32.f32 %v5652_v52 }
0x32cb   :  { %v5669_v23 = vcvt.s32.f32 %v5667_v24  ;;  %5656 = vmin.xlane.f32.xlu1 %v5655_v63 }
0x32cc   :  { %v5577_v59 = vpop.xlane.xlu1 %5576 }
0x32cd   :  { %vm5586_vm2 = vcmp.eq.f32.partialorder %v5553_v2, %v5577_v59  ;;  %5670 = vmin.xlane.f32.xlu0 %v5669_v23  ;;  %v5626_v2 = vcvt.s32.f32 %v5624_v7 }
0x32ce   :  { %v5594_v4 = vsel %vm5586_vm2, %v9125_v1, 2147483647  ;;  %v5579_v34 = vpop.xlane.xlu0 %5578 }
0x32cf   :  { %v5681_v13 = vshra.s32 %v5594_v4, 16  ;;  %vm5587_vm3 = vcmp.eq.f32.partialorder %v5554_v33, %v5579_v34  ;;  %v5680_v14 = vand.u32 65535, %v5594_v4 }
0x32d0   :  { %v5595_v18 = vsel %vm5587_vm3, %v9125_v1, 2147483647 }
0x32d1   :  { %v5683_v28 = vcvt.s32.f32 %v5681_v13  ;;  %v5695_v42 = vshra.s32 %v5595_v18, 16  ;;  %v5682_v22 = vcvt.s32.f32 %v5680_v14 }
0x32d3   :  { %v5697_v20 = vcvt.s32.f32 %v5695_v42  ;;  %5684 = vmin.xlane.f32.xlu1 %v5683_v28 }
0x32d5   :  { %5698 = vmin.xlane.f32.xlu0 %v5697_v20 }
0x3348   :  { %v5601_v25 = vpop.xlane.xlu1 %5600 }
0x3349   :  { %vm5602_vm4 = vcmp.eq.f32.partialorder %v5599_v37, %v5601_v25  ;;  %v5666_v37 = vand.u32 65535, %v5593_v53  ;;  %v5607_v53 = vcvt.f32.s32 %v5601_v25 }
0x334a   :  { %v5615_v58 = vpop.xlane.xlu0 %5614  ;;  %v5603_v11 = vsel %vm5602_vm4, %v5598_v55, inf }
0x334b   :  { %vm5616_vm5 = vcmp.eq.f32.partialorder %v5613_v35, %v5615_v58  ;;  %5604 = vmin.xlane.f32.xlu1 %v5603_v11  ;;  %v5668_v35 = vcvt.s32.f32 %v5666_v37  ;;  %v5608_v59 = vshll.u32 %v5607_v53, 16 }
0x334c   :  { %v5617_v17 = vsel %vm5616_vm5, %v5612_v46, inf }
0x334d   :  { %5618 = vmin.xlane.f32.xlu0 %v5617_v17 }
0x3350   :  { %v5629_v33 = vpop.xlane.xlu1 %5628 }
0x3351   :  { %vm5630_vm6 = vcmp.eq.f32.partialorder %v5627_v10, %v5629_v33  ;;  %v5694_v10 = vand.u32 65535, %v5595_v18  ;;  %v5635_v62 = vcvt.f32.s32 %v5629_v33 }
0x3352   :  { %v5631_v40 = vsel %vm5630_vm6, %v5626_v2, inf }
0x3353   :  { %5632 = vmin.xlane.f32.xlu1 %v5631_v40  ;;  %v5636_v55 = vshll.u32 %v5635_v62, 16 }
0x3354   :  { %v5643_v31 = vpop.xlane.xlu0 %5642 }
0x3355   :  { %vm5644_vm7 = vcmp.eq.f32.partialorder %v5641_v51, %v5643_v31  ;;  %v5696_v51 = vcvt.s32.f32 %v5694_v10 }
0x3356   :  { %v5645_v30 = vsel %vm5644_vm7, %v5640_v9, inf }
0x3357   :  { %5646 = vmin.xlane.f32.xlu0 %v5645_v30 }
0x3358   :  { %v5657_v19 = vpop.xlane.xlu1 %5656 }
0x3359   :  { %vm5658_vm8 = vcmp.eq.f32.partialorder %v5655_v63, %v5657_v19  ;;  %v5621_v63 = vcvt.f32.s32 %v5615_v58  ;;  %v5663_v17 = vcvt.f32.s32 %v5657_v19 }
0x335a   :  { %v5671_v27 = vpop.xlane.xlu0 %5670  ;;  %v5659_v54 = vsel %vm5658_vm8, %v5654_v61, inf }
0x335b   :  { %vm5672_vm9 = vcmp.eq.f32.partialorder %v5669_v23, %v5671_v27  ;;  %5660 = vmin.xlane.f32.xlu1 %v5659_v54  ;;  %v5622_v4 = vshll.u32 %v5621_v63, 16  ;;  %v5677_v2 = vcvt.f32.s32 %v5671_v27  ;;  %v5664_v33 = vshll.u32 %v5663_v17, 16  ;;  %v6555_v17 = vld [vmem:[%s10873_s2 + $0x1b8] sm:$0xff] }
0x335c   :  { %v5673_v0 = vsel %vm5672_vm9, %v5668_v35, inf }
0x335d   :  { %5674 = vmin.xlane.f32.xlu0 %v5673_v0 }
0x3360   :  { %v5685_v12 = vpop.xlane.xlu1 %5684 }
0x3361   :  { %vm5686_vm10 = vcmp.eq.f32.partialorder %v5683_v28, %v5685_v12  ;;  %v5691_v37 = vcvt.f32.s32 %v5685_v12  ;;  %v5813_v12 = vstv %s5812_s5 }
0x3362   :  { %v5699_v41 = vpop.xlane.xlu0 %5698  ;;  %v5687_v36 = vsel %vm5686_vm10, %v5682_v22, inf  ;;  %vm10704_vm9 = vcmp.eq.s32.totalorder %v5813_v12, 1 }
0x3363   :  { %vm5700_vm11 = vcmp.eq.f32.partialorder %v5697_v20, %v5699_v41  ;;  %5688 = vmin.xlane.f32.xlu1 %v5687_v36  ;;  %v5649_v20 = vcvt.f32.s32 %v5643_v31  ;;  %v5678_v31 = vshll.u32 %v5677_v2, 16  ;;  %v5705_v35 = vcvt.f32.s32 %v5699_v41  ;;  %v6550_v36 = vld [vmem:[%s10873_s2 + $0x190] sm:$0xff] }
0x3364   :  { %v5701_v29 = vsel %vm5700_vm11, %v5696_v51, inf  ;;  %v5692_v27 = vshll.u32 %v5691_v37, 16 }
0x3365   :  { %5702 = vmin.xlane.f32.xlu0 %v5701_v29  ;;  %v5650_v46 = vshll.u32 %v5649_v20, 16  ;;  %v5706_v0 = vshll.u32 %v5705_v35, 16 }
0x33d8   :  { %v5605_v24 = vpop.xlane.xlu1 %5604 }
0x33d9   :  { %v5606_v23 = vcvt.f32.s32 %v5605_v24 }
0x33da   :  { %v5619_v34 = vpop.xlane.xlu0 %5618 }
0x33db   :  { %v5609_v13 = vadd.s32 %v5608_v59, %v5606_v23  ;;  %v5620_v42 = vcvt.f32.s32 %v5619_v34  ;;  %v6551_v59 = vld [vmem:[%s10873_s2 + $0x198] sm:$0xff] }
0x33dd   :  { %v5623_v18 = vadd.s32 %v5622_v4, %v5620_v42  ;;  %vm5708_vm12 = vcmp.eq.s32.totalorder %v9125_v1, %v5609_v13  ;;  %v6549_v13 = vld [vmem:[%s10873_s2 + $0x188] sm:$0xff] }
0x33df   :  { %vm5709_vm13 = vcmp.eq.s32.totalorder %v9125_v1, %v5623_v18 }
0x33e0   :  { %v5633_v28 = vpop.xlane.xlu1 %5632  ;;  %vm6539_vm14 = vmpackc.low %vm5709_vm13, %vm5708_vm12 }
0x33e1   :  { %v5634_v45 = vcvt.f32.s32 %v5633_v28  ;;  %6910 = vmatprep.mubr.msk.bf16.mxu1 %vm6539_vm14, %v7889_v57 }
0x33e3   :  { %v5637_v58 = vadd.s32 %v5636_v55, %v5634_v45 }
0x33e4   :  { %v5647_v25 = vpop.xlane.xlu0 %5646 }
0x33e5   :  { %v5648_v11 = vcvt.f32.s32 %v5647_v25  ;;  %vm5710_vm15 = vcmp.eq.s32.totalorder %v9125_v1, %v5637_v58 }
0x33e7   :  { %v5651_v7 = vadd.s32 %v5650_v46, %v5648_v11 }
0x33e8   :  { %v5661_v16 = vpop.xlane.xlu1 %5660 }
0x33e9   :  { %vm5711_vm1 = vcmp.eq.s32.totalorder %v9125_v1, %v5651_v7  ;;  %v5662_v40 = vcvt.f32.s32 %v5661_v16 }
0x33ea   :  { %vm6541_vm2 = vmpackc.low %vm5711_vm1, %vm5710_vm15  ;;  %v5675_v9 = vpop.xlane.xlu0 %5674 }
0x33eb   :  { %6911 = vmatmul.mubr.msk.bf16.vlgmr.msra.gmra.mrb[88].mxu1 %vm6541_vm2, %v7889_v57  ;;  %v5665_v30 = vadd.s32 %v5664_v33, %v5662_v40  ;;  %v5676_v52 = vcvt.f32.s32 %v5675_v9 }
0x33ed   :  { %v5679_v61 = vadd.s32 %v5678_v31, %v5676_v52  ;;  %vm5712_vm3 = vcmp.eq.s32.totalorder %v9125_v1, %v5665_v30  ;;  %v6553_v30 = vld [vmem:[%s10873_s2 + $0x1a8] sm:$0xff] }
0x33ef   :  { %vm5713_vm4 = vcmp.eq.s32.totalorder %v9125_v1, %v5679_v61 }
0x33f0   :  { %v5689_v19 = vpop.xlane.xlu1 %5688  ;;  %vm6543_vm5 = vmpackc.low %vm5713_vm4, %vm5712_vm3 }
0x33f1   :  { %v5690_v54 = vcvt.f32.s32 %v5689_v19  ;;  %6914 = vmatprep.mubr.msk.bf16.mxu1 %vm6543_vm5, %v7889_v57 }
0x33f2   :  { %v5703_v14 = vpop.xlane.xlu0 %5702 }
0x33f3   :  { %v5693_v10 = vadd.s32 %v5692_v27, %v5690_v54  ;;  %v5704_v22 = vcvt.f32.s32 %v5703_v14 }
0x33f5   :  { %v5707_v51 = vadd.s32 %v5706_v0, %v5704_v22  ;;  %vm5714_vm6 = vcmp.eq.s32.totalorder %v9125_v1, %v5693_v10 }
0x33f7   :  { %vm5715_vm7 = vcmp.eq.s32.totalorder %v9125_v1, %v5707_v51  ;;  %v6548_v1 = vld [vmem:[%s10873_s2 + $0x180] sm:$0xff] }
0x33f8   :  { %vm6545_vm8 = vmpackc.low %vm5715_vm7, %vm5714_vm6 }
0x33f9   :  { %6915 = vmatmul.mubr.msk.bf16.gmra.mrb[92].mxu1 %vm6545_vm8, %v7889_v57 }
0x34be   :  { %v6912_v41 = vpop.f32.mrb[88].mxu1 }
0x34bf   :  { %v5779_v53 = vadd.f32 %v10461_v8, %v6912_v41  ;;  %v5770_v63 = vpop.f32.mrb[89].mxu1 }
0x34c0   :  { %v5771_v57 = vadd.f32 %v10461_v8, %v5770_v63  ;;  %v6913_v24 = vpop.f32.mrb[90].mxu1 }
0x34c1   :  { %v5817_v23 = vsel %vm10704_vm9, %v6550_v36, %v5779_v53  ;;  %v5782_v34 = vadd.f32 %v10461_v8, %v6913_v24  ;;  %v5773_v4 = vpop.f32.mrb[91].mxu1 }
0x34c2   :  { %v5825_v42 = vadd.f32 %v5817_v23, %v10645_v48  ;;  %v5815_v18 = vsel %vm10704_vm9, %v6548_v1, %v5771_v57  ;;  %v5774_v62 = vadd.f32 %v10461_v8, %v5773_v4 }
0x34c3   :  { %v5823_v28 = vadd.f32 %v5815_v18, %v10633_v50  ;;  %v5818_v20 = vsel %vm10704_vm9, %v6551_v59, %v5782_v34  ;;  %v6554_v50 = vld [vmem:[%s10873_s2 + $0x1b0] sm:$0xff] }
0x34c4   :  { %v5826_v45 = vadd.f32 %v5818_v20, %v10648_v56  ;;  %v5816_v55 = vsel %vm10704_vm9, %v6549_v13, %v5774_v62  ;;  %v6552_v56 = vld [vmem:[%s10873_s2 + $0x1a0] sm:$0xff] }
0x34c5   :  { %7772 = vtanh.f32 %v5823_v28  ;;  %v5824_v25 = vadd.f32 %v5816_v55, %v10636_v49  ;;  %v6556_v0 = vmul.f32 -1.442695, %v5823_v28 }
0x34c6   :  { %7774 = vtanh.f32 %v5825_v42  ;;  %v6559_v10 = vmul.f32 -1.442695, %v5826_v45 }
0x34c7   :  { %7776 = vtanh.f32 %v5824_v25  ;;  %v6557_v22 = vmul.f32 -1.442695, %v5824_v25 }
0x34c8   :  { %7778 = vtanh.f32 %v5826_v45 }
0x34cc   :  { %v6916_v46 = vpop.f32.mrb[92].mxu1 }
0x34cd   :  { %v5795_v58 = vadd.f32 %v10461_v8, %v6916_v46  ;;  %v5786_v11 = vpop.f32.mrb[93].mxu1 }
0x34ce   :  { %v5787_v49 = vadd.f32 %v10461_v8, %v5786_v11  ;;  %v6917_v7 = vpop.f32.mrb[94].mxu1 }
0x34cf   :  { %v7773_v48 = vpop.eup %7772  ;;  %v5821_v2 = vsel %vm10704_vm9, %v6554_v50, %v5795_v58  ;;  %v5798_v16 = vadd.f32 %v10461_v8, %v6917_v7  ;;  %v5789_v33 = vpop.f32.mrb[95].mxu1 }
0x34d0   :  { %5903 = vrot.lane.b32.xlu1 %v7773_v48, %s7887_s20  ;;  %v7775_v40 = vpop.eup %7774  ;;  %v5829_v9 = vadd.f32 %v5821_v2, %v10669_v26  ;;  %v5819_v31 = vsel %vm10704_vm9, %v6552_v56, %v5787_v49  ;;  %v5790_v61 = vadd.f32 %v10461_v8, %v5789_v33 }
0x34d1   :  { %v5827_v52 = vadd.f32 %v5819_v31, %v10657_v39  ;;  %v5822_v37 = vsel %vm10704_vm9, %v6555_v17, %v5798_v16  ;;  %v7777_v35 = vpop.eup %7776 }
0x34d2   :  { %v5830_v19 = vadd.f32 %v5822_v37, %v10672_v60  ;;  %v5820_v26 = vsel %vm10704_vm9, %v6553_v30, %v5790_v61  ;;  %5905 = vrot.lane.b32.xlu0 %v7777_v35, %s7887_s20  ;;  %v7779_v27 = vpop.eup %7778  ;;  %v6562_v24 = vmul.f32 -1.442695, %v5829_v9 }
0x34d3   :  { %v5828_v54 = vadd.f32 %v5820_v26, %v10660_v6  ;;  %7780 = vtanh.f32 %v5827_v52  ;;  %v6558_v6 = vmul.f32 -1.442695, %v5825_v42  ;;  %v6560_v63 = vmul.f32 -1.442695, %v5827_v52 }
0x34d4   :  { %5907 = vrot.lane.b32.xlu1 %v7775_v40, %s7887_s20  ;;  %7782 = vtanh.f32 %v5829_v9  ;;  %v6563_v23 = vmul.f32 -1.442695, %v5830_v19 }
0x34d5   :  { %7784 = vtanh.f32 %v5828_v54  ;;  %v6561_v59 = vmul.f32 -1.442695, %v5828_v54 }
0x34d6   :  { %7786 = vtanh.f32 %v5830_v19 }
0x34d7   :  { %7788 = vpow2.f32 %v6556_v0 }
0x34d8   :  { %5909 = vrot.lane.b32.xlu1 %v7779_v27, %s7887_s20  ;;  %7790 = vpow2.f32 %v6558_v6 }
0x34d9   :  { %7792 = vpow2.f32 %v6559_v10 }
0x34da   :  { %7794 = vpow2.f32 %v6557_v22 }
0x34dd   :  { %v7781_v8 = vpop.eup %7780 }
0x34de   :  { %5911 = vrot.lane.b32.xlu0 %v7781_v8, %s7887_s20  ;;  %v7783_v39 = vpop.eup %7782 }
0x34df   :  { %v7785_v14 = vpop.eup %7784 }
0x34e0   :  { %5913 = vrot.lane.b32.xlu1 %v7785_v14, %s7887_s20  ;;  %v7787_v60 = vpop.eup %7786 }
0x34e1   :  { %v7789_v51 = vpop.eup %7788 }
0x34e2   :  { %5915 = vrot.lane.b32.xlu0 %v7783_v39, %s7887_s20  ;;  %v7791_v12 = vpop.eup %7790  ;;  %v5855_v41 = vadd.f32 1.0, %v7789_v51 }
0x34e3   :  { %v7793_v36 = vpop.eup %7792  ;;  %v5857_v53 = vadd.f32 1.0, %v7791_v12 }
0x34e4   :  { %5917 = vrot.lane.b32.xlu1 %v7787_v60, %s7887_s20  ;;  %v7795_v29 = vpop.eup %7794  ;;  %7796 = vrcp.f32 %v5855_v41  ;;  %v5858_v1 = vadd.f32 1.0, %v7793_v36 }
0x34e5   :  { %v5856_v57 = vadd.f32 1.0, %v7795_v29  ;;  %7798 = vrcp.f32 %v5857_v53 }
0x34e6   :  { %7800 = vpow2.f32 %v6560_v63 }
0x34e7   :  { %7802 = vrcp.f32 %v5858_v1 }
0x34e8   :  { %7804 = vrcp.f32 %v5856_v57 }
0x34e9   :  { %7806 = vpow2.f32 %v6562_v24 }
0x34ea   :  { %7808 = vpow2.f32 %v6561_v59 }
0x34eb   :  { %7810 = vpow2.f32 %v6563_v23 }
0x34ee   :  { %v10769_v34 = vpop.eup %7796 }
0x34ef   :  { %v10772_v42 = vpop.eup %7798  ;;  %v5887_v26 = vmul.f32 %v10769_v34, %v10558_v44 }
0x34f0   :  { %v7801_v18 = vpop.eup %7800  ;;  %v5889_v8 = vmul.f32 %v10772_v42, %v10565_v32 }
0x34f1   :  { %v10775_v28 = vpop.eup %7802  ;;  %v5859_v48 = vadd.f32 1.0, %v7801_v18 }
0x34f2   :  { %v10778_v45 = vpop.eup %7804  ;;  %v5890_v10 = vmul.f32 %v10775_v28, %v10573_v15 }
0x34f3   :  { %v7807_v25 = vpop.eup %7806  ;;  %7812 = vrcp.f32 %v5859_v48  ;;  %v5888_v14 = vmul.f32 %v10778_v45, %v10567_v21 }
0x34f4   :  { %v7809_v50 = vpop.eup %7808  ;;  %v5861_v56 = vadd.f32 1.0, %v7807_v25 }
0x34f5   :  { %v5860_v49 = vadd.f32 1.0, %v7809_v50  ;;  %v7811_v7 = vpop.eup %7810 }
0x34f6   :  { %7814 = vrcp.f32 %v5861_v56  ;;  %v5862_v17 = vadd.f32 1.0, %v7811_v7 }
0x34f7   :  { %7816 = vrcp.f32 %v5860_v49 }
0x34f8   :  { %7818 = vrcp.f32 %v5862_v17 }
0x34fd   :  { %v10785_v2 = vpop.eup %7812 }
0x34fe   :  { %v5891_v21 = vmul.f32 %v10785_v2, %v10581_v5 }
0x3500   :  { %v10788_v40 = vpop.eup %7814 }
0x3501   :  { %v10791_v9 = vpop.eup %7816  ;;  %v5893_v53 = vmul.f32 %v10788_v40, %v10591_v47 }
0x3502   :  { %v10797_v61 = vpop.eup %7818  ;;  %v5892_v15 = vmul.f32 %v10791_v9, %v10589_v43 }
0x3503   :  { %v5894_v5 = vmul.f32 %v10797_v61, %v10597_v38 }
0x3542   :  { %v5904_v4 = vpop.permute.xlu1 %5903 }
0x3543   :  { %v5927_v13 = vmul.f32 %v10769_v34, %v5904_v4 }
0x3544   :  { %v5906_v55 = vpop.permute.xlu0 %5905 }
0x3545   :  { %5943 = vrot.lane.b32.xlu0 %v5927_v13, %s7887_s20  ;;  %v5928_v46 = vmul.f32 %v10778_v45, %v5906_v55 }
0x3546   :  { %v5908_v62 = vpop.permute.xlu1 %5907 }
0x3547   :  { %v5929_v20 = vmul.f32 %v10772_v42, %v5908_v62  ;;  %5945 = vrot.lane.b32.xlu1 %v5928_v46, %s7887_s20 }
0x3549   :  { %5947 = vrot.lane.b32.xlu0 %v5929_v20, %s7887_s20 }
0x354a   :  { %v5910_v58 = vpop.permute.xlu1 %5909 }
0x354b   :  { %v5930_v11 = vmul.f32 %v10775_v28, %v5910_v58 }
0x354d   :  { %5949 = vrot.lane.b32.xlu1 %v5930_v11, %s7887_s20 }
0x3550   :  { %v5912_v16 = vpop.permute.xlu0 %5911 }
0x3551   :  { %v5931_v33 = vmul.f32 %v10785_v2, %v5912_v16 }
0x3552   :  { %v5914_v31 = vpop.permute.xlu1 %5913 }
0x3553   :  { %5951 = vrot.lane.b32.xlu0 %v5931_v33, %s7887_s20  ;;  %v5932_v52 = vmul.f32 %v10791_v9, %v5914_v31 }
0x3554   :  { %v5916_v30 = vpop.permute.xlu0 %5915 }
0x3555   :  { %v5933_v37 = vmul.f32 %v10788_v40, %v5916_v30  ;;  %5953 = vrot.lane.b32.xlu1 %v5932_v52, %s7887_s20  ;;  %v7869_v52 = vld [vmem:[%s10878_s7] ss:$0 sm:$0xff] }
0x3556   :  { %v5918_v35 = vpop.permute.xlu1 %5917 }
0x3557   :  { %5955 = vrot.lane.b32.xlu0 %v5933_v37, %s7887_s20  ;;  %v5934_v19 = vmul.f32 %v10797_v61, %v5918_v35 }
0x3559   :  { %5957 = vrot.lane.b32.xlu1 %v5934_v19, %s7887_s20 }
0x35b7   :  { %v5944_v27 = vpop.permute.xlu0 %5943 }
0x35b8   :  { %v5967_v54 = vadd.f32 %v5944_v27, %v5887_v26 }
0x35b9   :  { %v5946_v0 = vpop.permute.xlu1 %5945 }
0x35ba   :  { %7820 = vtanh.f32 %v5967_v54  ;;  %v5968_v6 = vadd.f32 %v5946_v0, %v5888_v14 }
0x35bb   :  { %v5948_v39 = vpop.permute.xlu0 %5947 }
0x35bc   :  { %v5969_v60 = vadd.f32 %v5948_v39, %v5889_v8 }
0x35be   :  { %7822 = vtanh.f32 %v5969_v60 }
0x35bf   :  { %7824 = vtanh.f32 %v5968_v6  ;;  %v5950_v22 = vpop.permute.xlu1 %5949 }
0x35c0   :  { %v5970_v44 = vadd.f32 %v5950_v22, %v5890_v10 }
0x35c2   :  { %7826 = vtanh.f32 %v5970_v44 }
0x35c4   :  { %v7821_v51 = vpop.eup %7820 }
0x35c5   :  { %5991 = vrot.lane.b32.xlu0 %v7821_v51, %s7887_s20  ;;  %v5952_v41 = vpop.permute.xlu0 %5951 }
0x35c6   :  { %v5971_v36 = vadd.f32 %v5952_v41, %v5891_v21 }
0x35c7   :  { %v5954_v63 = vpop.permute.xlu1 %5953 }
0x35c8   :  { %v7823_v12 = vpop.eup %7822  ;;  %7828 = vtanh.f32 %v5971_v36  ;;  %v5972_v57 = vadd.f32 %v5954_v63, %v5892_v15 }
0x35c9   :  { %5995 = vrot.lane.b32.xlu0 %v7823_v12, %s7887_s20  ;;  %v7825_v32 = vpop.eup %7824  ;;  %v5956_v1 = vpop.permute.xlu0 %5955 }
0x35ca   :  { %5993 = vrot.lane.b32.xlu1 %v7825_v32, %s7887_s20  ;;  %v5973_v24 = vadd.f32 %v5956_v1, %v5893_v53  ;;  %7830 = vtanh.f32 %v5972_v57 }
0x35cb   :  { %v5958_v59 = vpop.permute.xlu1 %5957 }
0x35cc   :  { %v7827_v29 = vpop.eup %7826  ;;  %7832 = vtanh.f32 %v5973_v24  ;;  %v5974_v23 = vadd.f32 %v5958_v59, %v5894_v5 }
0x35ce   :  { %5997 = vrot.lane.b32.xlu1 %v7827_v29, %s7887_s20  ;;  %7834 = vtanh.f32 %v5974_v23 }
0x35d2   :  { %v7829_v4 = vpop.eup %7828 }
0x35d3   :  { %5999 = vrot.lane.b32.xlu0 %v7829_v4, %s7887_s20 }
0x35d4   :  { %v7831_v43 = vpop.eup %7830 }
0x35d5   :  { %6001 = vrot.lane.b32.xlu1 %v7831_v43, %s7887_s20 }
0x35d6   :  { %v7833_v13 = vpop.eup %7832 }
0x35d7   :  { %6003 = vrot.lane.b32.xlu0 %v7833_v13, %s7887_s20 }
0x35d8   :  { %v7835_v47 = vpop.eup %7834 }
0x35d9   :  { %6005 = vrot.lane.b32.xlu1 %v7835_v47, %s7887_s20 }
0x3637   :  { %v5992_v18 = vpop.permute.xlu0 %5991 }
0x3638   :  { %v6015_v38 = vmul.f32 %v10769_v34, %v5992_v18 }
0x363b   :  { %v5996_v55 = vpop.permute.xlu0 %5995 }
0x363c   :  { %v5994_v62 = vpop.permute.xlu1 %5993  ;;  %v6017_v46 = vmul.f32 %v10772_v42, %v5996_v55 }
0x363d   :  { %v6016_v20 = vmul.f32 %v10778_v45, %v5994_v62 }
0x363f   :  { %v6023_v25 = vpack.c.bf16 %v6016_v20, %v6015_v38 }
0x3640   :  { %v5998_v48 = vpop.permute.xlu1 %5997 }
0x3641   :  { %6031 = vrot.lane.b32.xlu0 %v6023_v25, %s7888_s23  ;;  %v6018_v50 = vmul.f32 %v10775_v28, %v5998_v48 }
0x3643   :  { %v6024_v58 = vpack.c.bf16 %v6018_v50, %v6017_v46 }
0x3645   :  { %6033 = vrot.lane.b32.xlu1 %v6024_v58, %s7888_s23  ;;  %v6000_v11 = vpop.permute.xlu0 %5999 }
0x3646   :  { %v6019_v49 = vmul.f32 %v10785_v2, %v6000_v11 }
0x3647   :  { %v6002_v56 = vpop.permute.xlu1 %6001 }
0x3648   :  { %v6020_v34 = vmul.f32 %v10791_v9, %v6002_v56 }
0x3649   :  { %v6004_v7 = vpop.permute.xlu0 %6003 }
0x364a   :  { %v6025_v45 = vpack.c.bf16 %v6020_v34, %v6019_v49  ;;  %v6021_v16 = vmul.f32 %v10788_v40, %v6004_v7 }
0x364b   :  { %v6006_v17 = vpop.permute.xlu1 %6005 }
0x364c   :  { %v6022_v42 = vmul.f32 %v10797_v61, %v6006_v17  ;;  %6035 = vrot.lane.b32.xlu0 %v6025_v45, %s7888_s23 }
0x364e   :  { %v6026_v33 = vpack.c.bf16 %v6022_v42, %v6021_v16 }
0x3650   :  { %6037 = vrot.lane.b32.xlu1 %v6026_v33, %s7888_s23 }
0x36b3   :  { %v6032_v28 = vpop.permute.xlu0 %6031 }
0x36b4   :  { %6564 = vmatmul.mubr.msk.bf16.vlgmr.msra.gmra.mrb[120].mxu0 %vm75_vm0, %v6032_v28 }
0x36b5   :  { %6091 = vmatprep.mubr.bf16.mxu0 %v7886_v3 }
0x36b7   :  { %v6034_v2 = vpop.permute.xlu1 %6033 }
0x36bc   :  { %6565 = vmatmul.mubr.msk.bf16.gmra.mrb[124].mxu0 %vm75_vm0, %v6034_v2 }
0x36bd   :  { %6099 = vmatprep.mubr.bf16.mxu0 %v7886_v3 }
0x36be   :  { %v6036_v9 = vpop.permute.xlu0 %6035 }
0x36c2   :  { %v6038_v40 = vpop.permute.xlu1 %6037 }
0x36c4   :  { %6566 = vmatmul.mubr.msk.bf16.gmra.mrb[128].mxu0 %vm75_vm0, %v6036_v9 }
0x36c5   :  { %6107 = vmatprep.mubr.bf16.mxu0 %v7886_v3 }
0x36cc   :  { %6567 = vmatmul.mubr.msk.bf16.gmra.mrb[132].mxu0 %vm75_vm0, %v6038_v40 }
0x3787   :  { %v6085_v31 = vpop.f32.mrb[120].mxu0 }
0x3788   :  { %v6086_v30 = vpop.f32.mrb[121].mxu0 }
0x3789   :  { %v6116_v37 = vadd.f32 %v7869_v52, %v6086_v30  ;;  %v6088_v61 = vpop.f32.mrb[122].mxu0 }
0x378a   :  { %v6089_v35 = vpop.f32.mrb[123].mxu0 }
0x378b   :  { %6568 = vst [vmem:[%s10879_s8 + $0x1c0] sm:$0xff] %v6116_v37  ;;  %v6117_v19 = vadd.f32 %v7869_v52, %v6089_v35 }
0x378d   :  { %6569 = vst [vmem:[%s10879_s8 + $0x1c8] sm:$0xff] %v6117_v19 }
0x378f   :  { %v6093_v3 = vpop.f32.mrb[124].mxu0 }
0x3790   :  { %v6094_v26 = vpop.f32.mrb[125].mxu0 }
0x3791   :  { %v6118_v27 = vadd.f32 %v7869_v52, %v6094_v26  ;;  %v6096_v54 = vpop.f32.mrb[126].mxu0 }
0x3792   :  { %v6097_v8 = vpop.f32.mrb[127].mxu0 }
0x3793   :  { %6570 = vst [vmem:[%s10879_s8 + $0x1d0] sm:$0xff] %v6118_v27  ;;  %v6119_v39 = vadd.f32 %v7869_v52, %v6097_v8 }
0x3795   :  { %6571 = vst [vmem:[%s10879_s8 + $0x1d8] sm:$0xff] %v6119_v39 }
0x3797   :  { %v6101_v14 = vpop.f32.mrb[128].mxu0 }
0x3798   :  { %v6102_v60 = vpop.f32.mrb[129].mxu0 }
0x3799   :  { %v6120_v0 = vadd.f32 %v7869_v52, %v6102_v60  ;;  %v6104_v6 = vpop.f32.mrb[130].mxu0 }
0x379a   :  { %v6105_v10 = vpop.f32.mrb[131].mxu0 }
0x379b   :  { %6572 = vst [vmem:[%s10879_s8 + $0x1e0] sm:$0xff] %v6120_v0  ;;  %v6121_v22 = vadd.f32 %v7869_v52, %v6105_v10 }
0x379d   :  { %6573 = vst [vmem:[%s10879_s8 + $0x1e8] sm:$0xff] %v6121_v22 }
0x379f   :  { %v6109_v44 = vpop.f32.mrb[132].mxu0 }
0x37a0   :  { %v6110_v51 = vpop.f32.mrb[133].mxu0 }
0x37a1   :  { %v6122_v12 = vadd.f32 %v7869_v52, %v6110_v51  ;;  %v6112_v32 = vpop.f32.mrb[134].mxu0 }
0x37a2   :  { %v6113_v21 = vpop.f32.mrb[135].mxu0 }
0x37a3   :  { %6574 = vst [vmem:[%s10879_s8 + $0x1f0] sm:$0xff] %v6122_v12  ;;  %v6123_v41 = vadd.f32 %v7869_v52, %v6113_v21 }
0x37a5   :  { %6575 = vst [vmem:[%s10879_s8 + $0x1f8] sm:$0xff] %v6123_v41 }
0x37a6   :  { %6137 = vsyncpa [#allocation3], 1 }

</bundles_post_ra>
